<compile_context>
chip_gen: v7x
topology: tpu7x:2x2x1
jax: 0.10.0
libtpu: 0.0.40
codegen_flags: <defaults>
</compile_context>

<pallas_src>
import functools

import jax
import jax.numpy as jnp
from jax.experimental import pallas as pl
from jax.experimental.pallas import tpu as pltpu


_LRELU_SLOPE = 0.2
_IN_EPS = 1e-5


def _round_up(x, m):
    return (x + m - 1) // m * m


@functools.lru_cache(maxsize=None)
def _vmem_limit_bytes():
    """Per-generation scoped-VMEM budget (v7x: 64 MiB/TC, v5e/v6e: 128 MiB)."""
    try:
        cap = pltpu.get_tpu_info().vmem_capacity_bytes
        return min((cap * 3) // 4, 96 * 1024 * 1024)
    except Exception:  # conservative fallback: fits every generation
        return 48 * 1024 * 1024


def _single_buffered(block_shape, index_map):
    """Grid-invariant operand: no point double-buffering a constant block."""
    try:
        return pl.BlockSpec(block_shape, index_map, pipeline_mode=pl.Buffered(1))
    except TypeError:  # older BlockSpec without pipeline_mode
        return pl.BlockSpec(block_shape, index_map)


# ---------------------------------------------------------------------------
# Pallas kernels
# ---------------------------------------------------------------------------
def _conv_bias_act_kernel(p_ref, w_ref, b_ref, o_ref, *, leaky):
    """(TM, K) @ (K, Cout) + bias [+ LeakyReLU], f32 accumulation on the MXU."""
    acc = jnp.dot(p_ref[...], w_ref[...], preferred_element_type=jnp.float32)
    acc = acc + b_ref[...]
    if leaky:
        acc = jnp.where(acc >= 0, acc, _LRELU_SLOPE * acc)
    o_ref[...] = acc.astype(o_ref.dtype)


def _conv_act_kernel(p_ref, w_ref, o_ref, *, leaky):
    """Bias-free variant (final conv has bias=False)."""
    acc = jnp.dot(p_ref[...], w_ref[...], preferred_element_type=jnp.float32)
    if leaky:
        acc = jnp.where(acc >= 0, acc, _LRELU_SLOPE * acc)
    o_ref[...] = acc.astype(o_ref.dtype)


def _conv_in_lrelu_kernel(p_ref, w_ref, o_ref, *, samples, hw):
    """Fused conv + per-sample InstanceNorm(affine=False, eps=1e-5) + LReLU.

    p_ref: (samples*hw, K) bf16 — `samples` whole images merged into one M
    w_ref: (K, Cout) bf16       o_ref: (samples*hw, Cout) bf16

    The conv bias is intentionally omitted: InstanceNorm's mean subtraction
    cancels a per-channel constant exactly.
    """
    acc = jnp.dot(p_ref[...], w_ref[...], preferred_element_type=jnp.float32)
    for si in range(samples):                      # static unroll, per-sample stats
        x = acc[si * hw:(si + 1) * hw, :]          # (hw, Cout) f32
        mean = jnp.mean(x, axis=0, keepdims=True)
        xc = x - mean
        var = jnp.mean(xc * xc, axis=0, keepdims=True)   # biased variance
        y = xc * jax.lax.rsqrt(var + _IN_EPS)
        y = jnp.where(y >= 0, y, _LRELU_SLOPE * y)
        o_ref[si * hw:(si + 1) * hw, :] = y.astype(o_ref.dtype)


# ---------------------------------------------------------------------------
# pallas_call wrappers
# ---------------------------------------------------------------------------
def _pallas_conv_flat(patches, w, b, *, leaky, out_dtype, tm):
    """patches: (M, K) bf16 (M % tm == 0), w: (K, Cout) bf16, b: (1, Cout) f32|None."""
    M, K = patches.shape
    Cout = w.shape[1]
    in_specs = [pl.BlockSpec((tm, K), lambda g: (g, 0)),
                _single_buffered((K, Cout), lambda g: (0, 0))]
    operands = [patches, w]
    if b is not None:
        in_specs.append(_single_buffered((1, Cout), lambda g: (0, 0)))
        operands.append(b)
        kernel = functools.partial(_conv_bias_act_kernel, leaky=leaky)
        bias_bytes = b.size * 4
    else:
        kernel = functools.partial(_conv_act_kernel, leaky=leaky)
        bias_bytes = 0
    out_itemsize = jnp.dtype(out_dtype).itemsize
    flops = 2 * M * K * Cout + 2 * M * Cout
    bytes_accessed = (patches.size + w.size) * 2 + bias_bytes + M * Cout * out_itemsize
    return pl.pallas_call(
        kernel,
        out_shape=jax.ShapeDtypeStruct((M, Cout), out_dtype),
        grid_spec=pl.GridSpec(
            grid=(M // tm,),
            in_specs=in_specs,
            out_specs=pl.BlockSpec((tm, Cout), lambda g: (g, 0)),
        ),
        compiler_params=pltpu.CompilerParams(
            dimension_semantics=("parallel",),
            vmem_limit_bytes=_vmem_limit_bytes(),
        ),
        cost_estimate=pl.CostEstimate(
            flops=flops, transcendentals=0, bytes_accessed=bytes_accessed),
    )(*operands)


def _pallas_conv_norm(patches, w, *, hw, samples):
    """patches: (N*HW, K) bf16, w: (K, Cout) bf16 -> (N*HW, Cout) bf16.

    Each grid step processes `samples` whole images (per-sample InstanceNorm).
    """
    M, K = patches.shape
    Cout = w.shape[1]
    rows = samples * hw
    flops = 2 * M * K * Cout + 10 * M * Cout
    bytes_accessed = (patches.size + w.size) * 2 + M * Cout * 2
    return pl.pallas_call(
        functools.partial(_conv_in_lrelu_kernel, samples=samples, hw=hw),
        out_shape=jax.ShapeDtypeStruct((M, Cout), jnp.bfloat16),
        grid_spec=pl.GridSpec(
            grid=(M // rows,),
            in_specs=[
                pl.BlockSpec((rows, K), lambda g: (g, 0)),
                _single_buffered((K, Cout), lambda g: (0, 0)),
            ],
            out_specs=pl.BlockSpec((rows, Cout), lambda g: (g, 0)),
        ),
        compiler_params=pltpu.CompilerParams(
            dimension_semantics=("parallel",),
            vmem_limit_bytes=_vmem_limit_bytes(),
        ),
        cost_estimate=pl.CostEstimate(
            flops=flops, transcendentals=M * Cout, bytes_accessed=bytes_accessed),
    )(patches, w)


# ---------------------------------------------------------------------------
# JAX glue: im2col, weight layout, tile-size selection
# ---------------------------------------------------------------------------
def _im2col(x_nhwc, k, stride, pad_h, pad_w):
    """(N, H, W, C) -> (N, Ho*Wo, k*k*C), K-axis ordered (kh, kw, cin)."""
    x = jnp.pad(x_nhwc, ((0, 0), pad_h, pad_w, (0, 0)))
    N, H, W, C = x.shape
    Ho = (H - k) // stride + 1
    Wo = (W - k) // stride + 1
    cols = []
    for kh in range(k):
        for kw in range(k):
            cols.append(x[:, kh:kh + stride * Ho:stride,
                          kw:kw + stride * Wo:stride, :])
    p = jnp.stack(cols, axis=3)                       # (N, Ho, Wo, k*k, C)
    return p.reshape(N, Ho * Wo, k * k * C), (Ho, Wo)


def _to_matmul_weight(w_torch, k_pad=0, cout_pad=0):
    """(Cout, Cin, kh, kw) -> (K[+pad], Cout[+pad]) bf16 matching patch order."""
    Cout, Cin, k, _ = w_torch.shape
    w2 = jnp.transpose(w_torch, (2, 3, 1, 0)).reshape(k * k * Cin, Cout)
    if k_pad or cout_pad:
        w2 = jnp.pad(w2, ((0, k_pad), (0, cout_pad)))
    return w2.astype(jnp.bfloat16)


def _pick_sample_group(n, hw, k, cout, *, target_rows=512, max_samples=16):
    """Samples per grid step for the norm layers: a divisor of n whose
    (samples*hw, K) block is sublane-aligned and keeps the pipeline within
    half the VMEM budget (weights are single-buffered on top of that)."""
    budget = max(8 * 1024 * 1024, _vmem_limit_bytes() // 2)
    valid = [s for s in range(1, min(n, max_samples) + 1)
             if n % s == 0 and ((s * hw) % 8 == 0 or s == n)]
    if not valid:
        valid = [n]
    best = valid[0]
    for s in valid:
        rows = s * hw
        need = 2 * rows * (k + cout) * 2 + k * cout * 2   # dbl-buffered act IO + weight
        if need > budget:
            break
        best = s
        if rows >= target_rows:
            break
    return best


def _pick_flat_tile(m):
    return min(512, _round_up(m, 8))


# ---------------------------------------------------------------------------
# Layer wrappers
# ---------------------------------------------------------------------------
def conv_block(x_nhwc, w_torch, b, *, stride, pad_h, pad_w, norm, leaky=True):
    """Conv2d(k=4, PyTorch-layout weights) [+ InstanceNorm] + LeakyReLU."""
    Cout, Cin, k, _ = w_torch.shape
    N = x_nhwc.shape[0]
    patches, (Ho, Wo) = _im2col(x_nhwc, k, stride, pad_h, pad_w)
    HW = Ho * Wo
    k_raw = k * k * Cin
    k_pad = (-k_raw) % 128                              # lane-align contraction dim
    patches = patches.reshape(N * HW, k_raw)            # fold batch+spatial into M
    if k_pad:
        patches = jnp.pad(patches, ((0, 0), (0, k_pad)))
    patches = patches.astype(jnp.bfloat16)
    w2 = _to_matmul_weight(w_torch, k_pad=k_pad)

    if norm:
        # Bias dropped: InstanceNorm(affine=False) mean subtraction cancels it.
        s = _pick_sample_group(N, HW, k_raw + k_pad, Cout)
        y = _pallas_conv_norm(patches, w2, hw=HW, samples=s)
    else:
        b2 = (jnp.zeros((1, Cout), jnp.float32) if b is None
              else b.reshape(1, Cout).astype(jnp.float32))
        M0 = N * HW
        tm = _pick_flat_tile(M0)
        Mp = _round_up(M0, tm)
        if Mp != M0:
            patches = jnp.pad(patches, ((0, Mp - M0), (0, 0)))
        y = _pallas_conv_flat(patches, w2, b2, leaky=leaky,
                              out_dtype=jnp.bfloat16, tm=tm)[:M0]
    return y.reshape(N, Ho, Wo, Cout)


def final_conv_block(x_nhwc, w_torch, *, pad_h, pad_w):
    """ZeroPad2d((1,0,1,0)) + Conv2d(512, 1, k=4, padding=1, bias=False)."""
    Cout, Cin, k, _ = w_torch.shape                     # (1, 512, 4, 4)
    N = x_nhwc.shape[0]
    patches, (Ho, Wo) = _im2col(x_nhwc, k, 1, pad_h, pad_w)
    HW = Ho * Wo
    K = k * k * Cin                                     # 8192, already lane-aligned
    patches = patches.reshape(N * HW, K).astype(jnp.bfloat16)
    cout_pad = (-Cout) % 128                            # lane-dense output stores
    w2 = _to_matmul_weight(w_torch, cout_pad=cout_pad)
    M0 = N * HW
    tm = _pick_flat_tile(M0)
    Mp = _round_up(M0, tm)
    if Mp != M0:
        patches = jnp.pad(patches, ((0, Mp - M0), (0, 0)))
    y = _pallas_conv_flat(patches, w2, None, leaky=False,
                          out_dtype=jnp.float32, tm=tm)
    return y[:M0, :Cout].reshape(N, Ho, Wo, Cout)


# ---------------------------------------------------------------------------
# Discriminator forward
# ---------------------------------------------------------------------------
def discriminator_forward(params, img_A, img_B):
    # img_A, img_B: NCHW (PyTorch convention at the boundary).
    x = jnp.concatenate([img_A, img_B], axis=1)               # (N, 2*Cin, H, W)
    x = jnp.transpose(x, (0, 2, 3, 1)).astype(jnp.bfloat16)   # NHWC, bf16 compute

    # Block 1: Conv + LeakyReLU (no normalization).
    y = conv_block(x, params["w1"], params["b1"], stride=2,
                   pad_h=(1, 1), pad_w=(1, 1), norm=False)

    # Blocks 2-4: Conv + InstanceNorm + LeakyReLU.  The conv biases b2-b4 are
    # provably cancelled by InstanceNorm's mean subtraction and are skipped.
    for wn in ("w2", "w3", "w4"):
        y = conv_block(y, params[wn], None, stride=2,
                       pad_h=(1, 1), pad_w=(1, 1), norm=True)

    # ZeroPad2d((1,0,1,0)) then Conv2d(512,1,k4,padding=1,bias=False):
    # combined padding top/left = 1+1 = 2, bottom/right = 0+1 = 1.
    out = final_conv_block(y, params["w5"], pad_h=(2, 1), pad_w=(2, 1))
    return jnp.transpose(out, (0, 3, 1, 2)).astype(jnp.float32)  # (N, 1, Ho, Wo)


def init_params(key, in_channels=3):
    shapes = {
        "w1": (64, in_channels * 2, 4, 4), "b1": (64,),
        "w2": (128, 64, 4, 4),             "b2": (128,),
        "w3": (256, 128, 4, 4),            "b3": (256,),
        "w4": (512, 256, 4, 4),            "b4": (512,),
        "w5": (1, 512, 4, 4),              # final conv, bias=False
    }
    params = {}
    for name, shp in shapes.items():
        key, sub = jax.random.split(key)
        params[name] = jax.random.normal(sub, shp, jnp.float32) * 0.05
    return params


if __name__ == "__main__":
    key = jax.random.PRNGKey(0)
    kA, kB, kP = jax.random.split(key, 3)

    in_channels, N, H, W = 3, 2, 32, 32
    img_A = jax.random.normal(kA, (N, in_channels, H, W), jnp.float32)
    img_B = jax.random.normal(kB, (N, in_channels, H, W), jnp.float32)
    params = init_params(kP, in_channels)

    out = jax.jit(discriminator_forward)(params, img_A, img_B)
    out = jax.block_until_ready(out)

    # 32 -> 16 -> 8 -> 4 -> 2 (4 stride-2 convs), final conv keeps spatial size.
    assert out.shape == (N, 1, 2, 2), out.shape
    assert out.dtype == jnp.float32
    print("KERNEL_OK")
</pallas_src>

<mosaic_0001>
module attributes {stable_mosaic.version = 11 : i64} {
  func.func @_conv_bias_act_kernel(%arg0: i32, %arg1: memref<512x128xbf16, #tpu.memory_space<vmem>>, %arg2: memref<128x64xbf16, #tpu.memory_space<vmem>>, %arg3: memref<1x64xf32, #tpu.memory_space<vmem>>, %arg4: memref<512x64xbf16, #tpu.memory_space<vmem>>) attributes {dimension_semantics = [#tpu.dimension_semantics<parallel>], iteration_bounds = array<i64: 1>, scalar_prefetch = 0 : i64, scratch_operands = 0 : i64, tpu.core_type = #tpu.core_type<tc>, window_params = [{transform_indices = @transform_0, window_bounds = array<i64: 512, 128>}, {pipeline_mode = #tpu.pipeline_mode<synchronous>, transform_indices = @transform_1, window_bounds = array<i64: 128, 64>}, {pipeline_mode = #tpu.pipeline_mode<synchronous>, transform_indices = @transform_2, window_bounds = array<i64: 1, 64>}, {transform_indices = @transform_3, window_bounds = array<i64: 512, 64>}]} {
    %c0 = arith.constant 0 : index
    %c0_0 = arith.constant 0 : index
    %0 = vector.load %arg1[%c0, %c0_0] : memref<512x128xbf16, #tpu.memory_space<vmem>>, vector<512x128xbf16>
    %c0_1 = arith.constant 0 : index
    %c0_2 = arith.constant 0 : index
    %1 = vector.load %arg2[%c0_1, %c0_2] : memref<128x64xbf16, #tpu.memory_space<vmem>>, vector<128x64xbf16>
    %cst = arith.constant dense<0.000000e+00> : vector<512x64xf32>
    %2 = tpu.matmul %0, %1, %cst {dimension_numbers = #tpu.dot_dimension_numbers<[1], [0], [0], [1], [0, 0, 1, 1], [], []>} : vector<512x128xbf16>, vector<128x64xbf16>, vector<512x64xf32> -> vector<512x64xf32>
    %c0_3 = arith.constant 0 : index
    %c0_4 = arith.constant 0 : index
    %3 = vector.load %arg3[%c0_3, %c0_4] : memref<1x64xf32, #tpu.memory_space<vmem>>, vector<1x64xf32>
    %4 = vector.broadcast %3 : vector<1x64xf32> to vector<512x64xf32>
    %5 = arith.addf %2, %4 : vector<512x64xf32>
    %cst_5 = arith.constant 0.000000e+00 : f32
    %6 = vector.broadcast %cst_5 : f32 to vector<512x64xf32>
    %7 = arith.cmpf oge, %5, %6 : vector<512x64xf32>
    %cst_6 = arith.constant 2.000000e-01 : f32
    %8 = vector.broadcast %cst_6 : f32 to vector<512x64xf32>
    %9 = arith.mulf %8, %5 : vector<512x64xf32>
    %10 = arith.select %7, %5, %9 : vector<512x64xi1>, vector<512x64xf32>
    %11 = arith.truncf %10 : vector<512x64xf32> to vector<512x64xbf16>
    %c0_7 = arith.constant 0 : index
    %c0_8 = arith.constant 0 : index
    %12 = vector.load %arg4[%c0_7, %c0_8] : memref<512x64xbf16, #tpu.memory_space<vmem>>, vector<512x64xbf16>
    tpu.vector_store %arg4[%c0_7, %c0_8], %11 {strides = array<i32>} : memref<512x64xbf16, #tpu.memory_space<vmem>>, vector<512x64xbf16>,
    return
  }
  func.func @transform_0(%arg0: i32) -> (i32, i32) {
    %c0_i32 = arith.constant 0 : i32
    %c0_i32_0 = arith.constant 0 : i32
    return %arg0, %c0_i32 : i32, i32
  }
  func.func @transform_1(%arg0: i32) -> (i32, i32) {
    %c0_i32 = arith.constant 0 : i32
    %c0_i32_0 = arith.constant 0 : i32
    %c0_i32_1 = arith.constant 0 : i32
    return %c0_i32, %c0_i32_0 : i32, i32
  }
  func.func @transform_2(%arg0: i32) -> (i32, i32) {
    %c0_i32 = arith.constant 0 : i32
    %c0_i32_0 = arith.constant 0 : i32
    %c0_i32_1 = arith.constant 0 : i32
    return %c0_i32, %c0_i32_0 : i32, i32
  }
  func.func @transform_3(%arg0: i32) -> (i32, i32) {
    %c0_i32 = arith.constant 0 : i32
    %c0_i32_0 = arith.constant 0 : i32
    return %arg0, %c0_i32 : i32, i32
  }
}

module attributes {stable_mosaic.version = 11 : i64} {
  func.func @_conv_in_lrelu_kernel(%arg0: i32, %arg1: memref<128x1024xbf16, #tpu.memory_space<vmem>>, %arg2: memref<1024x128xbf16, #tpu.memory_space<vmem>>, %arg3: memref<128x128xbf16, #tpu.memory_space<vmem>>) attributes {dimension_semantics = [#tpu.dimension_semantics<parallel>], iteration_bounds = array<i64: 1>, scalar_prefetch = 0 : i64, scratch_operands = 0 : i64, tpu.core_type = #tpu.core_type<tc>, window_params = [{transform_indices = @transform_0, window_bounds = array<i64: 128, 1024>}, {pipeline_mode = #tpu.pipeline_mode<synchronous>, transform_indices = @transform_1, window_bounds = array<i64: 1024, 128>}, {transform_indices = @transform_2, window_bounds = array<i64: 128, 128>}]} {
    %c0 = arith.constant 0 : index
    %c0_0 = arith.constant 0 : index
    %0 = vector.load %arg1[%c0, %c0_0] : memref<128x1024xbf16, #tpu.memory_space<vmem>>, vector<128x1024xbf16>
    %c0_1 = arith.constant 0 : index
    %c0_2 = arith.constant 0 : index
    %1 = vector.load %arg2[%c0_1, %c0_2] : memref<1024x128xbf16, #tpu.memory_space<vmem>>, vector<1024x128xbf16>
    %cst = arith.constant dense<0.000000e+00> : vector<128x128xf32>
    %2 = tpu.matmul %0, %1, %cst {dimension_numbers = #tpu.dot_dimension_numbers<[1], [0], [0], [1], [0, 0, 1, 1], [], []>} : vector<128x1024xbf16>, vector<1024x128xbf16>, vector<128x128xf32> -> vector<128x128xf32>
    %3 = vector.extract_strided_slice %2 {offsets = [0, 0], sizes = [64, 128], strides = [1, 1]} : vector<128x128xf32> to vector<64x128xf32>
    %cst_3 = arith.constant dense<0.000000e+00> : vector<128xf32>
    %4 = vector.multi_reduction <add>, %3, %cst_3 [0] : vector<64x128xf32> to vector<128xf32>
    %5 = vector.shape_cast %4 : vector<128xf32> to vector<1x128xf32>
    %cst_4 = arith.constant 6.400000e+01 : f32
    %6 = vector.broadcast %cst_4 : f32 to vector<1x128xf32>
    %7 = arith.divf %5, %6 : vector<1x128xf32>
    %8 = vector.broadcast %7 : vector<1x128xf32> to vector<64x128xf32>
    %9 = arith.subf %3, %8 : vector<64x128xf32>
    %10 = arith.mulf %9, %9 : vector<64x128xf32>
    %cst_5 = arith.constant dense<0.000000e+00> : vector<128xf32>
    %11 = vector.multi_reduction <add>, %10, %cst_5 [0] : vector<64x128xf32> to vector<128xf32>
    %12 = vector.shape_cast %11 : vector<128xf32> to vector<1x128xf32>
    %cst_6 = arith.constant 6.400000e+01 : f32
    %13 = vector.broadcast %cst_6 : f32 to vector<1x128xf32>
    %14 = arith.divf %12, %13 : vector<1x128xf32>
    %cst_7 = arith.constant 9.99999974E-6 : f32
    %15 = vector.broadcast %cst_7 : f32 to vector<1x128xf32>
    %16 = arith.addf %14, %15 : vector<1x128xf32>
    %17 = math.rsqrt %16 : vector<1x128xf32>
    %18 = vector.broadcast %17 : vector<1x128xf32> to vector<64x128xf32>
    %19 = arith.mulf %9, %18 : vector<64x128xf32>
    %cst_8 = arith.constant 0.000000e+00 : f32
    %20 = vector.broadcast %cst_8 : f32 to vector<64x128xf32>
    %21 = arith.cmpf oge, %19, %20 : vector<64x128xf32>
    %cst_9 = arith.constant 2.000000e-01 : f32
    %22 = vector.broadcast %cst_9 : f32 to vector<64x128xf32>
    %23 = arith.mulf %22, %19 : vector<64x128xf32>
    %24 = arith.select %21, %19, %23 : vector<64x128xi1>, vector<64x128xf32>
    %25 = arith.truncf %24 : vector<64x128xf32> to vector<64x128xbf16>
    %c0_10 = arith.constant 0 : index
    %c0_11 = arith.constant 0 : index
    %26 = vector.load %arg3[%c0_10, %c0_11] : memref<128x128xbf16, #tpu.memory_space<vmem>>, vector<64x128xbf16>
    tpu.vector_store %arg3[%c0_10, %c0_11], %25 {strides = array<i32>} : memref<128x128xbf16, #tpu.memory_space<vmem>>, vector<64x128xbf16>,
    %27 = vector.extract_strided_slice %2 {offsets = [64, 0], sizes = [64, 128], strides = [1, 1]} : vector<128x128xf32> to vector<64x128xf32>
    %cst_12 = arith.constant dense<0.000000e+00> : vector<128xf32>
    %28 = vector.multi_reduction <add>, %27, %cst_12 [0] : vector<64x128xf32> to vector<128xf32>
    %29 = vector.shape_cast %28 : vector<128xf32> to vector<1x128xf32>
    %cst_13 = arith.constant 6.400000e+01 : f32
    %30 = vector.broadcast %cst_13 : f32 to vector<1x128xf32>
    %31 = arith.divf %29, %30 : vector<1x128xf32>
    %32 = vector.broadcast %31 : vector<1x128xf32> to vector<64x128xf32>
    %33 = arith.subf %27, %32 : vector<64x128xf32>
    %34 = arith.mulf %33, %33 : vector<64x128xf32>
    %cst_14 = arith.constant dense<0.000000e+00> : vector<128xf32>
    %35 = vector.multi_reduction <add>, %34, %cst_14 [0] : vector<64x128xf32> to vector<128xf32>
    %36 = vector.shape_cast %35 : vector<128xf32> to vector<1x128xf32>
    %cst_15 = arith.constant 6.400000e+01 : f32
    %37 = vector.broadcast %cst_15 : f32 to vector<1x128xf32>
    %38 = arith.divf %36, %37 : vector<1x128xf32>
    %cst_16 = arith.constant 9.99999974E-6 : f32
    %39 = vector.broadcast %cst_16 : f32 to vector<1x128xf32>
    %40 = arith.addf %38, %39 : vector<1x128xf32>
    %41 = math.rsqrt %40 : vector<1x128xf32>
    %42 = vector.broadcast %41 : vector<1x128xf32> to vector<64x128xf32>
    %43 = arith.mulf %33, %42 : vector<64x128xf32>
    %cst_17 = arith.constant 0.000000e+00 : f32
    %44 = vector.broadcast %cst_17 : f32 to vector<64x128xf32>
    %45 = arith.cmpf oge, %43, %44 : vector<64x128xf32>
    %cst_18 = arith.constant 2.000000e-01 : f32
    %46 = vector.broadcast %cst_18 : f32 to vector<64x128xf32>
    %47 = arith.mulf %46, %43 : vector<64x128xf32>
    %48 = arith.select %45, %43, %47 : vector<64x128xi1>, vector<64x128xf32>
    %49 = arith.truncf %48 : vector<64x128xf32> to vector<64x128xbf16>
    %c64 = arith.constant 64 : index
    %c0_19 = arith.constant 0 : index
    %50 = vector.load %arg3[%c64, %c0_19] : memref<128x128xbf16, #tpu.memory_space<vmem>>, vector<64x128xbf16>
    tpu.vector_store %arg3[%c64, %c0_19], %49 {strides = array<i32>} : memref<128x128xbf16, #tpu.memory_space<vmem>>, vector<64x128xbf16>,
    return
  }
  func.func @transform_0(%arg0: i32) -> (i32, i32) {
    %c0_i32 = arith.constant 0 : i32
    %c0_i32_0 = arith.constant 0 : i32
    return %arg0, %c0_i32 : i32, i32
  }
  func.func @transform_1(%arg0: i32) -> (i32, i32) {
    %c0_i32 = arith.constant 0 : i32
    %c0_i32_0 = arith.constant 0 : i32
    %c0_i32_1 = arith.constant 0 : i32
    return %c0_i32, %c0_i32_0 : i32, i32
  }
  func.func @transform_2(%arg0: i32) -> (i32, i32) {
    %c0_i32 = arith.constant 0 : i32
    %c0_i32_0 = arith.constant 0 : i32
    return %arg0, %c0_i32 : i32, i32
  }
}

module attributes {stable_mosaic.version = 11 : i64} {
  func.func @_conv_in_lrelu_kernel(%arg0: i32, %arg1: memref<32x2048xbf16, #tpu.memory_space<vmem>>, %arg2: memref<2048x256xbf16, #tpu.memory_space<vmem>>, %arg3: memref<32x256xbf16, #tpu.memory_space<vmem>>) attributes {dimension_semantics = [#tpu.dimension_semantics<parallel>], iteration_bounds = array<i64: 1>, scalar_prefetch = 0 : i64, scratch_operands = 0 : i64, tpu.core_type = #tpu.core_type<tc>, window_params = [{transform_indices = @transform_0, window_bounds = array<i64: 32, 2048>}, {pipeline_mode = #tpu.pipeline_mode<synchronous>, transform_indices = @transform_1, window_bounds = array<i64: 2048, 256>}, {transform_indices = @transform_2, window_bounds = array<i64: 32, 256>}]} {
    %c0 = arith.constant 0 : index
    %c0_0 = arith.constant 0 : index
    %0 = vector.load %arg1[%c0, %c0_0] : memref<32x2048xbf16, #tpu.memory_space<vmem>>, vector<32x2048xbf16>
    %c0_1 = arith.constant 0 : index
    %c0_2 = arith.constant 0 : index
    %1 = vector.load %arg2[%c0_1, %c0_2] : memref<2048x256xbf16, #tpu.memory_space<vmem>>, vector<2048x256xbf16>
    %cst = arith.constant dense<0.000000e+00> : vector<32x256xf32>
    %2 = tpu.matmul %0, %1, %cst {dimension_numbers = #tpu.dot_dimension_numbers<[1], [0], [0], [1], [0, 0, 1, 1], [], []>} : vector<32x2048xbf16>, vector<2048x256xbf16>, vector<32x256xf32> -> vector<32x256xf32>
    %3 = vector.extract_strided_slice %2 {offsets = [0, 0], sizes = [16, 256], strides = [1, 1]} : vector<32x256xf32> to vector<16x256xf32>
    %cst_3 = arith.constant dense<0.000000e+00> : vector<256xf32>
    %4 = vector.multi_reduction <add>, %3, %cst_3 [0] : vector<16x256xf32> to vector<256xf32>
    %5 = vector.shape_cast %4 : vector<256xf32> to vector<1x256xf32>
    %cst_4 = arith.constant 1.600000e+01 : f32
    %6 = vector.broadcast %cst_4 : f32 to vector<1x256xf32>
    %7 = arith.divf %5, %6 : vector<1x256xf32>
    %8 = vector.broadcast %7 : vector<1x256xf32> to vector<16x256xf32>
    %9 = arith.subf %3, %8 : vector<16x256xf32>
    %10 = arith.mulf %9, %9 : vector<16x256xf32>
    %cst_5 = arith.constant dense<0.000000e+00> : vector<256xf32>
    %11 = vector.multi_reduction <add>, %10, %cst_5 [0] : vector<16x256xf32> to vector<256xf32>
    %12 = vector.shape_cast %11 : vector<256xf32> to vector<1x256xf32>
    %cst_6 = arith.constant 1.600000e+01 : f32
    %13 = vector.broadcast %cst_6 : f32 to vector<1x256xf32>
    %14 = arith.divf %12, %13 : vector<1x256xf32>
    %cst_7 = arith.constant 9.99999974E-6 : f32
    %15 = vector.broadcast %cst_7 : f32 to vector<1x256xf32>
    %16 = arith.addf %14, %15 : vector<1x256xf32>
    %17 = math.rsqrt %16 : vector<1x256xf32>
    %18 = vector.broadcast %17 : vector<1x256xf32> to vector<16x256xf32>
    %19 = arith.mulf %9, %18 : vector<16x256xf32>
    %cst_8 = arith.constant 0.000000e+00 : f32
    %20 = vector.broadcast %cst_8 : f32 to vector<16x256xf32>
    %21 = arith.cmpf oge, %19, %20 : vector<16x256xf32>
    %cst_9 = arith.constant 2.000000e-01 : f32
    %22 = vector.broadcast %cst_9 : f32 to vector<16x256xf32>
    %23 = arith.mulf %22, %19 : vector<16x256xf32>
    %24 = arith.select %21, %19, %23 : vector<16x256xi1>, vector<16x256xf32>
    %25 = arith.truncf %24 : vector<16x256xf32> to vector<16x256xbf16>
    %c0_10 = arith.constant 0 : index
    %c0_11 = arith.constant 0 : index
    %26 = vector.load %arg3[%c0_10, %c0_11] : memref<32x256xbf16, #tpu.memory_space<vmem>>, vector<16x256xbf16>
    tpu.vector_store %arg3[%c0_10, %c0_11], %25 {strides = array<i32>} : memref<32x256xbf16, #tpu.memory_space<vmem>>, vector<16x256xbf16>,
    %27 = vector.extract_strided_slice %2 {offsets = [16, 0], sizes = [16, 256], strides = [1, 1]} : vector<32x256xf32> to vector<16x256xf32>
    %cst_12 = arith.constant dense<0.000000e+00> : vector<256xf32>
    %28 = vector.multi_reduction <add>, %27, %cst_12 [0] : vector<16x256xf32> to vector<256xf32>
    %29 = vector.shape_cast %28 : vector<256xf32> to vector<1x256xf32>
    %cst_13 = arith.constant 1.600000e+01 : f32
    %30 = vector.broadcast %cst_13 : f32 to vector<1x256xf32>
    %31 = arith.divf %29, %30 : vector<1x256xf32>
    %32 = vector.broadcast %31 : vector<1x256xf32> to vector<16x256xf32>
    %33 = arith.subf %27, %32 : vector<16x256xf32>
    %34 = arith.mulf %33, %33 : vector<16x256xf32>
    %cst_14 = arith.constant dense<0.000000e+00> : vector<256xf32>
    %35 = vector.multi_reduction <add>, %34, %cst_14 [0] : vector<16x256xf32> to vector<256xf32>
    %36 = vector.shape_cast %35 : vector<256xf32> to vector<1x256xf32>
    %cst_15 = arith.constant 1.600000e+01 : f32
    %37 = vector.broadcast %cst_15 : f32 to vector<1x256xf32>
    %38 = arith.divf %36, %37 : vector<1x256xf32>
    %cst_16 = arith.constant 9.99999974E-6 : f32
    %39 = vector.broadcast %cst_16 : f32 to vector<1x256xf32>
    %40 = arith.addf %38, %39 : vector<1x256xf32>
    %41 = math.rsqrt %40 : vector<1x256xf32>
    %42 = vector.broadcast %41 : vector<1x256xf32> to vector<16x256xf32>
    %43 = arith.mulf %33, %42 : vector<16x256xf32>
    %cst_17 = arith.constant 0.000000e+00 : f32
    %44 = vector.broadcast %cst_17 : f32 to vector<16x256xf32>
    %45 = arith.cmpf oge, %43, %44 : vector<16x256xf32>
    %cst_18 = arith.constant 2.000000e-01 : f32
    %46 = vector.broadcast %cst_18 : f32 to vector<16x256xf32>
    %47 = arith.mulf %46, %43 : vector<16x256xf32>
    %48 = arith.select %45, %43, %47 : vector<16x256xi1>, vector<16x256xf32>
    %49 = arith.truncf %48 : vector<16x256xf32> to vector<16x256xbf16>
    %c16 = arith.constant 16 : index
    %c0_19 = arith.constant 0 : index
    %50 = vector.load %arg3[%c16, %c0_19] : memref<32x256xbf16, #tpu.memory_space<vmem>>, vector<16x256xbf16>
    tpu.vector_store %arg3[%c16, %c0_19], %49 {strides = array<i32>} : memref<32x256xbf16, #tpu.memory_space<vmem>>, vector<16x256xbf16>,
    return
  }
  func.func @transform_0(%arg0: i32) -> (i32, i32) {
    %c0_i32 = arith.constant 0 : i32
    %c0_i32_0 = arith.constant 0 : i32
    return %arg0, %c0_i32 : i32, i32
  }
  func.func @transform_1(%arg0: i32) -> (i32, i32) {
    %c0_i32 = arith.constant 0 : i32
    %c0_i32_0 = arith.constant 0 : i32
    %c0_i32_1 = arith.constant 0 : i32
    return %c0_i32, %c0_i32_0 : i32, i32
  }
  func.func @transform_2(%arg0: i32) -> (i32, i32) {
    %c0_i32 = arith.constant 0 : i32
    %c0_i32_0 = arith.constant 0 : i32
    return %arg0, %c0_i32 : i32, i32
  }
}

module attributes {stable_mosaic.version = 11 : i64} {
  func.func @_conv_in_lrelu_kernel(%arg0: i32, %arg1: memref<8x4096xbf16, #tpu.memory_space<vmem>>, %arg2: memref<4096x512xbf16, #tpu.memory_space<vmem>>, %arg3: memref<8x512xbf16, #tpu.memory_space<vmem>>) attributes {dimension_semantics = [#tpu.dimension_semantics<parallel>], iteration_bounds = array<i64: 1>, scalar_prefetch = 0 : i64, scratch_operands = 0 : i64, tpu.core_type = #tpu.core_type<tc>, window_params = [{transform_indices = @transform_0, window_bounds = array<i64: 8, 4096>}, {pipeline_mode = #tpu.pipeline_mode<synchronous>, transform_indices = @transform_1, window_bounds = array<i64: 4096, 512>}, {transform_indices = @transform_2, window_bounds = array<i64: 8, 512>}]} {
    %c0 = arith.constant 0 : index
    %c0_0 = arith.constant 0 : index
    %0 = vector.load %arg1[%c0, %c0_0] : memref<8x4096xbf16, #tpu.memory_space<vmem>>, vector<8x4096xbf16>
    %c0_1 = arith.constant 0 : index
    %c0_2 = arith.constant 0 : index
    %1 = vector.load %arg2[%c0_1, %c0_2] : memref<4096x512xbf16, #tpu.memory_space<vmem>>, vector<4096x512xbf16>
    %cst = arith.constant dense<0.000000e+00> : vector<8x512xf32>
    %2 = tpu.matmul %0, %1, %cst {dimension_numbers = #tpu.dot_dimension_numbers<[1], [0], [0], [1], [0, 0, 1, 1], [], []>} : vector<8x4096xbf16>, vector<4096x512xbf16>, vector<8x512xf32> -> vector<8x512xf32>
    %3 = vector.extract_strided_slice %2 {offsets = [0, 0], sizes = [4, 512], strides = [1, 1]} : vector<8x512xf32> to vector<4x512xf32>
    %cst_3 = arith.constant dense<0.000000e+00> : vector<512xf32>
    %4 = vector.multi_reduction <add>, %3, %cst_3 [0] : vector<4x512xf32> to vector<512xf32>
    %5 = vector.shape_cast %4 : vector<512xf32> to vector<1x512xf32>
    %cst_4 = arith.constant 4.000000e+00 : f32
    %6 = vector.broadcast %cst_4 : f32 to vector<1x512xf32>
    %7 = arith.divf %5, %6 : vector<1x512xf32>
    %8 = vector.broadcast %7 : vector<1x512xf32> to vector<4x512xf32>
    %9 = arith.subf %3, %8 : vector<4x512xf32>
    %10 = arith.mulf %9, %9 : vector<4x512xf32>
    %cst_5 = arith.constant dense<0.000000e+00> : vector<512xf32>
    %11 = vector.multi_reduction <add>, %10, %cst_5 [0] : vector<4x512xf32> to vector<512xf32>
    %12 = vector.shape_cast %11 : vector<512xf32> to vector<1x512xf32>
    %cst_6 = arith.constant 4.000000e+00 : f32
    %13 = vector.broadcast %cst_6 : f32 to vector<1x512xf32>
    %14 = arith.divf %12, %13 : vector<1x512xf32>
    %cst_7 = arith.constant 9.99999974E-6 : f32
    %15 = vector.broadcast %cst_7 : f32 to vector<1x512xf32>
    %16 = arith.addf %14, %15 : vector<1x512xf32>
    %17 = math.rsqrt %16 : vector<1x512xf32>
    %18 = vector.broadcast %17 : vector<1x512xf32> to vector<4x512xf32>
    %19 = arith.mulf %9, %18 : vector<4x512xf32>
    %cst_8 = arith.constant 0.000000e+00 : f32
    %20 = vector.broadcast %cst_8 : f32 to vector<4x512xf32>
    %21 = arith.cmpf oge, %19, %20 : vector<4x512xf32>
    %cst_9 = arith.constant 2.000000e-01 : f32
    %22 = vector.broadcast %cst_9 : f32 to vector<4x512xf32>
    %23 = arith.mulf %22, %19 : vector<4x512xf32>
    %24 = arith.select %21, %19, %23 : vector<4x512xi1>, vector<4x512xf32>
    %25 = arith.truncf %24 : vector<4x512xf32> to vector<4x512xbf16>
    %c0_10 = arith.constant 0 : index
    %c0_11 = arith.constant 0 : index
    %26 = vector.load %arg3[%c0_10, %c0_11] : memref<8x512xbf16, #tpu.memory_space<vmem>>, vector<4x512xbf16>
    tpu.vector_store %arg3[%c0_10, %c0_11], %25 {strides = array<i32>} : memref<8x512xbf16, #tpu.memory_space<vmem>>, vector<4x512xbf16>,
    %27 = vector.extract_strided_slice %2 {offsets = [4, 0], sizes = [4, 512], strides = [1, 1]} : vector<8x512xf32> to vector<4x512xf32>
    %cst_12 = arith.constant dense<0.000000e+00> : vector<512xf32>
    %28 = vector.multi_reduction <add>, %27, %cst_12 [0] : vector<4x512xf32> to vector<512xf32>
    %29 = vector.shape_cast %28 : vector<512xf32> to vector<1x512xf32>
    %cst_13 = arith.constant 4.000000e+00 : f32
    %30 = vector.broadcast %cst_13 : f32 to vector<1x512xf32>
    %31 = arith.divf %29, %30 : vector<1x512xf32>
    %32 = vector.broadcast %31 : vector<1x512xf32> to vector<4x512xf32>
    %33 = arith.subf %27, %32 : vector<4x512xf32>
    %34 = arith.mulf %33, %33 : vector<4x512xf32>
    %cst_14 = arith.constant dense<0.000000e+00> : vector<512xf32>
    %35 = vector.multi_reduction <add>, %34, %cst_14 [0] : vector<4x512xf32> to vector<512xf32>
    %36 = vector.shape_cast %35 : vector<512xf32> to vector<1x512xf32>
    %cst_15 = arith.constant 4.000000e+00 : f32
    %37 = vector.broadcast %cst_15 : f32 to vector<1x512xf32>
    %38 = arith.divf %36, %37 : vector<1x512xf32>
    %cst_16 = arith.constant 9.99999974E-6 : f32
    %39 = vector.broadcast %cst_16 : f32 to vector<1x512xf32>
    %40 = arith.addf %38, %39 : vector<1x512xf32>
    %41 = math.rsqrt %40 : vector<1x512xf32>
    %42 = vector.broadcast %41 : vector<1x512xf32> to vector<4x512xf32>
    %43 = arith.mulf %33, %42 : vector<4x512xf32>
    %cst_17 = arith.constant 0.000000e+00 : f32
    %44 = vector.broadcast %cst_17 : f32 to vector<4x512xf32>
    %45 = arith.cmpf oge, %43, %44 : vector<4x512xf32>
    %cst_18 = arith.constant 2.000000e-01 : f32
    %46 = vector.broadcast %cst_18 : f32 to vector<4x512xf32>
    %47 = arith.mulf %46, %43 : vector<4x512xf32>
    %48 = arith.select %45, %43, %47 : vector<4x512xi1>, vector<4x512xf32>
    %49 = arith.truncf %48 : vector<4x512xf32> to vector<4x512xbf16>
    %c4 = arith.constant 4 : index
    %c0_19 = arith.constant 0 : index
    %50 = vector.load %arg3[%c4, %c0_19] : memref<8x512xbf16, #tpu.memory_space<vmem>>, vector<4x512xbf16>
    tpu.vector_store %arg3[%c4, %c0_19], %49 {strides = array<i32>} : memref<8x512xbf16, #tpu.memory_space<vmem>>, vector<4x512xbf16>,
    return
  }
  func.func @transform_0(%arg0: i32) -> (i32, i32) {
    %c0_i32 = arith.constant 0 : i32
    %c0_i32_0 = arith.constant 0 : i32
    return %arg0, %c0_i32 : i32, i32
  }
  func.func @transform_1(%arg0: i32) -> (i32, i32) {
    %c0_i32 = arith.constant 0 : i32
    %c0_i32_0 = arith.constant 0 : i32
    %c0_i32_1 = arith.constant 0 : i32
    return %c0_i32, %c0_i32_0 : i32, i32
  }
  func.func @transform_2(%arg0: i32) -> (i32, i32) {
    %c0_i32 = arith.constant 0 : i32
    %c0_i32_0 = arith.constant 0 : i32
    return %arg0, %c0_i32 : i32, i32
  }
}

module attributes {stable_mosaic.version = 11 : i64} {
  func.func @_conv_act_kernel(%arg0: i32, %arg1: memref<8x8192xbf16, #tpu.memory_space<vmem>>, %arg2: memref<8192x128xbf16, #tpu.memory_space<vmem>>, %arg3: memref<8x128xf32, #tpu.memory_space<vmem>>) attributes {dimension_semantics = [#tpu.dimension_semantics<parallel>], iteration_bounds = array<i64: 1>, scalar_prefetch = 0 : i64, scratch_operands = 0 : i64, tpu.core_type = #tpu.core_type<tc>, window_params = [{transform_indices = @transform_0, window_bounds = array<i64: 8, 8192>}, {pipeline_mode = #tpu.pipeline_mode<synchronous>, transform_indices = @transform_1, window_bounds = array<i64: 8192, 128>}, {transform_indices = @transform_2, window_bounds = array<i64: 8, 128>}]} {
    %c0 = arith.constant 0 : index
    %c0_0 = arith.constant 0 : index
    %0 = vector.load %arg1[%c0, %c0_0] : memref<8x8192xbf16, #tpu.memory_space<vmem>>, vector<8x8192xbf16>
    %c0_1 = arith.constant 0 : index
    %c0_2 = arith.constant 0 : index
    %1 = vector.load %arg2[%c0_1, %c0_2] : memref<8192x128xbf16, #tpu.memory_space<vmem>>, vector<8192x128xbf16>
    %cst = arith.constant dense<0.000000e+00> : vector<8x128xf32>
    %2 = tpu.matmul %0, %1, %cst {dimension_numbers = #tpu.dot_dimension_numbers<[1], [0], [0], [1], [0, 0, 1, 1], [], []>} : vector<8x8192xbf16>, vector<8192x128xbf16>, vector<8x128xf32> -> vector<8x128xf32>
    %c0_3 = arith.constant 0 : index
    %c0_4 = arith.constant 0 : index
    %3 = vector.load %arg3[%c0_3, %c0_4] : memref<8x128xf32, #tpu.memory_space<vmem>>, vector<8x128xf32>
    tpu.vector_store %arg3[%c0_3, %c0_4], %2 {strides = array<i32>} : memref<8x128xf32, #tpu.memory_space<vmem>>, vector<8x128xf32>,
    return
  }
  func.func @transform_0(%arg0: i32) -> (i32, i32) {
    %c0_i32 = arith.constant 0 : i32
    %c0_i32_0 = arith.constant 0 : i32
    return %arg0, %c0_i32 : i32, i32
  }
  func.func @transform_1(%arg0: i32) -> (i32, i32) {
    %c0_i32 = arith.constant 0 : i32
    %c0_i32_0 = arith.constant 0 : i32
    %c0_i32_1 = arith.constant 0 : i32
    return %c0_i32, %c0_i32_0 : i32, i32
  }
  func.func @transform_2(%arg0: i32) -> (i32, i32) {
    %c0_i32 = arith.constant 0 : i32
    %c0_i32_0 = arith.constant 0 : i32
    return %arg0, %c0_i32 : i32, i32
  }
}

</mosaic_0001>

<bundles_post_ra>
// kernel: discriminator_forward.5
= control target key start
LH: loop header
LB: loop body
LE: loop exit
PB: predicated region body
PF: predicated region fallthrough
CT: control target
= control target key end

     0   :  { %vm1079_vm0 = vcmask 519168   ;;  %s2037_s1 = inlined_call_operand.vmem [shape: bf16[128,64], index: 1, kind: input, shape index: {}]   ;;  %s2038_s0 = inlined_call_operand.vmem [shape: bf16[512,128], index: 0, kind: input, shape index: {}]   ;;  %s2039_s2 = inlined_call_operand.vmem [shape: f32[1,64], index: 2, kind: input, shape index: {}]   ;;  %s2040_s3 = inlined_call_operand.vmem [shape: bf16[512,64], index: 3, kind: output, shape index: {}]  }
   0x1   :  { %v1453_v0 = vld [vmem:[%s2037_s1] sm:$0xff]   ;;  %v1454_v1 = vld [vmem:[%s2037_s1 + $0x8] sm:$0xff]   ;;  %v1455_v2 = vld [vmem:[%s2037_s1 + $0x10] sm:$0xff]  }
   0x2   :  { %1357 = vmatprep.subr.bf16.mxu0 %v1453_v0  ;;  %1437 = vmatprep.subr.bf16.mxu1 %v1453_v0  ;;  %v1456_v3 = vld [vmem:[%s2037_s1 + $0x18] sm:$0xff]   ;;  %v1461_v4 = vld [vmem:[%s2038_s0] sm:$0xff]   ;;  %v1458_v7 = vld [vmem:[%s2037_s1 + $0x28] sm:$0xff]  }
   0x3   :  { %1358 = vmatpush3.bf16.msra.mxu0 %v1453_v0  ;;  %1445 = vmatpush3.bf16.msra.mxu1 %v1453_v0  ;;  %v1462_v5 = vld [vmem:[%s2038_s0 + $0x80] sm:$0xff]   ;;  %v1459_v8 = vld [vmem:[%s2037_s1 + $0x30] sm:$0xff]   ;;  %v1460_v9 = vld [vmem:[%s2037_s1 + $0x38] sm:$0xff]  }
   0x4   :  { %1359 = vmatprep.subr.bf16.mxu0 %v1454_v1  ;;  %1438 = vmatprep.subr.bf16.mxu1 %v1454_v1  ;;  %v1457_v6 = vld [vmem:[%s2037_s1 + $0x20] sm:$0xff]   ;;  %v1463_v10 = vld [vmem:[%s2038_s0 + $0x8] sm:$0xff]   ;;  %v1465_v12 = vld [vmem:[%s2038_s0 + $0x10] sm:$0xff]  }
   0x5   :  { %1373 = vmatprep.mubr.bf16.mxu0 %v1461_v4  ;;  %1405 = vmatprep.mubr.bf16.mxu1 %v1462_v5  ;;  %v1464_v11 = vld [vmem:[%s2038_s0 + $0x88] sm:$0xff]   ;;  %v1466_v13 = vld [vmem:[%s2038_s0 + $0x90] sm:$0xff]   ;;  %v1467_v14 = vld [vmem:[%s2038_s0 + $0x18] sm:$0xff]  }
   0x6   :  { %v1468_v15 = vld [vmem:[%s2038_s0 + $0x98] sm:$0xff]   ;;  %v1469_v16 = vld [vmem:[%s2038_s0 + $0x20] sm:$0xff]   ;;  %v1471_v18 = vld [vmem:[%s2038_s0 + $0x28] sm:$0xff]  }
   0x7   :  { %1360 = vmatpush3.bf16.msra.mxu0 %v1454_v1  ;;  %1446 = vmatpush3.bf16.msra.mxu1 %v1454_v1  ;;  %v1470_v17 = vld [vmem:[%s2038_s0 + $0xa0] sm:$0xff]   ;;  %v1472_v19 = vld [vmem:[%s2038_s0 + $0xa8] sm:$0xff]   ;;  %v1473_v20 = vld [vmem:[%s2038_s0 + $0x30] sm:$0xff]  }
   0x8   :  { %1361 = vmatprep.subr.bf16.mxu0 %v1455_v2  ;;  %1439 = vmatprep.subr.bf16.mxu1 %v1455_v2  ;;  %v1474_v21 = vld [vmem:[%s2038_s0 + $0xb0] sm:$0xff]   ;;  %v1475_v22 = vld [vmem:[%s2038_s0 + $0x38] sm:$0xff]   ;;  %v1477_v24 = vld [vmem:[%s2038_s0 + $0x40] sm:$0xff]  }
   0x9   :  { %v1476_v23 = vld [vmem:[%s2038_s0 + $0xb8] sm:$0xff]   ;;  %v1478_v25 = vld [vmem:[%s2038_s0 + $0xc0] sm:$0xff]   ;;  %v1479_v26 = vld [vmem:[%s2038_s0 + $0x48] sm:$0xff]  }
   0xa   :  { %v1480_v27 = vld [vmem:[%s2038_s0 + $0xc8] sm:$0xff]   ;;  %v1481_v28 = vld [vmem:[%s2038_s0 + $0x50] sm:$0xff]   ;;  %v1483_v30 = vld [vmem:[%s2038_s0 + $0x58] sm:$0xff]  }
   0xb   :  { %1362 = vmatpush3.bf16.msra.mxu0 %v1455_v2  ;;  %1447 = vmatpush3.bf16.msra.mxu1 %v1455_v2  ;;  %v1482_v29 = vld [vmem:[%s2038_s0 + $0xd0] sm:$0xff]   ;;  %v1484_v31 = vld [vmem:[%s2038_s0 + $0xd8] sm:$0xff]   ;;  %v1485_v32 = vld [vmem:[%s2038_s0 + $0x60] sm:$0xff]  }
   0xc   :  { %1363 = vmatprep.subr.bf16.mxu0 %v1456_v3  ;;  %1440 = vmatprep.subr.bf16.mxu1 %v1456_v3  ;;  %v1486_v33 = vld [vmem:[%s2038_s0 + $0xe0] sm:$0xff]   ;;  %v1487_v34 = vld [vmem:[%s2038_s0 + $0x68] sm:$0xff]   ;;  %v1489_v36 = vld [vmem:[%s2038_s0 + $0x70] sm:$0xff]  }
   0xd   :  { %v1488_v35 = vld [vmem:[%s2038_s0 + $0xe8] sm:$0xff]   ;;  %v1490_v37 = vld [vmem:[%s2038_s0 + $0xf0] sm:$0xff]   ;;  %v1491_v38 = vld [vmem:[%s2038_s0 + $0x78] sm:$0xff]  }
   0xe   :  { %v1492_v39 = vld [vmem:[%s2038_s0 + $0xf8] sm:$0xff]   ;;  %v1636_v40 = vld [vmem:[%s2039_s2] ss:$0 sm:$0xff] }
   0xf   :  { %1364 = vmatpush3.bf16.msra.mxu0 %v1456_v3  ;;  %1448 = vmatpush3.bf16.msra.mxu1 %v1456_v3 }
  0x10   :  { %1365 = vmatprep.subr.bf16.mxu0 %v1457_v6  ;;  %1441 = vmatprep.subr.bf16.mxu1 %v1457_v6 }
  0x13   :  { %1366 = vmatpush3.bf16.msra.mxu0 %v1457_v6  ;;  %1449 = vmatpush3.bf16.msra.mxu1 %v1457_v6 }
  0x14   :  { %1367 = vmatprep.subr.bf16.mxu0 %v1458_v7  ;;  %1442 = vmatprep.subr.bf16.mxu1 %v1458_v7 }
  0x17   :  { %1368 = vmatpush3.bf16.msra.mxu0 %v1458_v7  ;;  %1450 = vmatpush3.bf16.msra.mxu1 %v1458_v7 }
  0x18   :  { %1369 = vmatprep.subr.bf16.mxu0 %v1459_v8  ;;  %1443 = vmatprep.subr.bf16.mxu1 %v1459_v8 }
  0x1b   :  { %1370 = vmatpush3.bf16.msra.mxu0 %v1459_v8  ;;  %1451 = vmatpush3.bf16.msra.mxu1 %v1459_v8 }
  0x1c   :  { %1371 = vmatprep.subr.bf16.mxu0 %v1460_v9  ;;  %1444 = vmatprep.subr.bf16.mxu1 %v1460_v9 }
  0x1f   :  { %1372 = vmatpush3.bf16.msra.mxu0 %v1460_v9  ;;  %1452 = vmatpush3.bf16.msra.mxu1 %v1460_v9 }
  0x22   :  { %1374 = vmatmul.mubr.bf16.vlgmr.msra.gmra.mrb[0].mxu0 %v1463_v10  ;;  %1406 = vmatmul.mubr.bf16.vlgmr.msra.gmra.mrb[0].mxu1 %v1464_v11 }
  0x23   :  { %1377 = vmatprep.mubr.bf16.mxu0 %v1465_v12  ;;  %1409 = vmatprep.mubr.bf16.mxu1 %v1466_v13 }
  0x2a   :  { %1378 = vmatmul.mubr.bf16.gmra.mrb[4].mxu0 %v1467_v14  ;;  %1410 = vmatmul.mubr.bf16.gmra.mrb[4].mxu1 %v1468_v15 }
  0x2b   :  { %1381 = vmatprep.mubr.bf16.mxu0 %v1469_v16  ;;  %1413 = vmatprep.mubr.bf16.mxu1 %v1470_v17 }
  0x32   :  { %1382 = vmatmul.mubr.bf16.gmra.mrb[8].mxu0 %v1471_v18  ;;  %1414 = vmatmul.mubr.bf16.gmra.mrb[8].mxu1 %v1472_v19 }
  0x33   :  { %1385 = vmatprep.mubr.bf16.mxu0 %v1473_v20  ;;  %1417 = vmatprep.mubr.bf16.mxu1 %v1474_v21 }
  0x3a   :  { %1386 = vmatmul.mubr.bf16.gmra.mrb[12].mxu0 %v1475_v22  ;;  %1418 = vmatmul.mubr.bf16.gmra.mrb[12].mxu1 %v1476_v23 }
  0x3b   :  { %1389 = vmatprep.mubr.bf16.mxu0 %v1477_v24  ;;  %1421 = vmatprep.mubr.bf16.mxu1 %v1478_v25 }
  0x42   :  { %1390 = vmatmul.mubr.bf16.gmra.mrb[16].mxu0 %v1479_v26  ;;  %1422 = vmatmul.mubr.bf16.gmra.mrb[16].mxu1 %v1480_v27 }
  0x43   :  { %1393 = vmatprep.mubr.bf16.mxu0 %v1481_v28  ;;  %1425 = vmatprep.mubr.bf16.mxu1 %v1482_v29 }
  0x4a   :  { %1394 = vmatmul.mubr.bf16.gmra.mrb[20].mxu0 %v1483_v30  ;;  %1426 = vmatmul.mubr.bf16.gmra.mrb[20].mxu1 %v1484_v31 }
  0x4b   :  { %1397 = vmatprep.mubr.bf16.mxu0 %v1485_v32  ;;  %1429 = vmatprep.mubr.bf16.mxu1 %v1486_v33 }
  0x52   :  { %1398 = vmatmul.mubr.bf16.gmra.mrb[24].mxu0 %v1487_v34  ;;  %1430 = vmatmul.mubr.bf16.gmra.mrb[24].mxu1 %v1488_v35 }
  0x53   :  { %1401 = vmatprep.mubr.bf16.mxu0 %v1489_v36  ;;  %1433 = vmatprep.mubr.bf16.mxu1 %v1490_v37 }
  0x5a   :  { %1402 = vmatmul.mubr.bf16.gmra.mrb[28].mxu0 %v1491_v38  ;;  %1434 = vmatmul.mubr.bf16.gmra.mrb[28].mxu1 %v1492_v39 }
  0xf5   :  { %v1375_v41 = vpop.f32.mrb[0].mxu0  ;;  %v1407_v42 = vpop.f32.mrb[0].mxu1 }
  0xf6   :  { %v385_v43 = vadd.f32 %v1375_v41, %v1636_v40  ;;  %v513_v44 = vadd.f32 %v1407_v42, %v1636_v40  ;;  %v376_v45 = vpop.f32.mrb[1].mxu0  ;;  %v504_v46 = vpop.f32.mrb[1].mxu1 }
  0xf7   :  { %v377_v47 = vadd.f32 %v1636_v40, %v376_v45  ;;  %v505_v48 = vadd.f32 %v1636_v40, %v504_v46  ;;  %v1376_v49 = vpop.f32.mrb[2].mxu0  ;;  %v1408_v50 = vpop.f32.mrb[2].mxu1 }
  0xf8   :  { %vm633_vm1 = vcmp.ge.f32.partialorder %v385_v43, 0.0  ;;  %v697_v51 = vmul.f32 0.2, %v385_v43  ;;  %vm665_vm2 = vcmp.ge.f32.partialorder %v513_v44, 0.0  ;;  %v729_v52 = vmul.f32 0.2, %v513_v44 }
  0xf9   :  { %vm631_vm3 = vcmp.ge.f32.partialorder %v377_v47, 0.0  ;;  %v695_v53 = vmul.f32 0.2, %v377_v47  ;;  %vm663_vm4 = vcmp.ge.f32.partialorder %v505_v48, 0.0  ;;  %v727_v54 = vmul.f32 0.2, %v505_v48 }
  0xfa   :  { %v761_v55 = vsel %vm633_vm1, %v385_v43, %v697_v51  ;;  %v793_v56 = vsel %vm665_vm2, %v513_v44, %v729_v52  ;;  %v388_v57 = vadd.f32 %v1376_v49, %v1636_v40  ;;  %v516_v58 = vadd.f32 %v1408_v50, %v1636_v40  ;;  %v379_v59 = vpop.f32.mrb[3].mxu0  ;;  %v507_v60 = vpop.f32.mrb[3].mxu1 }
  0xfb   :  { %v1255_v61 = vpack.c.bf16 %v761_v55, %v761_v55  ;;  %v1287_v62 = vpack.c.bf16 %v793_v56, %v793_v56  ;;  %v759_v63 = vsel %vm631_vm3, %v377_v47, %v695_v53  ;;  %v791_v0 = vsel %vm663_vm4, %v505_v48, %v727_v54 }
  0xfc   :  { %v1253_v1 = vpack.c.bf16 %v759_v63, %v759_v63  ;;  %v1285_v2 = vpack.c.bf16 %v791_v0, %v791_v0  ;;  %vm634_vm5 = vcmp.ge.f32.partialorder %v388_v57, 0.0  ;;  %v698_v3 = vmul.f32 0.2, %v388_v57 }
  0xfd   :  { %1082 = vst.msk [vmem:[%s2040_s3 + $0x8] sm:$0xf] %vm1079_vm0, %v1255_v61  ;;  %1114 = vst.msk [vmem:[%s2040_s3 + $0x88] sm:$0xf] %vm1079_vm0, %v1287_v62  ;;  %vm666_vm6 = vcmp.ge.f32.partialorder %v516_v58, 0.0  ;;  %v380_v5 = vadd.f32 %v1636_v40, %v379_v59  ;;  %v508_v6 = vadd.f32 %v1636_v40, %v507_v60  ;;  %v1379_v7 = vpop.f32.mrb[4].mxu0 }
  0xfe   :  { %v730_v4 = vmul.f32 0.2, %v516_v58  ;;  %v1411_v8 = vpop.f32.mrb[4].mxu1  ;;  %1080 = vst.msk [vmem:[%s2040_s3] sm:$0xf] %vm1079_vm0, %v1253_v1  ;;  %v762_v9 = vsel %vm634_vm5, %v388_v57, %v698_v3  ;;  %v401_v10 = vadd.f32 %v1379_v7, %v1636_v40  ;;  %v392_v12 = vpop.f32.mrb[5].mxu0 }
  0xff   :  { %1112 = vst.msk [vmem:[%s2040_s3 + $0x80] sm:$0xf] %vm1079_vm0, %v1285_v2  ;;  %v529_v11 = vadd.f32 %v1411_v8, %v1636_v40  ;;  %v520_v13 = vpop.f32.mrb[5].mxu1  ;;  %v1256_v14 = vpack.c.bf16 %v762_v9, %v762_v9  ;;  %vm632_vm7 = vcmp.ge.f32.partialorder %v380_v5, 0.0  ;;  %v696_v16 = vmul.f32 0.2, %v380_v5 }
 0x100   :  { %v794_v15 = vsel %vm666_vm6, %v516_v58, %v730_v4  ;;  %v1380_v17 = vpop.f32.mrb[6].mxu0  ;;  %v1412_v18 = vpop.f32.mrb[6].mxu1  ;;  %vm664_vm8 = vcmp.ge.f32.partialorder %v508_v6, 0.0  ;;  %v728_v20 = vmul.f32 0.2, %v508_v6  ;;  %vm637_vm9 = vcmp.ge.f32.partialorder %v401_v10, 0.0 }
 0x101   :  { %v1288_v19 = vpack.c.bf16 %v794_v15, %v794_v15  ;;  %v395_v21 = vpop.f32.mrb[7].mxu0  ;;  %v523_v22 = vpop.f32.mrb[7].mxu1  ;;  %1083 = vst.msk [vmem:[%s2040_s3 + $0xc] sm:$0xf] %vm1079_vm0, %v1256_v14  ;;  %v760_v23 = vsel %vm632_vm7, %v380_v5, %v696_v16  ;;  %v701_v24 = vmul.f32 0.2, %v401_v10  ;;  %v393_v28 = vadd.f32 %v1636_v40, %v392_v12 }
 0x102   :  { %vm669_vm10 = vcmp.ge.f32.partialorder %v529_v11, 0.0  ;;  %v733_v25 = vmul.f32 0.2, %v529_v11  ;;  %v1254_v26 = vpack.c.bf16 %v760_v23, %v760_v23  ;;  %v792_v27 = vsel %vm664_vm8, %v508_v6, %v728_v20 }
 0x103   :  { %1115 = vst.msk [vmem:[%s2040_s3 + $0x8c] sm:$0xf] %vm1079_vm0, %v1288_v19  ;;  %v521_v29 = vadd.f32 %v1636_v40, %v520_v13  ;;  %v1286_v30 = vpack.c.bf16 %v792_v27, %v792_v27  ;;  %v765_v31 = vsel %vm637_vm9, %v401_v10, %v701_v24  ;;  %v404_v33 = vadd.f32 %v1380_v17, %v1636_v40 }
 0x104   :  { %v797_v32 = vsel %vm669_vm10, %v529_v11, %v733_v25  ;;  %1081 = vst.msk [vmem:[%s2040_s3 + $0x4] sm:$0xf] %vm1079_vm0, %v1254_v26  ;;  %v1259_v34 = vpack.c.bf16 %v765_v31, %v765_v31  ;;  %vm635_vm11 = vcmp.ge.f32.partialorder %v393_v28, 0.0  ;;  %v699_v36 = vmul.f32 0.2, %v393_v28 }
 0x105   :  { %v1291_v35 = vpack.c.bf16 %v797_v32, %v797_v32  ;;  %1113 = vst.msk [vmem:[%s2040_s3 + $0x84] sm:$0xf] %vm1079_vm0, %v1286_v30  ;;  %vm667_vm12 = vcmp.ge.f32.partialorder %v521_v29, 0.0  ;;  %v731_v37 = vmul.f32 0.2, %v521_v29  ;;  %vm638_vm13 = vcmp.ge.f32.partialorder %v404_v33, 0.0 }
 0x106   :  { %v702_v38 = vmul.f32 0.2, %v404_v33  ;;  %1086 = vst.msk [vmem:[%s2040_s3 + $0x18] sm:$0xf] %vm1079_vm0, %v1259_v34  ;;  %v763_v39 = vsel %vm635_vm11, %v393_v28, %v699_v36  ;;  %v532_v41 = vadd.f32 %v1412_v18, %v1636_v40  ;;  %v396_v42 = vadd.f32 %v1636_v40, %v395_v21  ;;  %v1383_v44 = vpop.f32.mrb[8].mxu0  ;;  %v1415_v45 = vpop.f32.mrb[8].mxu1 }
 0x107   :  { %1118 = vst.msk [vmem:[%s2040_s3 + $0x98] sm:$0xf] %vm1079_vm0, %v1291_v35  ;;  %v524_v43 = vadd.f32 %v1636_v40, %v523_v22  ;;  %v1257_v46 = vpack.c.bf16 %v763_v39, %v763_v39  ;;  %v795_v47 = vsel %vm667_vm12, %v521_v29, %v731_v37  ;;  %v417_v49 = vadd.f32 %v1383_v44, %v1636_v40  ;;  %v408_v50 = vpop.f32.mrb[9].mxu0  ;;  %v536_v51 = vpop.f32.mrb[9].mxu1 }
 0x108   :  { %v766_v48 = vsel %vm638_vm13, %v404_v33, %v702_v38  ;;  %v1289_v52 = vpack.c.bf16 %v795_v47, %v795_v47  ;;  %vm670_vm14 = vcmp.ge.f32.partialorder %v532_v41, 0.0  ;;  %v734_v54 = vmul.f32 0.2, %v532_v41  ;;  %v1384_v55 = vpop.f32.mrb[10].mxu0  ;;  %v1416_v56 = vpop.f32.mrb[10].mxu1 }
 0x109   :  { %v1260_v53 = vpack.c.bf16 %v766_v48, %v766_v48  ;;  %1084 = vst.msk [vmem:[%s2040_s3 + $0x10] sm:$0xf] %vm1079_vm0, %v1257_v46  ;;  %vm636_vm15 = vcmp.ge.f32.partialorder %v396_v42, 0.0  ;;  %v700_v57 = vmul.f32 0.2, %v396_v42  ;;  %vm668_vm1 = vcmp.ge.f32.partialorder %v524_v43, 0.0 }
 0x10a   :  { %v732_v58 = vmul.f32 0.2, %v524_v43  ;;  %1116 = vst.msk [vmem:[%s2040_s3 + $0x90] sm:$0xf] %vm1079_vm0, %v1289_v52  ;;  %v798_v59 = vsel %vm670_vm14, %v532_v41, %v734_v54  ;;  %vm641_vm2 = vcmp.ge.f32.partialorder %v417_v49, 0.0  ;;  %v545_v61 = vadd.f32 %v1415_v45, %v1636_v40  ;;  %v411_v62 = vpop.f32.mrb[11].mxu0 }
 0x10b   :  { %1087 = vst.msk [vmem:[%s2040_s3 + $0x1c] sm:$0xf] %vm1079_vm0, %v1260_v53  ;;  %v705_v60 = vmul.f32 0.2, %v417_v49  ;;  %v539_v63 = vpop.f32.mrb[11].mxu1  ;;  %v1292_v0 = vpack.c.bf16 %v798_v59, %v798_v59  ;;  %v764_v1 = vsel %vm636_vm15, %v396_v42, %v700_v57  ;;  %v409_v3 = vadd.f32 %v1636_v40, %v408_v50 }
 0x10c   :  { %v796_v2 = vsel %vm668_vm1, %v524_v43, %v732_v58  ;;  %v1258_v4 = vpack.c.bf16 %v764_v1, %v764_v1  ;;  %vm673_vm3 = vcmp.ge.f32.partialorder %v545_v61, 0.0  ;;  %v737_v8 = vmul.f32 0.2, %v545_v61 }
 0x10d   :  { %v1290_v5 = vpack.c.bf16 %v796_v2, %v796_v2  ;;  %v769_v6 = vsel %vm641_vm2, %v417_v49, %v705_v60  ;;  %1119 = vst.msk [vmem:[%s2040_s3 + $0x9c] sm:$0xf] %vm1079_vm0, %v1292_v0  ;;  %vm639_vm4 = vcmp.ge.f32.partialorder %v409_v3, 0.0  ;;  %v703_v9 = vmul.f32 0.2, %v409_v3  ;;  %v1387_v10 = vpop.f32.mrb[12].mxu0 }
 0x10e   :  { %v1263_v7 = vpack.c.bf16 %v769_v6, %v769_v6  ;;  %1085 = vst.msk [vmem:[%s2040_s3 + $0x14] sm:$0xf] %vm1079_vm0, %v1258_v4  ;;  %v537_v11 = vadd.f32 %v1636_v40, %v536_v51  ;;  %v420_v12 = vadd.f32 %v1384_v55, %v1636_v40  ;;  %v548_v13 = vadd.f32 %v1416_v56, %v1636_v40  ;;  %v1419_v15 = vpop.f32.mrb[12].mxu1  ;;  %v424_v16 = vpop.f32.mrb[13].mxu0 }
 0x10f   :  { %1117 = vst.msk [vmem:[%s2040_s3 + $0x94] sm:$0xf] %vm1079_vm0, %v1290_v5  ;;  %v412_v14 = vadd.f32 %v1636_v40, %v411_v62  ;;  %v801_v17 = vsel %vm673_vm3, %v545_v61, %v737_v8  ;;  %v767_v18 = vsel %vm639_vm4, %v409_v3, %v703_v9  ;;  %v540_v19 = vadd.f32 %v1636_v40, %v539_v63  ;;  %v552_v21 = vpop.f32.mrb[13].mxu1  ;;  %v1388_v22 = vpop.f32.mrb[14].mxu0 }
 0x110   :  { %1090 = vst.msk [vmem:[%s2040_s3 + $0x28] sm:$0xf] %vm1079_vm0, %v1263_v7  ;;  %v433_v20 = vadd.f32 %v1387_v10, %v1636_v40  ;;  %v1295_v23 = vpack.c.bf16 %v801_v17, %v801_v17  ;;  %v1261_v24 = vpack.c.bf16 %v767_v18, %v767_v18  ;;  %vm671_vm5 = vcmp.ge.f32.partialorder %v537_v11, 0.0  ;;  %v1420_v26 = vpop.f32.mrb[14].mxu1  ;;  %v427_v27 = vpop.f32.mrb[15].mxu0 }
 0x111   :  { %v735_v25 = vmul.f32 0.2, %v537_v11  ;;  %vm642_vm6 = vcmp.ge.f32.partialorder %v420_v12, 0.0  ;;  %v706_v28 = vmul.f32 0.2, %v420_v12  ;;  %vm674_vm7 = vcmp.ge.f32.partialorder %v548_v13, 0.0 }
 0x112   :  { %v738_v29 = vmul.f32 0.2, %v548_v13  ;;  %1122 = vst.msk [vmem:[%s2040_s3 + $0xa8] sm:$0xf] %vm1079_vm0, %v1295_v23  ;;  %1088 = vst.msk [vmem:[%s2040_s3 + $0x20] sm:$0xf] %vm1079_vm0, %v1261_v24  ;;  %v561_v44 = vadd.f32 %v1419_v15, %v1636_v40  ;;  %v425_v48 = vadd.f32 %v1636_v40, %v424_v16  ;;  %v553_v49 = vadd.f32 %v1636_v40, %v552_v21 }
 0x113   :  { %v799_v30 = vsel %vm671_vm5, %v537_v11, %v735_v25  ;;  %vm640_vm8 = vcmp.ge.f32.partialorder %v412_v14, 0.0  ;;  %v704_v31 = vmul.f32 0.2, %v412_v14  ;;  %vm672_vm9 = vcmp.ge.f32.partialorder %v540_v19, 0.0  ;;  %v555_v32 = vpop.f32.mrb[15].mxu1 }
 0x114   :  { %v1293_v33 = vpack.c.bf16 %v799_v30, %v799_v30  ;;  %v770_v34 = vsel %vm642_vm6, %v420_v12, %v706_v28  ;;  %v802_v35 = vsel %vm674_vm7, %v548_v13, %v738_v29  ;;  %v736_v36 = vmul.f32 0.2, %v540_v19 }
 0x115   :  { %v1264_v37 = vpack.c.bf16 %v770_v34, %v770_v34  ;;  %v1296_v38 = vpack.c.bf16 %v802_v35, %v802_v35  ;;  %v768_v39 = vsel %vm640_vm8, %v412_v14, %v704_v31  ;;  %vm645_vm10 = vcmp.ge.f32.partialorder %v433_v20, 0.0  ;;  %v1391_v45 = vpop.f32.mrb[16].mxu0  ;;  %v1423_v46 = vpop.f32.mrb[16].mxu1 }
 0x116   :  { %1120 = vst.msk [vmem:[%s2040_s3 + $0xa0] sm:$0xf] %vm1079_vm0, %v1293_v33  ;;  %v1262_v41 = vpack.c.bf16 %v768_v39, %v768_v39  ;;  %v800_v42 = vsel %vm672_vm9, %v540_v19, %v736_v36  ;;  %v709_v43 = vmul.f32 0.2, %v433_v20  ;;  %v436_v50 = vadd.f32 %v1388_v22, %v1636_v40  ;;  %v440_v51 = vpop.f32.mrb[17].mxu0  ;;  %v568_v52 = vpop.f32.mrb[17].mxu1 }
 0x117   :  { %1091 = vst.msk [vmem:[%s2040_s3 + $0x2c] sm:$0xf] %vm1079_vm0, %v1264_v37  ;;  %1123 = vst.msk [vmem:[%s2040_s3 + $0xac] sm:$0xf] %vm1079_vm0, %v1296_v38  ;;  %v1294_v47 = vpack.c.bf16 %v800_v42, %v800_v42  ;;  %vm677_vm11 = vcmp.ge.f32.partialorder %v561_v44, 0.0  ;;  %v564_v55 = vadd.f32 %v1420_v26, %v1636_v40  ;;  %v1762_v56 = vpop.f32.mrb[18].mxu0  ;;  %v428_v7 = vadd.f32 %v1636_v40, %v427_v27 }
 0x118   :  { %1089 = vst.msk [vmem:[%s2040_s3 + $0x24] sm:$0xf] %vm1079_vm0, %v1262_v41  ;;  %v773_v53 = vsel %vm645_vm10, %v433_v20, %v709_v43  ;;  %v741_v54 = vmul.f32 0.2, %v561_v44  ;;  %v1764_v57 = vpop.f32.mrb[18].mxu1  ;;  %vm643_vm12 = vcmp.ge.f32.partialorder %v425_v48, 0.0  ;;  %v556_v11 = vadd.f32 %v1636_v40, %v555_v32 }
 0x119   :  { %1121 = vst.msk [vmem:[%s2040_s3 + $0xa4] sm:$0xf] %vm1079_vm0, %v1294_v47  ;;  %v1267_v58 = vpack.c.bf16 %v773_v53, %v773_v53  ;;  %v707_v59 = vmul.f32 0.2, %v425_v48  ;;  %vm675_vm13 = vcmp.ge.f32.partialorder %v553_v49, 0.0  ;;  %v1770_v60 = vpop.f32.mrb[19].mxu0  ;;  %v449_v14 = vadd.f32 %v1391_v45, %v1636_v40 }
 0x11a   :  { %v1772_v61 = vpop.f32.mrb[19].mxu1  ;;  %v805_v62 = vsel %vm677_vm11, %v561_v44, %v741_v54  ;;  %v739_v63 = vmul.f32 0.2, %v553_v49  ;;  %vm646_vm14 = vcmp.ge.f32.partialorder %v436_v50, 0.0  ;;  %v710_v0 = vmul.f32 0.2, %v436_v50 }
 0x11b   :  { %1094 = vst.msk [vmem:[%s2040_s3 + $0x38] sm:$0xf] %vm1079_vm0, %v1267_v58  ;;  %v1299_v1 = vpack.c.bf16 %v805_v62, %v805_v62  ;;  %v771_v2 = vsel %vm643_vm12, %v425_v48, %v707_v59  ;;  %vm678_vm15 = vcmp.ge.f32.partialorder %v564_v55, 0.0  ;;  %v742_v3 = vmul.f32 0.2, %v564_v55 }
 0x11c   :  { %v1265_v4 = vpack.c.bf16 %v771_v2, %v771_v2  ;;  %v803_v5 = vsel %vm675_vm13, %v553_v49, %v739_v63  ;;  %v774_v6 = vsel %vm646_vm14, %v436_v50, %v710_v0  ;;  %vm644_vm1 = vcmp.ge.f32.partialorder %v428_v7, 0.0 }
 0x11d   :  { %1126 = vst.msk [vmem:[%s2040_s3 + $0xb8] sm:$0xf] %vm1079_vm0, %v1299_v1  ;;  %v1297_v8 = vpack.c.bf16 %v803_v5, %v803_v5  ;;  %v1268_v9 = vpack.c.bf16 %v774_v6, %v774_v6  ;;  %v806_v10 = vsel %vm678_vm15, %v564_v55, %v742_v3  ;;  %v708_v13 = vmul.f32 0.2, %v428_v7  ;;  %v1395_v15 = vpop.f32.mrb[20].mxu0  ;;  %v1427_v16 = vpop.f32.mrb[20].mxu1 }
 0x11e   :  { %1092 = vst.msk [vmem:[%s2040_s3 + $0x30] sm:$0xf] %vm1079_vm0, %v1265_v4  ;;  %v1300_v12 = vpack.c.bf16 %v806_v10, %v806_v10  ;;  %vm676_vm2 = vcmp.ge.f32.partialorder %v556_v11, 0.0  ;;  %v740_v17 = vmul.f32 0.2, %v556_v11  ;;  %v577_v18 = vadd.f32 %v1423_v46, %v1636_v40  ;;  %v456_v20 = vpop.f32.mrb[21].mxu0 }
 0x11f   :  { %1124 = vst.msk [vmem:[%s2040_s3 + $0xb0] sm:$0xf] %vm1079_vm0, %v1297_v8  ;;  %1095 = vst.msk [vmem:[%s2040_s3 + $0x3c] sm:$0xf] %vm1079_vm0, %v1268_v9  ;;  %v441_v19 = vadd.f32 %v1636_v40, %v440_v51  ;;  %v1799_v21 = vpop.f32.mrb[21].mxu1  ;;  %v772_v22 = vsel %vm644_vm1, %v428_v7, %v708_v13  ;;  %vm649_vm3 = vcmp.ge.f32.partialorder %v449_v14, 0.0  ;;  %v569_v24 = vadd.f32 %v1636_v40, %v568_v52 }
 0x120   :  { %1127 = vst.msk [vmem:[%s2040_s3 + $0xbc] sm:$0xf] %vm1079_vm0, %v1300_v12  ;;  %v713_v23 = vmul.f32 0.2, %v449_v14  ;;  %v1806_v25 = vpop.f32.mrb[22].mxu0  ;;  %v1808_v26 = vpop.f32.mrb[22].mxu1  ;;  %v1266_v27 = vpack.c.bf16 %v772_v22, %v772_v22  ;;  %v804_v28 = vsel %vm676_vm2, %v556_v11, %v740_v17  ;;  %v452_v41 = vadd.f32 %v1762_v56, %v1636_v40 }
 0x121   :  { %vm681_vm4 = vcmp.ge.f32.partialorder %v577_v18, 0.0  ;;  %v745_v29 = vmul.f32 0.2, %v577_v18  ;;  %v1810_v30 = vpop.f32.mrb[23].mxu0  ;;  %v1812_v31 = vpop.f32.mrb[23].mxu1  ;;  %v1298_v32 = vpack.c.bf16 %v804_v28, %v804_v28  ;;  %vm647_vm5 = vcmp.ge.f32.partialorder %v441_v19, 0.0 }
 0x122   :  { %v777_v33 = vsel %vm649_vm3, %v449_v14, %v713_v23  ;;  %v711_v34 = vmul.f32 0.2, %v441_v19  ;;  %1093 = vst.msk [vmem:[%s2040_s3 + $0x34] sm:$0xf] %vm1079_vm0, %v1266_v27  ;;  %vm679_vm6 = vcmp.ge.f32.partialorder %v569_v24, 0.0  ;;  %v580_v42 = vadd.f32 %v1764_v57, %v1636_v40 }
 0x123   :  { %v1271_v35 = vpack.c.bf16 %v777_v33, %v777_v33  ;;  %v809_v36 = vsel %vm681_vm4, %v577_v18, %v745_v29  ;;  %v743_v37 = vmul.f32 0.2, %v569_v24  ;;  %1125 = vst.msk [vmem:[%s2040_s3 + $0xb4] sm:$0xf] %vm1079_vm0, %v1298_v32  ;;  %v444_v45 = vadd.f32 %v1636_v40, %v1770_v60 }
 0x124   :  { %v1303_v38 = vpack.c.bf16 %v809_v36, %v809_v36  ;;  %v775_v39 = vsel %vm647_vm5, %v441_v19, %v711_v34  ;;  %v572_v46 = vadd.f32 %v1636_v40, %v1772_v61  ;;  %vm650_vm7 = vcmp.ge.f32.partialorder %v452_v41, 0.0 }
 0x125   :  { %1098 = vst.msk [vmem:[%s2040_s3 + $0x48] sm:$0xf] %vm1079_vm0, %v1271_v35  ;;  %v1269_v43 = vpack.c.bf16 %v775_v39, %v775_v39  ;;  %v807_v44 = vsel %vm679_vm6, %v569_v24, %v743_v37  ;;  %v714_v48 = vmul.f32 0.2, %v452_v41  ;;  %vm682_vm8 = vcmp.ge.f32.partialorder %v580_v42, 0.0  ;;  %v1838_v49 = vpop.f32.mrb[24].mxu0 }
 0x126   :  { %1130 = vst.msk [vmem:[%s2040_s3 + $0xc8] sm:$0xf] %vm1079_vm0, %v1303_v38  ;;  %v1301_v47 = vpack.c.bf16 %v807_v44, %v807_v44  ;;  %v1840_v50 = vpop.f32.mrb[24].mxu1  ;;  %v746_v51 = vmul.f32 0.2, %v580_v42  ;;  %vm648_vm9 = vcmp.ge.f32.partialorder %v444_v45, 0.0  ;;  %v465_v55 = vadd.f32 %v1395_v15, %v1636_v40 }
 0x127   :  { %1096 = vst.msk [vmem:[%s2040_s3 + $0x40] sm:$0xf] %vm1079_vm0, %v1269_v43  ;;  %v712_v52 = vmul.f32 0.2, %v444_v45  ;;  %vm680_vm10 = vcmp.ge.f32.partialorder %v572_v46, 0.0  ;;  %v778_v53 = vsel %vm650_vm7, %v452_v41, %v714_v48  ;;  %v593_v56 = vadd.f32 %v1427_v16, %v1636_v40  ;;  %v1852_v57 = vpop.f32.mrb[25].mxu0 }
 0x128   :  { %1128 = vst.msk [vmem:[%s2040_s3 + $0xc0] sm:$0xf] %vm1079_vm0, %v1301_v47  ;;  %v744_v54 = vmul.f32 0.2, %v572_v46  ;;  %v1854_v58 = vpop.f32.mrb[25].mxu1  ;;  %v1272_v59 = vpack.c.bf16 %v778_v53, %v778_v53  ;;  %v810_v60 = vsel %vm682_vm8, %v580_v42, %v746_v51  ;;  %v457_v62 = vadd.f32 %v1636_v40, %v456_v20  ;;  %v1858_v63 = vpop.f32.mrb[26].mxu0 }
 0x129   :  { %v776_v61 = vsel %vm648_vm9, %v444_v45, %v712_v52  ;;  %v1860_v0 = vpop.f32.mrb[26].mxu1  ;;  %v1304_v1 = vpack.c.bf16 %v810_v60, %v810_v60  ;;  %vm653_vm11 = vcmp.ge.f32.partialorder %v465_v55, 0.0  ;;  %v1863_v4 = vpop.f32.mrb[27].mxu0  ;;  %v717_v7 = vmul.f32 0.2, %v465_v55 }
 0x12a   :  { %v1270_v2 = vpack.c.bf16 %v776_v61, %v776_v61  ;;  %v808_v3 = vsel %vm680_vm10, %v572_v46, %v744_v54  ;;  %v1865_v5 = vpop.f32.mrb[27].mxu1  ;;  %1099 = vst.msk [vmem:[%s2040_s3 + $0x4c] sm:$0xf] %vm1079_vm0, %v1272_v59  ;;  %vm685_vm12 = vcmp.ge.f32.partialorder %v593_v56, 0.0  ;;  %v749_v8 = vmul.f32 0.2, %v593_v56 }
 0x12b   :  { %v1302_v6 = vpack.c.bf16 %v808_v3, %v808_v3  ;;  %1131 = vst.msk [vmem:[%s2040_s3 + $0xcc] sm:$0xf] %vm1079_vm0, %v1304_v1  ;;  %vm651_vm13 = vcmp.ge.f32.partialorder %v457_v62, 0.0  ;;  %v715_v9 = vmul.f32 0.2, %v457_v62  ;;  %v585_v10 = vadd.f32 %v1636_v40, %v1799_v21 }
 0x12c   :  { %1097 = vst.msk [vmem:[%s2040_s3 + $0x44] sm:$0xf] %vm1079_vm0, %v1270_v2  ;;  %v468_v11 = vadd.f32 %v1806_v25, %v1636_v40  ;;  %v781_v12 = vsel %vm653_vm11, %v465_v55, %v717_v7  ;;  %v813_v13 = vsel %vm685_vm12, %v593_v56, %v749_v8  ;;  %v596_v14 = vadd.f32 %v1808_v26, %v1636_v40 }
 0x12d   :  { %1129 = vst.msk [vmem:[%s2040_s3 + $0xc4] sm:$0xf] %vm1079_vm0, %v1302_v6  ;;  %v460_v15 = vadd.f32 %v1636_v40, %v1810_v30  ;;  %v1275_v16 = vpack.c.bf16 %v781_v12, %v781_v12  ;;  %v1307_v17 = vpack.c.bf16 %v813_v13, %v813_v13  ;;  %v779_v18 = vsel %vm651_vm13, %v457_v62, %v715_v9  ;;  %v1891_v19 = vpop.f32.mrb[28].mxu0  ;;  %v1893_v20 = vpop.f32.mrb[28].mxu1 }
 0x12e   :  { %vm683_vm14 = vcmp.ge.f32.partialorder %v585_v10, 0.0  ;;  %v1273_v21 = vpack.c.bf16 %v779_v18, %v779_v18  ;;  %v747_v22 = vmul.f32 0.2, %v585_v10  ;;  %vm654_vm15 = vcmp.ge.f32.partialorder %v468_v11, 0.0  ;;  %v1895_v24 = vpop.f32.mrb[29].mxu0  ;;  %v1913_v32 = vpop.f32.mrb[29].mxu1 }
 0x12f   :  { %v718_v23 = vmul.f32 0.2, %v468_v11  ;;  %1102 = vst.msk [vmem:[%s2040_s3 + $0x58] sm:$0xf] %vm1079_vm0, %v1275_v16  ;;  %1134 = vst.msk [vmem:[%s2040_s3 + $0xd8] sm:$0xf] %vm1079_vm0, %v1307_v17  ;;  %v588_v29 = vadd.f32 %v1636_v40, %v1812_v31  ;;  %v481_v30 = vadd.f32 %v1838_v49, %v1636_v40  ;;  %v609_v45 = vadd.f32 %v1840_v50, %v1636_v40 }
 0x130   :  { %vm686_vm1 = vcmp.ge.f32.partialorder %v596_v14, 0.0  ;;  %v750_v25 = vmul.f32 0.2, %v596_v14  ;;  %vm652_vm2 = vcmp.ge.f32.partialorder %v460_v15, 0.0  ;;  %v716_v26 = vmul.f32 0.2, %v460_v15 }
 0x131   :  { %1100 = vst.msk [vmem:[%s2040_s3 + $0x50] sm:$0xf] %vm1079_vm0, %v1273_v21  ;;  %v811_v27 = vsel %vm683_vm14, %v585_v10, %v747_v22  ;;  %v782_v28 = vsel %vm654_vm15, %v468_v11, %v718_v23  ;;  %v1915_v33 = vpop.f32.mrb[30].mxu0  ;;  %v1917_v38 = vpop.f32.mrb[30].mxu1  ;;  %vm684_vm3 = vcmp.ge.f32.partialorder %v588_v29, 0.0  ;;  %vm657_vm4 = vcmp.ge.f32.partialorder %v481_v30, 0.0 }
 0x132   :  { %v1305_v34 = vpack.c.bf16 %v811_v27, %v811_v27  ;;  %v1276_v35 = vpack.c.bf16 %v782_v28, %v782_v28  ;;  %v814_v36 = vsel %vm686_vm1, %v596_v14, %v750_v25  ;;  %v780_v37 = vsel %vm652_vm2, %v460_v15, %v716_v26  ;;  %v1919_v39 = vpop.f32.mrb[31].mxu0  ;;  %v1921_v31 = vpop.f32.mrb[31].mxu1 }
 0x133   :  { %v1308_v41 = vpack.c.bf16 %v814_v36, %v814_v36  ;;  %v1274_v42 = vpack.c.bf16 %v780_v37, %v780_v37  ;;  %v748_v43 = vmul.f32 0.2, %v588_v29  ;;  %v721_v44 = vmul.f32 0.2, %v481_v30 }
 0x134   :  { %1132 = vst.msk [vmem:[%s2040_s3 + $0xd0] sm:$0xf] %vm1079_vm0, %v1305_v34  ;;  %1103 = vst.msk [vmem:[%s2040_s3 + $0x5c] sm:$0xf] %vm1079_vm0, %v1276_v35  ;;  %v473_v46 = vadd.f32 %v1636_v40, %v1852_v57  ;;  %v601_v48 = vadd.f32 %v1636_v40, %v1854_v58  ;;  %v484_v49 = vadd.f32 %v1858_v63, %v1636_v40  ;;  %vm689_vm5 = vcmp.ge.f32.partialorder %v609_v45, 0.0 }
 0x135   :  { %1135 = vst.msk [vmem:[%s2040_s3 + $0xdc] sm:$0xf] %vm1079_vm0, %v1308_v41  ;;  %1101 = vst.msk [vmem:[%s2040_s3 + $0x54] sm:$0xf] %vm1079_vm0, %v1274_v42  ;;  %v812_v47 = vsel %vm684_vm3, %v588_v29, %v748_v43  ;;  %v612_v50 = vadd.f32 %v1860_v0, %v1636_v40  ;;  %v785_v52 = vsel %vm657_vm4, %v481_v30, %v721_v44  ;;  %v753_v53 = vmul.f32 0.2, %v609_v45 }
 0x136   :  { %v1306_v51 = vpack.c.bf16 %v812_v47, %v812_v47  ;;  %v1279_v54 = vpack.c.bf16 %v785_v52, %v785_v52  ;;  %vm655_vm6 = vcmp.ge.f32.partialorder %v473_v46, 0.0  ;;  %v719_v55 = vmul.f32 0.2, %v473_v46 }
 0x137   :  { %vm687_vm7 = vcmp.ge.f32.partialorder %v601_v48, 0.0  ;;  %v817_v56 = vsel %vm689_vm5, %v609_v45, %v753_v53  ;;  %v751_v57 = vmul.f32 0.2, %v601_v48  ;;  %vm658_vm8 = vcmp.ge.f32.partialorder %v484_v49, 0.0 }
 0x138   :  { %1133 = vst.msk [vmem:[%s2040_s3 + $0xd4] sm:$0xf] %vm1079_vm0, %v1306_v51  ;;  %v722_v58 = vmul.f32 0.2, %v484_v49  ;;  %1106 = vst.msk [vmem:[%s2040_s3 + $0x68] sm:$0xf] %vm1079_vm0, %v1279_v54  ;;  %v1311_v59 = vpack.c.bf16 %v817_v56, %v817_v56  ;;  %v783_v60 = vsel %vm655_vm6, %v473_v46, %v719_v55  ;;  %v476_v1 = vadd.f32 %v1636_v40, %v1863_v4 }
 0x139   :  { %vm690_vm9 = vcmp.ge.f32.partialorder %v612_v50, 0.0  ;;  %v754_v61 = vmul.f32 0.2, %v612_v50  ;;  %v1277_v62 = vpack.c.bf16 %v783_v60, %v783_v60  ;;  %v815_v63 = vsel %vm687_vm7, %v601_v48, %v751_v57 }
 0x13a   :  { %v786_v0 = vsel %vm658_vm8, %v484_v49, %v722_v58  ;;  %1138 = vst.msk [vmem:[%s2040_s3 + $0xe8] sm:$0xf] %vm1079_vm0, %v1311_v59  ;;  %v1309_v2 = vpack.c.bf16 %v815_v63, %v815_v63  ;;  %v604_v7 = vadd.f32 %v1636_v40, %v1865_v5  ;;  %vm656_vm10 = vcmp.ge.f32.partialorder %v476_v1, 0.0 }
 0x13b   :  { %v1280_v3 = vpack.c.bf16 %v786_v0, %v786_v0  ;;  %v818_v6 = vsel %vm690_vm9, %v612_v50, %v754_v61  ;;  %1104 = vst.msk [vmem:[%s2040_s3 + $0x60] sm:$0xf] %vm1079_vm0, %v1277_v62  ;;  %v720_v9 = vmul.f32 0.2, %v476_v1  ;;  %v497_v4 = vadd.f32 %v1891_v19, %v1636_v40 }
 0x13c   :  { %v1312_v8 = vpack.c.bf16 %v818_v6, %v818_v6  ;;  %1136 = vst.msk [vmem:[%s2040_s3 + $0xe0] sm:$0xf] %vm1079_vm0, %v1309_v2  ;;  %vm688_vm11 = vcmp.ge.f32.partialorder %v604_v7, 0.0  ;;  %v752_v5 = vmul.f32 0.2, %v604_v7  ;;  %v625_v10 = vadd.f32 %v1893_v20, %v1636_v40 }
 0x13d   :  { %1107 = vst.msk [vmem:[%s2040_s3 + $0x6c] sm:$0xf] %vm1079_vm0, %v1280_v3  ;;  %v489_v11 = vadd.f32 %v1636_v40, %v1895_v24  ;;  %v784_v12 = vsel %vm656_vm10, %v476_v1, %v720_v9  ;;  %vm661_vm12 = vcmp.ge.f32.partialorder %v497_v4, 0.0  ;;  %v725_v13 = vmul.f32 0.2, %v497_v4 }
 0x13e   :  { %1139 = vst.msk [vmem:[%s2040_s3 + $0xec] sm:$0xf] %vm1079_vm0, %v1312_v8  ;;  %v617_v14 = vadd.f32 %v1636_v40, %v1913_v32  ;;  %v1278_v15 = vpack.c.bf16 %v784_v12, %v784_v12  ;;  %v816_v16 = vsel %vm688_vm11, %v604_v7, %v752_v5  ;;  %vm693_vm13 = vcmp.ge.f32.partialorder %v625_v10, 0.0 }
 0x13f   :  { %v757_v17 = vmul.f32 0.2, %v625_v10  ;;  %v1310_v18 = vpack.c.bf16 %v816_v16, %v816_v16  ;;  %v789_v19 = vsel %vm661_vm12, %v497_v4, %v725_v13  ;;  %vm659_vm14 = vcmp.ge.f32.partialorder %v489_v11, 0.0 }
 0x140   :  { %v723_v20 = vmul.f32 0.2, %v489_v11  ;;  %1105 = vst.msk [vmem:[%s2040_s3 + $0x64] sm:$0xf] %vm1079_vm0, %v1278_v15  ;;  %v1283_v21 = vpack.c.bf16 %v789_v19, %v789_v19  ;;  %vm691_vm15 = vcmp.ge.f32.partialorder %v617_v14, 0.0  ;;  %v500_v26 = vadd.f32 %v1915_v33, %v1636_v40 }
 0x141   :  { %v821_v22 = vsel %vm693_vm13, %v625_v10, %v757_v17  ;;  %v755_v23 = vmul.f32 0.2, %v617_v14  ;;  %1137 = vst.msk [vmem:[%s2040_s3 + $0xe4] sm:$0xf] %vm1079_vm0, %v1310_v18  ;;  %v628_v27 = vadd.f32 %v1917_v38, %v1636_v40  ;;  %v492_v30 = vadd.f32 %v1636_v40, %v1919_v39 }
 0x142   :  { %v1315_v24 = vpack.c.bf16 %v821_v22, %v821_v22  ;;  %v787_v25 = vsel %vm659_vm14, %v489_v11, %v723_v20  ;;  %1110 = vst.msk [vmem:[%s2040_s3 + $0x78] sm:$0xf] %vm1079_vm0, %v1283_v21  ;;  %v620_v32 = vadd.f32 %v1636_v40, %v1921_v31  ;;  %vm662_vm1 = vcmp.ge.f32.partialorder %v500_v26, 0.0 }
 0x143   :  { %v1281_v28 = vpack.c.bf16 %v787_v25, %v787_v25  ;;  %v819_v29 = vsel %vm691_vm15, %v617_v14, %v755_v23  ;;  %v726_v34 = vmul.f32 0.2, %v500_v26  ;;  %vm694_vm2 = vcmp.ge.f32.partialorder %v628_v27, 0.0 }
 0x144   :  { %1142 = vst.msk [vmem:[%s2040_s3 + $0xf8] sm:$0xf] %vm1079_vm0, %v1315_v24  ;;  %v1313_v33 = vpack.c.bf16 %v819_v29, %v819_v29  ;;  %v758_v35 = vmul.f32 0.2, %v628_v27  ;;  %vm660_vm3 = vcmp.ge.f32.partialorder %v492_v30, 0.0  ;;  %vm692_vm4 = vcmp.ge.f32.partialorder %v620_v32, 0.0 }
 0x145   :  { %1108 = vst.msk [vmem:[%s2040_s3 + $0x70] sm:$0xf] %vm1079_vm0, %v1281_v28  ;;  %v724_v36 = vmul.f32 0.2, %v492_v30  ;;  %v790_v40 = vsel %vm662_vm1, %v500_v26, %v726_v34  ;;  %v756_v37 = vmul.f32 0.2, %v620_v32 }
 0x146   :  { %1140 = vst.msk [vmem:[%s2040_s3 + $0xf0] sm:$0xf] %vm1079_vm0, %v1313_v33  ;;  %v1284_v38 = vpack.c.bf16 %v790_v40, %v790_v40  ;;  %v822_v39 = vsel %vm694_vm2, %v628_v27, %v758_v35 }
 0x147   :  { %v788_v41 = vsel %vm660_vm3, %v492_v30, %v724_v36  ;;  %v1316_v42 = vpack.c.bf16 %v822_v39, %v822_v39  ;;  %v820_v31 = vsel %vm692_vm4, %v620_v32, %v756_v37 }
 0x148   :  { %v1282_v43 = vpack.c.bf16 %v788_v41, %v788_v41  ;;  %1111 = vst.msk [vmem:[%s2040_s3 + $0x7c] sm:$0xf] %vm1079_vm0, %v1284_v38  ;;  %v1314_v44 = vpack.c.bf16 %v820_v31, %v820_v31 }
 0x149   :  { %1143 = vst.msk [vmem:[%s2040_s3 + $0xfc] sm:$0xf] %vm1079_vm0, %v1316_v42 }
 0x14a   :  { %1109 = vst.msk [vmem:[%s2040_s3 + $0x74] sm:$0xf] %vm1079_vm0, %v1282_v43  ;;  %1141 = vst.msk [vmem:[%s2040_s3 + $0xf4] sm:$0xf] %vm1079_vm0, %v1314_v44 }

// kernel: discriminator_forward.6
= control target key start
LH: loop header
LB: loop body
LE: loop exit
PB: predicated region body
PF: predicated region fallthrough
CT: control target
= control target key end

     0   :  { %s2675_s1 = inlined_call_operand.vmem [shape: bf16[1024,128], index: 1, kind: input, shape index: {}]   ;;  %s2676_s0 = inlined_call_operand.vmem [shape: bf16[128,1024], index: 0, kind: input, shape index: {}]   ;;  %s2677_s2 = inlined_call_operand.vmem [shape: bf16[128,128], index: 2, kind: output, shape index: {}]  }
   0x1   :  { %v2000_v0 = vld [vmem:[%s2675_s1 + $0x40] sm:$0xff]   ;;  %v2004_v4 = vld [vmem:[%s2675_s1 + $0x48] sm:$0xff]   ;;  %v2008_v8 = vld [vmem:[%s2675_s1 + $0x50] sm:$0xff]  }
   0x2   :  { %v2001_v1 = vld [vmem:[%s2675_s1 + $0xc0] sm:$0xff]   ;;  %1744 = vmatprep.subr.bf16.mxu0 %v2000_v0  ;;  %v2005_v5 = vld [vmem:[%s2675_s1 + $0xc8] sm:$0xff]   ;;  %v2009_v9 = vld [vmem:[%s2675_s1 + $0xd0] sm:$0xff]  }
   0x3   :  { %v2002_v2 = vld [vmem:[%s2675_s1] sm:$0xff]   ;;  %1808 = vmatprep.subr.bf16.mxu1 %v2001_v1  ;;  %v2006_v6 = vld [vmem:[%s2675_s1 + $0x8] sm:$0xff]   ;;  %v2010_v10 = vld [vmem:[%s2675_s1 + $0x10] sm:$0xff]  }
   0x4   :  { %v2003_v3 = vld [vmem:[%s2675_s1 + $0x80] sm:$0xff]   ;;  %1745 = vmatpush3.bf16.msra.mxu0 %v2002_v2  ;;  %v2007_v7 = vld [vmem:[%s2675_s1 + $0x88] sm:$0xff]   ;;  %v2011_v11 = vld [vmem:[%s2675_s1 + $0x90] sm:$0xff]  }
   0x5   :  { %1809 = vmatpush3.bf16.msra.mxu1 %v2003_v3  ;;  %1746 = vmatprep.subr.bf16.mxu0 %v2004_v4  ;;  %v2012_v12 = vld [vmem:[%s2675_s1 + $0x58] sm:$0xff]   ;;  %v2016_v16 = vld [vmem:[%s2675_s1 + $0x60] sm:$0xff]   ;;  %v2020_v20 = vld [vmem:[%s2675_s1 + $0x68] sm:$0xff]  }
   0x6   :  { %1810 = vmatprep.subr.bf16.mxu1 %v2005_v5  ;;  %v2013_v13 = vld [vmem:[%s2675_s1 + $0xd8] sm:$0xff]   ;;  %v2017_v17 = vld [vmem:[%s2675_s1 + $0xe0] sm:$0xff]   ;;  %v2021_v21 = vld [vmem:[%s2675_s1 + $0xe8] sm:$0xff]  }
   0x7   :  { %v2014_v14 = vld [vmem:[%s2675_s1 + $0x18] sm:$0xff]   ;;  %v2018_v18 = vld [vmem:[%s2675_s1 + $0x20] sm:$0xff]   ;;  %v2022_v22 = vld [vmem:[%s2675_s1 + $0x28] sm:$0xff]  }
   0x8   :  { %1747 = vmatpush3.bf16.msra.mxu0 %v2006_v6  ;;  %v2015_v15 = vld [vmem:[%s2675_s1 + $0x98] sm:$0xff]   ;;  %v2019_v19 = vld [vmem:[%s2675_s1 + $0xa0] sm:$0xff]   ;;  %v2023_v23 = vld [vmem:[%s2675_s1 + $0xa8] sm:$0xff]  }
   0x9   :  { %1811 = vmatpush3.bf16.msra.mxu1 %v2007_v7  ;;  %1748 = vmatprep.subr.bf16.mxu0 %v2008_v8  ;;  %v2024_v24 = vld [vmem:[%s2675_s1 + $0x70] sm:$0xff]   ;;  %v2028_v28 = vld [vmem:[%s2675_s1 + $0x78] sm:$0xff]   ;;  %v12_v32 = vld [vmem:[%s2676_s0] sm:$0xff] }
   0xa   :  { %1812 = vmatprep.subr.bf16.mxu1 %v2009_v9  ;;  %v2025_v25 = vld [vmem:[%s2675_s1 + $0xf0] sm:$0xff]   ;;  %v2029_v29 = vld [vmem:[%s2675_s1 + $0xf8] sm:$0xff]   ;;  %v16_v33 = vld [vmem:[%s2676_s0 + $0x20] sm:$0xff] }
   0xb   :  { %v2026_v26 = vld [vmem:[%s2675_s1 + $0x30] sm:$0xff]   ;;  %v2030_v30 = vld [vmem:[%s2675_s1 + $0x38] sm:$0xff]   ;;  %v13_v34 = vld [vmem:[%s2676_s0 + $0x8] sm:$0xff]  ;;  %v1537_v35 = vcombine.low %v12_v32, %v16_v33  ;;  %v1538_v36 = vcombine.high %v12_v32, %v16_v33 }
   0xc   :  { %1749 = vmatpush3.bf16.msra.mxu0 %v2010_v10  ;;  %v2027_v27 = vld [vmem:[%s2675_s1 + $0xb0] sm:$0xff]   ;;  %v2031_v31 = vld [vmem:[%s2675_s1 + $0xb8] sm:$0xff]   ;;  %v17_v37 = vld [vmem:[%s2676_s0 + $0x28] sm:$0xff] }
   0xd   :  { %1813 = vmatpush3.bf16.msra.mxu1 %v2011_v11  ;;  %1750 = vmatprep.subr.bf16.mxu0 %v2012_v12  ;;  %v1539_v38 = vcombine.low %v13_v34, %v17_v37  ;;  %v1540_v39 = vcombine.high %v13_v34, %v17_v37  ;;  %v2032_v40 = vld [vmem:[%s2675_s1 + $0x140] sm:$0xff]   ;;  %v21_v47 = vld [vmem:[%s2676_s0 + $0x48] sm:$0xff]  ;;  %v2040_v62 = vld [vmem:[%s2675_s1 + $0x150] sm:$0xff]  }
   0xe   :  { %1814 = vmatprep.subr.bf16.mxu1 %v2013_v13  ;;  %940 = vmatprep.mubr.bf16.mxu0 %v1538_v36  ;;  %v2033_v41 = vld [vmem:[%s2675_s1 + $0x100] sm:$0xff]   ;;  %v25_v48 = vld [vmem:[%s2676_s0 + $0x68] sm:$0xff]  ;;  %v2041_v63 = vld [vmem:[%s2675_s1 + $0x110] sm:$0xff]  }
   0xf   :  { %1037 = vmatprep.mubr.bf16.mxu1 %v1540_v39  ;;  %v2034_v42 = vld [vmem:[%s2675_s1 + $0x1c0] sm:$0xff]   ;;  %v1548_v49 = vcombine.high %v21_v47, %v25_v48  ;;  %v2036_v50 = vld [vmem:[%s2675_s1 + $0x148] sm:$0xff]   ;;  %v1547_v53 = vcombine.low %v21_v47, %v25_v48  ;;  %v2042_v0 = vld [vmem:[%s2675_s1 + $0x1d0] sm:$0xff]  }
  0x10   :  { %1751 = vmatpush3.bf16.msra.mxu0 %v2014_v14  ;;  %v2035_v43 = vld [vmem:[%s2675_s1 + $0x180] sm:$0xff]   ;;  %v2037_v52 = vld [vmem:[%s2675_s1 + $0x108] sm:$0xff]   ;;  %v2043_v1 = vld [vmem:[%s2675_s1 + $0x190] sm:$0xff]  }
  0x11   :  { %1815 = vmatpush3.bf16.msra.mxu1 %v2015_v15  ;;  %1752 = vmatprep.subr.bf16.mxu0 %v2016_v16  ;;  %v20_v44 = vld [vmem:[%s2676_s0 + $0x40] sm:$0xff]  ;;  %v2038_v54 = vld [vmem:[%s2675_s1 + $0x1c8] sm:$0xff]   ;;  %v2044_v10 = vld [vmem:[%s2675_s1 + $0x158] sm:$0xff]  }
  0x12   :  { %1816 = vmatprep.subr.bf16.mxu1 %v2017_v17  ;;  %v24_v45 = vld [vmem:[%s2676_s0 + $0x60] sm:$0xff]  ;;  %v2039_v55 = vld [vmem:[%s2675_s1 + $0x188] sm:$0xff]   ;;  %v2045_v11 = vld [vmem:[%s2675_s1 + $0x118] sm:$0xff]  }
  0x13   :  { %v1546_v46 = vcombine.high %v20_v44, %v24_v45  ;;  %v1545_v51 = vcombine.low %v20_v44, %v24_v45  ;;  %v28_v56 = vld [vmem:[%s2676_s0 + $0x80] sm:$0xff]  ;;  %v29_v58 = vld [vmem:[%s2676_s0 + $0x88] sm:$0xff]  ;;  %v2046_v12 = vld [vmem:[%s2675_s1 + $0x1d8] sm:$0xff]  }
  0x14   :  { %1753 = vmatpush3.bf16.msra.mxu0 %v2018_v18  ;;  %v32_v57 = vld [vmem:[%s2676_s0 + $0xa0] sm:$0xff]  ;;  %v33_v59 = vld [vmem:[%s2676_s0 + $0xa8] sm:$0xff]  ;;  %v2047_v13 = vld [vmem:[%s2675_s1 + $0x198] sm:$0xff]  }
  0x15   :  { %1817 = vmatpush3.bf16.msra.mxu1 %v2019_v19  ;;  %1754 = vmatprep.subr.bf16.mxu0 %v2020_v20  ;;  %v1554_v60 = vcombine.high %v28_v56, %v32_v57  ;;  %v1556_v61 = vcombine.high %v29_v58, %v33_v59  ;;  %v1553_v2 = vcombine.low %v28_v56, %v32_v57  ;;  %v36_v3 = vld [vmem:[%s2676_s0 + $0xc0] sm:$0xff]  ;;  %v37_v5 = vld [vmem:[%s2676_s0 + $0xc8] sm:$0xff]  ;;  %v2057_v39 = vld [vmem:[%s2675_s1 + $0x130] sm:$0xff]  }
  0x16   :  { %1818 = vmatprep.subr.bf16.mxu1 %v2021_v21  ;;  %v40_v4 = vld [vmem:[%s2676_s0 + $0xe0] sm:$0xff]  ;;  %v1555_v6 = vcombine.low %v29_v58, %v33_v59  ;;  %v41_v8 = vld [vmem:[%s2676_s0 + $0xe8] sm:$0xff]  ;;  %v2061_v48 = vld [vmem:[%s2675_s1 + $0x138] sm:$0xff]  }
  0x17   :  { %v1562_v7 = vcombine.high %v36_v3, %v40_v4  ;;  %v1564_v9 = vcombine.high %v37_v5, %v41_v8  ;;  %v44_v14 = vld [vmem:[%s2676_s0 + $0x100] sm:$0xff]  ;;  %v45_v16 = vld [vmem:[%s2676_s0 + $0x108] sm:$0xff]  ;;  %v1561_v19 = vcombine.low %v36_v3, %v40_v4  ;;  %v1563_v21 = vcombine.low %v37_v5, %v41_v8  ;;  %v23_v8 = vld [vmem:[%s2676_s0 + $0x58] sm:$0xff] }
  0x18   :  { %1755 = vmatpush3.bf16.msra.mxu0 %v2022_v22  ;;  %v48_v15 = vld [vmem:[%s2676_s0 + $0x120] sm:$0xff]  ;;  %v49_v17 = vld [vmem:[%s2676_s0 + $0x128] sm:$0xff] }
  0x19   :  { %1819 = vmatpush3.bf16.msra.mxu1 %v2023_v23  ;;  %1756 = vmatprep.subr.bf16.mxu0 %v2024_v24  ;;  %v2048_v18 = vld [vmem:[%s2675_s1 + $0x160] sm:$0xff]   ;;  %v1570_v22 = vcombine.high %v44_v14, %v48_v15  ;;  %v1572_v24 = vcombine.high %v45_v16, %v49_v17  ;;  %v2054_v32 = vld [vmem:[%s2675_s1 + $0x1e8] sm:$0xff]   ;;  %v1569_v34 = vcombine.low %v44_v14, %v48_v15  ;;  %v30_v14 = vld [vmem:[%s2676_s0 + $0x90] sm:$0xff] }
  0x1a   :  { %1820 = vmatprep.subr.bf16.mxu1 %v2025_v25  ;;  %v2049_v20 = vld [vmem:[%s2675_s1 + $0x120] sm:$0xff]   ;;  %v2055_v33 = vld [vmem:[%s2675_s1 + $0x1a8] sm:$0xff]   ;;  %v34_v15 = vld [vmem:[%s2676_s0 + $0xb0] sm:$0xff] }
  0x1b   :  { %v2050_v23 = vld [vmem:[%s2675_s1 + $0x1e0] sm:$0xff]   ;;  %v61_v44 = vld [vmem:[%s2676_s0 + $0x188] sm:$0xff] }
  0x1c   :  { %1757 = vmatpush3.bf16.msra.mxu0 %v2026_v26  ;;  %v2051_v25 = vld [vmem:[%s2675_s1 + $0x1a0] sm:$0xff]   ;;  %v65_v45 = vld [vmem:[%s2676_s0 + $0x1a8] sm:$0xff] }
  0x1d   :  { %1821 = vmatpush3.bf16.msra.mxu1 %v2027_v27  ;;  %1758 = vmatprep.subr.bf16.mxu0 %v2028_v28  ;;  %v52_v26 = vld [vmem:[%s2676_s0 + $0x140] sm:$0xff]  ;;  %v2052_v28 = vld [vmem:[%s2675_s1 + $0x168] sm:$0xff]   ;;  %v1587_v59 = vcombine.low %v61_v44, %v65_v45 }
  0x1e   :  { %1822 = vmatprep.subr.bf16.mxu1 %v2029_v29  ;;  %v56_v27 = vld [vmem:[%s2676_s0 + $0x160] sm:$0xff]  ;;  %v53_v29 = vld [vmem:[%s2676_s0 + $0x148] sm:$0xff] }
  0x1f   :  { %v1578_v36 = vcombine.high %v52_v26, %v56_v27  ;;  %v1577_v47 = vcombine.low %v52_v26, %v56_v27  ;;  %v69_v56 = vld [vmem:[%s2676_s0 + $0x1c8] sm:$0xff]  ;;  %v1557_v26 = vcombine.low %v30_v14, %v34_v15 }
  0x20   :  { %1759 = vmatpush3.bf16.msra.mxu0 %v2030_v30  ;;  %v57_v30 = vld [vmem:[%s2676_s0 + $0x168] sm:$0xff] }
  0x21   :  { %1823 = vmatpush3.bf16.msra.mxu1 %v2031_v31  ;;  %1872 = vmatprep.subr.bf16.mxu0 %v2032_v40  ;;  %v2053_v31 = vld [vmem:[%s2675_s1 + $0x128] sm:$0xff]   ;;  %v1580_v37 = vcombine.high %v53_v29, %v57_v30  ;;  %v2058_v40 = vld [vmem:[%s2675_s1 + $0x1f0] sm:$0xff]  }
  0x22   :  { %1936 = vmatprep.subr.bf16.mxu1 %v2034_v42  ;;  %v64_v42 = vld [vmem:[%s2676_s0 + $0x1a0] sm:$0xff]  ;;  %v73_v57 = vld [vmem:[%s2676_s0 + $0x1e8] sm:$0xff] }
  0x23   :  { %941 = vmatmul.mubr.bf16.vlgmr.msra.gmra.mrb[0].mxu0 %v1537_v35  ;;  %v1571_v35 = vcombine.low %v45_v16, %v49_v17  ;;  %v1595_v3 = vcombine.low %v69_v56, %v73_v57  ;;  %v31_v16 = vld [vmem:[%s2676_s0 + $0x98] sm:$0xff] }
  0x24   :  { %1038 = vmatmul.mubr.bf16.vlgmr.msra.gmra.mrb[0].mxu1 %v1539_v38  ;;  %1873 = vmatpush3.bf16.msra.mxu0 %v2033_v41  ;;  %v2056_v38 = vld [vmem:[%s2675_s1 + $0x170] sm:$0xff]   ;;  %v60_v41 = vld [vmem:[%s2676_s0 + $0x180] sm:$0xff]  ;;  %v35_v17 = vld [vmem:[%s2676_s0 + $0xb8] sm:$0xff] }
  0x25   :  { %1937 = vmatpush3.bf16.msra.mxu1 %v2035_v43  ;;  %948 = vmatprep.mubr.bf16.mxu0 %v1546_v46  ;;  %v2059_v43 = vld [vmem:[%s2675_s1 + $0x1b0] sm:$0xff]   ;;  %v2060_v46 = vld [vmem:[%s2675_s1 + $0x178] sm:$0xff]   ;;  %v1585_v58 = vcombine.low %v60_v41, %v64_v42  ;;  %v1559_v27 = vcombine.low %v31_v16, %v35_v17 }
  0x26   :  { %1045 = vmatprep.mubr.bf16.mxu1 %v1548_v49  ;;  %1874 = vmatprep.subr.bf16.mxu0 %v2036_v50  ;;  %v1579_v49 = vcombine.low %v53_v29, %v57_v30  ;;  %v1586_v50 = vcombine.high %v60_v41, %v64_v42  ;;  %v46_v30 = vld [vmem:[%s2676_s0 + $0x110] sm:$0xff]  ;;  %v59_v41 = vld [vmem:[%s2676_s0 + $0x178] sm:$0xff] }
  0x27   :  { %1938 = vmatprep.subr.bf16.mxu1 %v2038_v54  ;;  %v68_v54 = vld [vmem:[%s2676_s0 + $0x1c0] sm:$0xff] }
  0x28   :  { %1875 = vmatpush3.bf16.msra.mxu0 %v2037_v52  ;;  %v1588_v52 = vcombine.high %v61_v44, %v65_v45 }
  0x29   :  { %1939 = vmatpush3.bf16.msra.mxu1 %v2039_v55  ;;  %1876 = vmatprep.subr.bf16.mxu0 %v2040_v62  ;;  %v72_v55 = vld [vmem:[%s2676_s0 + $0x1e0] sm:$0xff]  ;;  %v14_v62 = vld [vmem:[%s2676_s0 + $0x10] sm:$0xff] }
  0x2a   :  { %1940 = vmatprep.subr.bf16.mxu1 %v2042_v0  ;;  %v15_v0 = vld [vmem:[%s2676_s0 + $0x18] sm:$0xff] }
  0x2b   :  { %949 = vmatmul.mubr.bf16.gmra.mrb[4].mxu0 %v1545_v51  ;;  %v2062_v51 = vld [vmem:[%s2675_s1 + $0x1f8] sm:$0xff]  }
  0x2c   :  { %1046 = vmatmul.mubr.bf16.gmra.mrb[4].mxu1 %v1547_v53  ;;  %956 = vmatprep.mubr.bf16.mxu0 %v1554_v60  ;;  %v2063_v53 = vld [vmem:[%s2675_s1 + $0x1b8] sm:$0xff]   ;;  %v1594_v60 = vcombine.high %v68_v54, %v72_v55 }
  0x2d   :  { %1053 = vmatprep.mubr.bf16.mxu1 %v1556_v61  ;;  %1877 = vmatpush3.bf16.msra.mxu0 %v2041_v63  ;;  %v1596_v61 = vcombine.high %v69_v56, %v73_v57  ;;  %v18_v63 = vld [vmem:[%s2676_s0 + $0x30] sm:$0xff]  ;;  %v71_v56 = vld [vmem:[%s2676_s0 + $0x1d8] sm:$0xff] }
  0x2e   :  { %1941 = vmatpush3.bf16.msra.mxu1 %v2043_v1  ;;  %1878 = vmatprep.subr.bf16.mxu0 %v2044_v10  ;;  %v19_v1 = vld [vmem:[%s2676_s0 + $0x38] sm:$0xff]  ;;  %v1542_v4 = vcombine.high %v14_v62, %v18_v63  ;;  %v1541_v10 = vcombine.low %v14_v62, %v18_v63 }
  0x2f   :  { %1942 = vmatprep.subr.bf16.mxu1 %v2046_v12  ;;  %v1544_v5 = vcombine.high %v15_v0, %v19_v1  ;;  %v75_v57 = vld [vmem:[%s2676_s0 + $0x1f8] sm:$0xff] }
  0x30   :  { %v1599_v63 = vcombine.low %v71_v56, %v75_v57 }
  0x31   :  { %1879 = vmatpush3.bf16.msra.mxu0 %v2045_v11  ;;  %v1543_v11 = vcombine.low %v15_v0, %v19_v1 }
  0x32   :  { %1943 = vmatpush3.bf16.msra.mxu1 %v2047_v13  ;;  %1880 = vmatprep.subr.bf16.mxu0 %v2048_v18 }
  0x33   :  { %957 = vmatmul.mubr.bf16.gmra.mrb[8].mxu0 %v1553_v2  ;;  %1944 = vmatprep.subr.bf16.mxu1 %v2050_v23  ;;  %v1593_v2 = vcombine.low %v68_v54, %v72_v55  ;;  %v42_v23 = vld [vmem:[%s2676_s0 + $0xf0] sm:$0xff] }
  0x34   :  { %1054 = vmatmul.mubr.bf16.gmra.mrb[8].mxu1 %v1555_v6  ;;  %964 = vmatprep.mubr.bf16.mxu0 %v1562_v7  ;;  %v22_v6 = vld [vmem:[%s2676_s0 + $0x50] sm:$0xff] }
  0x35   :  { %1061 = vmatprep.mubr.bf16.mxu1 %v1564_v9  ;;  %1881 = vmatpush3.bf16.msra.mxu0 %v2049_v20  ;;  %v26_v7 = vld [vmem:[%s2676_s0 + $0x70] sm:$0xff]  ;;  %v27_v9 = vld [vmem:[%s2676_s0 + $0x78] sm:$0xff]  ;;  %v1558_v20 = vcombine.high %v30_v14, %v34_v15 }
  0x36   :  { %1945 = vmatpush3.bf16.msra.mxu1 %v2051_v25  ;;  %1882 = vmatprep.subr.bf16.mxu0 %v2052_v28  ;;  %v1550_v12 = vcombine.high %v22_v6, %v26_v7  ;;  %v1552_v13 = vcombine.high %v23_v8, %v27_v9  ;;  %v1549_v18 = vcombine.low %v22_v6, %v26_v7  ;;  %v43_v25 = vld [vmem:[%s2676_s0 + $0xf8] sm:$0xff]  ;;  %v70_v54 = vld [vmem:[%s2676_s0 + $0x1d0] sm:$0xff] }
  0x37   :  { %1946 = vmatprep.subr.bf16.mxu1 %v2054_v32  ;;  %v47_v32 = vld [vmem:[%s2676_s0 + $0x118] sm:$0xff]  ;;  %v74_v55 = vld [vmem:[%s2676_s0 + $0x1f0] sm:$0xff] }
  0x38   :  { %v1597_v62 = vcombine.low %v70_v54, %v74_v55 }
  0x39   :  { %1883 = vmatpush3.bf16.msra.mxu0 %v2053_v31  ;;  %v50_v31 = vld [vmem:[%s2676_s0 + $0x130] sm:$0xff] }
  0x3a   :  { %1947 = vmatpush3.bf16.msra.mxu1 %v2055_v33  ;;  %1884 = vmatprep.subr.bf16.mxu0 %v2056_v38  ;;  %v51_v33 = vld [vmem:[%s2676_s0 + $0x138] sm:$0xff]  ;;  %v54_v38 = vld [vmem:[%s2676_s0 + $0x150] sm:$0xff]  ;;  %v1573_v42 = vcombine.low %v46_v30, %v50_v31 }
  0x3b   :  { %965 = vmatmul.mubr.bf16.gmra.mrb[12].mxu0 %v1561_v19  ;;  %1948 = vmatprep.subr.bf16.mxu1 %v2058_v40  ;;  %v1551_v19 = vcombine.low %v23_v8, %v27_v9  ;;  %v55_v40 = vld [vmem:[%s2676_s0 + $0x158] sm:$0xff] }
  0x3c   :  { %1062 = vmatmul.mubr.bf16.gmra.mrb[12].mxu1 %v1563_v21  ;;  %972 = vmatprep.mubr.bf16.mxu0 %v1570_v22  ;;  %v1560_v21 = vcombine.high %v31_v16, %v35_v17  ;;  %v38_v22 = vld [vmem:[%s2676_s0 + $0xd0] sm:$0xff]  ;;  %v1584_v45 = vcombine.high %v55_v40, %v59_v41 }
  0x3d   :  { %1069 = vmatprep.mubr.bf16.mxu1 %v1572_v24  ;;  %1885 = vmatpush3.bf16.msra.mxu0 %v2057_v39  ;;  %v39_v24 = vld [vmem:[%s2676_s0 + $0xd8] sm:$0xff]  ;;  %v1566_v28 = vcombine.high %v38_v22, %v42_v23  ;;  %v58_v39 = vld [vmem:[%s2676_s0 + $0x170] sm:$0xff] }
  0x3e   :  { %1949 = vmatpush3.bf16.msra.mxu1 %v2059_v43  ;;  %1886 = vmatprep.subr.bf16.mxu0 %v2060_v46  ;;  %v1568_v29 = vcombine.high %v39_v24, %v43_v25  ;;  %v1575_v43 = vcombine.low %v47_v32, %v51_v33  ;;  %v1582_v44 = vcombine.high %v54_v38, %v58_v39  ;;  %v62_v46 = vld [vmem:[%s2676_s0 + $0x190] sm:$0xff] }
  0x3f   :  { %1950 = vmatprep.subr.bf16.mxu1 %v2062_v51  ;;  %v1583_v51 = vcombine.low %v55_v40, %v59_v41 }
  0x41   :  { %1887 = vmatpush3.bf16.msra.mxu0 %v2061_v48  ;;  %v63_v48 = vld [vmem:[%s2676_s0 + $0x198] sm:$0xff] }
  0x42   :  { %1951 = vmatpush3.bf16.msra.mxu1 %v2063_v53 }
  0x43   :  { %973 = vmatmul.mubr.bf16.gmra.mrb[16].mxu0 %v1569_v34  ;;  %v1565_v34 = vcombine.low %v38_v22, %v42_v23 }
  0x44   :  { %1070 = vmatmul.mubr.bf16.gmra.mrb[16].mxu1 %v1571_v35  ;;  %980 = vmatprep.mubr.bf16.mxu0 %v1578_v36  ;;  %v1567_v35 = vcombine.low %v39_v24, %v43_v25  ;;  %v1574_v36 = vcombine.high %v46_v30, %v50_v31 }
  0x45   :  { %1077 = vmatprep.mubr.bf16.mxu1 %v1580_v37  ;;  %v1576_v37 = vcombine.high %v47_v32, %v51_v33 }
  0x4b   :  { %981 = vmatmul.mubr.bf16.gmra.mrb[20].mxu0 %v1577_v47  ;;  %v66_v47 = vld [vmem:[%s2676_s0 + $0x1b0] sm:$0xff] }
  0x4c   :  { %1078 = vmatmul.mubr.bf16.gmra.mrb[20].mxu1 %v1579_v49  ;;  %988 = vmatprep.mubr.bf16.mxu0 %v1586_v50  ;;  %v67_v49 = vld [vmem:[%s2676_s0 + $0x1b8] sm:$0xff]  ;;  %v1581_v50 = vcombine.low %v54_v38, %v58_v39 }
  0x4d   :  { %1085 = vmatprep.mubr.bf16.mxu1 %v1588_v52  ;;  %v1590_v52 = vcombine.high %v62_v46, %v66_v47  ;;  %v1592_v53 = vcombine.high %v63_v48, %v67_v49 }
  0x53   :  { %989 = vmatmul.mubr.bf16.gmra.mrb[24].mxu0 %v1585_v58  ;;  %v1589_v58 = vcombine.low %v62_v46, %v66_v47 }
  0x54   :  { %1086 = vmatmul.mubr.bf16.gmra.mrb[24].mxu1 %v1587_v59  ;;  %996 = vmatprep.mubr.bf16.mxu0 %v1594_v60  ;;  %v1591_v59 = vcombine.low %v63_v48, %v67_v49  ;;  %v1598_v60 = vcombine.high %v70_v54, %v74_v55 }
  0x55   :  { %1093 = vmatprep.mubr.bf16.mxu1 %v1596_v61  ;;  %v1600_v61 = vcombine.high %v71_v56, %v75_v57 }
  0x5b   :  { %997 = vmatmul.mubr.bf16.gmra.mrb[28].mxu0 %v1593_v2 }
  0x5c   :  { %1094 = vmatmul.mubr.bf16.gmra.mrb[28].mxu1 %v1595_v3  ;;  %1134 = vmatprep.mubr.bf16.mxu0 %v1542_v4 }
  0x5d   :  { %1231 = vmatprep.mubr.bf16.mxu1 %v1544_v5 }
  0x63   :  { %1135 = vmatmul.mubr.bf16.vlgmr.msra.gmra.mrb[32].mxu0 %v1541_v10 }
  0x64   :  { %1232 = vmatmul.mubr.bf16.vlgmr.msra.gmra.mrb[32].mxu1 %v1543_v11  ;;  %1142 = vmatprep.mubr.bf16.mxu0 %v1550_v12 }
  0x65   :  { %1239 = vmatprep.mubr.bf16.mxu1 %v1552_v13 }
  0x6b   :  { %1143 = vmatmul.mubr.bf16.gmra.mrb[36].mxu0 %v1549_v18 }
  0x6c   :  { %1240 = vmatmul.mubr.bf16.gmra.mrb[36].mxu1 %v1551_v19  ;;  %1150 = vmatprep.mubr.bf16.mxu0 %v1558_v20 }
  0x6d   :  { %1247 = vmatprep.mubr.bf16.mxu1 %v1560_v21 }
  0x73   :  { %1151 = vmatmul.mubr.bf16.gmra.mrb[40].mxu0 %v1557_v26 }
  0x74   :  { %1248 = vmatmul.mubr.bf16.gmra.mrb[40].mxu1 %v1559_v27  ;;  %1158 = vmatprep.mubr.bf16.mxu0 %v1566_v28 }
  0x75   :  { %1255 = vmatprep.mubr.bf16.mxu1 %v1568_v29 }
  0x7b   :  { %1159 = vmatmul.mubr.bf16.gmra.mrb[44].mxu0 %v1565_v34 }
  0x7c   :  { %1256 = vmatmul.mubr.bf16.gmra.mrb[44].mxu1 %v1567_v35  ;;  %1166 = vmatprep.mubr.bf16.mxu0 %v1574_v36 }
  0x7d   :  { %1263 = vmatprep.mubr.bf16.mxu1 %v1576_v37 }
  0x83   :  { %1167 = vmatmul.mubr.bf16.gmra.mrb[48].mxu0 %v1573_v42 }
  0x84   :  { %1264 = vmatmul.mubr.bf16.gmra.mrb[48].mxu1 %v1575_v43  ;;  %1174 = vmatprep.mubr.bf16.mxu0 %v1582_v44 }
  0x85   :  { %1271 = vmatprep.mubr.bf16.mxu1 %v1584_v45 }
  0x8b   :  { %1175 = vmatmul.mubr.bf16.gmra.mrb[52].mxu0 %v1581_v50 }
  0x8c   :  { %1272 = vmatmul.mubr.bf16.gmra.mrb[52].mxu1 %v1583_v51  ;;  %1182 = vmatprep.mubr.bf16.mxu0 %v1590_v52 }
  0x8d   :  { %1279 = vmatprep.mubr.bf16.mxu1 %v1592_v53 }
  0x93   :  { %1183 = vmatmul.mubr.bf16.gmra.mrb[56].mxu0 %v1589_v58 }
  0x94   :  { %1280 = vmatmul.mubr.bf16.gmra.mrb[56].mxu1 %v1591_v59  ;;  %1190 = vmatprep.mubr.bf16.mxu0 %v1598_v60 }
  0x95   :  { %1287 = vmatprep.mubr.bf16.mxu1 %v1600_v61 }
  0x9b   :  { %1191 = vmatmul.mubr.bf16.gmra.mrb[60].mxu0 %v1597_v62 }
  0x9c   :  { %1288 = vmatmul.mubr.bf16.gmra.mrb[60].mxu1 %v1599_v63 }
  0xf6   :  { %v1760_v0 = vpop.f32.mrb[0].mxu0 }
  0xf7   :  { %v1824_v1 = vpop.f32.mrb[0].mxu1  ;;  %v1761_v2 = vpop.f32.mrb[1].mxu0 }
  0xf8   :  { %v1762_v3 = vadd.f32 %v1761_v2, %v1760_v0  ;;  %v1825_v4 = vpop.f32.mrb[1].mxu1  ;;  %v1763_v5 = vpop.f32.mrb[2].mxu0 }
  0xf9   :  { %v1826_v6 = vadd.f32 %v1825_v4, %v1824_v1  ;;  %v1827_v7 = vpop.f32.mrb[2].mxu1  ;;  %v1764_v8 = vpop.f32.mrb[3].mxu0 }
  0xfa   :  { %v1765_v9 = vadd.f32 %v1764_v8, %v1763_v5  ;;  %v1828_v10 = vpop.f32.mrb[3].mxu1 }
  0xfb   :  { %v2467_v11 = vadd.f32 %v1826_v6, %v1762_v3  ;;  %v1829_v12 = vadd.f32 %v1828_v10, %v1827_v7 }
  0xfd   :  { %v2469_v13 = vadd.f32 %v1829_v12, %v1765_v9 }
  0xfe   :  { %v1766_v14 = vpop.f32.mrb[4].mxu0 }
  0xff   :  { %v1830_v15 = vpop.f32.mrb[4].mxu1  ;;  %v1767_v16 = vpop.f32.mrb[5].mxu0 }
 0x100   :  { %v1768_v17 = vadd.f32 %v1767_v16, %v1766_v14  ;;  %v1831_v18 = vpop.f32.mrb[5].mxu1  ;;  %v1769_v19 = vpop.f32.mrb[6].mxu0 }
 0x101   :  { %v1832_v20 = vadd.f32 %v1831_v18, %v1830_v15  ;;  %v1833_v21 = vpop.f32.mrb[6].mxu1  ;;  %v1770_v22 = vpop.f32.mrb[7].mxu0 }
 0x102   :  { %v1771_v23 = vadd.f32 %v1770_v22, %v1769_v19  ;;  %v1834_v24 = vpop.f32.mrb[7].mxu1 }
 0x103   :  { %v2471_v25 = vadd.f32 %v1832_v20, %v1768_v17  ;;  %v1835_v26 = vadd.f32 %v1834_v24, %v1833_v21 }
 0x105   :  { %v2473_v27 = vadd.f32 %v1835_v26, %v1771_v23 }
 0x106   :  { %v1772_v28 = vpop.f32.mrb[8].mxu0 }
 0x107   :  { %v1836_v29 = vpop.f32.mrb[8].mxu1  ;;  %v1773_v30 = vpop.f32.mrb[9].mxu0 }
 0x108   :  { %v1774_v31 = vadd.f32 %v1773_v30, %v1772_v28  ;;  %v1837_v32 = vpop.f32.mrb[9].mxu1  ;;  %v1775_v33 = vpop.f32.mrb[10].mxu0 }
 0x109   :  { %v1838_v34 = vadd.f32 %v1837_v32, %v1836_v29  ;;  %v1839_v35 = vpop.f32.mrb[10].mxu1  ;;  %v1776_v36 = vpop.f32.mrb[11].mxu0 }
 0x10a   :  { %v1777_v37 = vadd.f32 %v1776_v36, %v1775_v33  ;;  %v1840_v38 = vpop.f32.mrb[11].mxu1 }
 0x10b   :  { %v2475_v39 = vadd.f32 %v1838_v34, %v1774_v31  ;;  %v1841_v40 = vadd.f32 %v1840_v38, %v1839_v35 }
 0x10d   :  { %v2477_v41 = vadd.f32 %v1841_v40, %v1777_v37 }
 0x10e   :  { %v1778_v42 = vpop.f32.mrb[12].mxu0 }
 0x10f   :  { %v1842_v43 = vpop.f32.mrb[12].mxu1  ;;  %v1779_v44 = vpop.f32.mrb[13].mxu0 }
 0x110   :  { %v1780_v45 = vadd.f32 %v1779_v44, %v1778_v42  ;;  %v1843_v46 = vpop.f32.mrb[13].mxu1  ;;  %v1781_v47 = vpop.f32.mrb[14].mxu0 }
 0x111   :  { %v1844_v48 = vadd.f32 %v1843_v46, %v1842_v43  ;;  %v1845_v49 = vpop.f32.mrb[14].mxu1  ;;  %v1782_v50 = vpop.f32.mrb[15].mxu0 }
 0x112   :  { %v1783_v51 = vadd.f32 %v1782_v50, %v1781_v47  ;;  %v1846_v52 = vpop.f32.mrb[15].mxu1 }
 0x113   :  { %v2479_v53 = vadd.f32 %v1844_v48, %v1780_v45  ;;  %v1847_v54 = vadd.f32 %v1846_v52, %v1845_v49 }
 0x115   :  { %v2481_v55 = vadd.f32 %v1847_v54, %v1783_v51 }
 0x116   :  { %v1784_v56 = vpop.f32.mrb[16].mxu0 }
 0x117   :  { %v1848_v57 = vpop.f32.mrb[16].mxu1  ;;  %v1785_v58 = vpop.f32.mrb[17].mxu0 }
 0x118   :  { %v1786_v59 = vadd.f32 %v1785_v58, %v1784_v56  ;;  %v1849_v60 = vpop.f32.mrb[17].mxu1  ;;  %v1787_v61 = vpop.f32.mrb[18].mxu0 }
 0x119   :  { %v1850_v62 = vadd.f32 %v1849_v60, %v1848_v57  ;;  %v1851_v63 = vpop.f32.mrb[18].mxu1  ;;  %v1788_v0 = vpop.f32.mrb[19].mxu0 }
 0x11a   :  { %v1789_v1 = vadd.f32 %v1788_v0, %v1787_v61  ;;  %v1852_v2 = vpop.f32.mrb[19].mxu1 }
 0x11b   :  { %v2483_v3 = vadd.f32 %v1850_v62, %v1786_v59  ;;  %v1853_v4 = vadd.f32 %v1852_v2, %v1851_v63 }
 0x11d   :  { %v2485_v5 = vadd.f32 %v1853_v4, %v1789_v1 }
 0x11e   :  { %v1790_v6 = vpop.f32.mrb[20].mxu0 }
 0x11f   :  { %v1854_v7 = vpop.f32.mrb[20].mxu1  ;;  %v1791_v8 = vpop.f32.mrb[21].mxu0 }
 0x120   :  { %v1792_v9 = vadd.f32 %v1791_v8, %v1790_v6  ;;  %v1855_v10 = vpop.f32.mrb[21].mxu1  ;;  %v1793_v12 = vpop.f32.mrb[22].mxu0 }
 0x121   :  { %v1856_v14 = vadd.f32 %v1855_v10, %v1854_v7  ;;  %v1857_v15 = vpop.f32.mrb[22].mxu1  ;;  %v1794_v16 = vpop.f32.mrb[23].mxu0 }
 0x122   :  { %v1795_v17 = vadd.f32 %v1794_v16, %v1793_v12  ;;  %v1858_v18 = vpop.f32.mrb[23].mxu1 }
 0x123   :  { %v2487_v19 = vadd.f32 %v1856_v14, %v1792_v9  ;;  %v1859_v20 = vadd.f32 %v1858_v18, %v1857_v15 }
 0x125   :  { %v2489_v21 = vadd.f32 %v1859_v20, %v1795_v17 }
 0x126   :  { %v1796_v22 = vpop.f32.mrb[24].mxu0 }
 0x127   :  { %v1860_v23 = vpop.f32.mrb[24].mxu1  ;;  %v1797_v24 = vpop.f32.mrb[25].mxu0 }
 0x128   :  { %v1798_v26 = vadd.f32 %v1797_v24, %v1796_v22  ;;  %v1861_v28 = vpop.f32.mrb[25].mxu1  ;;  %v1799_v29 = vpop.f32.mrb[26].mxu0 }
 0x129   :  { %v1862_v30 = vadd.f32 %v1861_v28, %v1860_v23  ;;  %v1863_v31 = vpop.f32.mrb[26].mxu1  ;;  %v1800_v32 = vpop.f32.mrb[27].mxu0 }
 0x12a   :  { %v1801_v33 = vadd.f32 %v1800_v32, %v1799_v29  ;;  %v1864_v34 = vpop.f32.mrb[27].mxu1 }
 0x12b   :  { %v2491_v35 = vadd.f32 %v1862_v30, %v1798_v26  ;;  %v1865_v36 = vadd.f32 %v1864_v34, %v1863_v31 }
 0x12d   :  { %v2493_v37 = vadd.f32 %v1865_v36, %v1801_v33 }
 0x12e   :  { %v1802_v38 = vpop.f32.mrb[28].mxu0 }
 0x12f   :  { %v1866_v40 = vpop.f32.mrb[28].mxu1  ;;  %v1803_v42 = vpop.f32.mrb[29].mxu0 }
 0x130   :  { %v1804_v43 = vadd.f32 %v1803_v42, %v1802_v38  ;;  %v1867_v44 = vpop.f32.mrb[29].mxu1  ;;  %v1805_v45 = vpop.f32.mrb[30].mxu0 }
 0x131   :  { %v1868_v46 = vadd.f32 %v1867_v44, %v1866_v40  ;;  %v1869_v47 = vpop.f32.mrb[30].mxu1  ;;  %v1806_v48 = vpop.f32.mrb[31].mxu0 }
 0x132   :  { %v1807_v49 = vadd.f32 %v1806_v48, %v1805_v45  ;;  %v1870_v50 = vpop.f32.mrb[31].mxu1 }
 0x133   :  { %v2495_v51 = vadd.f32 %v1868_v46, %v1804_v43  ;;  %v1871_v52 = vadd.f32 %v1870_v50, %v1869_v47 }
 0x135   :  { %v2497_v54 = vadd.f32 %v1871_v52, %v1807_v49 }
 0x136   :  { %v1888_v56 = vpop.f32.mrb[32].mxu0 }
 0x137   :  { %v1952_v57 = vpop.f32.mrb[32].mxu1  ;;  %v1889_v58 = vpop.f32.mrb[33].mxu0 }
 0x138   :  { %v1890_v59 = vadd.f32 %v1889_v58, %v1888_v56  ;;  %v1953_v60 = vpop.f32.mrb[33].mxu1  ;;  %v1891_v61 = vpop.f32.mrb[34].mxu0 }
 0x139   :  { %v1954_v62 = vadd.f32 %v1953_v60, %v1952_v57  ;;  %v1955_v63 = vpop.f32.mrb[34].mxu1  ;;  %v1892_v0 = vpop.f32.mrb[35].mxu0 }
 0x13a   :  { %v1137_v1 = vadd.f32 %v1890_v59, %v2467_v11  ;;  %v1893_v2 = vadd.f32 %v1892_v0, %v1891_v61  ;;  %v1956_v4 = vpop.f32.mrb[35].mxu1 }
 0x13b   :  { %v1957_v6 = vadd.f32 %v1956_v4, %v1955_v63 }
 0x13c   :  { %v2500_v7 = vadd.f32 %v1954_v62, %v1137_v1  ;;  %v1140_v8 = vadd.f32 %v1893_v2, %v2469_v13 }
 0x13e   :  { %v2503_v9 = vadd.f32 %v1957_v6, %v1140_v8  ;;  %v1894_v10 = vpop.f32.mrb[36].mxu0 }
 0x13f   :  { %v1958_v12 = vpop.f32.mrb[36].mxu1  ;;  %v1895_v14 = vpop.f32.mrb[37].mxu0 }
 0x140   :  { %v1296_v15 = vadd.f32 %v2503_v9, %v2500_v7  ;;  %v1896_v16 = vadd.f32 %v1895_v14, %v1894_v10  ;;  %v1959_v17 = vpop.f32.mrb[37].mxu1  ;;  %v1897_v18 = vpop.f32.mrb[38].mxu0 }
 0x141   :  { %v1960_v20 = vadd.f32 %v1959_v17, %v1958_v12  ;;  %v1961_v11 = vpop.f32.mrb[38].mxu1  ;;  %v1898_v22 = vpop.f32.mrb[39].mxu0 }
 0x142   :  { %v1145_v23 = vadd.f32 %v1896_v16, %v2471_v25  ;;  %v1899_v24 = vadd.f32 %v1898_v22, %v1897_v18  ;;  %v1962_v26 = vpop.f32.mrb[39].mxu1 }
 0x143   :  { %v1963_v28 = vadd.f32 %v1962_v26, %v1961_v11 }
 0x144   :  { %v2508_v13 = vadd.f32 %v1960_v20, %v1145_v23  ;;  %v1148_v29 = vadd.f32 %v1899_v24, %v2473_v27 }
 0x146   :  { %v1297_v30 = vadd.f32 %v1296_v15, %v2508_v13  ;;  %v2512_v31 = vadd.f32 %v1963_v28, %v1148_v29  ;;  %v1900_v32 = vpop.f32.mrb[40].mxu0 }
 0x147   :  { %v1964_v33 = vpop.f32.mrb[40].mxu1  ;;  %v1901_v34 = vpop.f32.mrb[41].mxu0 }
 0x148   :  { %v1298_v36 = vadd.f32 %v1297_v30, %v2512_v31  ;;  %v1902_v38 = vadd.f32 %v1901_v34, %v1900_v32  ;;  %v1965_v40 = vpop.f32.mrb[41].mxu1  ;;  %v1903_v42 = vpop.f32.mrb[42].mxu0 }
 0x149   :  { %v1966_v25 = vadd.f32 %v1965_v40, %v1964_v33  ;;  %v1967_v43 = vpop.f32.mrb[42].mxu1  ;;  %v1904_v44 = vpop.f32.mrb[43].mxu0 }
 0x14a   :  { %v1153_v45 = vadd.f32 %v1902_v38, %v2475_v39  ;;  %v1905_v46 = vadd.f32 %v1904_v44, %v1903_v42  ;;  %v1968_v47 = vpop.f32.mrb[43].mxu1 }
 0x14b   :  { %v1969_v27 = vadd.f32 %v1968_v47, %v1967_v43 }
 0x14c   :  { %v2516_v48 = vadd.f32 %v1966_v25, %v1153_v45  ;;  %v1156_v49 = vadd.f32 %v1905_v46, %v2477_v41 }
 0x14e   :  { %v1299_v50 = vadd.f32 %v1298_v36, %v2516_v48  ;;  %v2520_v52 = vadd.f32 %v1969_v27, %v1156_v49  ;;  %v1906_v56 = vpop.f32.mrb[44].mxu0 }
 0x14f   :  { %v1970_v57 = vpop.f32.mrb[44].mxu1  ;;  %v1907_v58 = vpop.f32.mrb[45].mxu0 }
 0x150   :  { %v1300_v59 = vadd.f32 %v1299_v50, %v2520_v52  ;;  %v1908_v60 = vadd.f32 %v1907_v58, %v1906_v56  ;;  %v1971_v61 = vpop.f32.mrb[45].mxu1  ;;  %v1909_v62 = vpop.f32.mrb[46].mxu0 }
 0x151   :  { %v1972_v39 = vadd.f32 %v1971_v61, %v1970_v57  ;;  %v1973_v63 = vpop.f32.mrb[46].mxu1  ;;  %v1910_v0 = vpop.f32.mrb[47].mxu0 }
 0x152   :  { %v1161_v1 = vadd.f32 %v1908_v60, %v2479_v53  ;;  %v1911_v2 = vadd.f32 %v1910_v0, %v1909_v62  ;;  %v1974_v4 = vpop.f32.mrb[47].mxu1 }
 0x153   :  { %v1975_v41 = vadd.f32 %v1974_v4, %v1973_v63 }
 0x154   :  { %v1258_v6 = vadd.f32 %v1972_v39, %v1161_v1  ;;  %v1164_v8 = vadd.f32 %v1911_v2, %v2481_v55 }
 0x156   :  { %v1301_v10 = vadd.f32 %v1300_v59, %v1258_v6  ;;  %v1261_v12 = vadd.f32 %v1975_v41, %v1164_v8  ;;  %v1912_v14 = vpop.f32.mrb[48].mxu0 }
 0x157   :  { %v1976_v15 = vpop.f32.mrb[48].mxu1  ;;  %v1913_v16 = vpop.f32.mrb[49].mxu0 }
 0x158   :  { %v1302_v17 = vadd.f32 %v1301_v10, %v1261_v12  ;;  %v1914_v18 = vadd.f32 %v1913_v16, %v1912_v14  ;;  %v1977_v20 = vpop.f32.mrb[49].mxu1  ;;  %v1915_v11 = vpop.f32.mrb[50].mxu0 }
 0x159   :  { %v1978_v22 = vadd.f32 %v1977_v20, %v1976_v15  ;;  %v1979_v23 = vpop.f32.mrb[50].mxu1  ;;  %v1916_v24 = vpop.f32.mrb[51].mxu0 }
 0x15a   :  { %v1303_v26 = vrot.slane %v1302_v17, 4  ;;  %v1169_v53 = vadd.f32 %v1914_v18, %v2483_v3  ;;  %v1917_v28 = vadd.f32 %v1916_v24, %v1915_v11  ;;  %v1980_v29 = vpop.f32.mrb[51].mxu1 }
 0x15b   :  { %v1981_v30 = vadd.f32 %v1980_v29, %v1979_v23 }
 0x15c   :  { %v1304_v32 = vadd.f32 %v1303_v26, %v1302_v17  ;;  %v2526_v55 = vadd.f32 %v1978_v22, %v1169_v53  ;;  %v1172_v33 = vadd.f32 %v1917_v28, %v2485_v5 }
 0x15e   :  { %v1305_v34 = vrot.slane %v1304_v32, 2  ;;  %v2529_v36 = vadd.f32 %v1981_v30, %v1172_v33  ;;  %v1918_v38 = vpop.f32.mrb[52].mxu0 }
 0x15f   :  { %v1982_v40 = vpop.f32.mrb[52].mxu1  ;;  %v1919_v42 = vpop.f32.mrb[53].mxu0 }
 0x160   :  { %v1306_v25 = vadd.f32 %v1305_v34, %v1304_v32  ;;  %v1415_v43 = vadd.f32 %v2529_v36, %v2526_v55  ;;  %v1920_v44 = vadd.f32 %v1919_v42, %v1918_v38  ;;  %v1983_v3 = vpop.f32.mrb[53].mxu1  ;;  %v1921_v45 = vpop.f32.mrb[54].mxu0 }
 0x161   :  { %v1984_v46 = vadd.f32 %v1983_v3, %v1982_v40  ;;  %v1985_v47 = vpop.f32.mrb[54].mxu1  ;;  %v1922_v27 = vpop.f32.mrb[55].mxu0 }
 0x162   :  { %v1307_v49 = vrot.slane %v1306_v25, 1  ;;  %v1177_v50 = vadd.f32 %v1920_v44, %v2487_v19  ;;  %v1923_v5 = vadd.f32 %v1922_v27, %v1921_v45  ;;  %v1986_v56 = vpop.f32.mrb[55].mxu1 }
 0x163   :  { %v1987_v57 = vadd.f32 %v1986_v56, %v1985_v47 }
 0x164   :  { %v1308_v58 = vadd.f32 %v1307_v49, %v1306_v25  ;;  %v2534_v59 = vadd.f32 %v1984_v46, %v1177_v50  ;;  %v1180_v60 = vadd.f32 %v1923_v5, %v2489_v21 }
 0x166   :  { %v1310_v61 = vmul.f32 0.015625, %v1308_v58  ;;  %v1416_v62 = vadd.f32 %v1415_v43, %v2534_v59  ;;  %v2538_v39 = vadd.f32 %v1987_v57, %v1180_v60  ;;  %v1924_v63 = vpop.f32.mrb[56].mxu0 }
 0x167   :  { %v1988_v0 = vpop.f32.mrb[56].mxu1  ;;  %v1925_v1 = vpop.f32.mrb[57].mxu0 }
 0x168   :  { %v2541_v2 = vsub.f32 %v2500_v7, %v1310_v61  ;;  %v2544_v19 = vsub.f32 %v2503_v9, %v1310_v61  ;;  %v2547_v4 = vsub.f32 %v2508_v13, %v1310_v61  ;;  %v2550_v41 = vsub.f32 %v2512_v31, %v1310_v61  ;;  %v1989_v21 = vpop.f32.mrb[57].mxu1  ;;  %v1927_v8 = vpop.f32.mrb[58].mxu0 }
 0x169   :  { %v2553_v10 = vsub.f32 %v2516_v48, %v1310_v61  ;;  %v2556_v14 = vsub.f32 %v2520_v52, %v1310_v61  ;;  %v2558_v15 = vsub.f32 %v1258_v6, %v1310_v61  ;;  %v2560_v7 = vsub.f32 %v1261_v12, %v1310_v61  ;;  %v1991_v9 = vpop.f32.mrb[58].mxu1  ;;  %v1928_v16 = vpop.f32.mrb[59].mxu0 }
 0x16a   :  { %v1319_v13 = vmul.f32 %v2541_v2, %v2541_v2  ;;  %v1320_v31 = vmul.f32 %v2544_v19, %v2544_v19  ;;  %v1992_v17 = vpop.f32.mrb[59].mxu1  ;;  %v1321_v48 = vmul.f32 %v2547_v4, %v2547_v4  ;;  %v1417_v52 = vadd.f32 %v1416_v62, %v2538_v39 }
 0x16b   :  { %v1926_v20 = vadd.f32 %v1925_v1, %v1924_v63  ;;  %v1990_v6 = vadd.f32 %v1989_v21, %v1988_v0  ;;  %v1929_v11 = vadd.f32 %v1928_v16, %v1927_v8  ;;  %v1993_v12 = vadd.f32 %v1992_v17, %v1991_v9 }
 0x16c   :  { %v1327_v18 = vadd.f32 %v1320_v31, %v1319_v13  ;;  %v1322_v22 = vmul.f32 %v2550_v41, %v2550_v41  ;;  %v1323_v30 = vmul.f32 %v2553_v10, %v2553_v10  ;;  %v1324_v42 = vmul.f32 %v2556_v14, %v2556_v14 }
 0x16d   :  { %v1185_v24 = vadd.f32 %v1926_v20, %v2491_v35  ;;  %v1188_v53 = vadd.f32 %v1929_v11, %v2493_v37  ;;  %v1325_v27 = vmul.f32 %v2558_v15, %v2558_v15  ;;  %v1326_v58 = vmul.f32 %v2560_v7, %v2560_v7 }
 0x16e   :  { %v1328_v23 = vadd.f32 %v1327_v18, %v1321_v48  ;;  %v1930_v26 = vpop.f32.mrb[60].mxu0 }
 0x16f   :  { %v1994_v28 = vpop.f32.mrb[60].mxu1  ;;  %v1931_v29 = vpop.f32.mrb[61].mxu0  ;;  %v1282_v33 = vadd.f32 %v1990_v6, %v1185_v24  ;;  %v1285_v25 = vadd.f32 %v1993_v12, %v1188_v53 }
 0x170   :  { %v1329_v32 = vadd.f32 %v1328_v23, %v1322_v22  ;;  %v1932_v34 = vadd.f32 %v1931_v29, %v1930_v26  ;;  %v1995_v38 = vpop.f32.mrb[61].mxu1  ;;  %v1933_v40 = vpop.f32.mrb[62].mxu0 }
 0x171   :  { %v1996_v43 = vadd.f32 %v1995_v38, %v1994_v28  ;;  %v1997_v44 = vpop.f32.mrb[62].mxu1  ;;  %v1934_v35 = vpop.f32.mrb[63].mxu0  ;;  %v1418_v45 = vadd.f32 %v1417_v52, %v1282_v33 }
 0x172   :  { %v1330_v3 = vadd.f32 %v1329_v32, %v1323_v30  ;;  %v1193_v37 = vadd.f32 %v1932_v34, %v2495_v51  ;;  %v1935_v46 = vadd.f32 %v1934_v35, %v1933_v40  ;;  %v1998_v47 = vpop.f32.mrb[63].mxu1 }
 0x173   :  { %v1999_v49 = vadd.f32 %v1998_v47, %v1997_v44  ;;  %v1419_v5 = vadd.f32 %v1418_v45, %v1285_v25 }
 0x174   :  { %v1331_v50 = vadd.f32 %v1330_v3, %v1324_v42  ;;  %v1290_v56 = vadd.f32 %v1996_v43, %v1193_v37  ;;  %v1196_v57 = vadd.f32 %v1935_v46, %v2497_v54 }
 0x176   :  { %v1332_v60 = vadd.f32 %v1331_v50, %v1325_v27  ;;  %v1420_v61 = vadd.f32 %v1419_v5, %v1290_v56  ;;  %v1293_v62 = vadd.f32 %v1999_v49, %v1196_v57 }
 0x178   :  { %v1333_v63 = vadd.f32 %v1332_v60, %v1326_v58  ;;  %v1421_v0 = vadd.f32 %v1420_v61, %v1293_v62 }
 0x17a   :  { %v1334_v51 = vrot.slane %v1333_v63, 4  ;;  %v1422_v1 = vrot.slane %v1421_v0, 4 }
 0x17c   :  { %v1335_v21 = vadd.f32 %v1334_v51, %v1333_v63  ;;  %v1423_v8 = vadd.f32 %v1422_v1, %v1421_v0 }
 0x17e   :  { %v1336_v9 = vrot.slane %v1335_v21, 2  ;;  %v1424_v16 = vrot.slane %v1423_v8, 2 }
 0x180   :  { %v1337_v13 = vadd.f32 %v1336_v9, %v1335_v21  ;;  %v1425_v31 = vadd.f32 %v1424_v16, %v1423_v8 }
 0x182   :  { %v1338_v17 = vrot.slane %v1337_v13, 1  ;;  %v1426_v48 = vrot.slane %v1425_v31, 1 }
 0x184   :  { %v1339_v18 = vadd.f32 %v1338_v17, %v1337_v13  ;;  %v1427_v54 = vadd.f32 %v1426_v48, %v1425_v31 }
 0x186   :  { %v1340_v52 = vmul.f32 0.015625, %v1339_v18  ;;  %v1428_v20 = vmul.f32 0.015625, %v1427_v54 }
 0x188   :  { %v1341_v6 = vadd.f32 1e-05, %v1340_v52  ;;  %v2584_v11 = vsub.f32 %v2526_v55, %v1428_v20  ;;  %v2587_v12 = vsub.f32 %v2529_v36, %v1428_v20  ;;  %v2590_v22 = vsub.f32 %v2534_v59, %v1428_v20 }
 0x189   :  { %v2593_v23 = vsub.f32 %v2538_v39, %v1428_v20  ;;  %v2595_v24 = vsub.f32 %v1282_v33, %v1428_v20  ;;  %v2597_v26 = vsub.f32 %v1285_v25, %v1428_v20  ;;  %v2599_v53 = vsub.f32 %v1290_v56, %v1428_v20 }
 0x18a   :  { %2064 = vrsqrt.f32 %v1341_v6  ;;  %v2601_v28 = vsub.f32 %v1293_v62, %v1428_v20  ;;  %v1437_v55 = vmul.f32 %v2584_v11, %v2584_v11  ;;  %v1438_v36 = vmul.f32 %v2587_v12, %v2587_v12 }
 0x18b   :  { %v1439_v59 = vmul.f32 %v2590_v22, %v2590_v22  ;;  %v1440_v29 = vmul.f32 %v2593_v23, %v2593_v23  ;;  %v1441_v32 = vmul.f32 %v2595_v24, %v2595_v24  ;;  %v1442_v34 = vmul.f32 %v2597_v26, %v2597_v26 }
 0x18c   :  { %v1445_v39 = vadd.f32 %v1438_v36, %v1437_v55  ;;  %v1443_v42 = vmul.f32 %v2599_v53, %v2599_v53 }
 0x18e   :  { %v1446_v30 = vadd.f32 %v1445_v39, %v1439_v59 }
 0x190   :  { %v1447_v33 = vadd.f32 %v1446_v30, %v1440_v29 }
 0x192   :  { %v1448_v38 = vadd.f32 %v1447_v33, %v1441_v32 }
 0x194   :  { %v2065_v40 = vpop.eup %2064  ;;  %v1449_v25 = vadd.f32 %v1448_v38, %v1442_v34 }
 0x195   :  { %v1343_v43 = vmul.f32 %v2065_v40, %v2541_v2  ;;  %v1344_v44 = vmul.f32 %v2065_v40, %v2544_v19  ;;  %v1345_v35 = vmul.f32 %v2065_v40, %v2547_v4  ;;  %v1346_v3 = vmul.f32 %v2065_v40, %v2550_v41 }
 0x196   :  { %v1347_v45 = vmul.f32 %v2065_v40, %v2553_v10  ;;  %v1348_v37 = vmul.f32 %v2065_v40, %v2556_v14  ;;  %v1349_v46 = vmul.f32 %v2065_v40, %v2558_v15  ;;  %v1350_v47 = vmul.f32 %v2065_v40, %v2560_v7 }
 0x197   :  { %vm1351_vm0 = vcmp.ge.f32.partialorder %v1343_v43, 0.0  ;;  %vm1352_vm1 = vcmp.ge.f32.partialorder %v1344_v44, 0.0  ;;  %vm1353_vm2 = vcmp.ge.f32.partialorder %v1345_v35, 0.0  ;;  %vm1354_vm3 = vcmp.ge.f32.partialorder %v1346_v3, 0.0 }
 0x198   :  { %vm1355_vm4 = vcmp.ge.f32.partialorder %v1347_v45, 0.0  ;;  %vm1356_vm5 = vcmp.ge.f32.partialorder %v1348_v37, 0.0  ;;  %vm1357_vm6 = vcmp.ge.f32.partialorder %v1349_v46, 0.0  ;;  %vm1358_vm7 = vcmp.ge.f32.partialorder %v1350_v47, 0.0 }
 0x199   :  { %v1359_v2 = vmul.f32 0.2, %v1343_v43  ;;  %v1360_v19 = vmul.f32 0.2, %v1344_v44  ;;  %v1361_v4 = vmul.f32 0.2, %v1345_v35  ;;  %v1450_v41 = vadd.f32 %v1449_v25, %v1443_v42 }
 0x19a   :  { %v1362_v27 = vmul.f32 0.2, %v1346_v3  ;;  %v1363_v10 = vmul.f32 0.2, %v1347_v45  ;;  %v1364_v49 = vmul.f32 0.2, %v1348_v37  ;;  %v1444_v14 = vmul.f32 %v2601_v28, %v2601_v28 }
 0x19b   :  { %v1365_v15 = vmul.f32 0.2, %v1349_v46  ;;  %v1366_v7 = vmul.f32 0.2, %v1350_v47  ;;  %v1367_v50 = vsel %vm1351_vm0, %v1343_v43, %v1359_v2  ;;  %v1368_v5 = vsel %vm1352_vm1, %v1344_v44, %v1360_v19 }
 0x19c   :  { %v1369_v56 = vsel %vm1353_vm2, %v1345_v35, %v1361_v4  ;;  %v1370_v57 = vsel %vm1354_vm3, %v1346_v3, %v1362_v27  ;;  %v1371_v58 = vsel %vm1355_vm4, %v1347_v45, %v1363_v10  ;;  %v1372_v60 = vsel %vm1356_vm5, %v1348_v37, %v1364_v49 }
 0x19d   :  { %v1373_v61 = vsel %vm1357_vm6, %v1349_v46, %v1365_v15  ;;  %v1374_v62 = vsel %vm1358_vm7, %v1350_v47, %v1366_v7  ;;  %v1700_v63 = vpack.c.bf16 %v1368_v5, %v1367_v50  ;;  %v1705_v0 = vpack.c.bf16 %v1370_v57, %v1369_v56 }
 0x19e   :  { %v1710_v51 = vpack.c.bf16 %v1372_v60, %v1371_v58  ;;  %v1715_v1 = vpack.c.bf16 %v1374_v62, %v1373_v61  ;;  %v1451_v21 = vadd.f32 %v1450_v41, %v1444_v14 }
 0x19f   :  { %1701 = vst [vmem:[%s2677_s2] sm:$0xff] %v1700_v63   ;;  %1737 = vst [vmem:[%s2677_s2 + $0x8] sm:$0xff] %v1705_v0  }
 0x1a0   :  { %1738 = vst [vmem:[%s2677_s2 + $0x10] sm:$0xff] %v1710_v51   ;;  %1739 = vst [vmem:[%s2677_s2 + $0x18] sm:$0xff] %v1715_v1   ;;  %v1452_v8 = vrot.slane %v1451_v21, 4 }
 0x1a2   :  { %v1453_v9 = vadd.f32 %v1452_v8, %v1451_v21 }
 0x1a4   :  { %v1454_v16 = vrot.slane %v1453_v9, 2 }
 0x1a6   :  { %v1455_v13 = vadd.f32 %v1454_v16, %v1453_v9 }
 0x1a8   :  { %v1456_v31 = vrot.slane %v1455_v13, 1 }
 0x1aa   :  { %v1457_v17 = vadd.f32 %v1456_v31, %v1455_v13 }
 0x1ac   :  { %v1458_v48 = vmul.f32 0.015625, %v1457_v17 }
 0x1ae   :  { %v1459_v18 = vadd.f32 1e-05, %v1458_v48 }
 0x1b0   :  { %2066 = vrsqrt.f32 %v1459_v18 }
 0x1ba   :  { %v2067_v54 = vpop.eup %2066 }
 0x1bb   :  { %v1461_v52 = vmul.f32 %v2067_v54, %v2584_v11  ;;  %v1462_v20 = vmul.f32 %v2067_v54, %v2587_v12  ;;  %v1463_v6 = vmul.f32 %v2067_v54, %v2590_v22  ;;  %v1464_v55 = vmul.f32 %v2067_v54, %v2593_v23 }
 0x1bc   :  { %v1465_v36 = vmul.f32 %v2067_v54, %v2595_v24  ;;  %v1466_v59 = vmul.f32 %v2067_v54, %v2597_v26  ;;  %v1467_v39 = vmul.f32 %v2067_v54, %v2599_v53  ;;  %v1468_v29 = vmul.f32 %v2067_v54, %v2601_v28 }
 0x1bd   :  { %vm1469_vm8 = vcmp.ge.f32.partialorder %v1461_v52, 0.0  ;;  %vm1470_vm9 = vcmp.ge.f32.partialorder %v1462_v20, 0.0  ;;  %vm1471_vm10 = vcmp.ge.f32.partialorder %v1463_v6, 0.0  ;;  %vm1472_vm11 = vcmp.ge.f32.partialorder %v1464_v55, 0.0 }
 0x1be   :  { %vm1473_vm12 = vcmp.ge.f32.partialorder %v1465_v36, 0.0  ;;  %vm1474_vm13 = vcmp.ge.f32.partialorder %v1466_v59, 0.0  ;;  %vm1475_vm14 = vcmp.ge.f32.partialorder %v1467_v39, 0.0  ;;  %vm1476_vm15 = vcmp.ge.f32.partialorder %v1468_v29, 0.0 }
 0x1bf   :  { %v1477_v11 = vmul.f32 0.2, %v1461_v52  ;;  %v1478_v12 = vmul.f32 0.2, %v1462_v20  ;;  %v1479_v22 = vmul.f32 0.2, %v1463_v6 }
 0x1c0   :  { %v1480_v23 = vmul.f32 0.2, %v1464_v55  ;;  %v1481_v30 = vmul.f32 0.2, %v1465_v36  ;;  %v1482_v24 = vmul.f32 0.2, %v1466_v59 }
 0x1c1   :  { %v1483_v32 = vmul.f32 0.2, %v1467_v39  ;;  %v1484_v26 = vmul.f32 0.2, %v1468_v29  ;;  %v1485_v53 = vsel %vm1469_vm8, %v1461_v52, %v1477_v11  ;;  %v1486_v28 = vsel %vm1470_vm9, %v1462_v20, %v1478_v12 }
 0x1c2   :  { %v1487_v33 = vsel %vm1471_vm10, %v1463_v6, %v1479_v22  ;;  %v1488_v34 = vsel %vm1472_vm11, %v1464_v55, %v1480_v23  ;;  %v1489_v38 = vsel %vm1473_vm12, %v1465_v36, %v1481_v30  ;;  %v1490_v40 = vsel %vm1474_vm13, %v1466_v59, %v1482_v24 }
 0x1c3   :  { %v1491_v42 = vsel %vm1475_vm14, %v1467_v39, %v1483_v32  ;;  %v1492_v25 = vsel %vm1476_vm15, %v1468_v29, %v1484_v26  ;;  %v1720_v43 = vpack.c.bf16 %v1486_v28, %v1485_v53  ;;  %v1725_v44 = vpack.c.bf16 %v1488_v34, %v1487_v33 }
 0x1c4   :  { %v1730_v35 = vpack.c.bf16 %v1490_v40, %v1489_v38  ;;  %v1735_v3 = vpack.c.bf16 %v1492_v25, %v1491_v42 }
 0x1c5   :  { %1740 = vst [vmem:[%s2677_s2 + $0x20] sm:$0xff] %v1720_v43   ;;  %1741 = vst [vmem:[%s2677_s2 + $0x28] sm:$0xff] %v1725_v44  }
 0x1c6   :  { %1742 = vst [vmem:[%s2677_s2 + $0x30] sm:$0xff] %v1730_v35   ;;  %1743 = vst [vmem:[%s2677_s2 + $0x38] sm:$0xff] %v1735_v3  }

// kernel: discriminator_forward.7
= control target key start
LH: loop header
LB: loop body
LE: loop exit
PB: predicated region body
PF: predicated region fallthrough
CT: control target
= control target key end

     0   :  { %s4039_s1 = inlined_call_operand.vmem [shape: bf16[2048,256], index: 1, kind: input, shape index: {}]   ;;  %s4040_s0 = inlined_call_operand.vmem [shape: bf16[32,2048], index: 0, kind: input, shape index: {}]   ;;  %s4041_s2 = inlined_call_operand.vmem [shape: bf16[32,256], index: 2, kind: output, shape index: {}]  }
   0x1   :  { %v2668_v0 = vld [vmem:[%s4039_s1 + $0x4] ss:$8 sps:$4 sm:$0xff]   ;;  %v2672_v2 = vld [vmem:[%s4039_s1] ss:$8 sps:$4 sm:$0xff]   ;;  %v2674_v4 = vld [vmem:[%s4039_s1 + $0x14] ss:$8 sps:$4 sm:$0xff]  }
   0x2   :  { %v2670_v1 = vld [vmem:[%s4039_s1 + $0x404] ss:$8 sps:$4 sm:$0xff]   ;;  %1739 = vmatprep.subr.bf16.mxu1 %v2668_v0  ;;  %v2673_v3 = vld [vmem:[%s4039_s1 + $0x400] ss:$8 sps:$4 sm:$0xff]   ;;  %v2676_v5 = vld [vmem:[%s4039_s1 + $0x414] ss:$8 sps:$4 sm:$0xff]  }
   0x3   :  { %1951 = vmatprep.subr.bf16.mxu0 %v2670_v1  ;;  %1740 = vmatpush1.bf16.msra.mxu1 %v2672_v2  ;;  %v2678_v6 = vld [vmem:[%s4039_s1 + $0x10] ss:$8 sps:$4 sm:$0xff]   ;;  %v2680_v8 = vld [vmem:[%s4039_s1 + $0x24] ss:$8 sps:$4 sm:$0xff]   ;;  %v2684_v10 = vld [vmem:[%s4039_s1 + $0x20] ss:$8 sps:$4 sm:$0xff]  }
   0x4   :  { %1952 = vmatpush1.bf16.msra.mxu0 %v2673_v3  ;;  %1741 = vmatprep.subr.bf16.mxu1 %v2674_v4  ;;  %v2679_v7 = vld [vmem:[%s4039_s1 + $0x410] ss:$8 sps:$4 sm:$0xff]   ;;  %v2682_v9 = vld [vmem:[%s4039_s1 + $0x424] ss:$8 sps:$4 sm:$0xff]   ;;  %v2685_v11 = vld [vmem:[%s4039_s1 + $0x420] ss:$8 sps:$4 sm:$0xff]  }
   0x5   :  { %1953 = vmatprep.subr.bf16.mxu0 %v2676_v5  ;;  %v2686_v12 = vld [vmem:[%s4039_s1 + $0x34] ss:$8 sps:$4 sm:$0xff]   ;;  %v2690_v14 = vld [vmem:[%s4039_s1 + $0x30] ss:$8 sps:$4 sm:$0xff]   ;;  %v2692_v16 = vld [vmem:[%s4039_s1 + $0x44] ss:$8 sps:$4 sm:$0xff]  }
   0x6   :  { %v2688_v13 = vld [vmem:[%s4039_s1 + $0x434] ss:$8 sps:$4 sm:$0xff]   ;;  %v2691_v15 = vld [vmem:[%s4039_s1 + $0x430] ss:$8 sps:$4 sm:$0xff]   ;;  %v2694_v17 = vld [vmem:[%s4039_s1 + $0x444] ss:$8 sps:$4 sm:$0xff]  }
   0x7   :  { %1742 = vmatpush1.bf16.msra.mxu1 %v2678_v6  ;;  %v2696_v18 = vld [vmem:[%s4039_s1 + $0x40] ss:$8 sps:$4 sm:$0xff]   ;;  %v2698_v20 = vld [vmem:[%s4039_s1 + $0x54] ss:$8 sps:$4 sm:$0xff]   ;;  %v2702_v22 = vld [vmem:[%s4039_s1 + $0x50] ss:$8 sps:$4 sm:$0xff]  }
   0x8   :  { %1954 = vmatpush1.bf16.msra.mxu0 %v2679_v7  ;;  %1743 = vmatprep.subr.bf16.mxu1 %v2680_v8  ;;  %v2697_v19 = vld [vmem:[%s4039_s1 + $0x440] ss:$8 sps:$4 sm:$0xff]   ;;  %v2700_v21 = vld [vmem:[%s4039_s1 + $0x454] ss:$8 sps:$4 sm:$0xff]   ;;  %v2703_v23 = vld [vmem:[%s4039_s1 + $0x450] ss:$8 sps:$4 sm:$0xff]  }
   0x9   :  { %1955 = vmatprep.subr.bf16.mxu0 %v2682_v9  ;;  %v2704_v24 = vld [vmem:[%s4039_s1 + $0x64] ss:$8 sps:$4 sm:$0xff]   ;;  %v2708_v26 = vld [vmem:[%s4039_s1 + $0x60] ss:$8 sps:$4 sm:$0xff]   ;;  %v2710_v28 = vld [vmem:[%s4039_s1 + $0x74] ss:$8 sps:$4 sm:$0xff]  }
   0xa   :  { %v2706_v25 = vld [vmem:[%s4039_s1 + $0x464] ss:$8 sps:$4 sm:$0xff]   ;;  %v2709_v27 = vld [vmem:[%s4039_s1 + $0x460] ss:$8 sps:$4 sm:$0xff]   ;;  %v2712_v29 = vld [vmem:[%s4039_s1 + $0x474] ss:$8 sps:$4 sm:$0xff]  }
   0xb   :  { %1744 = vmatpush1.bf16.msra.mxu1 %v2684_v10  ;;  %v2714_v30 = vld [vmem:[%s4039_s1 + $0x70] ss:$8 sps:$4 sm:$0xff]   ;;  %v2716_v32 = vld [vmem:[%s4039_s1 + $0x84] ss:$8 sps:$4 sm:$0xff]   ;;  %v2720_v34 = vld [vmem:[%s4039_s1 + $0x80] ss:$8 sps:$4 sm:$0xff]  }
   0xc   :  { %1956 = vmatpush1.bf16.msra.mxu0 %v2685_v11  ;;  %1745 = vmatprep.subr.bf16.mxu1 %v2686_v12  ;;  %v2715_v31 = vld [vmem:[%s4039_s1 + $0x470] ss:$8 sps:$4 sm:$0xff]   ;;  %v2718_v33 = vld [vmem:[%s4039_s1 + $0x484] ss:$8 sps:$4 sm:$0xff]   ;;  %v2721_v35 = vld [vmem:[%s4039_s1 + $0x480] ss:$8 sps:$4 sm:$0xff]  }
   0xd   :  { %1957 = vmatprep.subr.bf16.mxu0 %v2688_v13  ;;  %v2722_v36 = vld [vmem:[%s4039_s1 + $0x94] ss:$8 sps:$4 sm:$0xff]   ;;  %v2726_v38 = vld [vmem:[%s4039_s1 + $0x90] ss:$8 sps:$4 sm:$0xff]   ;;  %v2728_v40 = vld [vmem:[%s4039_s1 + $0xa4] ss:$8 sps:$4 sm:$0xff]  }
   0xe   :  { %v2724_v37 = vld [vmem:[%s4039_s1 + $0x494] ss:$8 sps:$4 sm:$0xff]   ;;  %v2727_v39 = vld [vmem:[%s4039_s1 + $0x490] ss:$8 sps:$4 sm:$0xff]   ;;  %v2730_v41 = vld [vmem:[%s4039_s1 + $0x4a4] ss:$8 sps:$4 sm:$0xff]  }
   0xf   :  { %1746 = vmatpush1.bf16.msra.mxu1 %v2690_v14  ;;  %v2732_v42 = vld [vmem:[%s4039_s1 + $0xa0] ss:$8 sps:$4 sm:$0xff]   ;;  %v2734_v44 = vld [vmem:[%s4039_s1 + $0xb4] ss:$8 sps:$4 sm:$0xff]   ;;  %v2738_v46 = vld [vmem:[%s4039_s1 + $0xb0] ss:$8 sps:$4 sm:$0xff]  }
  0x10   :  { %1958 = vmatpush1.bf16.msra.mxu0 %v2691_v15  ;;  %1747 = vmatprep.subr.bf16.mxu1 %v2692_v16  ;;  %v2733_v43 = vld [vmem:[%s4039_s1 + $0x4a0] ss:$8 sps:$4 sm:$0xff]   ;;  %v2736_v45 = vld [vmem:[%s4039_s1 + $0x4b4] ss:$8 sps:$4 sm:$0xff]   ;;  %v2739_v47 = vld [vmem:[%s4039_s1 + $0x4b0] ss:$8 sps:$4 sm:$0xff]  }
  0x11   :  { %1959 = vmatprep.subr.bf16.mxu0 %v2694_v17  ;;  %v11_v48 = vld [vmem:[%s4040_s0] sm:$0xff]  ;;  %v2746_v58 = vld [vmem:[%s4039_s1 + $0xd4] ss:$8 sps:$4 sm:$0xff]   ;;  %v2750_v60 = vld [vmem:[%s4039_s1 + $0xd0] ss:$8 sps:$4 sm:$0xff]  }
  0x12   :  { %v19_v49 = vld [vmem:[%s4040_s0 + $0x40] sm:$0xff]  ;;  %v2748_v59 = vld [vmem:[%s4039_s1 + $0x4d4] ss:$8 sps:$4 sm:$0xff]   ;;  %v2751_v61 = vld [vmem:[%s4039_s1 + $0x4d0] ss:$8 sps:$4 sm:$0xff]  }
  0x13   :  { %1748 = vmatpush1.bf16.msra.mxu1 %v2696_v18  ;;  %v2740_v50 = vld [vmem:[%s4039_s1 + $0xc4] ss:$8 sps:$4 sm:$0xff]   ;;  %v2317_v52 = vcombine.high %v11_v48, %v19_v49  ;;  %v2744_v56 = vld [vmem:[%s4039_s1 + $0xc0] ss:$8 sps:$4 sm:$0xff]   ;;  %v2758_v2 = vld [vmem:[%s4039_s1 + $0xf4] ss:$8 sps:$4 sm:$0xff]   ;;  %v2316_v8 = vcombine.low %v11_v48, %v19_v49 }
  0x14   :  { %1960 = vmatpush1.bf16.msra.mxu0 %v2697_v19  ;;  %1749 = vmatprep.subr.bf16.mxu1 %v2698_v20  ;;  %v2742_v51 = vld [vmem:[%s4039_s1 + $0x4c4] ss:$8 sps:$4 sm:$0xff]   ;;  %v2745_v57 = vld [vmem:[%s4039_s1 + $0x4c0] ss:$8 sps:$4 sm:$0xff]   ;;  %v2760_v3 = vld [vmem:[%s4039_s1 + $0x4f4] ss:$8 sps:$4 sm:$0xff]  }
  0x15   :  { %1961 = vmatprep.subr.bf16.mxu0 %v2700_v21  ;;  %v15_v53 = vld [vmem:[%s4040_s0 + $0x20] sm:$0xff]  ;;  %1771 = vmatprep.mubr.bf16.mxu1 %v2317_v52  ;;  %v2762_v4 = vld [vmem:[%s4039_s1 + $0xf0] ss:$8 sps:$4 sm:$0xff]   ;;  %v2772_v12 = vld [vmem:[%s4039_s1 + $0x114] ss:$8 sps:$4 sm:$0xff]  }
  0x16   :  { %v23_v54 = vld [vmem:[%s4040_s0 + $0x60] sm:$0xff]  ;;  %v2763_v5 = vld [vmem:[%s4039_s1 + $0x4f0] ss:$8 sps:$4 sm:$0xff]   ;;  %v2775_v13 = vld [vmem:[%s4039_s1 + $0x514] ss:$8 sps:$4 sm:$0xff]  }
  0x17   :  { %1750 = vmatpush1.bf16.msra.mxu1 %v2702_v22  ;;  %v2325_v55 = vcombine.high %v15_v53, %v23_v54  ;;  %v2752_v62 = vld [vmem:[%s4039_s1 + $0xe4] ss:$8 sps:$4 sm:$0xff]   ;;  %v2756_v0 = vld [vmem:[%s4039_s1 + $0xe0] ss:$8 sps:$4 sm:$0xff]   ;;  %v2324_v10 = vcombine.low %v15_v53, %v23_v54  ;;  %v2770_v14 = vld [vmem:[%s4039_s1 + $0x110] ss:$8 sps:$4 sm:$0xff]  }
  0x18   :  { %1962 = vmatpush1.bf16.msra.mxu0 %v2703_v23  ;;  %1751 = vmatprep.subr.bf16.mxu1 %v2704_v24  ;;  %v2754_v63 = vld [vmem:[%s4039_s1 + $0x4e4] ss:$8 sps:$4 sm:$0xff]   ;;  %v2757_v1 = vld [vmem:[%s4039_s1 + $0x4e0] ss:$8 sps:$4 sm:$0xff]   ;;  %v2773_v15 = vld [vmem:[%s4039_s1 + $0x510] ss:$8 sps:$4 sm:$0xff]  }
  0x19   :  { %1963 = vmatprep.subr.bf16.mxu0 %v2706_v25  ;;  %1983 = vmatprep.mubr.bf16.mxu0 %v2325_v55  ;;  %v2766_v6 = vld [vmem:[%s4039_s1 + $0x104] ss:$8 sps:$4 sm:$0xff]   ;;  %v2764_v9 = vld [vmem:[%s4039_s1 + $0x100] ss:$8 sps:$4 sm:$0xff]   ;;  %v2784_v20 = vld [vmem:[%s4039_s1 + $0x134] ss:$8 sps:$4 sm:$0xff]  }
  0x1a   :  { %v2769_v7 = vld [vmem:[%s4039_s1 + $0x504] ss:$8 sps:$4 sm:$0xff]   ;;  %v2767_v11 = vld [vmem:[%s4039_s1 + $0x500] ss:$8 sps:$4 sm:$0xff]   ;;  %v2787_v21 = vld [vmem:[%s4039_s1 + $0x534] ss:$8 sps:$4 sm:$0xff]  }
  0x1b   :  { %1752 = vmatpush1.bf16.msra.mxu1 %v2708_v26  ;;  %v2778_v16 = vld [vmem:[%s4039_s1 + $0x124] ss:$8 sps:$4 sm:$0xff]   ;;  %v2776_v18 = vld [vmem:[%s4039_s1 + $0x120] ss:$8 sps:$4 sm:$0xff]   ;;  %v2782_v22 = vld [vmem:[%s4039_s1 + $0x130] ss:$8 sps:$4 sm:$0xff]  }
  0x1c   :  { %1964 = vmatpush1.bf16.msra.mxu0 %v2709_v27  ;;  %1753 = vmatprep.subr.bf16.mxu1 %v2710_v28  ;;  %v2781_v17 = vld [vmem:[%s4039_s1 + $0x524] ss:$8 sps:$4 sm:$0xff]   ;;  %v2779_v19 = vld [vmem:[%s4039_s1 + $0x520] ss:$8 sps:$4 sm:$0xff]   ;;  %v2785_v23 = vld [vmem:[%s4039_s1 + $0x530] ss:$8 sps:$4 sm:$0xff]  }
  0x1d   :  { %1965 = vmatprep.subr.bf16.mxu0 %v2712_v29  ;;  %v2790_v24 = vld [vmem:[%s4039_s1 + $0x144] ss:$8 sps:$4 sm:$0xff]   ;;  %v2788_v26 = vld [vmem:[%s4039_s1 + $0x140] ss:$8 sps:$4 sm:$0xff]   ;;  %v2796_v28 = vld [vmem:[%s4039_s1 + $0x154] ss:$8 sps:$4 sm:$0xff]  }
  0x1e   :  { %v2793_v25 = vld [vmem:[%s4039_s1 + $0x544] ss:$8 sps:$4 sm:$0xff]   ;;  %v2791_v27 = vld [vmem:[%s4039_s1 + $0x540] ss:$8 sps:$4 sm:$0xff]   ;;  %v2799_v29 = vld [vmem:[%s4039_s1 + $0x554] ss:$8 sps:$4 sm:$0xff]  }
  0x1f   :  { %1754 = vmatpush1.bf16.msra.mxu1 %v2714_v30  ;;  %v27_v30 = vld [vmem:[%s4040_s0 + $0x80] sm:$0xff]  ;;  %v3396_v49 = vld [vmem:[%s4040_s0 + $0x28] sm:$0xff]  ;;  %v2809_v52 = vld [vmem:[%s4039_s1 + $0x570] ss:$8 sps:$4 sm:$0xff]  }
  0x20   :  { %1966 = vmatpush1.bf16.msra.mxu0 %v2715_v31  ;;  %1755 = vmatprep.subr.bf16.mxu1 %v2716_v32  ;;  %v35_v31 = vld [vmem:[%s4040_s0 + $0xc0] sm:$0xff]  ;;  %v2794_v32 = vld [vmem:[%s4039_s1 + $0x150] ss:$8 sps:$4 sm:$0xff]  }
  0x21   :  { %1967 = vmatprep.subr.bf16.mxu0 %v2718_v33  ;;  %v2333_v33 = vcombine.high %v27_v30, %v35_v31  ;;  %v2814_v54 = vld [vmem:[%s4039_s1 + $0x184] ss:$8 sps:$4 sm:$0xff]  }
  0x22   :  { %v2817_v55 = vld [vmem:[%s4039_s1 + $0x584] ss:$8 sps:$4 sm:$0xff]  }
  0x23   :  { %1756 = vmatpush1.bf16.msra.mxu1 %v2720_v34  ;;  %v2797_v34 = vld [vmem:[%s4039_s1 + $0x550] ss:$8 sps:$4 sm:$0xff]  }
  0x24   :  { %1968 = vmatpush1.bf16.msra.mxu0 %v2721_v35  ;;  %1757 = vmatprep.subr.bf16.mxu1 %v2722_v36  ;;  %v31_v35 = vld [vmem:[%s4040_s0 + $0xa0] sm:$0xff] }
  0x25   :  { %1969 = vmatprep.subr.bf16.mxu0 %v2724_v37  ;;  %v39_v36 = vld [vmem:[%s4040_s0 + $0xe0] sm:$0xff]  ;;  %v2332_v37 = vcombine.low %v27_v30, %v35_v31  ;;  %v2868_v30 = vld [vmem:[%s4039_s1 + $0x214] ss:$8 sps:$4 sm:$0xff]  }
  0x26   :  { %v2871_v31 = vld [vmem:[%s4039_s1 + $0x614] ss:$8 sps:$4 sm:$0xff]  }
  0x27   :  { %1758 = vmatpush1.bf16.msra.mxu1 %v2726_v38  ;;  %v2802_v38 = vld [vmem:[%s4039_s1 + $0x164] ss:$8 sps:$4 sm:$0xff]  }
  0x28   :  { %1970 = vmatpush1.bf16.msra.mxu0 %v2727_v39  ;;  %1759 = vmatprep.subr.bf16.mxu1 %v2728_v40  ;;  %v2341_v39 = vcombine.high %v31_v35, %v39_v36  ;;  %v2340_v40 = vcombine.low %v31_v35, %v39_v36  ;;  %v2866_v36 = vld [vmem:[%s4039_s1 + $0x210] ss:$8 sps:$4 sm:$0xff]  }
  0x29   :  { %1971 = vmatprep.subr.bf16.mxu0 %v2730_v41  ;;  %v2805_v41 = vld [vmem:[%s4039_s1 + $0x564] ss:$8 sps:$4 sm:$0xff]  }
  0x2b   :  { %1760 = vmatpush1.bf16.msra.mxu1 %v2732_v42  ;;  %v2800_v42 = vld [vmem:[%s4039_s1 + $0x160] ss:$8 sps:$4 sm:$0xff]  }
  0x2c   :  { %1972 = vmatpush1.bf16.msra.mxu0 %v2733_v43  ;;  %1761 = vmatprep.subr.bf16.mxu1 %v2734_v44  ;;  %v2803_v43 = vld [vmem:[%s4039_s1 + $0x560] ss:$8 sps:$4 sm:$0xff]  }
  0x2d   :  { %1973 = vmatprep.subr.bf16.mxu0 %v2736_v45  ;;  %v3378_v44 = vld [vmem:[%s4040_s0 + $0x8] sm:$0xff] }
  0x2e   :  { %v3383_v45 = vld [vmem:[%s4040_s0 + $0x48] sm:$0xff] }
  0x2f   :  { %1762 = vmatpush1.bf16.msra.mxu1 %v2738_v46  ;;  %v2808_v46 = vld [vmem:[%s4039_s1 + $0x174] ss:$8 sps:$4 sm:$0xff]   ;;  %v2319_v48 = vcombine.high %v3378_v44, %v3383_v45 }
  0x30   :  { %1974 = vmatpush1.bf16.msra.mxu0 %v2739_v47  ;;  %1763 = vmatprep.subr.bf16.mxu1 %v2740_v50  ;;  %v2811_v47 = vld [vmem:[%s4039_s1 + $0x574] ss:$8 sps:$4 sm:$0xff]   ;;  %v3401_v50 = vld [vmem:[%s4040_s0 + $0x68] sm:$0xff] }
  0x31   :  { %1975 = vmatprep.subr.bf16.mxu0 %v2742_v51  ;;  %v2806_v51 = vld [vmem:[%s4039_s1 + $0x170] ss:$8 sps:$4 sm:$0xff]   ;;  %v2327_v53 = vcombine.high %v3396_v49, %v3401_v50 }
  0x33   :  { %1764 = vmatpush1.bf16.msra.mxu1 %v2744_v56  ;;  %v2812_v56 = vld [vmem:[%s4039_s1 + $0x180] ss:$8 sps:$4 sm:$0xff]  }
  0x34   :  { %1976 = vmatpush1.bf16.msra.mxu0 %v2745_v57  ;;  %1765 = vmatprep.subr.bf16.mxu1 %v2746_v58  ;;  %v2815_v57 = vld [vmem:[%s4039_s1 + $0x580] ss:$8 sps:$4 sm:$0xff]   ;;  %v2820_v58 = vld [vmem:[%s4039_s1 + $0x194] ss:$8 sps:$4 sm:$0xff]  }
  0x35   :  { %1977 = vmatprep.subr.bf16.mxu0 %v2748_v59  ;;  %v2823_v59 = vld [vmem:[%s4039_s1 + $0x594] ss:$8 sps:$4 sm:$0xff]  }
  0x37   :  { %1766 = vmatpush1.bf16.msra.mxu1 %v2750_v60  ;;  %v2818_v60 = vld [vmem:[%s4039_s1 + $0x190] ss:$8 sps:$4 sm:$0xff]  }
  0x38   :  { %1978 = vmatpush1.bf16.msra.mxu0 %v2751_v61  ;;  %1767 = vmatprep.subr.bf16.mxu1 %v2752_v62  ;;  %v2821_v61 = vld [vmem:[%s4039_s1 + $0x590] ss:$8 sps:$4 sm:$0xff]   ;;  %v2826_v62 = vld [vmem:[%s4039_s1 + $0x1a4] ss:$8 sps:$4 sm:$0xff]  }
  0x39   :  { %1979 = vmatprep.subr.bf16.mxu0 %v2754_v63  ;;  %v2829_v63 = vld [vmem:[%s4039_s1 + $0x5a4] ss:$8 sps:$4 sm:$0xff]  }
  0x3b   :  { %1768 = vmatpush1.bf16.msra.mxu1 %v2756_v0  ;;  %v2824_v0 = vld [vmem:[%s4039_s1 + $0x1a0] ss:$8 sps:$4 sm:$0xff]  }
  0x3c   :  { %1980 = vmatpush1.bf16.msra.mxu0 %v2757_v1  ;;  %1769 = vmatprep.subr.bf16.mxu1 %v2758_v2  ;;  %v2827_v1 = vld [vmem:[%s4039_s1 + $0x5a0] ss:$8 sps:$4 sm:$0xff]   ;;  %v2832_v2 = vld [vmem:[%s4039_s1 + $0x1b4] ss:$8 sps:$4 sm:$0xff]  }
  0x3d   :  { %1981 = vmatprep.subr.bf16.mxu0 %v2760_v3  ;;  %v2835_v3 = vld [vmem:[%s4039_s1 + $0x5b4] ss:$8 sps:$4 sm:$0xff]  }
  0x3f   :  { %1770 = vmatpush1.bf16.msra.mxu1 %v2762_v4  ;;  %v2830_v4 = vld [vmem:[%s4039_s1 + $0x1b0] ss:$8 sps:$4 sm:$0xff]  }
  0x40   :  { %1982 = vmatpush1.bf16.msra.mxu0 %v2763_v5  ;;  %1792 = vmatprep.subr.bf16.mxu1 %v2766_v6  ;;  %v2833_v5 = vld [vmem:[%s4039_s1 + $0x5b0] ss:$8 sps:$4 sm:$0xff]   ;;  %v2838_v6 = vld [vmem:[%s4039_s1 + $0x1c4] ss:$8 sps:$4 sm:$0xff]  }
  0x41   :  { %2004 = vmatprep.subr.bf16.mxu0 %v2769_v7  ;;  %v2841_v7 = vld [vmem:[%s4039_s1 + $0x5c4] ss:$8 sps:$4 sm:$0xff]  }
  0x42   :  { %1772 = vmatmul.mubr.bf16.vlgmr.msra.gmra.mrb[0].mxu1 %v2316_v8  ;;  %v2836_v8 = vld [vmem:[%s4039_s1 + $0x1c0] ss:$8 sps:$4 sm:$0xff]  }
  0x43   :  { %1984 = vmatmul.mubr.bf16.vlgmr.msra.gmra.mrb[0].mxu0 %v2324_v10  ;;  %1793 = vmatpush1.bf16.msra.mxu1 %v2764_v9  ;;  %v2839_v9 = vld [vmem:[%s4039_s1 + $0x5c0] ss:$8 sps:$4 sm:$0xff]   ;;  %v2844_v10 = vld [vmem:[%s4039_s1 + $0x1d4] ss:$8 sps:$4 sm:$0xff]  }
  0x44   :  { %2005 = vmatpush1.bf16.msra.mxu0 %v2767_v11  ;;  %1794 = vmatprep.subr.bf16.mxu1 %v2772_v12  ;;  %v2847_v11 = vld [vmem:[%s4039_s1 + $0x5d4] ss:$8 sps:$4 sm:$0xff]   ;;  %v2842_v12 = vld [vmem:[%s4039_s1 + $0x1d0] ss:$8 sps:$4 sm:$0xff]  }
  0x45   :  { %2006 = vmatprep.subr.bf16.mxu0 %v2775_v13  ;;  %1781 = vmatprep.mubr.bf16.mxu1 %v2333_v33  ;;  %v2845_v13 = vld [vmem:[%s4039_s1 + $0x5d0] ss:$8 sps:$4 sm:$0xff]   ;;  %v40_v33 = vld [vmem:[%s4040_s0 + $0xe8] sm:$0xff] }
  0x46   :  { %1993 = vmatprep.mubr.bf16.mxu0 %v2341_v39  ;;  %v2877_v39 = vld [vmem:[%s4039_s1 + $0x624] ss:$8 sps:$4 sm:$0xff]  }
  0x47   :  { %1795 = vmatpush1.bf16.msra.mxu1 %v2770_v14  ;;  %v2850_v14 = vld [vmem:[%s4039_s1 + $0x1e4] ss:$8 sps:$4 sm:$0xff]  }
  0x48   :  { %2007 = vmatpush1.bf16.msra.mxu0 %v2773_v15  ;;  %1796 = vmatprep.subr.bf16.mxu1 %v2778_v16  ;;  %v2853_v15 = vld [vmem:[%s4039_s1 + $0x5e4] ss:$8 sps:$4 sm:$0xff]   ;;  %v2848_v16 = vld [vmem:[%s4039_s1 + $0x1e0] ss:$8 sps:$4 sm:$0xff]  }
  0x49   :  { %2008 = vmatprep.subr.bf16.mxu0 %v2781_v17  ;;  %v2851_v17 = vld [vmem:[%s4039_s1 + $0x5e0] ss:$8 sps:$4 sm:$0xff]  }
  0x4a   :  { %1782 = vmatmul.mubr.bf16.gmra.mrb[4].mxu1 %v2332_v37  ;;  %v2869_v37 = vld [vmem:[%s4039_s1 + $0x610] ss:$8 sps:$4 sm:$0xff]  }
  0x4b   :  { %1797 = vmatpush1.bf16.msra.mxu1 %v2776_v18  ;;  %1994 = vmatmul.mubr.bf16.gmra.mrb[4].mxu0 %v2340_v40  ;;  %v2856_v18 = vld [vmem:[%s4039_s1 + $0x1f4] ss:$8 sps:$4 sm:$0xff]   ;;  %v2872_v40 = vld [vmem:[%s4039_s1 + $0x220] ss:$8 sps:$4 sm:$0xff]  }
  0x4c   :  { %2009 = vmatpush1.bf16.msra.mxu0 %v2779_v19  ;;  %1798 = vmatprep.subr.bf16.mxu1 %v2784_v20  ;;  %v2859_v19 = vld [vmem:[%s4039_s1 + $0x5f4] ss:$8 sps:$4 sm:$0xff]   ;;  %v2854_v20 = vld [vmem:[%s4039_s1 + $0x1f0] ss:$8 sps:$4 sm:$0xff]  }
  0x4d   :  { %2010 = vmatprep.subr.bf16.mxu0 %v2787_v21  ;;  %1824 = vmatprep.mubr.bf16.mxu1 %v2319_v48  ;;  %v2857_v21 = vld [vmem:[%s4039_s1 + $0x5f0] ss:$8 sps:$4 sm:$0xff]   ;;  %v2880_v48 = vld [vmem:[%s4039_s1 + $0x234] ss:$8 sps:$4 sm:$0xff]  }
  0x4e   :  { %2036 = vmatprep.mubr.bf16.mxu0 %v2327_v53  ;;  %v2881_v53 = vld [vmem:[%s4039_s1 + $0x630] ss:$8 sps:$4 sm:$0xff]  }
  0x4f   :  { %1799 = vmatpush1.bf16.msra.mxu1 %v2782_v22  ;;  %v2862_v22 = vld [vmem:[%s4039_s1 + $0x204] ss:$8 sps:$4 sm:$0xff]  }
  0x50   :  { %2011 = vmatpush1.bf16.msra.mxu0 %v2785_v23  ;;  %1800 = vmatprep.subr.bf16.mxu1 %v2790_v24  ;;  %v2865_v23 = vld [vmem:[%s4039_s1 + $0x604] ss:$8 sps:$4 sm:$0xff]   ;;  %v2860_v24 = vld [vmem:[%s4039_s1 + $0x200] ss:$8 sps:$4 sm:$0xff]  }
  0x51   :  { %2012 = vmatprep.subr.bf16.mxu0 %v2793_v25  ;;  %v2863_v25 = vld [vmem:[%s4039_s1 + $0x600] ss:$8 sps:$4 sm:$0xff]  }
  0x53   :  { %1801 = vmatpush1.bf16.msra.mxu1 %v2788_v26  ;;  %v28_v26 = vld [vmem:[%s4040_s0 + $0x88] sm:$0xff] }
  0x54   :  { %2013 = vmatpush1.bf16.msra.mxu0 %v2791_v27  ;;  %1802 = vmatprep.subr.bf16.mxu1 %v2796_v28  ;;  %v2318_v27 = vcombine.low %v3378_v44, %v3383_v45  ;;  %v2326_v28 = vcombine.low %v3396_v49, %v3401_v50  ;;  %v3567_v45 = vld [vmem:[%s4040_s0 + $0x50] sm:$0xff] }
  0x55   :  { %2014 = vmatprep.subr.bf16.mxu0 %v2799_v29  ;;  %v36_v29 = vld [vmem:[%s4040_s0 + $0xc8] sm:$0xff]  ;;  %v2883_v49 = vld [vmem:[%s4039_s1 + $0x634] ss:$8 sps:$4 sm:$0xff]  }
  0x57   :  { %1803 = vmatpush1.bf16.msra.mxu1 %v2794_v32  ;;  %v32_v32 = vld [vmem:[%s4040_s0 + $0xa8] sm:$0xff] }
  0x58   :  { %2015 = vmatpush1.bf16.msra.mxu0 %v2797_v34  ;;  %1804 = vmatprep.subr.bf16.mxu1 %v2802_v38  ;;  %v2335_v34 = vcombine.high %v28_v26, %v36_v29  ;;  %v2343_v35 = vcombine.high %v32_v32, %v40_v33  ;;  %v2874_v38 = vld [vmem:[%s4039_s1 + $0x224] ss:$8 sps:$4 sm:$0xff]   ;;  %v2342_v44 = vcombine.low %v32_v32, %v40_v33  ;;  %v2944_v32 = vld [vmem:[%s4039_s1 + $0x2e0] ss:$8 sps:$4 sm:$0xff]  }
  0x59   :  { %2016 = vmatprep.subr.bf16.mxu0 %v2805_v41  ;;  %v2875_v41 = vld [vmem:[%s4039_s1 + $0x620] ss:$8 sps:$4 sm:$0xff]  }
  0x5a   :  { %v2947_v33 = vld [vmem:[%s4039_s1 + $0x6e0] ss:$8 sps:$4 sm:$0xff]  }
  0x5b   :  { %1805 = vmatpush1.bf16.msra.mxu1 %v2800_v42  ;;  %v3562_v42 = vld [vmem:[%s4040_s0 + $0x10] sm:$0xff] }
  0x5c   :  { %2017 = vmatpush1.bf16.msra.mxu0 %v2803_v43  ;;  %1806 = vmatprep.subr.bf16.mxu1 %v2808_v46  ;;  %v2334_v43 = vcombine.low %v28_v26, %v36_v29  ;;  %v3572_v46 = vld [vmem:[%s4040_s0 + $0x30] sm:$0xff]  ;;  %v2321_v50 = vcombine.high %v3562_v42, %v3567_v45 }
  0x5d   :  { %2018 = vmatprep.subr.bf16.mxu0 %v2811_v47  ;;  %v3577_v47 = vld [vmem:[%s4040_s0 + $0x70] sm:$0xff] }
  0x5e   :  { %v2940_v26 = vld [vmem:[%s4039_s1 + $0x2d4] ss:$8 sps:$4 sm:$0xff]   ;;  %v2941_v29 = vld [vmem:[%s4039_s1 + $0x6d0] ss:$8 sps:$4 sm:$0xff]  }
  0x5f   :  { %1807 = vmatpush1.bf16.msra.mxu1 %v2806_v51  ;;  %v2329_v51 = vcombine.high %v3572_v46, %v3577_v47 }
  0x60   :  { %2019 = vmatpush1.bf16.msra.mxu0 %v2809_v52  ;;  %1808 = vmatprep.subr.bf16.mxu1 %v2814_v54  ;;  %v2878_v52 = vld [vmem:[%s4039_s1 + $0x230] ss:$8 sps:$4 sm:$0xff]   ;;  %v2886_v54 = vld [vmem:[%s4039_s1 + $0x244] ss:$8 sps:$4 sm:$0xff]  }
  0x61   :  { %2020 = vmatprep.subr.bf16.mxu0 %v2817_v55  ;;  %v2889_v55 = vld [vmem:[%s4039_s1 + $0x644] ss:$8 sps:$4 sm:$0xff]  }
  0x63   :  { %1809 = vmatpush1.bf16.msra.mxu1 %v2812_v56  ;;  %v2884_v56 = vld [vmem:[%s4039_s1 + $0x240] ss:$8 sps:$4 sm:$0xff]  }
  0x64   :  { %2021 = vmatpush1.bf16.msra.mxu0 %v2815_v57  ;;  %1810 = vmatprep.subr.bf16.mxu1 %v2820_v58  ;;  %v2887_v57 = vld [vmem:[%s4039_s1 + $0x640] ss:$8 sps:$4 sm:$0xff]   ;;  %v2892_v58 = vld [vmem:[%s4039_s1 + $0x254] ss:$8 sps:$4 sm:$0xff]  }
  0x65   :  { %2022 = vmatprep.subr.bf16.mxu0 %v2823_v59  ;;  %v2895_v59 = vld [vmem:[%s4039_s1 + $0x654] ss:$8 sps:$4 sm:$0xff]  }
  0x67   :  { %1811 = vmatpush1.bf16.msra.mxu1 %v2818_v60  ;;  %v2890_v60 = vld [vmem:[%s4039_s1 + $0x250] ss:$8 sps:$4 sm:$0xff]  }
  0x68   :  { %2023 = vmatpush1.bf16.msra.mxu0 %v2821_v61  ;;  %1812 = vmatprep.subr.bf16.mxu1 %v2826_v62  ;;  %v2893_v61 = vld [vmem:[%s4039_s1 + $0x650] ss:$8 sps:$4 sm:$0xff]   ;;  %v2898_v62 = vld [vmem:[%s4039_s1 + $0x264] ss:$8 sps:$4 sm:$0xff]  }
  0x69   :  { %2024 = vmatprep.subr.bf16.mxu0 %v2829_v63  ;;  %v2901_v63 = vld [vmem:[%s4039_s1 + $0x664] ss:$8 sps:$4 sm:$0xff]  }
  0x6b   :  { %1813 = vmatpush1.bf16.msra.mxu1 %v2824_v0  ;;  %v2896_v0 = vld [vmem:[%s4039_s1 + $0x260] ss:$8 sps:$4 sm:$0xff]  }
  0x6c   :  { %2025 = vmatpush1.bf16.msra.mxu0 %v2827_v1  ;;  %1814 = vmatprep.subr.bf16.mxu1 %v2832_v2  ;;  %v2899_v1 = vld [vmem:[%s4039_s1 + $0x660] ss:$8 sps:$4 sm:$0xff]   ;;  %v2904_v2 = vld [vmem:[%s4039_s1 + $0x274] ss:$8 sps:$4 sm:$0xff]  }
  0x6d   :  { %2026 = vmatprep.subr.bf16.mxu0 %v2835_v3  ;;  %v2907_v3 = vld [vmem:[%s4039_s1 + $0x674] ss:$8 sps:$4 sm:$0xff]  }
  0x6f   :  { %1815 = vmatpush1.bf16.msra.mxu1 %v2830_v4  ;;  %v2902_v4 = vld [vmem:[%s4039_s1 + $0x270] ss:$8 sps:$4 sm:$0xff]  }
  0x70   :  { %2027 = vmatpush1.bf16.msra.mxu0 %v2833_v5  ;;  %1816 = vmatprep.subr.bf16.mxu1 %v2838_v6  ;;  %v2905_v5 = vld [vmem:[%s4039_s1 + $0x670] ss:$8 sps:$4 sm:$0xff]   ;;  %v2910_v6 = vld [vmem:[%s4039_s1 + $0x284] ss:$8 sps:$4 sm:$0xff]  }
  0x71   :  { %2028 = vmatprep.subr.bf16.mxu0 %v2841_v7  ;;  %v2913_v7 = vld [vmem:[%s4039_s1 + $0x684] ss:$8 sps:$4 sm:$0xff]  }
  0x73   :  { %1817 = vmatpush1.bf16.msra.mxu1 %v2836_v8  ;;  %v2908_v8 = vld [vmem:[%s4039_s1 + $0x280] ss:$8 sps:$4 sm:$0xff]  }
  0x74   :  { %2029 = vmatpush1.bf16.msra.mxu0 %v2839_v9  ;;  %1818 = vmatprep.subr.bf16.mxu1 %v2844_v10  ;;  %v2911_v9 = vld [vmem:[%s4039_s1 + $0x680] ss:$8 sps:$4 sm:$0xff]   ;;  %v2916_v10 = vld [vmem:[%s4039_s1 + $0x294] ss:$8 sps:$4 sm:$0xff]  }
  0x75   :  { %2030 = vmatprep.subr.bf16.mxu0 %v2847_v11  ;;  %v2919_v11 = vld [vmem:[%s4039_s1 + $0x694] ss:$8 sps:$4 sm:$0xff]  }
  0x77   :  { %1819 = vmatpush1.bf16.msra.mxu1 %v2842_v12  ;;  %v2914_v12 = vld [vmem:[%s4039_s1 + $0x290] ss:$8 sps:$4 sm:$0xff]  }
  0x78   :  { %2031 = vmatpush1.bf16.msra.mxu0 %v2845_v13  ;;  %1820 = vmatprep.subr.bf16.mxu1 %v2850_v14  ;;  %v2917_v13 = vld [vmem:[%s4039_s1 + $0x690] ss:$8 sps:$4 sm:$0xff]   ;;  %v2922_v14 = vld [vmem:[%s4039_s1 + $0x2a4] ss:$8 sps:$4 sm:$0xff]  }
  0x79   :  { %2032 = vmatprep.subr.bf16.mxu0 %v2853_v15  ;;  %v2925_v15 = vld [vmem:[%s4039_s1 + $0x6a4] ss:$8 sps:$4 sm:$0xff]  }
  0x7b   :  { %1821 = vmatpush1.bf16.msra.mxu1 %v2848_v16  ;;  %v2920_v16 = vld [vmem:[%s4039_s1 + $0x2a0] ss:$8 sps:$4 sm:$0xff]  }
  0x7c   :  { %2033 = vmatpush1.bf16.msra.mxu0 %v2851_v17  ;;  %1822 = vmatprep.subr.bf16.mxu1 %v2856_v18  ;;  %v2923_v17 = vld [vmem:[%s4039_s1 + $0x6a0] ss:$8 sps:$4 sm:$0xff]   ;;  %v2928_v18 = vld [vmem:[%s4039_s1 + $0x2b4] ss:$8 sps:$4 sm:$0xff]  }
  0x7d   :  { %2034 = vmatprep.subr.bf16.mxu0 %v2859_v19  ;;  %v2931_v19 = vld [vmem:[%s4039_s1 + $0x6b4] ss:$8 sps:$4 sm:$0xff]  }
  0x7f   :  { %1823 = vmatpush1.bf16.msra.mxu1 %v2854_v20  ;;  %v2926_v20 = vld [vmem:[%s4039_s1 + $0x2b0] ss:$8 sps:$4 sm:$0xff]  }
  0x80   :  { %2035 = vmatpush1.bf16.msra.mxu0 %v2857_v21  ;;  %1845 = vmatprep.subr.bf16.mxu1 %v2862_v22  ;;  %v2929_v21 = vld [vmem:[%s4039_s1 + $0x6b0] ss:$8 sps:$4 sm:$0xff]   ;;  %v2934_v22 = vld [vmem:[%s4039_s1 + $0x2c4] ss:$8 sps:$4 sm:$0xff]  }
  0x81   :  { %2057 = vmatprep.subr.bf16.mxu0 %v2865_v23  ;;  %v2937_v23 = vld [vmem:[%s4039_s1 + $0x6c4] ss:$8 sps:$4 sm:$0xff]  }
  0x82   :  { %1825 = vmatmul.mubr.bf16.vlgmr.msra.gmra.mrb[0].mxu1 %v2318_v27  ;;  %v2943_v27 = vld [vmem:[%s4039_s1 + $0x6d4] ss:$8 sps:$4 sm:$0xff]  }
  0x83   :  { %2037 = vmatmul.mubr.bf16.vlgmr.msra.gmra.mrb[0].mxu0 %v2326_v28  ;;  %1846 = vmatpush1.bf16.msra.mxu1 %v2860_v24  ;;  %v2932_v24 = vld [vmem:[%s4039_s1 + $0x2c0] ss:$8 sps:$4 sm:$0xff]   ;;  %v2938_v28 = vld [vmem:[%s4039_s1 + $0x2d0] ss:$8 sps:$4 sm:$0xff]  }
  0x84   :  { %2058 = vmatpush1.bf16.msra.mxu0 %v2863_v25  ;;  %1847 = vmatprep.subr.bf16.mxu1 %v2868_v30  ;;  %v2935_v25 = vld [vmem:[%s4039_s1 + $0x6c0] ss:$8 sps:$4 sm:$0xff]   ;;  %v2946_v30 = vld [vmem:[%s4039_s1 + $0x2e4] ss:$8 sps:$4 sm:$0xff]  }
  0x85   :  { %2059 = vmatprep.subr.bf16.mxu0 %v2871_v31  ;;  %1834 = vmatprep.mubr.bf16.mxu1 %v2335_v34  ;;  %v2949_v31 = vld [vmem:[%s4039_s1 + $0x6e4] ss:$8 sps:$4 sm:$0xff]   ;;  %v2952_v34 = vld [vmem:[%s4039_s1 + $0x2f4] ss:$8 sps:$4 sm:$0xff]  }
  0x86   :  { %2046 = vmatprep.mubr.bf16.mxu0 %v2343_v35  ;;  %v2955_v35 = vld [vmem:[%s4039_s1 + $0x6f4] ss:$8 sps:$4 sm:$0xff]  }
  0x87   :  { %1848 = vmatpush1.bf16.msra.mxu1 %v2866_v36  ;;  %v2950_v36 = vld [vmem:[%s4039_s1 + $0x2f0] ss:$8 sps:$4 sm:$0xff]  }
  0x88   :  { %2060 = vmatpush1.bf16.msra.mxu0 %v2869_v37  ;;  %1849 = vmatprep.subr.bf16.mxu1 %v2874_v38  ;;  %v2953_v37 = vld [vmem:[%s4039_s1 + $0x6f0] ss:$8 sps:$4 sm:$0xff]   ;;  %v2958_v38 = vld [vmem:[%s4039_s1 + $0x304] ss:$8 sps:$4 sm:$0xff]  }
  0x89   :  { %2061 = vmatprep.subr.bf16.mxu0 %v2877_v39  ;;  %v2961_v39 = vld [vmem:[%s4039_s1 + $0x704] ss:$8 sps:$4 sm:$0xff]  }
  0x8a   :  { %1835 = vmatmul.mubr.bf16.gmra.mrb[4].mxu1 %v2334_v43  ;;  %v2328_v43 = vcombine.low %v3572_v46, %v3577_v47  ;;  %v2964_v46 = vld [vmem:[%s4039_s1 + $0x314] ss:$8 sps:$4 sm:$0xff]  }
  0x8b   :  { %2047 = vmatmul.mubr.bf16.gmra.mrb[4].mxu0 %v2342_v44  ;;  %1850 = vmatpush1.bf16.msra.mxu1 %v2872_v40  ;;  %v29_v40 = vld [vmem:[%s4040_s0 + $0x90] sm:$0xff] }
  0x8c   :  { %2062 = vmatpush1.bf16.msra.mxu0 %v2875_v41  ;;  %1851 = vmatprep.subr.bf16.mxu1 %v2880_v48  ;;  %v2320_v41 = vcombine.low %v3562_v42, %v3567_v45  ;;  %v37_v44 = vld [vmem:[%s4040_s0 + $0xd0] sm:$0xff]  ;;  %v2956_v42 = vld [vmem:[%s4039_s1 + $0x300] ss:$8 sps:$4 sm:$0xff]  }
  0x8d   :  { %2063 = vmatprep.subr.bf16.mxu0 %v2883_v49  ;;  %1877 = vmatprep.mubr.bf16.mxu1 %v2321_v50  ;;  %v33_v48 = vld [vmem:[%s4040_s0 + $0xb0] sm:$0xff]  ;;  %v2959_v45 = vld [vmem:[%s4039_s1 + $0x700] ss:$8 sps:$4 sm:$0xff]   ;;  %v2337_v50 = vcombine.high %v29_v40, %v37_v44 }
  0x8e   :  { %2089 = vmatprep.mubr.bf16.mxu0 %v2329_v51  ;;  %v41_v49 = vld [vmem:[%s4040_s0 + $0xf0] sm:$0xff] }
  0x8f   :  { %1852 = vmatpush1.bf16.msra.mxu1 %v2878_v52  ;;  %v2967_v47 = vld [vmem:[%s4039_s1 + $0x714] ss:$8 sps:$4 sm:$0xff]   ;;  %v2345_v51 = vcombine.high %v33_v48, %v41_v49  ;;  %v2962_v52 = vld [vmem:[%s4039_s1 + $0x310] ss:$8 sps:$4 sm:$0xff]  }
  0x90   :  { %2064 = vmatpush1.bf16.msra.mxu0 %v2881_v53  ;;  %1853 = vmatprep.subr.bf16.mxu1 %v2886_v54  ;;  %v2965_v53 = vld [vmem:[%s4039_s1 + $0x710] ss:$8 sps:$4 sm:$0xff]   ;;  %v2970_v54 = vld [vmem:[%s4039_s1 + $0x324] ss:$8 sps:$4 sm:$0xff]  }
  0x91   :  { %2065 = vmatprep.subr.bf16.mxu0 %v2889_v55  ;;  %v2973_v55 = vld [vmem:[%s4039_s1 + $0x724] ss:$8 sps:$4 sm:$0xff]  }
  0x93   :  { %1854 = vmatpush1.bf16.msra.mxu1 %v2884_v56  ;;  %v3788_v56 = vld [vmem:[%s4040_s0 + $0x18] sm:$0xff] }
  0x94   :  { %2066 = vmatpush1.bf16.msra.mxu0 %v2887_v57  ;;  %1855 = vmatprep.subr.bf16.mxu1 %v2892_v58  ;;  %v2336_v57 = vcombine.low %v29_v40, %v37_v44  ;;  %v2344_v58 = vcombine.low %v33_v48, %v41_v49  ;;  %v3028_v40 = vld [vmem:[%s4039_s1 + $0x3c0] ss:$8 sps:$4 sm:$0xff]   ;;  %v3039_v44 = vld [vmem:[%s4039_s1 + $0x7d4] ss:$8 sps:$4 sm:$0xff]   ;;  %v3034_v48 = vld [vmem:[%s4039_s1 + $0x3d0] ss:$8 sps:$4 sm:$0xff]  }
  0x95   :  { %2067 = vmatprep.subr.bf16.mxu0 %v2895_v59  ;;  %v3793_v59 = vld [vmem:[%s4040_s0 + $0x58] sm:$0xff] }
  0x96   :  { %v3037_v49 = vld [vmem:[%s4039_s1 + $0x7d0] ss:$8 sps:$4 sm:$0xff]  }
  0x97   :  { %1856 = vmatpush1.bf16.msra.mxu1 %v2890_v60  ;;  %v3798_v60 = vld [vmem:[%s4040_s0 + $0x38] sm:$0xff] }
  0x98   :  { %2068 = vmatpush1.bf16.msra.mxu0 %v2893_v61  ;;  %1857 = vmatprep.subr.bf16.mxu1 %v2898_v62  ;;  %v3803_v61 = vld [vmem:[%s4040_s0 + $0x78] sm:$0xff]  ;;  %v2968_v62 = vld [vmem:[%s4039_s1 + $0x320] ss:$8 sps:$4 sm:$0xff]  }
  0x99   :  { %2069 = vmatprep.subr.bf16.mxu0 %v2901_v63  ;;  %v2971_v63 = vld [vmem:[%s4039_s1 + $0x720] ss:$8 sps:$4 sm:$0xff]  }
  0x9b   :  { %1858 = vmatpush1.bf16.msra.mxu1 %v2896_v0  ;;  %v2976_v0 = vld [vmem:[%s4039_s1 + $0x334] ss:$8 sps:$4 sm:$0xff]  }
  0x9c   :  { %2070 = vmatpush1.bf16.msra.mxu0 %v2899_v1  ;;  %1859 = vmatprep.subr.bf16.mxu1 %v2904_v2  ;;  %v2979_v1 = vld [vmem:[%s4039_s1 + $0x734] ss:$8 sps:$4 sm:$0xff]   ;;  %v2323_v2 = vcombine.high %v3788_v56, %v3793_v59 }
  0x9d   :  { %2071 = vmatprep.subr.bf16.mxu0 %v2907_v3  ;;  %v2331_v3 = vcombine.high %v3798_v60, %v3803_v61 }
  0x9f   :  { %1860 = vmatpush1.bf16.msra.mxu1 %v2902_v4  ;;  %v2974_v4 = vld [vmem:[%s4039_s1 + $0x330] ss:$8 sps:$4 sm:$0xff]  }
  0xa0   :  { %2072 = vmatpush1.bf16.msra.mxu0 %v2905_v5  ;;  %1861 = vmatprep.subr.bf16.mxu1 %v2910_v6  ;;  %v2977_v5 = vld [vmem:[%s4039_s1 + $0x730] ss:$8 sps:$4 sm:$0xff]   ;;  %v2982_v6 = vld [vmem:[%s4039_s1 + $0x344] ss:$8 sps:$4 sm:$0xff]  }
  0xa1   :  { %2073 = vmatprep.subr.bf16.mxu0 %v2913_v7  ;;  %v2985_v7 = vld [vmem:[%s4039_s1 + $0x744] ss:$8 sps:$4 sm:$0xff]  }
  0xa3   :  { %1862 = vmatpush1.bf16.msra.mxu1 %v2908_v8  ;;  %v2980_v8 = vld [vmem:[%s4039_s1 + $0x340] ss:$8 sps:$4 sm:$0xff]  }
  0xa4   :  { %2074 = vmatpush1.bf16.msra.mxu0 %v2911_v9  ;;  %1863 = vmatprep.subr.bf16.mxu1 %v2916_v10  ;;  %v2983_v9 = vld [vmem:[%s4039_s1 + $0x740] ss:$8 sps:$4 sm:$0xff]   ;;  %v2988_v10 = vld [vmem:[%s4039_s1 + $0x354] ss:$8 sps:$4 sm:$0xff]  }
  0xa5   :  { %2075 = vmatprep.subr.bf16.mxu0 %v2919_v11  ;;  %v2991_v11 = vld [vmem:[%s4039_s1 + $0x754] ss:$8 sps:$4 sm:$0xff]  }
  0xa7   :  { %1864 = vmatpush1.bf16.msra.mxu1 %v2914_v12  ;;  %v2986_v12 = vld [vmem:[%s4039_s1 + $0x350] ss:$8 sps:$4 sm:$0xff]  }
  0xa8   :  { %2076 = vmatpush1.bf16.msra.mxu0 %v2917_v13  ;;  %1865 = vmatprep.subr.bf16.mxu1 %v2922_v14  ;;  %v2989_v13 = vld [vmem:[%s4039_s1 + $0x750] ss:$8 sps:$4 sm:$0xff]   ;;  %v2994_v14 = vld [vmem:[%s4039_s1 + $0x364] ss:$8 sps:$4 sm:$0xff]  }
  0xa9   :  { %2077 = vmatprep.subr.bf16.mxu0 %v2925_v15  ;;  %v2997_v15 = vld [vmem:[%s4039_s1 + $0x764] ss:$8 sps:$4 sm:$0xff]  }
  0xab   :  { %1866 = vmatpush1.bf16.msra.mxu1 %v2920_v16  ;;  %v2992_v16 = vld [vmem:[%s4039_s1 + $0x360] ss:$8 sps:$4 sm:$0xff]  }
  0xac   :  { %2078 = vmatpush1.bf16.msra.mxu0 %v2923_v17  ;;  %1867 = vmatprep.subr.bf16.mxu1 %v2928_v18  ;;  %v2995_v17 = vld [vmem:[%s4039_s1 + $0x760] ss:$8 sps:$4 sm:$0xff]   ;;  %v3000_v18 = vld [vmem:[%s4039_s1 + $0x374] ss:$8 sps:$4 sm:$0xff]  }
  0xad   :  { %2079 = vmatprep.subr.bf16.mxu0 %v2931_v19  ;;  %v3003_v19 = vld [vmem:[%s4039_s1 + $0x774] ss:$8 sps:$4 sm:$0xff]  }
  0xaf   :  { %1868 = vmatpush1.bf16.msra.mxu1 %v2926_v20  ;;  %v2998_v20 = vld [vmem:[%s4039_s1 + $0x370] ss:$8 sps:$4 sm:$0xff]  }
  0xb0   :  { %2080 = vmatpush1.bf16.msra.mxu0 %v2929_v21  ;;  %1869 = vmatprep.subr.bf16.mxu1 %v2934_v22  ;;  %v3001_v21 = vld [vmem:[%s4039_s1 + $0x770] ss:$8 sps:$4 sm:$0xff]   ;;  %v3006_v22 = vld [vmem:[%s4039_s1 + $0x384] ss:$8 sps:$4 sm:$0xff]  }
  0xb1   :  { %2081 = vmatprep.subr.bf16.mxu0 %v2937_v23  ;;  %v3009_v23 = vld [vmem:[%s4039_s1 + $0x784] ss:$8 sps:$4 sm:$0xff]  }
  0xb3   :  { %1870 = vmatpush1.bf16.msra.mxu1 %v2932_v24  ;;  %v3004_v24 = vld [vmem:[%s4039_s1 + $0x380] ss:$8 sps:$4 sm:$0xff]  }
  0xb4   :  { %2082 = vmatpush1.bf16.msra.mxu0 %v2935_v25  ;;  %1871 = vmatprep.subr.bf16.mxu1 %v2940_v26  ;;  %v3007_v25 = vld [vmem:[%s4039_s1 + $0x780] ss:$8 sps:$4 sm:$0xff]   ;;  %v3012_v26 = vld [vmem:[%s4039_s1 + $0x394] ss:$8 sps:$4 sm:$0xff]  }
  0xb5   :  { %2083 = vmatprep.subr.bf16.mxu0 %v2943_v27  ;;  %v3015_v27 = vld [vmem:[%s4039_s1 + $0x794] ss:$8 sps:$4 sm:$0xff]  }
  0xb7   :  { %1872 = vmatpush1.bf16.msra.mxu1 %v2938_v28  ;;  %v3010_v28 = vld [vmem:[%s4039_s1 + $0x390] ss:$8 sps:$4 sm:$0xff]  }
  0xb8   :  { %2084 = vmatpush1.bf16.msra.mxu0 %v2941_v29  ;;  %1873 = vmatprep.subr.bf16.mxu1 %v2946_v30  ;;  %v3013_v29 = vld [vmem:[%s4039_s1 + $0x790] ss:$8 sps:$4 sm:$0xff]   ;;  %v3018_v30 = vld [vmem:[%s4039_s1 + $0x3a4] ss:$8 sps:$4 sm:$0xff]  }
  0xb9   :  { %2085 = vmatprep.subr.bf16.mxu0 %v2949_v31  ;;  %v3021_v31 = vld [vmem:[%s4039_s1 + $0x7a4] ss:$8 sps:$4 sm:$0xff]  }
  0xbb   :  { %1874 = vmatpush1.bf16.msra.mxu1 %v2944_v32  ;;  %v3016_v32 = vld [vmem:[%s4039_s1 + $0x3a0] ss:$8 sps:$4 sm:$0xff]  }
  0xbc   :  { %2086 = vmatpush1.bf16.msra.mxu0 %v2947_v33  ;;  %1875 = vmatprep.subr.bf16.mxu1 %v2952_v34  ;;  %v3019_v33 = vld [vmem:[%s4039_s1 + $0x7a0] ss:$8 sps:$4 sm:$0xff]   ;;  %v3024_v34 = vld [vmem:[%s4039_s1 + $0x3b4] ss:$8 sps:$4 sm:$0xff]  }
  0xbd   :  { %2087 = vmatprep.subr.bf16.mxu0 %v2955_v35  ;;  %v3027_v35 = vld [vmem:[%s4039_s1 + $0x7b4] ss:$8 sps:$4 sm:$0xff]  }
  0xbf   :  { %1876 = vmatpush1.bf16.msra.mxu1 %v2950_v36  ;;  %v3022_v36 = vld [vmem:[%s4039_s1 + $0x3b0] ss:$8 sps:$4 sm:$0xff]  }
  0xc0   :  { %2088 = vmatpush1.bf16.msra.mxu0 %v2953_v37  ;;  %1898 = vmatprep.subr.bf16.mxu1 %v2958_v38  ;;  %v3025_v37 = vld [vmem:[%s4039_s1 + $0x7b0] ss:$8 sps:$4 sm:$0xff]   ;;  %v3030_v38 = vld [vmem:[%s4039_s1 + $0x3c4] ss:$8 sps:$4 sm:$0xff]  }
  0xc1   :  { %2110 = vmatprep.subr.bf16.mxu0 %v2961_v39  ;;  %v3033_v39 = vld [vmem:[%s4039_s1 + $0x7c4] ss:$8 sps:$4 sm:$0xff]  }
  0xc2   :  { %1878 = vmatmul.mubr.bf16.vlgmr.msra.gmra.mrb[0].mxu1 %v2320_v41  ;;  %v3031_v41 = vld [vmem:[%s4039_s1 + $0x7c0] ss:$8 sps:$4 sm:$0xff]  }
  0xc3   :  { %2090 = vmatmul.mubr.bf16.vlgmr.msra.gmra.mrb[0].mxu0 %v2328_v43  ;;  %1899 = vmatpush1.bf16.msra.mxu1 %v2956_v42  ;;  %v3036_v43 = vld [vmem:[%s4039_s1 + $0x3d4] ss:$8 sps:$4 sm:$0xff]   ;;  %v3042_v42 = vld [vmem:[%s4039_s1 + $0x3e4] ss:$8 sps:$4 sm:$0xff]  }
  0xc4   :  { %2111 = vmatpush1.bf16.msra.mxu0 %v2959_v45  ;;  %1900 = vmatprep.subr.bf16.mxu1 %v2964_v46  ;;  %v3045_v45 = vld [vmem:[%s4039_s1 + $0x7e4] ss:$8 sps:$4 sm:$0xff]   ;;  %v3040_v46 = vld [vmem:[%s4039_s1 + $0x3e0] ss:$8 sps:$4 sm:$0xff]  }
  0xc5   :  { %2112 = vmatprep.subr.bf16.mxu0 %v2967_v47  ;;  %1887 = vmatprep.mubr.bf16.mxu1 %v2337_v50  ;;  %v3043_v47 = vld [vmem:[%s4039_s1 + $0x7e0] ss:$8 sps:$4 sm:$0xff]   ;;  %v3048_v50 = vld [vmem:[%s4039_s1 + $0x3f4] ss:$8 sps:$4 sm:$0xff]  }
  0xc6   :  { %2099 = vmatprep.mubr.bf16.mxu0 %v2345_v51  ;;  %v3051_v51 = vld [vmem:[%s4039_s1 + $0x7f4] ss:$8 sps:$4 sm:$0xff]  }
  0xc7   :  { %1901 = vmatpush1.bf16.msra.mxu1 %v2962_v52  ;;  %v3046_v52 = vld [vmem:[%s4039_s1 + $0x3f0] ss:$8 sps:$4 sm:$0xff]  }
  0xc8   :  { %2113 = vmatpush1.bf16.msra.mxu0 %v2965_v53  ;;  %1902 = vmatprep.subr.bf16.mxu1 %v2970_v54  ;;  %v3049_v53 = vld [vmem:[%s4039_s1 + $0x7f0] ss:$8 sps:$4 sm:$0xff]  }
  0xc9   :  { %2114 = vmatprep.subr.bf16.mxu0 %v2973_v55  ;;  %v30_v54 = vld [vmem:[%s4040_s0 + $0x98] sm:$0xff] }
  0xca   :  { %1888 = vmatmul.mubr.bf16.gmra.mrb[4].mxu1 %v2336_v57  ;;  %v38_v55 = vld [vmem:[%s4040_s0 + $0xd8] sm:$0xff] }
  0xcb   :  { %2100 = vmatmul.mubr.bf16.gmra.mrb[4].mxu0 %v2344_v58  ;;  %1903 = vmatpush1.bf16.msra.mxu1 %v2968_v62  ;;  %v34_v57 = vld [vmem:[%s4040_s0 + $0xb8] sm:$0xff]  ;;  %v2322_v62 = vcombine.low %v3788_v56, %v3793_v59 }
  0xcc   :  { %2115 = vmatpush1.bf16.msra.mxu0 %v2971_v63  ;;  %1904 = vmatprep.subr.bf16.mxu1 %v2976_v0  ;;  %v42_v58 = vld [vmem:[%s4040_s0 + $0xf8] sm:$0xff]  ;;  %v2330_v63 = vcombine.low %v3798_v60, %v3803_v61  ;;  %v2339_v0 = vcombine.high %v30_v54, %v38_v55 }
  0xcd   :  { %2116 = vmatprep.subr.bf16.mxu0 %v2979_v1  ;;  %1930 = vmatprep.mubr.bf16.mxu1 %v2323_v2  ;;  %v2347_v1 = vcombine.high %v34_v57, %v42_v58  ;;  %v2338_v2 = vcombine.low %v30_v54, %v38_v55 }
  0xce   :  { %2142 = vmatprep.mubr.bf16.mxu0 %v2331_v3  ;;  %v2346_v3 = vcombine.low %v34_v57, %v42_v58 }
  0xcf   :  { %1905 = vmatpush1.bf16.msra.mxu1 %v2974_v4 }
  0xd0   :  { %2117 = vmatpush1.bf16.msra.mxu0 %v2977_v5  ;;  %1906 = vmatprep.subr.bf16.mxu1 %v2982_v6 }
  0xd1   :  { %2118 = vmatprep.subr.bf16.mxu0 %v2985_v7 }
  0xd3   :  { %1907 = vmatpush1.bf16.msra.mxu1 %v2980_v8 }
  0xd4   :  { %2119 = vmatpush1.bf16.msra.mxu0 %v2983_v9  ;;  %1908 = vmatprep.subr.bf16.mxu1 %v2988_v10 }
  0xd5   :  { %2120 = vmatprep.subr.bf16.mxu0 %v2991_v11 }
  0xd7   :  { %1909 = vmatpush1.bf16.msra.mxu1 %v2986_v12 }
  0xd8   :  { %2121 = vmatpush1.bf16.msra.mxu0 %v2989_v13  ;;  %1910 = vmatprep.subr.bf16.mxu1 %v2994_v14 }
  0xd9   :  { %2122 = vmatprep.subr.bf16.mxu0 %v2997_v15 }
  0xdb   :  { %1911 = vmatpush1.bf16.msra.mxu1 %v2992_v16 }
  0xdc   :  { %2123 = vmatpush1.bf16.msra.mxu0 %v2995_v17  ;;  %1912 = vmatprep.subr.bf16.mxu1 %v3000_v18 }
  0xdd   :  { %2124 = vmatprep.subr.bf16.mxu0 %v3003_v19 }
  0xdf   :  { %1913 = vmatpush1.bf16.msra.mxu1 %v2998_v20 }
  0xe0   :  { %2125 = vmatpush1.bf16.msra.mxu0 %v3001_v21  ;;  %1914 = vmatprep.subr.bf16.mxu1 %v3006_v22 }
  0xe1   :  { %2126 = vmatprep.subr.bf16.mxu0 %v3009_v23 }
  0xe3   :  { %1915 = vmatpush1.bf16.msra.mxu1 %v3004_v24 }
  0xe4   :  { %2127 = vmatpush1.bf16.msra.mxu0 %v3007_v25  ;;  %1916 = vmatprep.subr.bf16.mxu1 %v3012_v26 }
  0xe5   :  { %2128 = vmatprep.subr.bf16.mxu0 %v3015_v27 }
  0xe7   :  { %1917 = vmatpush1.bf16.msra.mxu1 %v3010_v28 }
  0xe8   :  { %2129 = vmatpush1.bf16.msra.mxu0 %v3013_v29  ;;  %1918 = vmatprep.subr.bf16.mxu1 %v3018_v30 }
  0xe9   :  { %2130 = vmatprep.subr.bf16.mxu0 %v3021_v31 }
  0xeb   :  { %1919 = vmatpush1.bf16.msra.mxu1 %v3016_v32 }
  0xec   :  { %2131 = vmatpush1.bf16.msra.mxu0 %v3019_v33  ;;  %1920 = vmatprep.subr.bf16.mxu1 %v3024_v34 }
  0xed   :  { %2132 = vmatprep.subr.bf16.mxu0 %v3027_v35 }
  0xef   :  { %1921 = vmatpush1.bf16.msra.mxu1 %v3022_v36 }
  0xf0   :  { %2133 = vmatpush1.bf16.msra.mxu0 %v3025_v37  ;;  %1922 = vmatprep.subr.bf16.mxu1 %v3030_v38 }
  0xf1   :  { %2134 = vmatprep.subr.bf16.mxu0 %v3033_v39 }
  0xf3   :  { %1923 = vmatpush1.bf16.msra.mxu1 %v3028_v40 }
  0xf4   :  { %2135 = vmatpush1.bf16.msra.mxu0 %v3031_v41  ;;  %1924 = vmatprep.subr.bf16.mxu1 %v3036_v43 }
  0xf5   :  { %2136 = vmatprep.subr.bf16.mxu0 %v3039_v44 }
  0xf7   :  { %1925 = vmatpush1.bf16.msra.mxu1 %v3034_v48 }
  0xf8   :  { %2137 = vmatpush1.bf16.msra.mxu0 %v3037_v49  ;;  %1926 = vmatprep.subr.bf16.mxu1 %v3042_v42 }
  0xf9   :  { %2138 = vmatprep.subr.bf16.mxu0 %v3045_v45 }
  0xfb   :  { %1927 = vmatpush1.bf16.msra.mxu1 %v3040_v46 }
  0xfc   :  { %2139 = vmatpush1.bf16.msra.mxu0 %v3043_v47  ;;  %1928 = vmatprep.subr.bf16.mxu1 %v3048_v50 }
  0xfd   :  { %2140 = vmatprep.subr.bf16.mxu0 %v3051_v51 }
  0xff   :  { %1929 = vmatpush1.bf16.msra.mxu1 %v3046_v52 }
 0x100   :  { %2141 = vmatpush1.bf16.msra.mxu0 %v3049_v53 }
 0x102   :  { %1931 = vmatmul.mubr.bf16.vlgmr.msra.gmra.mrb[0].mxu1 %v2322_v62 }
 0x103   :  { %2143 = vmatmul.mubr.bf16.vlgmr.msra.gmra.mrb[0].mxu0 %v2330_v63  ;;  %1940 = vmatprep.mubr.bf16.mxu1 %v2339_v0 }
 0x104   :  { %2152 = vmatprep.mubr.bf16.mxu0 %v2347_v1 }
 0x10a   :  { %1941 = vmatmul.mubr.bf16.gmra.mrb[4].mxu1 %v2338_v2 }
 0x10b   :  { %2153 = vmatmul.mubr.bf16.gmra.mrb[4].mxu0 %v2346_v3 }
 0x1d5   :  { %v1932_v4 = vpop.f32.mrb[0].mxu1 }
 0x1d6   :  { %v2144_v5 = vpop.f32.mrb[0].mxu0  ;;  %v1934_v7 = vpop.f32.mrb[1].mxu1 }
 0x1d7   :  { %v2612_v6 = vadd.f32 %v2144_v5, %v1932_v4  ;;  %v2146_v56 = vpop.f32.mrb[1].mxu0  ;;  %v1936_v8 = vpop.f32.mrb[2].mxu1 }
 0x1d8   :  { %v2613_v59 = vadd.f32 %v2146_v56, %v1934_v7  ;;  %v2148_v60 = vpop.f32.mrb[2].mxu0  ;;  %v1938_v9 = vpop.f32.mrb[3].mxu1 }
 0x1d9   :  { %v2614_v61 = vadd.f32 %v2148_v60, %v1936_v8  ;;  %v2150_v10 = vpop.f32.mrb[3].mxu0 }
 0x1da   :  { %v2615_v11 = vadd.f32 %v2150_v10, %v1938_v9 }
 0x1db   :  { %v2163_v12 = vadd.f32 %v2614_v61, %v2612_v6 }
 0x1dc   :  { %v2170_v13 = vadd.f32 %v2615_v11, %v2613_v59 }
 0x1dd   :  { %v2164_v14 = vrot.slane %v2163_v12, 4  ;;  %v1942_v16 = vpop.f32.mrb[4].mxu1 }
 0x1de   :  { %v2171_v15 = vrot.slane %v2170_v13, 4  ;;  %v2154_v17 = vpop.f32.mrb[4].mxu0  ;;  %v1944_v20 = vpop.f32.mrb[5].mxu1 }
 0x1df   :  { %v2165_v18 = vadd.f32 %v2164_v14, %v2163_v12  ;;  %v2616_v19 = vadd.f32 %v2154_v17, %v1942_v16  ;;  %v2156_v21 = vpop.f32.mrb[5].mxu0  ;;  %v1946_v24 = vpop.f32.mrb[6].mxu1 }
 0x1e0   :  { %v2172_v22 = vadd.f32 %v2171_v15, %v2170_v13  ;;  %v2617_v23 = vadd.f32 %v2156_v21, %v1944_v20  ;;  %v2158_v25 = vpop.f32.mrb[6].mxu0  ;;  %v1948_v28 = vpop.f32.mrb[7].mxu1 }
 0x1e1   :  { %v2166_v26 = vrot.slane %v2165_v18, 2  ;;  %v2618_v27 = vadd.f32 %v2158_v25, %v1946_v24  ;;  %v2160_v29 = vpop.f32.mrb[7].mxu0 }
 0x1e2   :  { %v2173_v30 = vrot.slane %v2172_v22, 2  ;;  %v2619_v31 = vadd.f32 %v2160_v29, %v1948_v28 }
 0x1e3   :  { %v2167_v32 = vadd.f32 %v2166_v26, %v2165_v18  ;;  %v2238_v33 = vadd.f32 %v2618_v27, %v2616_v19 }
 0x1e4   :  { %v2174_v34 = vadd.f32 %v2173_v30, %v2172_v22  ;;  %v2245_v35 = vadd.f32 %v2619_v31, %v2617_v23 }
 0x1e5   :  { %v2168_v36 = vrot.slane %v2167_v32, 1  ;;  %v2239_v37 = vrot.slane %v2238_v33, 4 }
 0x1e6   :  { %v2175_v38 = vrot.slane %v2174_v34, 1  ;;  %v2246_v39 = vrot.slane %v2245_v35, 4 }
 0x1e7   :  { %v2169_v40 = vadd.f32 %v2168_v36, %v2167_v32  ;;  %v2240_v41 = vadd.f32 %v2239_v37, %v2238_v33 }
 0x1e8   :  { %v2176_v43 = vadd.f32 %v2175_v38, %v2174_v34  ;;  %v2247_v44 = vadd.f32 %v2246_v39, %v2245_v35 }
 0x1e9   :  { %v2178_v48 = vmul.f32 0.0625, %v2169_v40  ;;  %v2241_v49 = vrot.slane %v2240_v41, 2 }
 0x1ea   :  { %v2179_v42 = vmul.f32 0.0625, %v2176_v43  ;;  %v2248_v45 = vrot.slane %v2247_v44, 2 }
 0x1eb   :  { %v3987_v46 = vsub.f32 %v2612_v6, %v2178_v48  ;;  %v3989_v47 = vsub.f32 %v2614_v61, %v2178_v48  ;;  %v2242_v50 = vadd.f32 %v2241_v49, %v2240_v41 }
 0x1ec   :  { %v3991_v51 = vsub.f32 %v2613_v59, %v2179_v42  ;;  %v3993_v52 = vsub.f32 %v2615_v11, %v2179_v42  ;;  %v2249_v53 = vadd.f32 %v2248_v45, %v2247_v44 }
 0x1ed   :  { %v2184_v54 = vmul.f32 %v3987_v46, %v3987_v46  ;;  %v2186_v55 = vmul.f32 %v3989_v47, %v3989_v47  ;;  %v2243_v57 = vrot.slane %v2242_v50, 1 }
 0x1ee   :  { %v2185_v58 = vmul.f32 %v3991_v51, %v3991_v51  ;;  %v2187_v62 = vmul.f32 %v3993_v52, %v3993_v52  ;;  %v2250_v63 = vrot.slane %v2249_v53, 1 }
 0x1ef   :  { %v2188_v0 = vadd.f32 %v2186_v55, %v2184_v54  ;;  %v2244_v1 = vadd.f32 %v2243_v57, %v2242_v50 }
 0x1f0   :  { %v2195_v2 = vadd.f32 %v2187_v62, %v2185_v58  ;;  %v2251_v3 = vadd.f32 %v2250_v63, %v2249_v53 }
 0x1f1   :  { %v2189_v4 = vrot.slane %v2188_v0, 4  ;;  %v2252_v5 = vmul.f32 0.0625, %v2244_v1 }
 0x1f2   :  { %v2196_v6 = vrot.slane %v2195_v2, 4  ;;  %v2253_v7 = vmul.f32 0.0625, %v2251_v3 }
 0x1f3   :  { %v2190_v56 = vadd.f32 %v2189_v4, %v2188_v0  ;;  %v4003_v59 = vsub.f32 %v2616_v19, %v2252_v5  ;;  %v4005_v8 = vsub.f32 %v2618_v27, %v2252_v5 }
 0x1f4   :  { %v2197_v60 = vadd.f32 %v2196_v6, %v2195_v2  ;;  %v4007_v61 = vsub.f32 %v2617_v23, %v2253_v7  ;;  %v4009_v9 = vsub.f32 %v2619_v31, %v2253_v7 }
 0x1f5   :  { %v2191_v10 = vrot.slane %v2190_v56, 2  ;;  %v2258_v11 = vmul.f32 %v4003_v59, %v4003_v59  ;;  %v2260_v12 = vmul.f32 %v4005_v8, %v4005_v8 }
 0x1f6   :  { %v2198_v13 = vrot.slane %v2197_v60, 2  ;;  %v2259_v14 = vmul.f32 %v4007_v61, %v4007_v61  ;;  %v2261_v15 = vmul.f32 %v4009_v9, %v4009_v9 }
 0x1f7   :  { %v2192_v16 = vadd.f32 %v2191_v10, %v2190_v56  ;;  %v2262_v17 = vadd.f32 %v2260_v12, %v2258_v11 }
 0x1f8   :  { %v2199_v18 = vadd.f32 %v2198_v13, %v2197_v60  ;;  %v2269_v19 = vadd.f32 %v2261_v15, %v2259_v14 }
 0x1f9   :  { %v2193_v20 = vrot.slane %v2192_v16, 1  ;;  %v2263_v21 = vrot.slane %v2262_v17, 4 }
 0x1fa   :  { %v2200_v22 = vrot.slane %v2199_v18, 1  ;;  %v2270_v23 = vrot.slane %v2269_v19, 4 }
 0x1fb   :  { %v2194_v24 = vadd.f32 %v2193_v20, %v2192_v16  ;;  %v2264_v25 = vadd.f32 %v2263_v21, %v2262_v17 }
 0x1fc   :  { %v2201_v26 = vadd.f32 %v2200_v22, %v2199_v18  ;;  %v2271_v27 = vadd.f32 %v2270_v23, %v2269_v19 }
 0x1fd   :  { %v2202_v28 = vmul.f32 0.0625, %v2194_v24  ;;  %v2265_v29 = vrot.slane %v2264_v25, 2 }
 0x1fe   :  { %v2203_v30 = vmul.f32 0.0625, %v2201_v26  ;;  %v2272_v31 = vrot.slane %v2271_v27, 2 }
 0x1ff   :  { %v2204_v32 = vadd.f32 1e-05, %v2202_v28  ;;  %v2266_v33 = vadd.f32 %v2265_v29, %v2264_v25 }
 0x200   :  { %v2205_v34 = vadd.f32 1e-05, %v2203_v30  ;;  %v2273_v35 = vadd.f32 %v2272_v31, %v2271_v27 }
 0x201   :  { %3052 = vrsqrt.f32 %v2204_v32  ;;  %v2267_v36 = vrot.slane %v2266_v33, 1 }
 0x202   :  { %3054 = vrsqrt.f32 %v2205_v34  ;;  %v2274_v37 = vrot.slane %v2273_v35, 1 }
 0x203   :  { %v2268_v38 = vadd.f32 %v2267_v36, %v2266_v33 }
 0x204   :  { %v2275_v39 = vadd.f32 %v2274_v37, %v2273_v35 }
 0x205   :  { %v2276_v40 = vmul.f32 0.0625, %v2268_v38 }
 0x206   :  { %v2277_v41 = vmul.f32 0.0625, %v2275_v39 }
 0x207   :  { %v2278_v43 = vadd.f32 1e-05, %v2276_v40 }
 0x208   :  { %v2279_v44 = vadd.f32 1e-05, %v2277_v41 }
 0x209   :  { %3056 = vrsqrt.f32 %v2278_v43 }
 0x20a   :  { %3058 = vrsqrt.f32 %v2279_v44 }
 0x20b   :  { %v3053_v48 = vpop.eup %3052 }
 0x20c   :  { %v3055_v49 = vpop.eup %3054  ;;  %v2208_v42 = vmul.f32 %v3053_v48, %v3987_v46  ;;  %v2210_v45 = vmul.f32 %v3053_v48, %v3989_v47 }
 0x20d   :  { %v2209_v50 = vmul.f32 %v3055_v49, %v3991_v51  ;;  %v2211_v53 = vmul.f32 %v3055_v49, %v3993_v52 }
 0x20e   :  { %vm2212_vm0 = vcmp.ge.f32.partialorder %v2208_v42, 0.0  ;;  %vm2214_vm1 = vcmp.ge.f32.partialorder %v2210_v45, 0.0  ;;  %v2216_v54 = vmul.f32 0.2, %v2208_v42  ;;  %v2218_v55 = vmul.f32 0.2, %v2210_v45 }
 0x20f   :  { %vm2213_vm2 = vcmp.ge.f32.partialorder %v2209_v50, 0.0  ;;  %vm2215_vm3 = vcmp.ge.f32.partialorder %v2211_v53, 0.0  ;;  %v2217_v57 = vmul.f32 0.2, %v2209_v50  ;;  %v2219_v58 = vmul.f32 0.2, %v2211_v53 }
 0x210   :  { %v2220_v62 = vsel %vm2212_vm0, %v2208_v42, %v2216_v54  ;;  %v2222_v63 = vsel %vm2214_vm1, %v2210_v45, %v2218_v55 }
 0x211   :  { %v2221_v0 = vsel %vm2213_vm2, %v2209_v50, %v2217_v57  ;;  %v2223_v1 = vsel %vm2215_vm3, %v2211_v53, %v2219_v58 }
 0x212   :  { %v2608_v2 = vpack.c.bf16 %v2221_v0, %v2220_v62  ;;  %v2609_v46 = vpack.c.bf16 %v2223_v1, %v2222_v63 }
 0x213   :  { %v3057_v3 = vpop.eup %3056 }
 0x214   :  { %v3059_v47 = vpop.eup %3058  ;;  %2236 = vst [vmem:[%s4041_s2] sm:$0xff] %v2608_v2  ;;  %2237 = vst [vmem:[%s4041_s2 + $0x8] sm:$0xff] %v2609_v46  ;;  %v2282_v51 = vmul.f32 %v3057_v3, %v4003_v59  ;;  %v2284_v52 = vmul.f32 %v3057_v3, %v4005_v8 }
 0x215   :  { %v2283_v4 = vmul.f32 %v3059_v47, %v4007_v61  ;;  %v2285_v5 = vmul.f32 %v3059_v47, %v4009_v9 }
 0x216   :  { %vm2286_vm4 = vcmp.ge.f32.partialorder %v2282_v51, 0.0  ;;  %vm2288_vm5 = vcmp.ge.f32.partialorder %v2284_v52, 0.0  ;;  %v2290_v6 = vmul.f32 0.2, %v2282_v51  ;;  %v2292_v7 = vmul.f32 0.2, %v2284_v52 }
 0x217   :  { %vm2287_vm6 = vcmp.ge.f32.partialorder %v2283_v4, 0.0  ;;  %vm2289_vm7 = vcmp.ge.f32.partialorder %v2285_v5, 0.0  ;;  %v2291_v56 = vmul.f32 0.2, %v2283_v4  ;;  %v2293_v60 = vmul.f32 0.2, %v2285_v5 }
 0x218   :  { %v2294_v10 = vsel %vm2286_vm4, %v2282_v51, %v2290_v6  ;;  %v2296_v11 = vsel %vm2288_vm5, %v2284_v52, %v2292_v7 }
 0x219   :  { %v2295_v12 = vsel %vm2287_vm6, %v2283_v4, %v2291_v56  ;;  %v2297_v13 = vsel %vm2289_vm7, %v2285_v5, %v2293_v60 }
 0x21a   :  { %v2610_v14 = vpack.c.bf16 %v2295_v12, %v2294_v10  ;;  %v2611_v59 = vpack.c.bf16 %v2297_v13, %v2296_v11 }
 0x21c   :  { %2310 = vst [vmem:[%s4041_s2 + $0x10] sm:$0xff] %v2610_v14  ;;  %2311 = vst [vmem:[%s4041_s2 + $0x18] sm:$0xff] %v2611_v59 }

// kernel: discriminator_forward.8
= control target key start
LH: loop header
LB: loop body
LE: loop exit
PB: predicated region body
PF: predicated region fallthrough
CT: control target
= control target key end

     0   :  { %vm7595_vm0 = vcmask 1043456   ;;  %s13938_s1 = inlined_call_operand.vmem [shape: bf16[4096,512], index: 1, kind: input, shape index: {}]   ;;  %s13939_s0 = inlined_call_operand.vmem [shape: bf16[8,4096], index: 0, kind: input, shape index: {}]   ;;  %s13940_s2 = inlined_call_operand.vmem [shape: bf16[8,512], index: 2, kind: output, shape index: {}]  }
   0x1   :  { %v9037_v0 = vld [vmem:[%s13938_s1 + $0x4] ss:$16 sps:$4 sm:$0xff]   ;;  %v9039_v1 = vld [vmem:[%s13938_s1 + $0xc] ss:$16 sps:$4 sm:$0xff]   ;;  %v9041_v2 = vld [vmem:[%s13938_s1] ss:$16 sps:$4 sm:$0xff]  }
   0x2   :  { %6283 = vmatprep.subr.bf16.mxu0 %v9037_v0  ;;  %v9042_v3 = vld [vmem:[%s13938_s1 + $0x8] ss:$16 sps:$4 sm:$0xff]   ;;  %6939 = vmatprep.subr.bf16.mxu1 %v9039_v1  ;;  %v9043_v4 = vld [vmem:[%s13938_s1 + $0x24] ss:$16 sps:$4 sm:$0xff]   ;;  %v9045_v5 = vld [vmem:[%s13938_s1 + $0x2c] ss:$16 sps:$4 sm:$0xff]  }
   0x3   :  { %6284 = vmatpush1.bf16.msra.mxu0 %v9041_v2  ;;  %6940 = vmatpush1.bf16.msra.mxu1 %v9042_v3  ;;  %v9047_v6 = vld [vmem:[%s13938_s1 + $0x20] ss:$16 sps:$4 sm:$0xff]   ;;  %v9048_v7 = vld [vmem:[%s13938_s1 + $0x28] ss:$16 sps:$4 sm:$0xff]   ;;  %v9049_v8 = vld [vmem:[%s13938_s1 + $0x44] ss:$16 sps:$4 sm:$0xff]  }
   0x4   :  { %6285 = vmatprep.subr.bf16.mxu0 %v9043_v4  ;;  %6941 = vmatprep.subr.bf16.mxu1 %v9045_v5  ;;  %v9051_v9 = vld [vmem:[%s13938_s1 + $0x4c] ss:$16 sps:$4 sm:$0xff]   ;;  %v9053_v10 = vld [vmem:[%s13938_s1 + $0x40] ss:$16 sps:$4 sm:$0xff]   ;;  %v9054_v11 = vld [vmem:[%s13938_s1 + $0x48] ss:$16 sps:$4 sm:$0xff]  }
   0x5   :  { %v9055_v12 = vld [vmem:[%s13938_s1 + $0x64] ss:$16 sps:$4 sm:$0xff]   ;;  %v9057_v13 = vld [vmem:[%s13938_s1 + $0x6c] ss:$16 sps:$4 sm:$0xff]   ;;  %v9059_v14 = vld [vmem:[%s13938_s1 + $0x60] ss:$16 sps:$4 sm:$0xff]  }
   0x6   :  { %v9060_v15 = vld [vmem:[%s13938_s1 + $0x68] ss:$16 sps:$4 sm:$0xff]   ;;  %v9061_v16 = vld [vmem:[%s13938_s1 + $0x84] ss:$16 sps:$4 sm:$0xff]   ;;  %v9063_v17 = vld [vmem:[%s13938_s1 + $0x8c] ss:$16 sps:$4 sm:$0xff]  }
   0x7   :  { %6286 = vmatpush1.bf16.msra.mxu0 %v9047_v6  ;;  %6942 = vmatpush1.bf16.msra.mxu1 %v9048_v7  ;;  %v9065_v18 = vld [vmem:[%s13938_s1 + $0x80] ss:$16 sps:$4 sm:$0xff]   ;;  %v9066_v19 = vld [vmem:[%s13938_s1 + $0x88] ss:$16 sps:$4 sm:$0xff]   ;;  %v9067_v20 = vld [vmem:[%s13938_s1 + $0xa4] ss:$16 sps:$4 sm:$0xff]  }
   0x8   :  { %6287 = vmatprep.subr.bf16.mxu0 %v9049_v8  ;;  %6943 = vmatprep.subr.bf16.mxu1 %v9051_v9  ;;  %v9069_v21 = vld [vmem:[%s13938_s1 + $0xac] ss:$16 sps:$4 sm:$0xff]   ;;  %v9071_v22 = vld [vmem:[%s13938_s1 + $0xa0] ss:$16 sps:$4 sm:$0xff]   ;;  %v9072_v23 = vld [vmem:[%s13938_s1 + $0xa8] ss:$16 sps:$4 sm:$0xff]  }
   0x9   :  { %v9073_v24 = vld [vmem:[%s13938_s1 + $0xc4] ss:$16 sps:$4 sm:$0xff]   ;;  %v9075_v25 = vld [vmem:[%s13938_s1 + $0xcc] ss:$16 sps:$4 sm:$0xff]   ;;  %v9077_v26 = vld [vmem:[%s13938_s1 + $0xc0] ss:$16 sps:$4 sm:$0xff]  }
   0xa   :  { %v9078_v27 = vld [vmem:[%s13938_s1 + $0xc8] ss:$16 sps:$4 sm:$0xff]   ;;  %v9079_v28 = vld [vmem:[%s13938_s1 + $0xe4] ss:$16 sps:$4 sm:$0xff]   ;;  %v9081_v29 = vld [vmem:[%s13938_s1 + $0xec] ss:$16 sps:$4 sm:$0xff]  }
   0xb   :  { %6288 = vmatpush1.bf16.msra.mxu0 %v9053_v10  ;;  %6944 = vmatpush1.bf16.msra.mxu1 %v9054_v11  ;;  %v9083_v30 = vld [vmem:[%s13938_s1 + $0xe0] ss:$16 sps:$4 sm:$0xff]   ;;  %v9084_v31 = vld [vmem:[%s13938_s1 + $0xe8] ss:$16 sps:$4 sm:$0xff]   ;;  %v9085_v32 = vld [vmem:[%s13938_s1 + $0x104] ss:$16 sps:$4 sm:$0xff]  }
   0xc   :  { %6289 = vmatprep.subr.bf16.mxu0 %v9055_v12  ;;  %6945 = vmatprep.subr.bf16.mxu1 %v9057_v13  ;;  %v9087_v33 = vld [vmem:[%s13938_s1 + $0x10c] ss:$16 sps:$4 sm:$0xff]   ;;  %v9089_v34 = vld [vmem:[%s13938_s1 + $0x100] ss:$16 sps:$4 sm:$0xff]   ;;  %v9090_v35 = vld [vmem:[%s13938_s1 + $0x108] ss:$16 sps:$4 sm:$0xff]  }
   0xd   :  { %v9091_v36 = vld [vmem:[%s13938_s1 + $0x124] ss:$16 sps:$4 sm:$0xff]   ;;  %v9093_v37 = vld [vmem:[%s13938_s1 + $0x12c] ss:$16 sps:$4 sm:$0xff]   ;;  %v9095_v38 = vld [vmem:[%s13938_s1 + $0x120] ss:$16 sps:$4 sm:$0xff]  }
   0xe   :  { %v9096_v39 = vld [vmem:[%s13938_s1 + $0x128] ss:$16 sps:$4 sm:$0xff]   ;;  %v9097_v40 = vld [vmem:[%s13938_s1 + $0x144] ss:$16 sps:$4 sm:$0xff]   ;;  %v9099_v41 = vld [vmem:[%s13938_s1 + $0x14c] ss:$16 sps:$4 sm:$0xff]  }
   0xf   :  { %6290 = vmatpush1.bf16.msra.mxu0 %v9059_v14  ;;  %6946 = vmatpush1.bf16.msra.mxu1 %v9060_v15  ;;  %v9101_v42 = vld [vmem:[%s13938_s1 + $0x140] ss:$16 sps:$4 sm:$0xff]   ;;  %v9102_v43 = vld [vmem:[%s13938_s1 + $0x148] ss:$16 sps:$4 sm:$0xff]   ;;  %v9103_v44 = vld [vmem:[%s13938_s1 + $0x164] ss:$16 sps:$4 sm:$0xff]  }
  0x10   :  { %6291 = vmatprep.subr.bf16.mxu0 %v9061_v16  ;;  %6947 = vmatprep.subr.bf16.mxu1 %v9063_v17  ;;  %v9105_v45 = vld [vmem:[%s13938_s1 + $0x16c] ss:$16 sps:$4 sm:$0xff]   ;;  %v11_v46 = vld [vmem:[%s13939_s0] sm:$0xff]  ;;  %v9108_v49 = vld [vmem:[%s13938_s1 + $0x168] ss:$16 sps:$4 sm:$0xff]  }
  0x11   :  { %v9107_v47 = vld [vmem:[%s13938_s1 + $0x160] ss:$16 sps:$4 sm:$0xff]   ;;  %v7854_v48 = vcombine.high %v11_v46, %v11_v46  ;;  %v9109_v50 = vld [vmem:[%s13938_s1 + $0x184] ss:$16 sps:$4 sm:$0xff]   ;;  %v9111_v51 = vld [vmem:[%s13938_s1 + $0x18c] ss:$16 sps:$4 sm:$0xff]   ;;  %v7853_v4 = vcombine.low %v11_v46, %v11_v46 }
  0x12   :  { %v9113_v52 = vld [vmem:[%s13938_s1 + $0x180] ss:$16 sps:$4 sm:$0xff]   ;;  %v9114_v53 = vld [vmem:[%s13938_s1 + $0x188] ss:$16 sps:$4 sm:$0xff]   ;;  %v9115_v54 = vld [vmem:[%s13938_s1 + $0x1a4] ss:$16 sps:$4 sm:$0xff]  }
  0x13   :  { %6292 = vmatpush1.bf16.msra.mxu0 %v9065_v18  ;;  %6948 = vmatpush1.bf16.msra.mxu1 %v9066_v19  ;;  %v9117_v55 = vld [vmem:[%s13938_s1 + $0x1ac] ss:$16 sps:$4 sm:$0xff]   ;;  %v9119_v56 = vld [vmem:[%s13938_s1 + $0x1a0] ss:$16 sps:$4 sm:$0xff]   ;;  %v9120_v57 = vld [vmem:[%s13938_s1 + $0x1a8] ss:$16 sps:$4 sm:$0xff]  }
  0x14   :  { %6293 = vmatprep.subr.bf16.mxu0 %v9067_v20  ;;  %6949 = vmatprep.subr.bf16.mxu1 %v9069_v21  ;;  %v9121_v58 = vld [vmem:[%s13938_s1 + $0x1c4] ss:$16 sps:$4 sm:$0xff]   ;;  %v9123_v59 = vld [vmem:[%s13938_s1 + $0x1cc] ss:$16 sps:$4 sm:$0xff]   ;;  %v9125_v60 = vld [vmem:[%s13938_s1 + $0x1c0] ss:$16 sps:$4 sm:$0xff]  }
  0x15   :  { %6315 = vmatprep.mubr.bf16.mxu0 %v7854_v48  ;;  %6971 = vmatprep.mubr.bf16.mxu1 %v7854_v48  ;;  %v9126_v61 = vld [vmem:[%s13938_s1 + $0x1c8] ss:$16 sps:$4 sm:$0xff]   ;;  %v9127_v62 = vld [vmem:[%s13938_s1 + $0x1e4] ss:$16 sps:$4 sm:$0xff]   ;;  %v9129_v63 = vld [vmem:[%s13938_s1 + $0x1ec] ss:$16 sps:$4 sm:$0xff]  }
  0x16   :  { %v9131_v0 = vld [vmem:[%s13938_s1 + $0x1e0] ss:$16 sps:$4 sm:$0xff]   ;;  %v9132_v1 = vld [vmem:[%s13938_s1 + $0x1e8] ss:$16 sps:$4 sm:$0xff]   ;;  %v9137_v2 = vld [vmem:[%s13938_s1 + $0x204] ss:$16 sps:$4 sm:$0xff]  }
  0x17   :  { %6294 = vmatpush1.bf16.msra.mxu0 %v9071_v22  ;;  %6950 = vmatpush1.bf16.msra.mxu1 %v9072_v23  ;;  %v9140_v3 = vld [vmem:[%s13938_s1 + $0x20c] ss:$16 sps:$4 sm:$0xff]   ;;  %v9135_v5 = vld [vmem:[%s13938_s1 + $0x200] ss:$16 sps:$4 sm:$0xff]   ;;  %v9138_v6 = vld [vmem:[%s13938_s1 + $0x208] ss:$16 sps:$4 sm:$0xff]  }
  0x18   :  { %6295 = vmatprep.subr.bf16.mxu0 %v9073_v24  ;;  %6951 = vmatprep.subr.bf16.mxu1 %v9075_v25  ;;  %v9143_v7 = vld [vmem:[%s13938_s1 + $0x224] ss:$16 sps:$4 sm:$0xff]   ;;  %v9146_v8 = vld [vmem:[%s13938_s1 + $0x22c] ss:$16 sps:$4 sm:$0xff]   ;;  %v9141_v9 = vld [vmem:[%s13938_s1 + $0x220] ss:$16 sps:$4 sm:$0xff]  }
  0x19   :  { %v9144_v10 = vld [vmem:[%s13938_s1 + $0x228] ss:$16 sps:$4 sm:$0xff]   ;;  %v9149_v11 = vld [vmem:[%s13938_s1 + $0x244] ss:$16 sps:$4 sm:$0xff]   ;;  %v9152_v12 = vld [vmem:[%s13938_s1 + $0x24c] ss:$16 sps:$4 sm:$0xff]  }
  0x1a   :  { %v9147_v13 = vld [vmem:[%s13938_s1 + $0x240] ss:$16 sps:$4 sm:$0xff]   ;;  %v9150_v14 = vld [vmem:[%s13938_s1 + $0x248] ss:$16 sps:$4 sm:$0xff]   ;;  %v9155_v15 = vld [vmem:[%s13938_s1 + $0x264] ss:$16 sps:$4 sm:$0xff]  }
  0x1b   :  { %6296 = vmatpush1.bf16.msra.mxu0 %v9077_v26  ;;  %6952 = vmatpush1.bf16.msra.mxu1 %v9078_v27  ;;  %v9158_v16 = vld [vmem:[%s13938_s1 + $0x26c] ss:$16 sps:$4 sm:$0xff]   ;;  %v9153_v17 = vld [vmem:[%s13938_s1 + $0x260] ss:$16 sps:$4 sm:$0xff]   ;;  %v9156_v18 = vld [vmem:[%s13938_s1 + $0x268] ss:$16 sps:$4 sm:$0xff]  }
  0x1c   :  { %6297 = vmatprep.subr.bf16.mxu0 %v9079_v28  ;;  %6953 = vmatprep.subr.bf16.mxu1 %v9081_v29  ;;  %v9161_v19 = vld [vmem:[%s13938_s1 + $0x284] ss:$16 sps:$4 sm:$0xff]   ;;  %v9164_v20 = vld [vmem:[%s13938_s1 + $0x28c] ss:$16 sps:$4 sm:$0xff]   ;;  %v9159_v21 = vld [vmem:[%s13938_s1 + $0x280] ss:$16 sps:$4 sm:$0xff]  }
  0x1d   :  { %v9162_v22 = vld [vmem:[%s13938_s1 + $0x288] ss:$16 sps:$4 sm:$0xff]   ;;  %v9167_v23 = vld [vmem:[%s13938_s1 + $0x2a4] ss:$16 sps:$4 sm:$0xff]   ;;  %v9170_v24 = vld [vmem:[%s13938_s1 + $0x2ac] ss:$16 sps:$4 sm:$0xff]  }
  0x1e   :  { %v9165_v25 = vld [vmem:[%s13938_s1 + $0x2a0] ss:$16 sps:$4 sm:$0xff]   ;;  %v9168_v26 = vld [vmem:[%s13938_s1 + $0x2a8] ss:$16 sps:$4 sm:$0xff]   ;;  %v9173_v27 = vld [vmem:[%s13938_s1 + $0x2c4] ss:$16 sps:$4 sm:$0xff]  }
  0x1f   :  { %6298 = vmatpush1.bf16.msra.mxu0 %v9083_v30  ;;  %6954 = vmatpush1.bf16.msra.mxu1 %v9084_v31  ;;  %v9176_v28 = vld [vmem:[%s13938_s1 + $0x2cc] ss:$16 sps:$4 sm:$0xff]   ;;  %v9171_v31 = vld [vmem:[%s13938_s1 + $0x2c0] ss:$16 sps:$4 sm:$0xff]   ;;  %v9198_v48 = vld [vmem:[%s13938_s1 + $0x348] ss:$16 sps:$4 sm:$0xff]  }
  0x20   :  { %6299 = vmatprep.subr.bf16.mxu0 %v9085_v32  ;;  %6955 = vmatprep.subr.bf16.mxu1 %v9087_v33  ;;  %v10912_v29 = vld [vmem:[%s13939_s0 + $0x8] sm:$0xff]  ;;  %v9179_v33 = vld [vmem:[%s13938_s1 + $0x2e4] ss:$16 sps:$4 sm:$0xff]  }
  0x21   :  { %v7856_v30 = vcombine.high %v10912_v29, %v10912_v29  ;;  %v9174_v32 = vld [vmem:[%s13938_s1 + $0x2c8] ss:$16 sps:$4 sm:$0xff]   ;;  %v9200_v46 = vld [vmem:[%s13938_s1 + $0x34c] ss:$16 sps:$4 sm:$0xff]  }
  0x23   :  { %6300 = vmatpush1.bf16.msra.mxu0 %v9089_v34  ;;  %6956 = vmatpush1.bf16.msra.mxu1 %v9090_v35  ;;  %v9182_v34 = vld [vmem:[%s13938_s1 + $0x2ec] ss:$16 sps:$4 sm:$0xff]   ;;  %v9177_v35 = vld [vmem:[%s13938_s1 + $0x2e0] ss:$16 sps:$4 sm:$0xff]  }
  0x24   :  { %6301 = vmatprep.subr.bf16.mxu0 %v9091_v36  ;;  %6957 = vmatprep.subr.bf16.mxu1 %v9093_v37  ;;  %v9180_v36 = vld [vmem:[%s13938_s1 + $0x2e8] ss:$16 sps:$4 sm:$0xff]   ;;  %v9185_v37 = vld [vmem:[%s13938_s1 + $0x304] ss:$16 sps:$4 sm:$0xff]  }
  0x27   :  { %6302 = vmatpush1.bf16.msra.mxu0 %v9095_v38  ;;  %6958 = vmatpush1.bf16.msra.mxu1 %v9096_v39  ;;  %v9188_v38 = vld [vmem:[%s13938_s1 + $0x30c] ss:$16 sps:$4 sm:$0xff]   ;;  %v9183_v39 = vld [vmem:[%s13938_s1 + $0x300] ss:$16 sps:$4 sm:$0xff]  }
  0x28   :  { %6303 = vmatprep.subr.bf16.mxu0 %v9097_v40  ;;  %6959 = vmatprep.subr.bf16.mxu1 %v9099_v41  ;;  %v9186_v40 = vld [vmem:[%s13938_s1 + $0x308] ss:$16 sps:$4 sm:$0xff]   ;;  %v9191_v41 = vld [vmem:[%s13938_s1 + $0x324] ss:$16 sps:$4 sm:$0xff]  }
  0x2b   :  { %6304 = vmatpush1.bf16.msra.mxu0 %v9101_v42  ;;  %6960 = vmatpush1.bf16.msra.mxu1 %v9102_v43  ;;  %v9194_v42 = vld [vmem:[%s13938_s1 + $0x32c] ss:$16 sps:$4 sm:$0xff]   ;;  %v9189_v43 = vld [vmem:[%s13938_s1 + $0x320] ss:$16 sps:$4 sm:$0xff]  }
  0x2c   :  { %6305 = vmatprep.subr.bf16.mxu0 %v9103_v44  ;;  %6961 = vmatprep.subr.bf16.mxu1 %v9105_v45  ;;  %v9192_v44 = vld [vmem:[%s13938_s1 + $0x328] ss:$16 sps:$4 sm:$0xff]   ;;  %v9197_v45 = vld [vmem:[%s13938_s1 + $0x344] ss:$16 sps:$4 sm:$0xff]  }
  0x2f   :  { %6306 = vmatpush1.bf16.msra.mxu0 %v9107_v47  ;;  %6962 = vmatpush1.bf16.msra.mxu1 %v9108_v49  ;;  %v9195_v47 = vld [vmem:[%s13938_s1 + $0x340] ss:$16 sps:$4 sm:$0xff]   ;;  %v9203_v49 = vld [vmem:[%s13938_s1 + $0x364] ss:$16 sps:$4 sm:$0xff]  }
  0x30   :  { %6307 = vmatprep.subr.bf16.mxu0 %v9109_v50  ;;  %6963 = vmatprep.subr.bf16.mxu1 %v9111_v51  ;;  %v9206_v50 = vld [vmem:[%s13938_s1 + $0x36c] ss:$16 sps:$4 sm:$0xff]   ;;  %v9201_v51 = vld [vmem:[%s13938_s1 + $0x360] ss:$16 sps:$4 sm:$0xff]  }
  0x33   :  { %6308 = vmatpush1.bf16.msra.mxu0 %v9113_v52  ;;  %6964 = vmatpush1.bf16.msra.mxu1 %v9114_v53  ;;  %v9204_v52 = vld [vmem:[%s13938_s1 + $0x368] ss:$16 sps:$4 sm:$0xff]   ;;  %v9209_v53 = vld [vmem:[%s13938_s1 + $0x384] ss:$16 sps:$4 sm:$0xff]  }
  0x34   :  { %6309 = vmatprep.subr.bf16.mxu0 %v9115_v54  ;;  %6965 = vmatprep.subr.bf16.mxu1 %v9117_v55  ;;  %v9212_v54 = vld [vmem:[%s13938_s1 + $0x38c] ss:$16 sps:$4 sm:$0xff]   ;;  %v9207_v55 = vld [vmem:[%s13938_s1 + $0x380] ss:$16 sps:$4 sm:$0xff]  }
  0x37   :  { %6310 = vmatpush1.bf16.msra.mxu0 %v9119_v56  ;;  %6966 = vmatpush1.bf16.msra.mxu1 %v9120_v57  ;;  %v9210_v56 = vld [vmem:[%s13938_s1 + $0x388] ss:$16 sps:$4 sm:$0xff]   ;;  %v9215_v57 = vld [vmem:[%s13938_s1 + $0x3a4] ss:$16 sps:$4 sm:$0xff]  }
  0x38   :  { %6311 = vmatprep.subr.bf16.mxu0 %v9121_v58  ;;  %6967 = vmatprep.subr.bf16.mxu1 %v9123_v59  ;;  %v9218_v58 = vld [vmem:[%s13938_s1 + $0x3ac] ss:$16 sps:$4 sm:$0xff]   ;;  %v9213_v59 = vld [vmem:[%s13938_s1 + $0x3a0] ss:$16 sps:$4 sm:$0xff]  }
  0x3b   :  { %6312 = vmatpush1.bf16.msra.mxu0 %v9125_v60  ;;  %6968 = vmatpush1.bf16.msra.mxu1 %v9126_v61  ;;  %v9216_v60 = vld [vmem:[%s13938_s1 + $0x3a8] ss:$16 sps:$4 sm:$0xff]   ;;  %v9221_v61 = vld [vmem:[%s13938_s1 + $0x3c4] ss:$16 sps:$4 sm:$0xff]  }
  0x3c   :  { %6313 = vmatprep.subr.bf16.mxu0 %v9127_v62  ;;  %6969 = vmatprep.subr.bf16.mxu1 %v9129_v63  ;;  %v9224_v62 = vld [vmem:[%s13938_s1 + $0x3cc] ss:$16 sps:$4 sm:$0xff]   ;;  %v9219_v63 = vld [vmem:[%s13938_s1 + $0x3c0] ss:$16 sps:$4 sm:$0xff]  }
  0x3f   :  { %6314 = vmatpush1.bf16.msra.mxu0 %v9131_v0  ;;  %6970 = vmatpush1.bf16.msra.mxu1 %v9132_v1  ;;  %v9222_v0 = vld [vmem:[%s13938_s1 + $0x3c8] ss:$16 sps:$4 sm:$0xff]   ;;  %v9227_v1 = vld [vmem:[%s13938_s1 + $0x3e4] ss:$16 sps:$4 sm:$0xff]  }
  0x40   :  { %6324 = vmatprep.subr.bf16.mxu0 %v9137_v2  ;;  %6980 = vmatprep.subr.bf16.mxu1 %v9140_v3  ;;  %v9230_v2 = vld [vmem:[%s13938_s1 + $0x3ec] ss:$16 sps:$4 sm:$0xff]   ;;  %v9225_v3 = vld [vmem:[%s13938_s1 + $0x3e0] ss:$16 sps:$4 sm:$0xff]  }
  0x42   :  { %6316 = vmatmul.mubr.bf16.vlgmr.msra.gmra.mrb[0].mxu0 %v7853_v4  ;;  %6972 = vmatmul.mubr.bf16.vlgmr.msra.gmra.mrb[0].mxu1 %v7853_v4  ;;  %v9228_v4 = vld [vmem:[%s13938_s1 + $0x3e8] ss:$16 sps:$4 sm:$0xff]  }
  0x43   :  { %6325 = vmatpush1.bf16.msra.mxu0 %v9135_v5  ;;  %6981 = vmatpush1.bf16.msra.mxu1 %v9138_v6  ;;  %v9235_v5 = vld [vmem:[%s13938_s1 + $0x404] ss:$16 sps:$4 sm:$0xff]   ;;  %v9238_v6 = vld [vmem:[%s13938_s1 + $0x40c] ss:$16 sps:$4 sm:$0xff]  }
  0x44   :  { %6326 = vmatprep.subr.bf16.mxu0 %v9143_v7  ;;  %6982 = vmatprep.subr.bf16.mxu1 %v9146_v8  ;;  %v7855_v7 = vcombine.low %v10912_v29, %v10912_v29  ;;  %v9233_v8 = vld [vmem:[%s13938_s1 + $0x400] ss:$16 sps:$4 sm:$0xff]   ;;  %v9268_v29 = vld [vmem:[%s13938_s1 + $0x4ac] ss:$16 sps:$4 sm:$0xff]  }
  0x45   :  { %6356 = vmatprep.mubr.bf16.mxu0 %v7856_v30  ;;  %7012 = vmatprep.mubr.bf16.mxu1 %v7856_v30  ;;  %v9263_v30 = vld [vmem:[%s13938_s1 + $0x4a0] ss:$16 sps:$4 sm:$0xff]  }
  0x47   :  { %6327 = vmatpush1.bf16.msra.mxu0 %v9141_v9  ;;  %6983 = vmatpush1.bf16.msra.mxu1 %v9144_v10  ;;  %v9236_v9 = vld [vmem:[%s13938_s1 + $0x408] ss:$16 sps:$4 sm:$0xff]   ;;  %v9241_v10 = vld [vmem:[%s13938_s1 + $0x424] ss:$16 sps:$4 sm:$0xff]  }
  0x48   :  { %6328 = vmatprep.subr.bf16.mxu0 %v9149_v11  ;;  %6984 = vmatprep.subr.bf16.mxu1 %v9152_v12  ;;  %v11050_v11 = vld [vmem:[%s13939_s0 + $0x10] sm:$0xff]  ;;  %v9244_v12 = vld [vmem:[%s13938_s1 + $0x42c] ss:$16 sps:$4 sm:$0xff]  }
  0x4b   :  { %6329 = vmatpush1.bf16.msra.mxu0 %v9147_v13  ;;  %6985 = vmatpush1.bf16.msra.mxu1 %v9150_v14  ;;  %v7858_v13 = vcombine.high %v11050_v11, %v11050_v11  ;;  %v9239_v14 = vld [vmem:[%s13938_s1 + $0x420] ss:$16 sps:$4 sm:$0xff]  }
  0x4c   :  { %6330 = vmatprep.subr.bf16.mxu0 %v9155_v15  ;;  %6986 = vmatprep.subr.bf16.mxu1 %v9158_v16  ;;  %v9242_v15 = vld [vmem:[%s13938_s1 + $0x428] ss:$16 sps:$4 sm:$0xff]   ;;  %v9247_v16 = vld [vmem:[%s13938_s1 + $0x444] ss:$16 sps:$4 sm:$0xff]  }
  0x4f   :  { %6331 = vmatpush1.bf16.msra.mxu0 %v9153_v17  ;;  %6987 = vmatpush1.bf16.msra.mxu1 %v9156_v18  ;;  %v9250_v17 = vld [vmem:[%s13938_s1 + $0x44c] ss:$16 sps:$4 sm:$0xff]   ;;  %v9245_v18 = vld [vmem:[%s13938_s1 + $0x440] ss:$16 sps:$4 sm:$0xff]  }
  0x50   :  { %6332 = vmatprep.subr.bf16.mxu0 %v9161_v19  ;;  %6988 = vmatprep.subr.bf16.mxu1 %v9164_v20  ;;  %v9248_v19 = vld [vmem:[%s13938_s1 + $0x448] ss:$16 sps:$4 sm:$0xff]   ;;  %v9253_v20 = vld [vmem:[%s13938_s1 + $0x464] ss:$16 sps:$4 sm:$0xff]  }
  0x53   :  { %6333 = vmatpush1.bf16.msra.mxu0 %v9159_v21  ;;  %6989 = vmatpush1.bf16.msra.mxu1 %v9162_v22  ;;  %v9256_v21 = vld [vmem:[%s13938_s1 + $0x46c] ss:$16 sps:$4 sm:$0xff]   ;;  %v9251_v22 = vld [vmem:[%s13938_s1 + $0x460] ss:$16 sps:$4 sm:$0xff]  }
  0x54   :  { %6334 = vmatprep.subr.bf16.mxu0 %v9167_v23  ;;  %6990 = vmatprep.subr.bf16.mxu1 %v9170_v24  ;;  %v9254_v23 = vld [vmem:[%s13938_s1 + $0x468] ss:$16 sps:$4 sm:$0xff]   ;;  %v9259_v24 = vld [vmem:[%s13938_s1 + $0x484] ss:$16 sps:$4 sm:$0xff]  }
  0x57   :  { %6335 = vmatpush1.bf16.msra.mxu0 %v9165_v25  ;;  %6991 = vmatpush1.bf16.msra.mxu1 %v9168_v26  ;;  %v9262_v25 = vld [vmem:[%s13938_s1 + $0x48c] ss:$16 sps:$4 sm:$0xff]   ;;  %v9257_v26 = vld [vmem:[%s13938_s1 + $0x480] ss:$16 sps:$4 sm:$0xff]  }
  0x58   :  { %6336 = vmatprep.subr.bf16.mxu0 %v9173_v27  ;;  %6992 = vmatprep.subr.bf16.mxu1 %v9176_v28  ;;  %v9260_v27 = vld [vmem:[%s13938_s1 + $0x488] ss:$16 sps:$4 sm:$0xff]   ;;  %v9265_v28 = vld [vmem:[%s13938_s1 + $0x4a4] ss:$16 sps:$4 sm:$0xff]  }
  0x5b   :  { %6337 = vmatpush1.bf16.msra.mxu0 %v9171_v31  ;;  %6993 = vmatpush1.bf16.msra.mxu1 %v9174_v32  ;;  %v9266_v31 = vld [vmem:[%s13938_s1 + $0x4a8] ss:$16 sps:$4 sm:$0xff]   ;;  %v9271_v32 = vld [vmem:[%s13938_s1 + $0x4c4] ss:$16 sps:$4 sm:$0xff]  }
  0x5c   :  { %6338 = vmatprep.subr.bf16.mxu0 %v9179_v33  ;;  %6994 = vmatprep.subr.bf16.mxu1 %v9182_v34  ;;  %v9274_v33 = vld [vmem:[%s13938_s1 + $0x4cc] ss:$16 sps:$4 sm:$0xff]   ;;  %v9269_v34 = vld [vmem:[%s13938_s1 + $0x4c0] ss:$16 sps:$4 sm:$0xff]  }
  0x5f   :  { %6339 = vmatpush1.bf16.msra.mxu0 %v9177_v35  ;;  %6995 = vmatpush1.bf16.msra.mxu1 %v9180_v36  ;;  %v9272_v35 = vld [vmem:[%s13938_s1 + $0x4c8] ss:$16 sps:$4 sm:$0xff]   ;;  %v9277_v36 = vld [vmem:[%s13938_s1 + $0x4e4] ss:$16 sps:$4 sm:$0xff]  }
  0x60   :  { %6340 = vmatprep.subr.bf16.mxu0 %v9185_v37  ;;  %6996 = vmatprep.subr.bf16.mxu1 %v9188_v38  ;;  %v9280_v37 = vld [vmem:[%s13938_s1 + $0x4ec] ss:$16 sps:$4 sm:$0xff]   ;;  %v9275_v38 = vld [vmem:[%s13938_s1 + $0x4e0] ss:$16 sps:$4 sm:$0xff]  }
  0x63   :  { %6341 = vmatpush1.bf16.msra.mxu0 %v9183_v39  ;;  %6997 = vmatpush1.bf16.msra.mxu1 %v9186_v40  ;;  %v9278_v39 = vld [vmem:[%s13938_s1 + $0x4e8] ss:$16 sps:$4 sm:$0xff]   ;;  %v9283_v40 = vld [vmem:[%s13938_s1 + $0x504] ss:$16 sps:$4 sm:$0xff]  }
  0x64   :  { %6342 = vmatprep.subr.bf16.mxu0 %v9191_v41  ;;  %6998 = vmatprep.subr.bf16.mxu1 %v9194_v42  ;;  %v9286_v41 = vld [vmem:[%s13938_s1 + $0x50c] ss:$16 sps:$4 sm:$0xff]   ;;  %v9281_v42 = vld [vmem:[%s13938_s1 + $0x500] ss:$16 sps:$4 sm:$0xff]  }
  0x67   :  { %6343 = vmatpush1.bf16.msra.mxu0 %v9189_v43  ;;  %6999 = vmatpush1.bf16.msra.mxu1 %v9192_v44  ;;  %v9284_v43 = vld [vmem:[%s13938_s1 + $0x508] ss:$16 sps:$4 sm:$0xff]   ;;  %v9289_v44 = vld [vmem:[%s13938_s1 + $0x524] ss:$16 sps:$4 sm:$0xff]  }
  0x68   :  { %6344 = vmatprep.subr.bf16.mxu0 %v9197_v45  ;;  %7000 = vmatprep.subr.bf16.mxu1 %v9200_v46  ;;  %v9292_v45 = vld [vmem:[%s13938_s1 + $0x52c] ss:$16 sps:$4 sm:$0xff]   ;;  %v9287_v46 = vld [vmem:[%s13938_s1 + $0x520] ss:$16 sps:$4 sm:$0xff]  }
  0x6b   :  { %6345 = vmatpush1.bf16.msra.mxu0 %v9195_v47  ;;  %7001 = vmatpush1.bf16.msra.mxu1 %v9198_v48  ;;  %v9290_v47 = vld [vmem:[%s13938_s1 + $0x528] ss:$16 sps:$4 sm:$0xff]   ;;  %v9295_v48 = vld [vmem:[%s13938_s1 + $0x544] ss:$16 sps:$4 sm:$0xff]  }
  0x6c   :  { %6346 = vmatprep.subr.bf16.mxu0 %v9203_v49  ;;  %7002 = vmatprep.subr.bf16.mxu1 %v9206_v50  ;;  %v9298_v49 = vld [vmem:[%s13938_s1 + $0x54c] ss:$16 sps:$4 sm:$0xff]   ;;  %v9293_v50 = vld [vmem:[%s13938_s1 + $0x540] ss:$16 sps:$4 sm:$0xff]  }
  0x6f   :  { %6347 = vmatpush1.bf16.msra.mxu0 %v9201_v51  ;;  %7003 = vmatpush1.bf16.msra.mxu1 %v9204_v52  ;;  %v9296_v51 = vld [vmem:[%s13938_s1 + $0x548] ss:$16 sps:$4 sm:$0xff]   ;;  %v9301_v52 = vld [vmem:[%s13938_s1 + $0x564] ss:$16 sps:$4 sm:$0xff]  }
  0x70   :  { %6348 = vmatprep.subr.bf16.mxu0 %v9209_v53  ;;  %7004 = vmatprep.subr.bf16.mxu1 %v9212_v54  ;;  %v9304_v53 = vld [vmem:[%s13938_s1 + $0x56c] ss:$16 sps:$4 sm:$0xff]   ;;  %v9299_v54 = vld [vmem:[%s13938_s1 + $0x560] ss:$16 sps:$4 sm:$0xff]  }
  0x73   :  { %6349 = vmatpush1.bf16.msra.mxu0 %v9207_v55  ;;  %7005 = vmatpush1.bf16.msra.mxu1 %v9210_v56  ;;  %v9302_v55 = vld [vmem:[%s13938_s1 + $0x568] ss:$16 sps:$4 sm:$0xff]   ;;  %v9307_v56 = vld [vmem:[%s13938_s1 + $0x584] ss:$16 sps:$4 sm:$0xff]  }
  0x74   :  { %6350 = vmatprep.subr.bf16.mxu0 %v9215_v57  ;;  %7006 = vmatprep.subr.bf16.mxu1 %v9218_v58  ;;  %v9310_v57 = vld [vmem:[%s13938_s1 + $0x58c] ss:$16 sps:$4 sm:$0xff]   ;;  %v9305_v58 = vld [vmem:[%s13938_s1 + $0x580] ss:$16 sps:$4 sm:$0xff]  }
  0x77   :  { %6351 = vmatpush1.bf16.msra.mxu0 %v9213_v59  ;;  %7007 = vmatpush1.bf16.msra.mxu1 %v9216_v60  ;;  %v9308_v59 = vld [vmem:[%s13938_s1 + $0x588] ss:$16 sps:$4 sm:$0xff]   ;;  %v9313_v60 = vld [vmem:[%s13938_s1 + $0x5a4] ss:$16 sps:$4 sm:$0xff]  }
  0x78   :  { %6352 = vmatprep.subr.bf16.mxu0 %v9221_v61  ;;  %7008 = vmatprep.subr.bf16.mxu1 %v9224_v62  ;;  %v9316_v61 = vld [vmem:[%s13938_s1 + $0x5ac] ss:$16 sps:$4 sm:$0xff]   ;;  %v9311_v62 = vld [vmem:[%s13938_s1 + $0x5a0] ss:$16 sps:$4 sm:$0xff]  }
  0x7b   :  { %6353 = vmatpush1.bf16.msra.mxu0 %v9219_v63  ;;  %7009 = vmatpush1.bf16.msra.mxu1 %v9222_v0  ;;  %v9314_v63 = vld [vmem:[%s13938_s1 + $0x5a8] ss:$16 sps:$4 sm:$0xff]   ;;  %v9319_v0 = vld [vmem:[%s13938_s1 + $0x5c4] ss:$16 sps:$4 sm:$0xff]  }
  0x7c   :  { %6354 = vmatprep.subr.bf16.mxu0 %v9227_v1  ;;  %7010 = vmatprep.subr.bf16.mxu1 %v9230_v2  ;;  %v9322_v1 = vld [vmem:[%s13938_s1 + $0x5cc] ss:$16 sps:$4 sm:$0xff]   ;;  %v9317_v2 = vld [vmem:[%s13938_s1 + $0x5c0] ss:$16 sps:$4 sm:$0xff]  }
  0x7f   :  { %6355 = vmatpush1.bf16.msra.mxu0 %v9225_v3  ;;  %7011 = vmatpush1.bf16.msra.mxu1 %v9228_v4  ;;  %v9320_v3 = vld [vmem:[%s13938_s1 + $0x5c8] ss:$16 sps:$4 sm:$0xff]   ;;  %v9325_v4 = vld [vmem:[%s13938_s1 + $0x5e4] ss:$16 sps:$4 sm:$0xff]  }
  0x80   :  { %6365 = vmatprep.subr.bf16.mxu0 %v9235_v5  ;;  %7021 = vmatprep.subr.bf16.mxu1 %v9238_v6  ;;  %v9328_v5 = vld [vmem:[%s13938_s1 + $0x5ec] ss:$16 sps:$4 sm:$0xff]   ;;  %v9323_v6 = vld [vmem:[%s13938_s1 + $0x5e0] ss:$16 sps:$4 sm:$0xff]  }
  0x82   :  { %6357 = vmatmul.mubr.bf16.vlgmr.msra.gmra.mrb[0].mxu0 %v7855_v7  ;;  %7013 = vmatmul.mubr.bf16.vlgmr.msra.gmra.mrb[0].mxu1 %v7855_v7  ;;  %v9326_v7 = vld [vmem:[%s13938_s1 + $0x5e8] ss:$16 sps:$4 sm:$0xff]  }
  0x83   :  { %6366 = vmatpush1.bf16.msra.mxu0 %v9233_v8  ;;  %7022 = vmatpush1.bf16.msra.mxu1 %v9236_v9  ;;  %v9333_v8 = vld [vmem:[%s13938_s1 + $0x604] ss:$16 sps:$4 sm:$0xff]   ;;  %v9336_v9 = vld [vmem:[%s13938_s1 + $0x60c] ss:$16 sps:$4 sm:$0xff]  }
  0x84   :  { %6367 = vmatprep.subr.bf16.mxu0 %v9241_v10  ;;  %7023 = vmatprep.subr.bf16.mxu1 %v9244_v12  ;;  %v9331_v10 = vld [vmem:[%s13938_s1 + $0x600] ss:$16 sps:$4 sm:$0xff]   ;;  %v7857_v12 = vcombine.low %v11050_v11, %v11050_v11  ;;  %v9342_v11 = vld [vmem:[%s13938_s1 + $0x62c] ss:$16 sps:$4 sm:$0xff]  }
  0x85   :  { %6397 = vmatprep.mubr.bf16.mxu0 %v7858_v13  ;;  %7053 = vmatprep.mubr.bf16.mxu1 %v7858_v13  ;;  %v9334_v13 = vld [vmem:[%s13938_s1 + $0x608] ss:$16 sps:$4 sm:$0xff]  }
  0x87   :  { %6368 = vmatpush1.bf16.msra.mxu0 %v9239_v14  ;;  %7024 = vmatpush1.bf16.msra.mxu1 %v9242_v15  ;;  %v11248_v14 = vld [vmem:[%s13939_s0 + $0x18] sm:$0xff]  ;;  %v9339_v15 = vld [vmem:[%s13938_s1 + $0x624] ss:$16 sps:$4 sm:$0xff]  }
  0x88   :  { %6369 = vmatprep.subr.bf16.mxu0 %v9247_v16  ;;  %7025 = vmatprep.subr.bf16.mxu1 %v9250_v17  ;;  %v7860_v16 = vcombine.high %v11248_v14, %v11248_v14  ;;  %v9337_v17 = vld [vmem:[%s13938_s1 + $0x620] ss:$16 sps:$4 sm:$0xff]  }
  0x8b   :  { %6370 = vmatpush1.bf16.msra.mxu0 %v9245_v18  ;;  %7026 = vmatpush1.bf16.msra.mxu1 %v9248_v19  ;;  %v9340_v18 = vld [vmem:[%s13938_s1 + $0x628] ss:$16 sps:$4 sm:$0xff]   ;;  %v9345_v19 = vld [vmem:[%s13938_s1 + $0x644] ss:$16 sps:$4 sm:$0xff]  }
  0x8c   :  { %6371 = vmatprep.subr.bf16.mxu0 %v9253_v20  ;;  %7027 = vmatprep.subr.bf16.mxu1 %v9256_v21  ;;  %v9348_v20 = vld [vmem:[%s13938_s1 + $0x64c] ss:$16 sps:$4 sm:$0xff]   ;;  %v9343_v21 = vld [vmem:[%s13938_s1 + $0x640] ss:$16 sps:$4 sm:$0xff]  }
  0x8f   :  { %6372 = vmatpush1.bf16.msra.mxu0 %v9251_v22  ;;  %7028 = vmatpush1.bf16.msra.mxu1 %v9254_v23  ;;  %v9346_v22 = vld [vmem:[%s13938_s1 + $0x648] ss:$16 sps:$4 sm:$0xff]   ;;  %v9351_v23 = vld [vmem:[%s13938_s1 + $0x664] ss:$16 sps:$4 sm:$0xff]  }
  0x90   :  { %6373 = vmatprep.subr.bf16.mxu0 %v9259_v24  ;;  %7029 = vmatprep.subr.bf16.mxu1 %v9262_v25  ;;  %v9354_v24 = vld [vmem:[%s13938_s1 + $0x66c] ss:$16 sps:$4 sm:$0xff]   ;;  %v9349_v25 = vld [vmem:[%s13938_s1 + $0x660] ss:$16 sps:$4 sm:$0xff]  }
  0x93   :  { %6374 = vmatpush1.bf16.msra.mxu0 %v9257_v26  ;;  %7030 = vmatpush1.bf16.msra.mxu1 %v9260_v27  ;;  %v9352_v26 = vld [vmem:[%s13938_s1 + $0x668] ss:$16 sps:$4 sm:$0xff]   ;;  %v9357_v27 = vld [vmem:[%s13938_s1 + $0x684] ss:$16 sps:$4 sm:$0xff]  }
  0x94   :  { %6375 = vmatprep.subr.bf16.mxu0 %v9265_v28  ;;  %7031 = vmatprep.subr.bf16.mxu1 %v9268_v29  ;;  %v9360_v28 = vld [vmem:[%s13938_s1 + $0x68c] ss:$16 sps:$4 sm:$0xff]   ;;  %v9355_v29 = vld [vmem:[%s13938_s1 + $0x680] ss:$16 sps:$4 sm:$0xff]  }
  0x97   :  { %6376 = vmatpush1.bf16.msra.mxu0 %v9263_v30  ;;  %7032 = vmatpush1.bf16.msra.mxu1 %v9266_v31  ;;  %v9358_v30 = vld [vmem:[%s13938_s1 + $0x688] ss:$16 sps:$4 sm:$0xff]   ;;  %v9363_v31 = vld [vmem:[%s13938_s1 + $0x6a4] ss:$16 sps:$4 sm:$0xff]  }
  0x98   :  { %6377 = vmatprep.subr.bf16.mxu0 %v9271_v32  ;;  %7033 = vmatprep.subr.bf16.mxu1 %v9274_v33  ;;  %v9366_v32 = vld [vmem:[%s13938_s1 + $0x6ac] ss:$16 sps:$4 sm:$0xff]   ;;  %v9361_v33 = vld [vmem:[%s13938_s1 + $0x6a0] ss:$16 sps:$4 sm:$0xff]  }
  0x9b   :  { %6378 = vmatpush1.bf16.msra.mxu0 %v9269_v34  ;;  %7034 = vmatpush1.bf16.msra.mxu1 %v9272_v35  ;;  %v9364_v34 = vld [vmem:[%s13938_s1 + $0x6a8] ss:$16 sps:$4 sm:$0xff]   ;;  %v9369_v35 = vld [vmem:[%s13938_s1 + $0x6c4] ss:$16 sps:$4 sm:$0xff]  }
  0x9c   :  { %6379 = vmatprep.subr.bf16.mxu0 %v9277_v36  ;;  %7035 = vmatprep.subr.bf16.mxu1 %v9280_v37  ;;  %v9372_v36 = vld [vmem:[%s13938_s1 + $0x6cc] ss:$16 sps:$4 sm:$0xff]   ;;  %v9367_v37 = vld [vmem:[%s13938_s1 + $0x6c0] ss:$16 sps:$4 sm:$0xff]  }
  0x9f   :  { %6380 = vmatpush1.bf16.msra.mxu0 %v9275_v38  ;;  %7036 = vmatpush1.bf16.msra.mxu1 %v9278_v39  ;;  %v9370_v38 = vld [vmem:[%s13938_s1 + $0x6c8] ss:$16 sps:$4 sm:$0xff]   ;;  %v9375_v39 = vld [vmem:[%s13938_s1 + $0x6e4] ss:$16 sps:$4 sm:$0xff]  }
  0xa0   :  { %6381 = vmatprep.subr.bf16.mxu0 %v9283_v40  ;;  %7037 = vmatprep.subr.bf16.mxu1 %v9286_v41  ;;  %v9378_v40 = vld [vmem:[%s13938_s1 + $0x6ec] ss:$16 sps:$4 sm:$0xff]   ;;  %v9373_v41 = vld [vmem:[%s13938_s1 + $0x6e0] ss:$16 sps:$4 sm:$0xff]  }
  0xa3   :  { %6382 = vmatpush1.bf16.msra.mxu0 %v9281_v42  ;;  %7038 = vmatpush1.bf16.msra.mxu1 %v9284_v43  ;;  %v9376_v42 = vld [vmem:[%s13938_s1 + $0x6e8] ss:$16 sps:$4 sm:$0xff]   ;;  %v9381_v43 = vld [vmem:[%s13938_s1 + $0x704] ss:$16 sps:$4 sm:$0xff]  }
  0xa4   :  { %6383 = vmatprep.subr.bf16.mxu0 %v9289_v44  ;;  %7039 = vmatprep.subr.bf16.mxu1 %v9292_v45  ;;  %v9384_v44 = vld [vmem:[%s13938_s1 + $0x70c] ss:$16 sps:$4 sm:$0xff]   ;;  %v9379_v45 = vld [vmem:[%s13938_s1 + $0x700] ss:$16 sps:$4 sm:$0xff]  }
  0xa7   :  { %6384 = vmatpush1.bf16.msra.mxu0 %v9287_v46  ;;  %7040 = vmatpush1.bf16.msra.mxu1 %v9290_v47  ;;  %v9382_v46 = vld [vmem:[%s13938_s1 + $0x708] ss:$16 sps:$4 sm:$0xff]   ;;  %v9387_v47 = vld [vmem:[%s13938_s1 + $0x724] ss:$16 sps:$4 sm:$0xff]  }
  0xa8   :  { %6385 = vmatprep.subr.bf16.mxu0 %v9295_v48  ;;  %7041 = vmatprep.subr.bf16.mxu1 %v9298_v49  ;;  %v9390_v48 = vld [vmem:[%s13938_s1 + $0x72c] ss:$16 sps:$4 sm:$0xff]   ;;  %v9385_v49 = vld [vmem:[%s13938_s1 + $0x720] ss:$16 sps:$4 sm:$0xff]  }
  0xab   :  { %6386 = vmatpush1.bf16.msra.mxu0 %v9293_v50  ;;  %7042 = vmatpush1.bf16.msra.mxu1 %v9296_v51  ;;  %v9388_v50 = vld [vmem:[%s13938_s1 + $0x728] ss:$16 sps:$4 sm:$0xff]   ;;  %v9393_v51 = vld [vmem:[%s13938_s1 + $0x744] ss:$16 sps:$4 sm:$0xff]  }
  0xac   :  { %6387 = vmatprep.subr.bf16.mxu0 %v9301_v52  ;;  %7043 = vmatprep.subr.bf16.mxu1 %v9304_v53  ;;  %v9396_v52 = vld [vmem:[%s13938_s1 + $0x74c] ss:$16 sps:$4 sm:$0xff]   ;;  %v9391_v53 = vld [vmem:[%s13938_s1 + $0x740] ss:$16 sps:$4 sm:$0xff]  }
  0xaf   :  { %6388 = vmatpush1.bf16.msra.mxu0 %v9299_v54  ;;  %7044 = vmatpush1.bf16.msra.mxu1 %v9302_v55  ;;  %v9394_v54 = vld [vmem:[%s13938_s1 + $0x748] ss:$16 sps:$4 sm:$0xff]   ;;  %v9399_v55 = vld [vmem:[%s13938_s1 + $0x764] ss:$16 sps:$4 sm:$0xff]  }
  0xb0   :  { %6389 = vmatprep.subr.bf16.mxu0 %v9307_v56  ;;  %7045 = vmatprep.subr.bf16.mxu1 %v9310_v57  ;;  %v9402_v56 = vld [vmem:[%s13938_s1 + $0x76c] ss:$16 sps:$4 sm:$0xff]   ;;  %v9397_v57 = vld [vmem:[%s13938_s1 + $0x760] ss:$16 sps:$4 sm:$0xff]  }
  0xb3   :  { %6390 = vmatpush1.bf16.msra.mxu0 %v9305_v58  ;;  %7046 = vmatpush1.bf16.msra.mxu1 %v9308_v59  ;;  %v9400_v58 = vld [vmem:[%s13938_s1 + $0x768] ss:$16 sps:$4 sm:$0xff]   ;;  %v9405_v59 = vld [vmem:[%s13938_s1 + $0x784] ss:$16 sps:$4 sm:$0xff]  }
  0xb4   :  { %6391 = vmatprep.subr.bf16.mxu0 %v9313_v60  ;;  %7047 = vmatprep.subr.bf16.mxu1 %v9316_v61  ;;  %v9408_v60 = vld [vmem:[%s13938_s1 + $0x78c] ss:$16 sps:$4 sm:$0xff]   ;;  %v9403_v61 = vld [vmem:[%s13938_s1 + $0x780] ss:$16 sps:$4 sm:$0xff]  }
  0xb7   :  { %6392 = vmatpush1.bf16.msra.mxu0 %v9311_v62  ;;  %7048 = vmatpush1.bf16.msra.mxu1 %v9314_v63  ;;  %v9406_v62 = vld [vmem:[%s13938_s1 + $0x788] ss:$16 sps:$4 sm:$0xff]   ;;  %v9411_v63 = vld [vmem:[%s13938_s1 + $0x7a4] ss:$16 sps:$4 sm:$0xff]  }
  0xb8   :  { %6393 = vmatprep.subr.bf16.mxu0 %v9319_v0  ;;  %7049 = vmatprep.subr.bf16.mxu1 %v9322_v1  ;;  %v9414_v0 = vld [vmem:[%s13938_s1 + $0x7ac] ss:$16 sps:$4 sm:$0xff]   ;;  %v9409_v1 = vld [vmem:[%s13938_s1 + $0x7a0] ss:$16 sps:$4 sm:$0xff]  }
  0xbb   :  { %6394 = vmatpush1.bf16.msra.mxu0 %v9317_v2  ;;  %7050 = vmatpush1.bf16.msra.mxu1 %v9320_v3  ;;  %v9412_v2 = vld [vmem:[%s13938_s1 + $0x7a8] ss:$16 sps:$4 sm:$0xff]   ;;  %v9417_v3 = vld [vmem:[%s13938_s1 + $0x7c4] ss:$16 sps:$4 sm:$0xff]  }
  0xbc   :  { %6395 = vmatprep.subr.bf16.mxu0 %v9325_v4  ;;  %7051 = vmatprep.subr.bf16.mxu1 %v9328_v5  ;;  %v9420_v4 = vld [vmem:[%s13938_s1 + $0x7cc] ss:$16 sps:$4 sm:$0xff]   ;;  %v9415_v5 = vld [vmem:[%s13938_s1 + $0x7c0] ss:$16 sps:$4 sm:$0xff]  }
  0xbf   :  { %6396 = vmatpush1.bf16.msra.mxu0 %v9323_v6  ;;  %7052 = vmatpush1.bf16.msra.mxu1 %v9326_v7  ;;  %v9418_v6 = vld [vmem:[%s13938_s1 + $0x7c8] ss:$16 sps:$4 sm:$0xff]   ;;  %v9423_v7 = vld [vmem:[%s13938_s1 + $0x7e4] ss:$16 sps:$4 sm:$0xff]  }
  0xc0   :  { %6406 = vmatprep.subr.bf16.mxu0 %v9333_v8  ;;  %7062 = vmatprep.subr.bf16.mxu1 %v9336_v9  ;;  %v9426_v8 = vld [vmem:[%s13938_s1 + $0x7ec] ss:$16 sps:$4 sm:$0xff]   ;;  %v9421_v9 = vld [vmem:[%s13938_s1 + $0x7e0] ss:$16 sps:$4 sm:$0xff]  }
  0xc2   :  { %6398 = vmatmul.mubr.bf16.vlgmr.msra.gmra.mrb[0].mxu0 %v7857_v12  ;;  %7054 = vmatmul.mubr.bf16.vlgmr.msra.gmra.mrb[0].mxu1 %v7857_v12  ;;  %v9431_v12 = vld [vmem:[%s13938_s1 + $0x804] ss:$16 sps:$4 sm:$0xff]  }
  0xc3   :  { %6407 = vmatpush1.bf16.msra.mxu0 %v9331_v10  ;;  %7063 = vmatpush1.bf16.msra.mxu1 %v9334_v13  ;;  %v9424_v10 = vld [vmem:[%s13938_s1 + $0x7e8] ss:$16 sps:$4 sm:$0xff]   ;;  %v9434_v13 = vld [vmem:[%s13938_s1 + $0x80c] ss:$16 sps:$4 sm:$0xff]  }
  0xc4   :  { %6408 = vmatprep.subr.bf16.mxu0 %v9339_v15  ;;  %7064 = vmatprep.subr.bf16.mxu1 %v9342_v11  ;;  %v9429_v15 = vld [vmem:[%s13938_s1 + $0x800] ss:$16 sps:$4 sm:$0xff]   ;;  %v7859_v11 = vcombine.low %v11248_v14, %v11248_v14  ;;  %v9440_v14 = vld [vmem:[%s13938_s1 + $0x82c] ss:$16 sps:$4 sm:$0xff]  }
  0xc5   :  { %6438 = vmatprep.mubr.bf16.mxu0 %v7860_v16  ;;  %7094 = vmatprep.mubr.bf16.mxu1 %v7860_v16  ;;  %v11446_v16 = vld [vmem:[%s13939_s0 + $0x20] sm:$0xff] }
  0xc7   :  { %6409 = vmatpush1.bf16.msra.mxu0 %v9337_v17  ;;  %7065 = vmatpush1.bf16.msra.mxu1 %v9340_v18  ;;  %v9432_v17 = vld [vmem:[%s13938_s1 + $0x808] ss:$16 sps:$4 sm:$0xff]   ;;  %v9437_v18 = vld [vmem:[%s13938_s1 + $0x824] ss:$16 sps:$4 sm:$0xff]  }
  0xc8   :  { %6410 = vmatprep.subr.bf16.mxu0 %v9345_v19  ;;  %7066 = vmatprep.subr.bf16.mxu1 %v9348_v20  ;;  %v7862_v19 = vcombine.high %v11446_v16, %v11446_v16  ;;  %v9435_v20 = vld [vmem:[%s13938_s1 + $0x820] ss:$16 sps:$4 sm:$0xff]  }
  0xcb   :  { %6411 = vmatpush1.bf16.msra.mxu0 %v9343_v21  ;;  %7067 = vmatpush1.bf16.msra.mxu1 %v9346_v22  ;;  %v9438_v21 = vld [vmem:[%s13938_s1 + $0x828] ss:$16 sps:$4 sm:$0xff]   ;;  %v9443_v22 = vld [vmem:[%s13938_s1 + $0x844] ss:$16 sps:$4 sm:$0xff]  }
  0xcc   :  { %6412 = vmatprep.subr.bf16.mxu0 %v9351_v23  ;;  %7068 = vmatprep.subr.bf16.mxu1 %v9354_v24  ;;  %v9446_v23 = vld [vmem:[%s13938_s1 + $0x84c] ss:$16 sps:$4 sm:$0xff]   ;;  %v9441_v24 = vld [vmem:[%s13938_s1 + $0x840] ss:$16 sps:$4 sm:$0xff]  }
  0xcf   :  { %6413 = vmatpush1.bf16.msra.mxu0 %v9349_v25  ;;  %7069 = vmatpush1.bf16.msra.mxu1 %v9352_v26  ;;  %v9444_v25 = vld [vmem:[%s13938_s1 + $0x848] ss:$16 sps:$4 sm:$0xff]   ;;  %v9449_v26 = vld [vmem:[%s13938_s1 + $0x864] ss:$16 sps:$4 sm:$0xff]  }
  0xd0   :  { %6414 = vmatprep.subr.bf16.mxu0 %v9357_v27  ;;  %7070 = vmatprep.subr.bf16.mxu1 %v9360_v28  ;;  %v9452_v27 = vld [vmem:[%s13938_s1 + $0x86c] ss:$16 sps:$4 sm:$0xff]   ;;  %v9447_v28 = vld [vmem:[%s13938_s1 + $0x860] ss:$16 sps:$4 sm:$0xff]  }
  0xd3   :  { %6415 = vmatpush1.bf16.msra.mxu0 %v9355_v29  ;;  %7071 = vmatpush1.bf16.msra.mxu1 %v9358_v30  ;;  %v9450_v29 = vld [vmem:[%s13938_s1 + $0x868] ss:$16 sps:$4 sm:$0xff]   ;;  %v9455_v30 = vld [vmem:[%s13938_s1 + $0x884] ss:$16 sps:$4 sm:$0xff]  }
  0xd4   :  { %6416 = vmatprep.subr.bf16.mxu0 %v9363_v31  ;;  %7072 = vmatprep.subr.bf16.mxu1 %v9366_v32  ;;  %v9458_v31 = vld [vmem:[%s13938_s1 + $0x88c] ss:$16 sps:$4 sm:$0xff]   ;;  %v9453_v32 = vld [vmem:[%s13938_s1 + $0x880] ss:$16 sps:$4 sm:$0xff]  }
  0xd7   :  { %6417 = vmatpush1.bf16.msra.mxu0 %v9361_v33  ;;  %7073 = vmatpush1.bf16.msra.mxu1 %v9364_v34  ;;  %v9456_v33 = vld [vmem:[%s13938_s1 + $0x888] ss:$16 sps:$4 sm:$0xff]   ;;  %v9461_v34 = vld [vmem:[%s13938_s1 + $0x8a4] ss:$16 sps:$4 sm:$0xff]  }
  0xd8   :  { %6418 = vmatprep.subr.bf16.mxu0 %v9369_v35  ;;  %7074 = vmatprep.subr.bf16.mxu1 %v9372_v36  ;;  %v9464_v35 = vld [vmem:[%s13938_s1 + $0x8ac] ss:$16 sps:$4 sm:$0xff]   ;;  %v9459_v36 = vld [vmem:[%s13938_s1 + $0x8a0] ss:$16 sps:$4 sm:$0xff]  }
  0xdb   :  { %6419 = vmatpush1.bf16.msra.mxu0 %v9367_v37  ;;  %7075 = vmatpush1.bf16.msra.mxu1 %v9370_v38  ;;  %v9462_v37 = vld [vmem:[%s13938_s1 + $0x8a8] ss:$16 sps:$4 sm:$0xff]   ;;  %v9467_v38 = vld [vmem:[%s13938_s1 + $0x8c4] ss:$16 sps:$4 sm:$0xff]  }
  0xdc   :  { %6420 = vmatprep.subr.bf16.mxu0 %v9375_v39  ;;  %7076 = vmatprep.subr.bf16.mxu1 %v9378_v40  ;;  %v9470_v39 = vld [vmem:[%s13938_s1 + $0x8cc] ss:$16 sps:$4 sm:$0xff]   ;;  %v9465_v40 = vld [vmem:[%s13938_s1 + $0x8c0] ss:$16 sps:$4 sm:$0xff]  }
  0xdf   :  { %6421 = vmatpush1.bf16.msra.mxu0 %v9373_v41  ;;  %7077 = vmatpush1.bf16.msra.mxu1 %v9376_v42  ;;  %v9468_v41 = vld [vmem:[%s13938_s1 + $0x8c8] ss:$16 sps:$4 sm:$0xff]   ;;  %v9473_v42 = vld [vmem:[%s13938_s1 + $0x8e4] ss:$16 sps:$4 sm:$0xff]  }
  0xe0   :  { %6422 = vmatprep.subr.bf16.mxu0 %v9381_v43  ;;  %7078 = vmatprep.subr.bf16.mxu1 %v9384_v44  ;;  %v9476_v43 = vld [vmem:[%s13938_s1 + $0x8ec] ss:$16 sps:$4 sm:$0xff]   ;;  %v9471_v44 = vld [vmem:[%s13938_s1 + $0x8e0] ss:$16 sps:$4 sm:$0xff]  }
  0xe3   :  { %6423 = vmatpush1.bf16.msra.mxu0 %v9379_v45  ;;  %7079 = vmatpush1.bf16.msra.mxu1 %v9382_v46  ;;  %v9474_v45 = vld [vmem:[%s13938_s1 + $0x8e8] ss:$16 sps:$4 sm:$0xff]   ;;  %v9479_v46 = vld [vmem:[%s13938_s1 + $0x904] ss:$16 sps:$4 sm:$0xff]  }
  0xe4   :  { %6424 = vmatprep.subr.bf16.mxu0 %v9387_v47  ;;  %7080 = vmatprep.subr.bf16.mxu1 %v9390_v48  ;;  %v9482_v47 = vld [vmem:[%s13938_s1 + $0x90c] ss:$16 sps:$4 sm:$0xff]   ;;  %v9477_v48 = vld [vmem:[%s13938_s1 + $0x900] ss:$16 sps:$4 sm:$0xff]  }
  0xe7   :  { %6425 = vmatpush1.bf16.msra.mxu0 %v9385_v49  ;;  %7081 = vmatpush1.bf16.msra.mxu1 %v9388_v50  ;;  %v9480_v49 = vld [vmem:[%s13938_s1 + $0x908] ss:$16 sps:$4 sm:$0xff]   ;;  %v9485_v50 = vld [vmem:[%s13938_s1 + $0x924] ss:$16 sps:$4 sm:$0xff]  }
  0xe8   :  { %6426 = vmatprep.subr.bf16.mxu0 %v9393_v51  ;;  %7082 = vmatprep.subr.bf16.mxu1 %v9396_v52  ;;  %v9488_v51 = vld [vmem:[%s13938_s1 + $0x92c] ss:$16 sps:$4 sm:$0xff]   ;;  %v9483_v52 = vld [vmem:[%s13938_s1 + $0x920] ss:$16 sps:$4 sm:$0xff]  }
  0xeb   :  { %6427 = vmatpush1.bf16.msra.mxu0 %v9391_v53  ;;  %7083 = vmatpush1.bf16.msra.mxu1 %v9394_v54  ;;  %v9486_v53 = vld [vmem:[%s13938_s1 + $0x928] ss:$16 sps:$4 sm:$0xff]   ;;  %v9491_v54 = vld [vmem:[%s13938_s1 + $0x944] ss:$16 sps:$4 sm:$0xff]  }
  0xec   :  { %6428 = vmatprep.subr.bf16.mxu0 %v9399_v55  ;;  %7084 = vmatprep.subr.bf16.mxu1 %v9402_v56  ;;  %v9494_v55 = vld [vmem:[%s13938_s1 + $0x94c] ss:$16 sps:$4 sm:$0xff]   ;;  %v9489_v56 = vld [vmem:[%s13938_s1 + $0x940] ss:$16 sps:$4 sm:$0xff]  }
  0xef   :  { %6429 = vmatpush1.bf16.msra.mxu0 %v9397_v57  ;;  %7085 = vmatpush1.bf16.msra.mxu1 %v9400_v58  ;;  %v9492_v57 = vld [vmem:[%s13938_s1 + $0x948] ss:$16 sps:$4 sm:$0xff]   ;;  %v9497_v58 = vld [vmem:[%s13938_s1 + $0x964] ss:$16 sps:$4 sm:$0xff]  }
  0xf0   :  { %6430 = vmatprep.subr.bf16.mxu0 %v9405_v59  ;;  %7086 = vmatprep.subr.bf16.mxu1 %v9408_v60  ;;  %v9500_v59 = vld [vmem:[%s13938_s1 + $0x96c] ss:$16 sps:$4 sm:$0xff]   ;;  %v9495_v60 = vld [vmem:[%s13938_s1 + $0x960] ss:$16 sps:$4 sm:$0xff]  }
  0xf3   :  { %6431 = vmatpush1.bf16.msra.mxu0 %v9403_v61  ;;  %7087 = vmatpush1.bf16.msra.mxu1 %v9406_v62  ;;  %v9498_v61 = vld [vmem:[%s13938_s1 + $0x968] ss:$16 sps:$4 sm:$0xff]   ;;  %v9503_v62 = vld [vmem:[%s13938_s1 + $0x984] ss:$16 sps:$4 sm:$0xff]  }
  0xf4   :  { %6432 = vmatprep.subr.bf16.mxu0 %v9411_v63  ;;  %7088 = vmatprep.subr.bf16.mxu1 %v9414_v0  ;;  %v9506_v63 = vld [vmem:[%s13938_s1 + $0x98c] ss:$16 sps:$4 sm:$0xff]   ;;  %v9501_v0 = vld [vmem:[%s13938_s1 + $0x980] ss:$16 sps:$4 sm:$0xff]  }
  0xf7   :  { %6433 = vmatpush1.bf16.msra.mxu0 %v9409_v1  ;;  %7089 = vmatpush1.bf16.msra.mxu1 %v9412_v2  ;;  %v9504_v1 = vld [vmem:[%s13938_s1 + $0x988] ss:$16 sps:$4 sm:$0xff]   ;;  %v9509_v2 = vld [vmem:[%s13938_s1 + $0x9a4] ss:$16 sps:$4 sm:$0xff]  }
  0xf8   :  { %6434 = vmatprep.subr.bf16.mxu0 %v9417_v3  ;;  %7090 = vmatprep.subr.bf16.mxu1 %v9420_v4  ;;  %v9512_v3 = vld [vmem:[%s13938_s1 + $0x9ac] ss:$16 sps:$4 sm:$0xff]   ;;  %v9507_v4 = vld [vmem:[%s13938_s1 + $0x9a0] ss:$16 sps:$4 sm:$0xff]  }
  0xfb   :  { %6435 = vmatpush1.bf16.msra.mxu0 %v9415_v5  ;;  %7091 = vmatpush1.bf16.msra.mxu1 %v9418_v6  ;;  %v9510_v5 = vld [vmem:[%s13938_s1 + $0x9a8] ss:$16 sps:$4 sm:$0xff]   ;;  %v9515_v6 = vld [vmem:[%s13938_s1 + $0x9c4] ss:$16 sps:$4 sm:$0xff]  }
  0xfc   :  { %6436 = vmatprep.subr.bf16.mxu0 %v9423_v7  ;;  %7092 = vmatprep.subr.bf16.mxu1 %v9426_v8  ;;  %v9518_v7 = vld [vmem:[%s13938_s1 + $0x9cc] ss:$16 sps:$4 sm:$0xff]   ;;  %v9513_v8 = vld [vmem:[%s13938_s1 + $0x9c0] ss:$16 sps:$4 sm:$0xff]  }
  0xff   :  { %6437 = vmatpush1.bf16.msra.mxu0 %v9421_v9  ;;  %7093 = vmatpush1.bf16.msra.mxu1 %v9424_v10  ;;  %v9516_v9 = vld [vmem:[%s13938_s1 + $0x9c8] ss:$16 sps:$4 sm:$0xff]   ;;  %v9521_v10 = vld [vmem:[%s13938_s1 + $0x9e4] ss:$16 sps:$4 sm:$0xff]  }
 0x100   :  { %6447 = vmatprep.subr.bf16.mxu0 %v9431_v12  ;;  %7103 = vmatprep.subr.bf16.mxu1 %v9434_v13  ;;  %v9524_v12 = vld [vmem:[%s13938_s1 + $0x9ec] ss:$16 sps:$4 sm:$0xff]   ;;  %v9519_v13 = vld [vmem:[%s13938_s1 + $0x9e0] ss:$16 sps:$4 sm:$0xff]  }
 0x102   :  { %6439 = vmatmul.mubr.bf16.vlgmr.msra.gmra.mrb[0].mxu0 %v7859_v11  ;;  %7095 = vmatmul.mubr.bf16.vlgmr.msra.gmra.mrb[0].mxu1 %v7859_v11  ;;  %v9529_v11 = vld [vmem:[%s13938_s1 + $0xa04] ss:$16 sps:$4 sm:$0xff]  }
 0x103   :  { %6448 = vmatpush1.bf16.msra.mxu0 %v9429_v15  ;;  %7104 = vmatpush1.bf16.msra.mxu1 %v9432_v17  ;;  %v9522_v15 = vld [vmem:[%s13938_s1 + $0x9e8] ss:$16 sps:$4 sm:$0xff]   ;;  %v9532_v17 = vld [vmem:[%s13938_s1 + $0xa0c] ss:$16 sps:$4 sm:$0xff]  }
 0x104   :  { %6449 = vmatprep.subr.bf16.mxu0 %v9437_v18  ;;  %7105 = vmatprep.subr.bf16.mxu1 %v9440_v14  ;;  %v11642_v18 = vld [vmem:[%s13939_s0 + $0x28] sm:$0xff]  ;;  %v7861_v14 = vcombine.low %v11446_v16, %v11446_v16 }
 0x105   :  { %6479 = vmatprep.mubr.bf16.mxu0 %v7862_v19  ;;  %7135 = vmatprep.mubr.bf16.mxu1 %v7862_v19  ;;  %v9527_v19 = vld [vmem:[%s13938_s1 + $0xa00] ss:$16 sps:$4 sm:$0xff]   ;;  %v9538_v16 = vld [vmem:[%s13938_s1 + $0xa2c] ss:$16 sps:$4 sm:$0xff]  }
 0x107   :  { %6450 = vmatpush1.bf16.msra.mxu0 %v9435_v20  ;;  %7106 = vmatpush1.bf16.msra.mxu1 %v9438_v21  ;;  %v9530_v20 = vld [vmem:[%s13938_s1 + $0xa08] ss:$16 sps:$4 sm:$0xff]   ;;  %v9535_v21 = vld [vmem:[%s13938_s1 + $0xa24] ss:$16 sps:$4 sm:$0xff]  }
 0x108   :  { %6451 = vmatprep.subr.bf16.mxu0 %v9443_v22  ;;  %7107 = vmatprep.subr.bf16.mxu1 %v9446_v23  ;;  %v7864_v22 = vcombine.high %v11642_v18, %v11642_v18  ;;  %v9533_v23 = vld [vmem:[%s13938_s1 + $0xa20] ss:$16 sps:$4 sm:$0xff]  }
 0x10b   :  { %6452 = vmatpush1.bf16.msra.mxu0 %v9441_v24  ;;  %7108 = vmatpush1.bf16.msra.mxu1 %v9444_v25  ;;  %v9536_v24 = vld [vmem:[%s13938_s1 + $0xa28] ss:$16 sps:$4 sm:$0xff]   ;;  %v9541_v25 = vld [vmem:[%s13938_s1 + $0xa44] ss:$16 sps:$4 sm:$0xff]  }
 0x10c   :  { %6453 = vmatprep.subr.bf16.mxu0 %v9449_v26  ;;  %7109 = vmatprep.subr.bf16.mxu1 %v9452_v27  ;;  %v9544_v26 = vld [vmem:[%s13938_s1 + $0xa4c] ss:$16 sps:$4 sm:$0xff]   ;;  %v9539_v27 = vld [vmem:[%s13938_s1 + $0xa40] ss:$16 sps:$4 sm:$0xff]  }
 0x10f   :  { %6454 = vmatpush1.bf16.msra.mxu0 %v9447_v28  ;;  %7110 = vmatpush1.bf16.msra.mxu1 %v9450_v29  ;;  %v9542_v28 = vld [vmem:[%s13938_s1 + $0xa48] ss:$16 sps:$4 sm:$0xff]   ;;  %v9547_v29 = vld [vmem:[%s13938_s1 + $0xa64] ss:$16 sps:$4 sm:$0xff]  }
 0x110   :  { %6455 = vmatprep.subr.bf16.mxu0 %v9455_v30  ;;  %7111 = vmatprep.subr.bf16.mxu1 %v9458_v31  ;;  %v9550_v30 = vld [vmem:[%s13938_s1 + $0xa6c] ss:$16 sps:$4 sm:$0xff]   ;;  %v9545_v31 = vld [vmem:[%s13938_s1 + $0xa60] ss:$16 sps:$4 sm:$0xff]  }
 0x113   :  { %6456 = vmatpush1.bf16.msra.mxu0 %v9453_v32  ;;  %7112 = vmatpush1.bf16.msra.mxu1 %v9456_v33  ;;  %v9548_v32 = vld [vmem:[%s13938_s1 + $0xa68] ss:$16 sps:$4 sm:$0xff]   ;;  %v9553_v33 = vld [vmem:[%s13938_s1 + $0xa84] ss:$16 sps:$4 sm:$0xff]  }
 0x114   :  { %6457 = vmatprep.subr.bf16.mxu0 %v9461_v34  ;;  %7113 = vmatprep.subr.bf16.mxu1 %v9464_v35  ;;  %v9556_v34 = vld [vmem:[%s13938_s1 + $0xa8c] ss:$16 sps:$4 sm:$0xff]   ;;  %v9551_v35 = vld [vmem:[%s13938_s1 + $0xa80] ss:$16 sps:$4 sm:$0xff]  }
 0x117   :  { %6458 = vmatpush1.bf16.msra.mxu0 %v9459_v36  ;;  %7114 = vmatpush1.bf16.msra.mxu1 %v9462_v37  ;;  %v9554_v36 = vld [vmem:[%s13938_s1 + $0xa88] ss:$16 sps:$4 sm:$0xff]   ;;  %v9559_v37 = vld [vmem:[%s13938_s1 + $0xaa4] ss:$16 sps:$4 sm:$0xff]  }
 0x118   :  { %6459 = vmatprep.subr.bf16.mxu0 %v9467_v38  ;;  %7115 = vmatprep.subr.bf16.mxu1 %v9470_v39  ;;  %v9562_v38 = vld [vmem:[%s13938_s1 + $0xaac] ss:$16 sps:$4 sm:$0xff]   ;;  %v9557_v39 = vld [vmem:[%s13938_s1 + $0xaa0] ss:$16 sps:$4 sm:$0xff]  }
 0x11b   :  { %6460 = vmatpush1.bf16.msra.mxu0 %v9465_v40  ;;  %7116 = vmatpush1.bf16.msra.mxu1 %v9468_v41  ;;  %v9560_v40 = vld [vmem:[%s13938_s1 + $0xaa8] ss:$16 sps:$4 sm:$0xff]   ;;  %v9565_v41 = vld [vmem:[%s13938_s1 + $0xac4] ss:$16 sps:$4 sm:$0xff]  }
 0x11c   :  { %6461 = vmatprep.subr.bf16.mxu0 %v9473_v42  ;;  %7117 = vmatprep.subr.bf16.mxu1 %v9476_v43  ;;  %v9568_v42 = vld [vmem:[%s13938_s1 + $0xacc] ss:$16 sps:$4 sm:$0xff]   ;;  %v9563_v43 = vld [vmem:[%s13938_s1 + $0xac0] ss:$16 sps:$4 sm:$0xff]  }
 0x11f   :  { %6462 = vmatpush1.bf16.msra.mxu0 %v9471_v44  ;;  %7118 = vmatpush1.bf16.msra.mxu1 %v9474_v45  ;;  %v9566_v44 = vld [vmem:[%s13938_s1 + $0xac8] ss:$16 sps:$4 sm:$0xff]   ;;  %v9571_v45 = vld [vmem:[%s13938_s1 + $0xae4] ss:$16 sps:$4 sm:$0xff]  }
 0x120   :  { %6463 = vmatprep.subr.bf16.mxu0 %v9479_v46  ;;  %7119 = vmatprep.subr.bf16.mxu1 %v9482_v47  ;;  %v9574_v46 = vld [vmem:[%s13938_s1 + $0xaec] ss:$16 sps:$4 sm:$0xff]   ;;  %v9569_v47 = vld [vmem:[%s13938_s1 + $0xae0] ss:$16 sps:$4 sm:$0xff]  }
 0x123   :  { %6464 = vmatpush1.bf16.msra.mxu0 %v9477_v48  ;;  %7120 = vmatpush1.bf16.msra.mxu1 %v9480_v49  ;;  %v9572_v48 = vld [vmem:[%s13938_s1 + $0xae8] ss:$16 sps:$4 sm:$0xff]   ;;  %v9577_v49 = vld [vmem:[%s13938_s1 + $0xb04] ss:$16 sps:$4 sm:$0xff]  }
 0x124   :  { %6465 = vmatprep.subr.bf16.mxu0 %v9485_v50  ;;  %7121 = vmatprep.subr.bf16.mxu1 %v9488_v51  ;;  %v9580_v50 = vld [vmem:[%s13938_s1 + $0xb0c] ss:$16 sps:$4 sm:$0xff]   ;;  %v9575_v51 = vld [vmem:[%s13938_s1 + $0xb00] ss:$16 sps:$4 sm:$0xff]  }
 0x127   :  { %6466 = vmatpush1.bf16.msra.mxu0 %v9483_v52  ;;  %7122 = vmatpush1.bf16.msra.mxu1 %v9486_v53  ;;  %v9578_v52 = vld [vmem:[%s13938_s1 + $0xb08] ss:$16 sps:$4 sm:$0xff]   ;;  %v9583_v53 = vld [vmem:[%s13938_s1 + $0xb24] ss:$16 sps:$4 sm:$0xff]  }
 0x128   :  { %6467 = vmatprep.subr.bf16.mxu0 %v9491_v54  ;;  %7123 = vmatprep.subr.bf16.mxu1 %v9494_v55  ;;  %v9586_v54 = vld [vmem:[%s13938_s1 + $0xb2c] ss:$16 sps:$4 sm:$0xff]   ;;  %v9581_v55 = vld [vmem:[%s13938_s1 + $0xb20] ss:$16 sps:$4 sm:$0xff]  }
 0x12b   :  { %6468 = vmatpush1.bf16.msra.mxu0 %v9489_v56  ;;  %7124 = vmatpush1.bf16.msra.mxu1 %v9492_v57  ;;  %v9584_v56 = vld [vmem:[%s13938_s1 + $0xb28] ss:$16 sps:$4 sm:$0xff]   ;;  %v9589_v57 = vld [vmem:[%s13938_s1 + $0xb44] ss:$16 sps:$4 sm:$0xff]  }
 0x12c   :  { %6469 = vmatprep.subr.bf16.mxu0 %v9497_v58  ;;  %7125 = vmatprep.subr.bf16.mxu1 %v9500_v59  ;;  %v9592_v58 = vld [vmem:[%s13938_s1 + $0xb4c] ss:$16 sps:$4 sm:$0xff]   ;;  %v9587_v59 = vld [vmem:[%s13938_s1 + $0xb40] ss:$16 sps:$4 sm:$0xff]  }
 0x12f   :  { %6470 = vmatpush1.bf16.msra.mxu0 %v9495_v60  ;;  %7126 = vmatpush1.bf16.msra.mxu1 %v9498_v61  ;;  %v9590_v60 = vld [vmem:[%s13938_s1 + $0xb48] ss:$16 sps:$4 sm:$0xff]   ;;  %v9595_v61 = vld [vmem:[%s13938_s1 + $0xb64] ss:$16 sps:$4 sm:$0xff]  }
 0x130   :  { %6471 = vmatprep.subr.bf16.mxu0 %v9503_v62  ;;  %7127 = vmatprep.subr.bf16.mxu1 %v9506_v63  ;;  %v9598_v62 = vld [vmem:[%s13938_s1 + $0xb6c] ss:$16 sps:$4 sm:$0xff]   ;;  %v9593_v63 = vld [vmem:[%s13938_s1 + $0xb60] ss:$16 sps:$4 sm:$0xff]  }
 0x133   :  { %6472 = vmatpush1.bf16.msra.mxu0 %v9501_v0  ;;  %7128 = vmatpush1.bf16.msra.mxu1 %v9504_v1  ;;  %v9596_v0 = vld [vmem:[%s13938_s1 + $0xb68] ss:$16 sps:$4 sm:$0xff]   ;;  %v9601_v1 = vld [vmem:[%s13938_s1 + $0xb84] ss:$16 sps:$4 sm:$0xff]  }
 0x134   :  { %6473 = vmatprep.subr.bf16.mxu0 %v9509_v2  ;;  %7129 = vmatprep.subr.bf16.mxu1 %v9512_v3  ;;  %v9604_v2 = vld [vmem:[%s13938_s1 + $0xb8c] ss:$16 sps:$4 sm:$0xff]   ;;  %v9599_v3 = vld [vmem:[%s13938_s1 + $0xb80] ss:$16 sps:$4 sm:$0xff]  }
 0x137   :  { %6474 = vmatpush1.bf16.msra.mxu0 %v9507_v4  ;;  %7130 = vmatpush1.bf16.msra.mxu1 %v9510_v5  ;;  %v9602_v4 = vld [vmem:[%s13938_s1 + $0xb88] ss:$16 sps:$4 sm:$0xff]   ;;  %v9607_v5 = vld [vmem:[%s13938_s1 + $0xba4] ss:$16 sps:$4 sm:$0xff]  }
 0x138   :  { %6475 = vmatprep.subr.bf16.mxu0 %v9515_v6  ;;  %7131 = vmatprep.subr.bf16.mxu1 %v9518_v7  ;;  %v9610_v6 = vld [vmem:[%s13938_s1 + $0xbac] ss:$16 sps:$4 sm:$0xff]   ;;  %v9605_v7 = vld [vmem:[%s13938_s1 + $0xba0] ss:$16 sps:$4 sm:$0xff]  }
 0x13b   :  { %6476 = vmatpush1.bf16.msra.mxu0 %v9513_v8  ;;  %7132 = vmatpush1.bf16.msra.mxu1 %v9516_v9  ;;  %v9608_v8 = vld [vmem:[%s13938_s1 + $0xba8] ss:$16 sps:$4 sm:$0xff]   ;;  %v9613_v9 = vld [vmem:[%s13938_s1 + $0xbc4] ss:$16 sps:$4 sm:$0xff]  }
 0x13c   :  { %6477 = vmatprep.subr.bf16.mxu0 %v9521_v10  ;;  %7133 = vmatprep.subr.bf16.mxu1 %v9524_v12  ;;  %v9616_v10 = vld [vmem:[%s13938_s1 + $0xbcc] ss:$16 sps:$4 sm:$0xff]   ;;  %v9611_v12 = vld [vmem:[%s13938_s1 + $0xbc0] ss:$16 sps:$4 sm:$0xff]  }
 0x13f   :  { %6478 = vmatpush1.bf16.msra.mxu0 %v9519_v13  ;;  %7134 = vmatpush1.bf16.msra.mxu1 %v9522_v15  ;;  %v9614_v13 = vld [vmem:[%s13938_s1 + $0xbc8] ss:$16 sps:$4 sm:$0xff]   ;;  %v9619_v15 = vld [vmem:[%s13938_s1 + $0xbe4] ss:$16 sps:$4 sm:$0xff]  }
 0x140   :  { %6488 = vmatprep.subr.bf16.mxu0 %v9529_v11  ;;  %7144 = vmatprep.subr.bf16.mxu1 %v9532_v17  ;;  %v9622_v11 = vld [vmem:[%s13938_s1 + $0xbec] ss:$16 sps:$4 sm:$0xff]   ;;  %v9617_v17 = vld [vmem:[%s13938_s1 + $0xbe0] ss:$16 sps:$4 sm:$0xff]  }
 0x142   :  { %6480 = vmatmul.mubr.bf16.vlgmr.msra.gmra.mrb[0].mxu0 %v7861_v14  ;;  %7136 = vmatmul.mubr.bf16.vlgmr.msra.gmra.mrb[0].mxu1 %v7861_v14  ;;  %v9620_v14 = vld [vmem:[%s13938_s1 + $0xbe8] ss:$16 sps:$4 sm:$0xff]  }
 0x143   :  { %6489 = vmatpush1.bf16.msra.mxu0 %v9527_v19  ;;  %7145 = vmatpush1.bf16.msra.mxu1 %v9530_v20  ;;  %v9627_v19 = vld [vmem:[%s13938_s1 + $0xc04] ss:$16 sps:$4 sm:$0xff]   ;;  %v9630_v20 = vld [vmem:[%s13938_s1 + $0xc0c] ss:$16 sps:$4 sm:$0xff]  }
 0x144   :  { %6490 = vmatprep.subr.bf16.mxu0 %v9535_v21  ;;  %7146 = vmatprep.subr.bf16.mxu1 %v9538_v16  ;;  %v11843_v21 = vld [vmem:[%s13939_s0 + $0x30] sm:$0xff]  ;;  %v7863_v16 = vcombine.low %v11642_v18, %v11642_v18  ;;  %v9636_v18 = vld [vmem:[%s13938_s1 + $0xc2c] ss:$16 sps:$4 sm:$0xff]  }
 0x145   :  { %6520 = vmatprep.mubr.bf16.mxu0 %v7864_v22  ;;  %7176 = vmatprep.mubr.bf16.mxu1 %v7864_v22  ;;  %v9625_v22 = vld [vmem:[%s13938_s1 + $0xc00] ss:$16 sps:$4 sm:$0xff]  }
 0x147   :  { %6491 = vmatpush1.bf16.msra.mxu0 %v9533_v23  ;;  %7147 = vmatpush1.bf16.msra.mxu1 %v9536_v24  ;;  %v9628_v23 = vld [vmem:[%s13938_s1 + $0xc08] ss:$16 sps:$4 sm:$0xff]   ;;  %v9633_v24 = vld [vmem:[%s13938_s1 + $0xc24] ss:$16 sps:$4 sm:$0xff]  }
 0x148   :  { %6492 = vmatprep.subr.bf16.mxu0 %v9541_v25  ;;  %7148 = vmatprep.subr.bf16.mxu1 %v9544_v26  ;;  %v7866_v25 = vcombine.high %v11843_v21, %v11843_v21  ;;  %v9631_v26 = vld [vmem:[%s13938_s1 + $0xc20] ss:$16 sps:$4 sm:$0xff]  }
 0x14b   :  { %6493 = vmatpush1.bf16.msra.mxu0 %v9539_v27  ;;  %7149 = vmatpush1.bf16.msra.mxu1 %v9542_v28  ;;  %v9634_v27 = vld [vmem:[%s13938_s1 + $0xc28] ss:$16 sps:$4 sm:$0xff]   ;;  %v9639_v28 = vld [vmem:[%s13938_s1 + $0xc44] ss:$16 sps:$4 sm:$0xff]  }
 0x14c   :  { %6494 = vmatprep.subr.bf16.mxu0 %v9547_v29  ;;  %7150 = vmatprep.subr.bf16.mxu1 %v9550_v30  ;;  %v9642_v29 = vld [vmem:[%s13938_s1 + $0xc4c] ss:$16 sps:$4 sm:$0xff]   ;;  %v9637_v30 = vld [vmem:[%s13938_s1 + $0xc40] ss:$16 sps:$4 sm:$0xff]  }
 0x14f   :  { %6495 = vmatpush1.bf16.msra.mxu0 %v9545_v31  ;;  %7151 = vmatpush1.bf16.msra.mxu1 %v9548_v32  ;;  %v9640_v31 = vld [vmem:[%s13938_s1 + $0xc48] ss:$16 sps:$4 sm:$0xff]   ;;  %v9645_v32 = vld [vmem:[%s13938_s1 + $0xc64] ss:$16 sps:$4 sm:$0xff]  }
 0x150   :  { %6496 = vmatprep.subr.bf16.mxu0 %v9553_v33  ;;  %7152 = vmatprep.subr.bf16.mxu1 %v9556_v34  ;;  %v9648_v33 = vld [vmem:[%s13938_s1 + $0xc6c] ss:$16 sps:$4 sm:$0xff]   ;;  %v9643_v34 = vld [vmem:[%s13938_s1 + $0xc60] ss:$16 sps:$4 sm:$0xff]  }
 0x153   :  { %6497 = vmatpush1.bf16.msra.mxu0 %v9551_v35  ;;  %7153 = vmatpush1.bf16.msra.mxu1 %v9554_v36  ;;  %v9646_v35 = vld [vmem:[%s13938_s1 + $0xc68] ss:$16 sps:$4 sm:$0xff]   ;;  %v9651_v36 = vld [vmem:[%s13938_s1 + $0xc84] ss:$16 sps:$4 sm:$0xff]  }
 0x154   :  { %6498 = vmatprep.subr.bf16.mxu0 %v9559_v37  ;;  %7154 = vmatprep.subr.bf16.mxu1 %v9562_v38  ;;  %v9654_v37 = vld [vmem:[%s13938_s1 + $0xc8c] ss:$16 sps:$4 sm:$0xff]   ;;  %v9649_v38 = vld [vmem:[%s13938_s1 + $0xc80] ss:$16 sps:$4 sm:$0xff]  }
 0x157   :  { %6499 = vmatpush1.bf16.msra.mxu0 %v9557_v39  ;;  %7155 = vmatpush1.bf16.msra.mxu1 %v9560_v40  ;;  %v9652_v39 = vld [vmem:[%s13938_s1 + $0xc88] ss:$16 sps:$4 sm:$0xff]   ;;  %v9657_v40 = vld [vmem:[%s13938_s1 + $0xca4] ss:$16 sps:$4 sm:$0xff]  }
 0x158   :  { %6500 = vmatprep.subr.bf16.mxu0 %v9565_v41  ;;  %7156 = vmatprep.subr.bf16.mxu1 %v9568_v42  ;;  %v9660_v41 = vld [vmem:[%s13938_s1 + $0xcac] ss:$16 sps:$4 sm:$0xff]   ;;  %v9655_v42 = vld [vmem:[%s13938_s1 + $0xca0] ss:$16 sps:$4 sm:$0xff]  }
 0x15b   :  { %6501 = vmatpush1.bf16.msra.mxu0 %v9563_v43  ;;  %7157 = vmatpush1.bf16.msra.mxu1 %v9566_v44  ;;  %v9658_v43 = vld [vmem:[%s13938_s1 + $0xca8] ss:$16 sps:$4 sm:$0xff]   ;;  %v9663_v44 = vld [vmem:[%s13938_s1 + $0xcc4] ss:$16 sps:$4 sm:$0xff]  }
 0x15c   :  { %6502 = vmatprep.subr.bf16.mxu0 %v9571_v45  ;;  %7158 = vmatprep.subr.bf16.mxu1 %v9574_v46  ;;  %v9666_v45 = vld [vmem:[%s13938_s1 + $0xccc] ss:$16 sps:$4 sm:$0xff]   ;;  %v9661_v46 = vld [vmem:[%s13938_s1 + $0xcc0] ss:$16 sps:$4 sm:$0xff]  }
 0x15f   :  { %6503 = vmatpush1.bf16.msra.mxu0 %v9569_v47  ;;  %7159 = vmatpush1.bf16.msra.mxu1 %v9572_v48  ;;  %v9664_v47 = vld [vmem:[%s13938_s1 + $0xcc8] ss:$16 sps:$4 sm:$0xff]   ;;  %v9669_v48 = vld [vmem:[%s13938_s1 + $0xce4] ss:$16 sps:$4 sm:$0xff]  }
 0x160   :  { %6504 = vmatprep.subr.bf16.mxu0 %v9577_v49  ;;  %7160 = vmatprep.subr.bf16.mxu1 %v9580_v50  ;;  %v9672_v49 = vld [vmem:[%s13938_s1 + $0xcec] ss:$16 sps:$4 sm:$0xff]   ;;  %v9667_v50 = vld [vmem:[%s13938_s1 + $0xce0] ss:$16 sps:$4 sm:$0xff]  }
 0x163   :  { %6505 = vmatpush1.bf16.msra.mxu0 %v9575_v51  ;;  %7161 = vmatpush1.bf16.msra.mxu1 %v9578_v52  ;;  %v9670_v51 = vld [vmem:[%s13938_s1 + $0xce8] ss:$16 sps:$4 sm:$0xff]   ;;  %v9675_v52 = vld [vmem:[%s13938_s1 + $0xd04] ss:$16 sps:$4 sm:$0xff]  }
 0x164   :  { %6506 = vmatprep.subr.bf16.mxu0 %v9583_v53  ;;  %7162 = vmatprep.subr.bf16.mxu1 %v9586_v54  ;;  %v9678_v53 = vld [vmem:[%s13938_s1 + $0xd0c] ss:$16 sps:$4 sm:$0xff]   ;;  %v9673_v54 = vld [vmem:[%s13938_s1 + $0xd00] ss:$16 sps:$4 sm:$0xff]  }
 0x167   :  { %6507 = vmatpush1.bf16.msra.mxu0 %v9581_v55  ;;  %7163 = vmatpush1.bf16.msra.mxu1 %v9584_v56  ;;  %v9676_v55 = vld [vmem:[%s13938_s1 + $0xd08] ss:$16 sps:$4 sm:$0xff]   ;;  %v9681_v56 = vld [vmem:[%s13938_s1 + $0xd24] ss:$16 sps:$4 sm:$0xff]  }
 0x168   :  { %6508 = vmatprep.subr.bf16.mxu0 %v9589_v57  ;;  %7164 = vmatprep.subr.bf16.mxu1 %v9592_v58  ;;  %v9684_v57 = vld [vmem:[%s13938_s1 + $0xd2c] ss:$16 sps:$4 sm:$0xff]   ;;  %v9679_v58 = vld [vmem:[%s13938_s1 + $0xd20] ss:$16 sps:$4 sm:$0xff]  }
 0x16b   :  { %6509 = vmatpush1.bf16.msra.mxu0 %v9587_v59  ;;  %7165 = vmatpush1.bf16.msra.mxu1 %v9590_v60  ;;  %v9682_v59 = vld [vmem:[%s13938_s1 + $0xd28] ss:$16 sps:$4 sm:$0xff]   ;;  %v9687_v60 = vld [vmem:[%s13938_s1 + $0xd44] ss:$16 sps:$4 sm:$0xff]  }
 0x16c   :  { %6510 = vmatprep.subr.bf16.mxu0 %v9595_v61  ;;  %7166 = vmatprep.subr.bf16.mxu1 %v9598_v62  ;;  %v9690_v61 = vld [vmem:[%s13938_s1 + $0xd4c] ss:$16 sps:$4 sm:$0xff]   ;;  %v9685_v62 = vld [vmem:[%s13938_s1 + $0xd40] ss:$16 sps:$4 sm:$0xff]  }
 0x16f   :  { %6511 = vmatpush1.bf16.msra.mxu0 %v9593_v63  ;;  %7167 = vmatpush1.bf16.msra.mxu1 %v9596_v0  ;;  %v9688_v63 = vld [vmem:[%s13938_s1 + $0xd48] ss:$16 sps:$4 sm:$0xff]   ;;  %v9693_v0 = vld [vmem:[%s13938_s1 + $0xd64] ss:$16 sps:$4 sm:$0xff]  }
 0x170   :  { %6512 = vmatprep.subr.bf16.mxu0 %v9601_v1  ;;  %7168 = vmatprep.subr.bf16.mxu1 %v9604_v2  ;;  %v9696_v1 = vld [vmem:[%s13938_s1 + $0xd6c] ss:$16 sps:$4 sm:$0xff]   ;;  %v9691_v2 = vld [vmem:[%s13938_s1 + $0xd60] ss:$16 sps:$4 sm:$0xff]  }
 0x173   :  { %6513 = vmatpush1.bf16.msra.mxu0 %v9599_v3  ;;  %7169 = vmatpush1.bf16.msra.mxu1 %v9602_v4  ;;  %v9694_v3 = vld [vmem:[%s13938_s1 + $0xd68] ss:$16 sps:$4 sm:$0xff]   ;;  %v9699_v4 = vld [vmem:[%s13938_s1 + $0xd84] ss:$16 sps:$4 sm:$0xff]  }
 0x174   :  { %6514 = vmatprep.subr.bf16.mxu0 %v9607_v5  ;;  %7170 = vmatprep.subr.bf16.mxu1 %v9610_v6  ;;  %v9702_v5 = vld [vmem:[%s13938_s1 + $0xd8c] ss:$16 sps:$4 sm:$0xff]   ;;  %v9697_v6 = vld [vmem:[%s13938_s1 + $0xd80] ss:$16 sps:$4 sm:$0xff]  }
 0x177   :  { %6515 = vmatpush1.bf16.msra.mxu0 %v9605_v7  ;;  %7171 = vmatpush1.bf16.msra.mxu1 %v9608_v8  ;;  %v9700_v7 = vld [vmem:[%s13938_s1 + $0xd88] ss:$16 sps:$4 sm:$0xff]   ;;  %v9705_v8 = vld [vmem:[%s13938_s1 + $0xda4] ss:$16 sps:$4 sm:$0xff]  }
 0x178   :  { %6516 = vmatprep.subr.bf16.mxu0 %v9613_v9  ;;  %7172 = vmatprep.subr.bf16.mxu1 %v9616_v10  ;;  %v9708_v9 = vld [vmem:[%s13938_s1 + $0xdac] ss:$16 sps:$4 sm:$0xff]   ;;  %v9703_v10 = vld [vmem:[%s13938_s1 + $0xda0] ss:$16 sps:$4 sm:$0xff]  }
 0x17b   :  { %6517 = vmatpush1.bf16.msra.mxu0 %v9611_v12  ;;  %7173 = vmatpush1.bf16.msra.mxu1 %v9614_v13  ;;  %v9706_v12 = vld [vmem:[%s13938_s1 + $0xda8] ss:$16 sps:$4 sm:$0xff]   ;;  %v9711_v13 = vld [vmem:[%s13938_s1 + $0xdc4] ss:$16 sps:$4 sm:$0xff]  }
 0x17c   :  { %6518 = vmatprep.subr.bf16.mxu0 %v9619_v15  ;;  %7174 = vmatprep.subr.bf16.mxu1 %v9622_v11  ;;  %v9714_v15 = vld [vmem:[%s13938_s1 + $0xdcc] ss:$16 sps:$4 sm:$0xff]   ;;  %v9709_v11 = vld [vmem:[%s13938_s1 + $0xdc0] ss:$16 sps:$4 sm:$0xff]  }
 0x17f   :  { %6519 = vmatpush1.bf16.msra.mxu0 %v9617_v17  ;;  %7175 = vmatpush1.bf16.msra.mxu1 %v9620_v14  ;;  %v9712_v17 = vld [vmem:[%s13938_s1 + $0xdc8] ss:$16 sps:$4 sm:$0xff]   ;;  %v9717_v14 = vld [vmem:[%s13938_s1 + $0xde4] ss:$16 sps:$4 sm:$0xff]  }
 0x180   :  { %6529 = vmatprep.subr.bf16.mxu0 %v9627_v19  ;;  %7185 = vmatprep.subr.bf16.mxu1 %v9630_v20  ;;  %v9720_v19 = vld [vmem:[%s13938_s1 + $0xdec] ss:$16 sps:$4 sm:$0xff]   ;;  %v9715_v20 = vld [vmem:[%s13938_s1 + $0xde0] ss:$16 sps:$4 sm:$0xff]  }
 0x182   :  { %6521 = vmatmul.mubr.bf16.vlgmr.msra.gmra.mrb[0].mxu0 %v7863_v16  ;;  %7177 = vmatmul.mubr.bf16.vlgmr.msra.gmra.mrb[0].mxu1 %v7863_v16  ;;  %v9718_v16 = vld [vmem:[%s13938_s1 + $0xde8] ss:$16 sps:$4 sm:$0xff]  }
 0x183   :  { %6530 = vmatpush1.bf16.msra.mxu0 %v9625_v22  ;;  %7186 = vmatpush1.bf16.msra.mxu1 %v9628_v23  ;;  %v9725_v22 = vld [vmem:[%s13938_s1 + $0xe04] ss:$16 sps:$4 sm:$0xff]   ;;  %v9728_v23 = vld [vmem:[%s13938_s1 + $0xe0c] ss:$16 sps:$4 sm:$0xff]  }
 0x184   :  { %6531 = vmatprep.subr.bf16.mxu0 %v9633_v24  ;;  %7187 = vmatprep.subr.bf16.mxu1 %v9636_v18  ;;  %v12044_v24 = vld [vmem:[%s13939_s0 + $0x38] sm:$0xff]  ;;  %v7865_v18 = vcombine.low %v11843_v21, %v11843_v21 }
 0x185   :  { %6561 = vmatprep.mubr.bf16.mxu0 %v7866_v25  ;;  %7217 = vmatprep.mubr.bf16.mxu1 %v7866_v25  ;;  %v9723_v25 = vld [vmem:[%s13938_s1 + $0xe00] ss:$16 sps:$4 sm:$0xff]   ;;  %v9734_v21 = vld [vmem:[%s13938_s1 + $0xe2c] ss:$16 sps:$4 sm:$0xff]  }
 0x187   :  { %6532 = vmatpush1.bf16.msra.mxu0 %v9631_v26  ;;  %7188 = vmatpush1.bf16.msra.mxu1 %v9634_v27  ;;  %v9726_v26 = vld [vmem:[%s13938_s1 + $0xe08] ss:$16 sps:$4 sm:$0xff]   ;;  %v9731_v27 = vld [vmem:[%s13938_s1 + $0xe24] ss:$16 sps:$4 sm:$0xff]  }
 0x188   :  { %6533 = vmatprep.subr.bf16.mxu0 %v9639_v28  ;;  %7189 = vmatprep.subr.bf16.mxu1 %v9642_v29  ;;  %v7868_v28 = vcombine.high %v12044_v24, %v12044_v24  ;;  %v9729_v29 = vld [vmem:[%s13938_s1 + $0xe20] ss:$16 sps:$4 sm:$0xff]  }
 0x18b   :  { %6534 = vmatpush1.bf16.msra.mxu0 %v9637_v30  ;;  %7190 = vmatpush1.bf16.msra.mxu1 %v9640_v31  ;;  %v9732_v30 = vld [vmem:[%s13938_s1 + $0xe28] ss:$16 sps:$4 sm:$0xff]   ;;  %v9737_v31 = vld [vmem:[%s13938_s1 + $0xe44] ss:$16 sps:$4 sm:$0xff]  }
 0x18c   :  { %6535 = vmatprep.subr.bf16.mxu0 %v9645_v32  ;;  %7191 = vmatprep.subr.bf16.mxu1 %v9648_v33  ;;  %v9740_v32 = vld [vmem:[%s13938_s1 + $0xe4c] ss:$16 sps:$4 sm:$0xff]   ;;  %v9735_v33 = vld [vmem:[%s13938_s1 + $0xe40] ss:$16 sps:$4 sm:$0xff]  }
 0x18f   :  { %6536 = vmatpush1.bf16.msra.mxu0 %v9643_v34  ;;  %7192 = vmatpush1.bf16.msra.mxu1 %v9646_v35  ;;  %v9738_v34 = vld [vmem:[%s13938_s1 + $0xe48] ss:$16 sps:$4 sm:$0xff]   ;;  %v9743_v35 = vld [vmem:[%s13938_s1 + $0xe64] ss:$16 sps:$4 sm:$0xff]  }
 0x190   :  { %6537 = vmatprep.subr.bf16.mxu0 %v9651_v36  ;;  %7193 = vmatprep.subr.bf16.mxu1 %v9654_v37  ;;  %v9746_v36 = vld [vmem:[%s13938_s1 + $0xe6c] ss:$16 sps:$4 sm:$0xff]   ;;  %v9741_v37 = vld [vmem:[%s13938_s1 + $0xe60] ss:$16 sps:$4 sm:$0xff]  }
 0x193   :  { %6538 = vmatpush1.bf16.msra.mxu0 %v9649_v38  ;;  %7194 = vmatpush1.bf16.msra.mxu1 %v9652_v39  ;;  %v9744_v38 = vld [vmem:[%s13938_s1 + $0xe68] ss:$16 sps:$4 sm:$0xff]   ;;  %v9749_v39 = vld [vmem:[%s13938_s1 + $0xe84] ss:$16 sps:$4 sm:$0xff]  }
 0x194   :  { %6539 = vmatprep.subr.bf16.mxu0 %v9657_v40  ;;  %7195 = vmatprep.subr.bf16.mxu1 %v9660_v41  ;;  %v9752_v40 = vld [vmem:[%s13938_s1 + $0xe8c] ss:$16 sps:$4 sm:$0xff]   ;;  %v9747_v41 = vld [vmem:[%s13938_s1 + $0xe80] ss:$16 sps:$4 sm:$0xff]  }
 0x197   :  { %6540 = vmatpush1.bf16.msra.mxu0 %v9655_v42  ;;  %7196 = vmatpush1.bf16.msra.mxu1 %v9658_v43  ;;  %v9750_v42 = vld [vmem:[%s13938_s1 + $0xe88] ss:$16 sps:$4 sm:$0xff]   ;;  %v9755_v43 = vld [vmem:[%s13938_s1 + $0xea4] ss:$16 sps:$4 sm:$0xff]  }
 0x198   :  { %6541 = vmatprep.subr.bf16.mxu0 %v9663_v44  ;;  %7197 = vmatprep.subr.bf16.mxu1 %v9666_v45  ;;  %v9758_v44 = vld [vmem:[%s13938_s1 + $0xeac] ss:$16 sps:$4 sm:$0xff]   ;;  %v9753_v45 = vld [vmem:[%s13938_s1 + $0xea0] ss:$16 sps:$4 sm:$0xff]  }
 0x19b   :  { %6542 = vmatpush1.bf16.msra.mxu0 %v9661_v46  ;;  %7198 = vmatpush1.bf16.msra.mxu1 %v9664_v47  ;;  %v9756_v46 = vld [vmem:[%s13938_s1 + $0xea8] ss:$16 sps:$4 sm:$0xff]   ;;  %v9761_v47 = vld [vmem:[%s13938_s1 + $0xec4] ss:$16 sps:$4 sm:$0xff]  }
 0x19c   :  { %6543 = vmatprep.subr.bf16.mxu0 %v9669_v48  ;;  %7199 = vmatprep.subr.bf16.mxu1 %v9672_v49  ;;  %v9764_v48 = vld [vmem:[%s13938_s1 + $0xecc] ss:$16 sps:$4 sm:$0xff]   ;;  %v9759_v49 = vld [vmem:[%s13938_s1 + $0xec0] ss:$16 sps:$4 sm:$0xff]  }
 0x19f   :  { %6544 = vmatpush1.bf16.msra.mxu0 %v9667_v50  ;;  %7200 = vmatpush1.bf16.msra.mxu1 %v9670_v51  ;;  %v9762_v50 = vld [vmem:[%s13938_s1 + $0xec8] ss:$16 sps:$4 sm:$0xff]   ;;  %v9767_v51 = vld [vmem:[%s13938_s1 + $0xee4] ss:$16 sps:$4 sm:$0xff]  }
 0x1a0   :  { %6545 = vmatprep.subr.bf16.mxu0 %v9675_v52  ;;  %7201 = vmatprep.subr.bf16.mxu1 %v9678_v53  ;;  %v9770_v52 = vld [vmem:[%s13938_s1 + $0xeec] ss:$16 sps:$4 sm:$0xff]   ;;  %v9765_v53 = vld [vmem:[%s13938_s1 + $0xee0] ss:$16 sps:$4 sm:$0xff]  }
 0x1a3   :  { %6546 = vmatpush1.bf16.msra.mxu0 %v9673_v54  ;;  %7202 = vmatpush1.bf16.msra.mxu1 %v9676_v55  ;;  %v9768_v54 = vld [vmem:[%s13938_s1 + $0xee8] ss:$16 sps:$4 sm:$0xff]   ;;  %v9773_v55 = vld [vmem:[%s13938_s1 + $0xf04] ss:$16 sps:$4 sm:$0xff]  }
 0x1a4   :  { %6547 = vmatprep.subr.bf16.mxu0 %v9681_v56  ;;  %7203 = vmatprep.subr.bf16.mxu1 %v9684_v57  ;;  %v9776_v56 = vld [vmem:[%s13938_s1 + $0xf0c] ss:$16 sps:$4 sm:$0xff]   ;;  %v9771_v57 = vld [vmem:[%s13938_s1 + $0xf00] ss:$16 sps:$4 sm:$0xff]  }
 0x1a7   :  { %6548 = vmatpush1.bf16.msra.mxu0 %v9679_v58  ;;  %7204 = vmatpush1.bf16.msra.mxu1 %v9682_v59  ;;  %v9774_v58 = vld [vmem:[%s13938_s1 + $0xf08] ss:$16 sps:$4 sm:$0xff]   ;;  %v9779_v59 = vld [vmem:[%s13938_s1 + $0xf24] ss:$16 sps:$4 sm:$0xff]  }
 0x1a8   :  { %6549 = vmatprep.subr.bf16.mxu0 %v9687_v60  ;;  %7205 = vmatprep.subr.bf16.mxu1 %v9690_v61  ;;  %v9782_v60 = vld [vmem:[%s13938_s1 + $0xf2c] ss:$16 sps:$4 sm:$0xff]   ;;  %v9777_v61 = vld [vmem:[%s13938_s1 + $0xf20] ss:$16 sps:$4 sm:$0xff]  }
 0x1ab   :  { %6550 = vmatpush1.bf16.msra.mxu0 %v9685_v62  ;;  %7206 = vmatpush1.bf16.msra.mxu1 %v9688_v63  ;;  %v9780_v62 = vld [vmem:[%s13938_s1 + $0xf28] ss:$16 sps:$4 sm:$0xff]   ;;  %v9785_v63 = vld [vmem:[%s13938_s1 + $0xf44] ss:$16 sps:$4 sm:$0xff]  }
 0x1ac   :  { %6551 = vmatprep.subr.bf16.mxu0 %v9693_v0  ;;  %7207 = vmatprep.subr.bf16.mxu1 %v9696_v1  ;;  %v9788_v0 = vld [vmem:[%s13938_s1 + $0xf4c] ss:$16 sps:$4 sm:$0xff]   ;;  %v9783_v1 = vld [vmem:[%s13938_s1 + $0xf40] ss:$16 sps:$4 sm:$0xff]  }
 0x1af   :  { %6552 = vmatpush1.bf16.msra.mxu0 %v9691_v2  ;;  %7208 = vmatpush1.bf16.msra.mxu1 %v9694_v3  ;;  %v9786_v2 = vld [vmem:[%s13938_s1 + $0xf48] ss:$16 sps:$4 sm:$0xff]   ;;  %v9791_v3 = vld [vmem:[%s13938_s1 + $0xf64] ss:$16 sps:$4 sm:$0xff]  }
 0x1b0   :  { %6553 = vmatprep.subr.bf16.mxu0 %v9699_v4  ;;  %7209 = vmatprep.subr.bf16.mxu1 %v9702_v5  ;;  %v9794_v4 = vld [vmem:[%s13938_s1 + $0xf6c] ss:$16 sps:$4 sm:$0xff]   ;;  %v9789_v5 = vld [vmem:[%s13938_s1 + $0xf60] ss:$16 sps:$4 sm:$0xff]  }
 0x1b3   :  { %6554 = vmatpush1.bf16.msra.mxu0 %v9697_v6  ;;  %7210 = vmatpush1.bf16.msra.mxu1 %v9700_v7  ;;  %v9792_v6 = vld [vmem:[%s13938_s1 + $0xf68] ss:$16 sps:$4 sm:$0xff]   ;;  %v9797_v7 = vld [vmem:[%s13938_s1 + $0xf84] ss:$16 sps:$4 sm:$0xff]  }
 0x1b4   :  { %6555 = vmatprep.subr.bf16.mxu0 %v9705_v8  ;;  %7211 = vmatprep.subr.bf16.mxu1 %v9708_v9  ;;  %v9800_v8 = vld [vmem:[%s13938_s1 + $0xf8c] ss:$16 sps:$4 sm:$0xff]   ;;  %v9795_v9 = vld [vmem:[%s13938_s1 + $0xf80] ss:$16 sps:$4 sm:$0xff]  }
 0x1b7   :  { %6556 = vmatpush1.bf16.msra.mxu0 %v9703_v10  ;;  %7212 = vmatpush1.bf16.msra.mxu1 %v9706_v12  ;;  %v9798_v10 = vld [vmem:[%s13938_s1 + $0xf88] ss:$16 sps:$4 sm:$0xff]   ;;  %v9803_v12 = vld [vmem:[%s13938_s1 + $0xfa4] ss:$16 sps:$4 sm:$0xff]  }
 0x1b8   :  { %6557 = vmatprep.subr.bf16.mxu0 %v9711_v13  ;;  %7213 = vmatprep.subr.bf16.mxu1 %v9714_v15  ;;  %v9806_v13 = vld [vmem:[%s13938_s1 + $0xfac] ss:$16 sps:$4 sm:$0xff]   ;;  %v9801_v15 = vld [vmem:[%s13938_s1 + $0xfa0] ss:$16 sps:$4 sm:$0xff]  }
 0x1bb   :  { %6558 = vmatpush1.bf16.msra.mxu0 %v9709_v11  ;;  %7214 = vmatpush1.bf16.msra.mxu1 %v9712_v17  ;;  %v9804_v11 = vld [vmem:[%s13938_s1 + $0xfa8] ss:$16 sps:$4 sm:$0xff]   ;;  %v9809_v17 = vld [vmem:[%s13938_s1 + $0xfc4] ss:$16 sps:$4 sm:$0xff]  }
 0x1bc   :  { %6559 = vmatprep.subr.bf16.mxu0 %v9717_v14  ;;  %7215 = vmatprep.subr.bf16.mxu1 %v9720_v19  ;;  %v9812_v14 = vld [vmem:[%s13938_s1 + $0xfcc] ss:$16 sps:$4 sm:$0xff]   ;;  %v9807_v19 = vld [vmem:[%s13938_s1 + $0xfc0] ss:$16 sps:$4 sm:$0xff]  }
 0x1bf   :  { %6560 = vmatpush1.bf16.msra.mxu0 %v9715_v20  ;;  %7216 = vmatpush1.bf16.msra.mxu1 %v9718_v16  ;;  %v9810_v20 = vld [vmem:[%s13938_s1 + $0xfc8] ss:$16 sps:$4 sm:$0xff]   ;;  %v9815_v16 = vld [vmem:[%s13938_s1 + $0xfe4] ss:$16 sps:$4 sm:$0xff]  }
 0x1c0   :  { %6570 = vmatprep.subr.bf16.mxu0 %v9725_v22  ;;  %7226 = vmatprep.subr.bf16.mxu1 %v9728_v23  ;;  %v9818_v22 = vld [vmem:[%s13938_s1 + $0xfec] ss:$16 sps:$4 sm:$0xff]   ;;  %v9813_v23 = vld [vmem:[%s13938_s1 + $0xfe0] ss:$16 sps:$4 sm:$0xff]  }
 0x1c2   :  { %6562 = vmatmul.mubr.bf16.vlgmr.msra.gmra.mrb[0].mxu0 %v7865_v18  ;;  %7218 = vmatmul.mubr.bf16.vlgmr.msra.gmra.mrb[0].mxu1 %v7865_v18  ;;  %v9816_v18 = vld [vmem:[%s13938_s1 + $0xfe8] ss:$16 sps:$4 sm:$0xff]  }
 0x1c3   :  { %6571 = vmatpush1.bf16.msra.mxu0 %v9723_v25  ;;  %7227 = vmatpush1.bf16.msra.mxu1 %v9726_v26  ;;  %v9823_v25 = vld [vmem:[%s13938_s1 + $0x1004] ss:$16 sps:$4 sm:$0xff]   ;;  %v9826_v26 = vld [vmem:[%s13938_s1 + $0x100c] ss:$16 sps:$4 sm:$0xff]  }
 0x1c4   :  { %6572 = vmatprep.subr.bf16.mxu0 %v9731_v27  ;;  %7228 = vmatprep.subr.bf16.mxu1 %v9734_v21  ;;  %v12245_v27 = vld [vmem:[%s13939_s0 + $0x40] sm:$0xff]  ;;  %v7867_v21 = vcombine.low %v12044_v24, %v12044_v24  ;;  %v9832_v24 = vld [vmem:[%s13938_s1 + $0x102c] ss:$16 sps:$4 sm:$0xff]  }
 0x1c5   :  { %6602 = vmatprep.mubr.bf16.mxu0 %v7868_v28  ;;  %7258 = vmatprep.mubr.bf16.mxu1 %v7868_v28  ;;  %v9821_v28 = vld [vmem:[%s13938_s1 + $0x1000] ss:$16 sps:$4 sm:$0xff]  }
 0x1c7   :  { %6573 = vmatpush1.bf16.msra.mxu0 %v9729_v29  ;;  %7229 = vmatpush1.bf16.msra.mxu1 %v9732_v30  ;;  %v9824_v29 = vld [vmem:[%s13938_s1 + $0x1008] ss:$16 sps:$4 sm:$0xff]   ;;  %v9829_v30 = vld [vmem:[%s13938_s1 + $0x1024] ss:$16 sps:$4 sm:$0xff]  }
 0x1c8   :  { %6574 = vmatprep.subr.bf16.mxu0 %v9737_v31  ;;  %7230 = vmatprep.subr.bf16.mxu1 %v9740_v32  ;;  %v7870_v31 = vcombine.high %v12245_v27, %v12245_v27  ;;  %v9827_v32 = vld [vmem:[%s13938_s1 + $0x1020] ss:$16 sps:$4 sm:$0xff]  }
 0x1cb   :  { %6575 = vmatpush1.bf16.msra.mxu0 %v9735_v33  ;;  %7231 = vmatpush1.bf16.msra.mxu1 %v9738_v34  ;;  %v9830_v33 = vld [vmem:[%s13938_s1 + $0x1028] ss:$16 sps:$4 sm:$0xff]   ;;  %v9835_v34 = vld [vmem:[%s13938_s1 + $0x1044] ss:$16 sps:$4 sm:$0xff]  }
 0x1cc   :  { %6576 = vmatprep.subr.bf16.mxu0 %v9743_v35  ;;  %7232 = vmatprep.subr.bf16.mxu1 %v9746_v36  ;;  %v9838_v35 = vld [vmem:[%s13938_s1 + $0x104c] ss:$16 sps:$4 sm:$0xff]   ;;  %v9833_v36 = vld [vmem:[%s13938_s1 + $0x1040] ss:$16 sps:$4 sm:$0xff]  }
 0x1cf   :  { %6577 = vmatpush1.bf16.msra.mxu0 %v9741_v37  ;;  %7233 = vmatpush1.bf16.msra.mxu1 %v9744_v38  ;;  %v9836_v37 = vld [vmem:[%s13938_s1 + $0x1048] ss:$16 sps:$4 sm:$0xff]   ;;  %v9841_v38 = vld [vmem:[%s13938_s1 + $0x1064] ss:$16 sps:$4 sm:$0xff]  }
 0x1d0   :  { %6578 = vmatprep.subr.bf16.mxu0 %v9749_v39  ;;  %7234 = vmatprep.subr.bf16.mxu1 %v9752_v40  ;;  %v9844_v39 = vld [vmem:[%s13938_s1 + $0x106c] ss:$16 sps:$4 sm:$0xff]   ;;  %v9839_v40 = vld [vmem:[%s13938_s1 + $0x1060] ss:$16 sps:$4 sm:$0xff]  }
 0x1d3   :  { %6579 = vmatpush1.bf16.msra.mxu0 %v9747_v41  ;;  %7235 = vmatpush1.bf16.msra.mxu1 %v9750_v42  ;;  %v9842_v41 = vld [vmem:[%s13938_s1 + $0x1068] ss:$16 sps:$4 sm:$0xff]   ;;  %v9847_v42 = vld [vmem:[%s13938_s1 + $0x1084] ss:$16 sps:$4 sm:$0xff]  }
 0x1d4   :  { %6580 = vmatprep.subr.bf16.mxu0 %v9755_v43  ;;  %7236 = vmatprep.subr.bf16.mxu1 %v9758_v44  ;;  %v9850_v43 = vld [vmem:[%s13938_s1 + $0x108c] ss:$16 sps:$4 sm:$0xff]   ;;  %v9845_v44 = vld [vmem:[%s13938_s1 + $0x1080] ss:$16 sps:$4 sm:$0xff]  }
 0x1d7   :  { %6581 = vmatpush1.bf16.msra.mxu0 %v9753_v45  ;;  %7237 = vmatpush1.bf16.msra.mxu1 %v9756_v46  ;;  %v9848_v45 = vld [vmem:[%s13938_s1 + $0x1088] ss:$16 sps:$4 sm:$0xff]   ;;  %v9853_v46 = vld [vmem:[%s13938_s1 + $0x10a4] ss:$16 sps:$4 sm:$0xff]  }
 0x1d8   :  { %6582 = vmatprep.subr.bf16.mxu0 %v9761_v47  ;;  %7238 = vmatprep.subr.bf16.mxu1 %v9764_v48  ;;  %v9856_v47 = vld [vmem:[%s13938_s1 + $0x10ac] ss:$16 sps:$4 sm:$0xff]   ;;  %v9851_v48 = vld [vmem:[%s13938_s1 + $0x10a0] ss:$16 sps:$4 sm:$0xff]  }
 0x1db   :  { %6583 = vmatpush1.bf16.msra.mxu0 %v9759_v49  ;;  %7239 = vmatpush1.bf16.msra.mxu1 %v9762_v50  ;;  %v9854_v49 = vld [vmem:[%s13938_s1 + $0x10a8] ss:$16 sps:$4 sm:$0xff]   ;;  %v9859_v50 = vld [vmem:[%s13938_s1 + $0x10c4] ss:$16 sps:$4 sm:$0xff]  }
 0x1dc   :  { %6584 = vmatprep.subr.bf16.mxu0 %v9767_v51  ;;  %7240 = vmatprep.subr.bf16.mxu1 %v9770_v52  ;;  %v9862_v51 = vld [vmem:[%s13938_s1 + $0x10cc] ss:$16 sps:$4 sm:$0xff]   ;;  %v9857_v52 = vld [vmem:[%s13938_s1 + $0x10c0] ss:$16 sps:$4 sm:$0xff]  }
 0x1df   :  { %6585 = vmatpush1.bf16.msra.mxu0 %v9765_v53  ;;  %7241 = vmatpush1.bf16.msra.mxu1 %v9768_v54  ;;  %v9860_v53 = vld [vmem:[%s13938_s1 + $0x10c8] ss:$16 sps:$4 sm:$0xff]   ;;  %v9865_v54 = vld [vmem:[%s13938_s1 + $0x10e4] ss:$16 sps:$4 sm:$0xff]  }
 0x1e0   :  { %6586 = vmatprep.subr.bf16.mxu0 %v9773_v55  ;;  %7242 = vmatprep.subr.bf16.mxu1 %v9776_v56  ;;  %v9868_v55 = vld [vmem:[%s13938_s1 + $0x10ec] ss:$16 sps:$4 sm:$0xff]   ;;  %v9863_v56 = vld [vmem:[%s13938_s1 + $0x10e0] ss:$16 sps:$4 sm:$0xff]  }
 0x1e3   :  { %6587 = vmatpush1.bf16.msra.mxu0 %v9771_v57  ;;  %7243 = vmatpush1.bf16.msra.mxu1 %v9774_v58  ;;  %v9866_v57 = vld [vmem:[%s13938_s1 + $0x10e8] ss:$16 sps:$4 sm:$0xff]   ;;  %v9871_v58 = vld [vmem:[%s13938_s1 + $0x1104] ss:$16 sps:$4 sm:$0xff]  }
 0x1e4   :  { %6588 = vmatprep.subr.bf16.mxu0 %v9779_v59  ;;  %7244 = vmatprep.subr.bf16.mxu1 %v9782_v60  ;;  %v9874_v59 = vld [vmem:[%s13938_s1 + $0x110c] ss:$16 sps:$4 sm:$0xff]   ;;  %v9869_v60 = vld [vmem:[%s13938_s1 + $0x1100] ss:$16 sps:$4 sm:$0xff]  }
 0x1e7   :  { %6589 = vmatpush1.bf16.msra.mxu0 %v9777_v61  ;;  %7245 = vmatpush1.bf16.msra.mxu1 %v9780_v62  ;;  %v9872_v61 = vld [vmem:[%s13938_s1 + $0x1108] ss:$16 sps:$4 sm:$0xff]   ;;  %v9877_v62 = vld [vmem:[%s13938_s1 + $0x1124] ss:$16 sps:$4 sm:$0xff]  }
 0x1e8   :  { %6590 = vmatprep.subr.bf16.mxu0 %v9785_v63  ;;  %7246 = vmatprep.subr.bf16.mxu1 %v9788_v0  ;;  %v9880_v63 = vld [vmem:[%s13938_s1 + $0x112c] ss:$16 sps:$4 sm:$0xff]   ;;  %v9875_v0 = vld [vmem:[%s13938_s1 + $0x1120] ss:$16 sps:$4 sm:$0xff]  }
 0x1eb   :  { %6591 = vmatpush1.bf16.msra.mxu0 %v9783_v1  ;;  %7247 = vmatpush1.bf16.msra.mxu1 %v9786_v2  ;;  %v9878_v1 = vld [vmem:[%s13938_s1 + $0x1128] ss:$16 sps:$4 sm:$0xff]   ;;  %v9883_v2 = vld [vmem:[%s13938_s1 + $0x1144] ss:$16 sps:$4 sm:$0xff]  }
 0x1ec   :  { %6592 = vmatprep.subr.bf16.mxu0 %v9791_v3  ;;  %7248 = vmatprep.subr.bf16.mxu1 %v9794_v4  ;;  %v9886_v3 = vld [vmem:[%s13938_s1 + $0x114c] ss:$16 sps:$4 sm:$0xff]   ;;  %v9881_v4 = vld [vmem:[%s13938_s1 + $0x1140] ss:$16 sps:$4 sm:$0xff]  }
 0x1ef   :  { %6593 = vmatpush1.bf16.msra.mxu0 %v9789_v5  ;;  %7249 = vmatpush1.bf16.msra.mxu1 %v9792_v6  ;;  %v9884_v5 = vld [vmem:[%s13938_s1 + $0x1148] ss:$16 sps:$4 sm:$0xff]   ;;  %v9889_v6 = vld [vmem:[%s13938_s1 + $0x1164] ss:$16 sps:$4 sm:$0xff]  }
 0x1f0   :  { %6594 = vmatprep.subr.bf16.mxu0 %v9797_v7  ;;  %7250 = vmatprep.subr.bf16.mxu1 %v9800_v8  ;;  %v9892_v7 = vld [vmem:[%s13938_s1 + $0x116c] ss:$16 sps:$4 sm:$0xff]   ;;  %v9887_v8 = vld [vmem:[%s13938_s1 + $0x1160] ss:$16 sps:$4 sm:$0xff]  }
 0x1f3   :  { %6595 = vmatpush1.bf16.msra.mxu0 %v9795_v9  ;;  %7251 = vmatpush1.bf16.msra.mxu1 %v9798_v10  ;;  %v9890_v9 = vld [vmem:[%s13938_s1 + $0x1168] ss:$16 sps:$4 sm:$0xff]   ;;  %v9895_v10 = vld [vmem:[%s13938_s1 + $0x1184] ss:$16 sps:$4 sm:$0xff]  }
 0x1f4   :  { %6596 = vmatprep.subr.bf16.mxu0 %v9803_v12  ;;  %7252 = vmatprep.subr.bf16.mxu1 %v9806_v13  ;;  %v9898_v12 = vld [vmem:[%s13938_s1 + $0x118c] ss:$16 sps:$4 sm:$0xff]   ;;  %v9893_v13 = vld [vmem:[%s13938_s1 + $0x1180] ss:$16 sps:$4 sm:$0xff]  }
 0x1f7   :  { %6597 = vmatpush1.bf16.msra.mxu0 %v9801_v15  ;;  %7253 = vmatpush1.bf16.msra.mxu1 %v9804_v11  ;;  %v9896_v15 = vld [vmem:[%s13938_s1 + $0x1188] ss:$16 sps:$4 sm:$0xff]   ;;  %v9901_v11 = vld [vmem:[%s13938_s1 + $0x11a4] ss:$16 sps:$4 sm:$0xff]  }
 0x1f8   :  { %6598 = vmatprep.subr.bf16.mxu0 %v9809_v17  ;;  %7254 = vmatprep.subr.bf16.mxu1 %v9812_v14  ;;  %v9904_v17 = vld [vmem:[%s13938_s1 + $0x11ac] ss:$16 sps:$4 sm:$0xff]   ;;  %v9899_v14 = vld [vmem:[%s13938_s1 + $0x11a0] ss:$16 sps:$4 sm:$0xff]  }
 0x1fb   :  { %6599 = vmatpush1.bf16.msra.mxu0 %v9807_v19  ;;  %7255 = vmatpush1.bf16.msra.mxu1 %v9810_v20  ;;  %v9902_v19 = vld [vmem:[%s13938_s1 + $0x11a8] ss:$16 sps:$4 sm:$0xff]   ;;  %v9907_v20 = vld [vmem:[%s13938_s1 + $0x11c4] ss:$16 sps:$4 sm:$0xff]  }
 0x1fc   :  { %6600 = vmatprep.subr.bf16.mxu0 %v9815_v16  ;;  %7256 = vmatprep.subr.bf16.mxu1 %v9818_v22  ;;  %v9910_v16 = vld [vmem:[%s13938_s1 + $0x11cc] ss:$16 sps:$4 sm:$0xff]   ;;  %v9905_v22 = vld [vmem:[%s13938_s1 + $0x11c0] ss:$16 sps:$4 sm:$0xff]  }
 0x1ff   :  { %6601 = vmatpush1.bf16.msra.mxu0 %v9813_v23  ;;  %7257 = vmatpush1.bf16.msra.mxu1 %v9816_v18  ;;  %v9908_v23 = vld [vmem:[%s13938_s1 + $0x11c8] ss:$16 sps:$4 sm:$0xff]   ;;  %v9913_v18 = vld [vmem:[%s13938_s1 + $0x11e4] ss:$16 sps:$4 sm:$0xff]  }
 0x200   :  { %6611 = vmatprep.subr.bf16.mxu0 %v9823_v25  ;;  %7267 = vmatprep.subr.bf16.mxu1 %v9826_v26  ;;  %v9916_v25 = vld [vmem:[%s13938_s1 + $0x11ec] ss:$16 sps:$4 sm:$0xff]   ;;  %v9911_v26 = vld [vmem:[%s13938_s1 + $0x11e0] ss:$16 sps:$4 sm:$0xff]  }
 0x202   :  { %6603 = vmatmul.mubr.bf16.vlgmr.msra.gmra.mrb[0].mxu0 %v7867_v21  ;;  %7259 = vmatmul.mubr.bf16.vlgmr.msra.gmra.mrb[0].mxu1 %v7867_v21  ;;  %v9914_v21 = vld [vmem:[%s13938_s1 + $0x11e8] ss:$16 sps:$4 sm:$0xff]  }
 0x203   :  { %6612 = vmatpush1.bf16.msra.mxu0 %v9821_v28  ;;  %7268 = vmatpush1.bf16.msra.mxu1 %v9824_v29  ;;  %v9921_v28 = vld [vmem:[%s13938_s1 + $0x1204] ss:$16 sps:$4 sm:$0xff]   ;;  %v9924_v29 = vld [vmem:[%s13938_s1 + $0x120c] ss:$16 sps:$4 sm:$0xff]  }
 0x204   :  { %6613 = vmatprep.subr.bf16.mxu0 %v9829_v30  ;;  %7269 = vmatprep.subr.bf16.mxu1 %v9832_v24  ;;  %v12446_v30 = vld [vmem:[%s13939_s0 + $0x48] sm:$0xff]  ;;  %v7869_v24 = vcombine.low %v12245_v27, %v12245_v27 }
 0x205   :  { %6643 = vmatprep.mubr.bf16.mxu0 %v7870_v31  ;;  %7299 = vmatprep.mubr.bf16.mxu1 %v7870_v31  ;;  %v9919_v31 = vld [vmem:[%s13938_s1 + $0x1200] ss:$16 sps:$4 sm:$0xff]   ;;  %v9930_v27 = vld [vmem:[%s13938_s1 + $0x122c] ss:$16 sps:$4 sm:$0xff]  }
 0x207   :  { %6614 = vmatpush1.bf16.msra.mxu0 %v9827_v32  ;;  %7270 = vmatpush1.bf16.msra.mxu1 %v9830_v33  ;;  %v9922_v32 = vld [vmem:[%s13938_s1 + $0x1208] ss:$16 sps:$4 sm:$0xff]   ;;  %v9927_v33 = vld [vmem:[%s13938_s1 + $0x1224] ss:$16 sps:$4 sm:$0xff]  }
 0x208   :  { %6615 = vmatprep.subr.bf16.mxu0 %v9835_v34  ;;  %7271 = vmatprep.subr.bf16.mxu1 %v9838_v35  ;;  %v7872_v34 = vcombine.high %v12446_v30, %v12446_v30  ;;  %v9925_v35 = vld [vmem:[%s13938_s1 + $0x1220] ss:$16 sps:$4 sm:$0xff]  }
 0x20b   :  { %6616 = vmatpush1.bf16.msra.mxu0 %v9833_v36  ;;  %7272 = vmatpush1.bf16.msra.mxu1 %v9836_v37  ;;  %v9928_v36 = vld [vmem:[%s13938_s1 + $0x1228] ss:$16 sps:$4 sm:$0xff]   ;;  %v9933_v37 = vld [vmem:[%s13938_s1 + $0x1244] ss:$16 sps:$4 sm:$0xff]  }
 0x20c   :  { %6617 = vmatprep.subr.bf16.mxu0 %v9841_v38  ;;  %7273 = vmatprep.subr.bf16.mxu1 %v9844_v39  ;;  %v9936_v38 = vld [vmem:[%s13938_s1 + $0x124c] ss:$16 sps:$4 sm:$0xff]   ;;  %v9931_v39 = vld [vmem:[%s13938_s1 + $0x1240] ss:$16 sps:$4 sm:$0xff]  }
 0x20f   :  { %6618 = vmatpush1.bf16.msra.mxu0 %v9839_v40  ;;  %7274 = vmatpush1.bf16.msra.mxu1 %v9842_v41  ;;  %v9934_v40 = vld [vmem:[%s13938_s1 + $0x1248] ss:$16 sps:$4 sm:$0xff]   ;;  %v9939_v41 = vld [vmem:[%s13938_s1 + $0x1264] ss:$16 sps:$4 sm:$0xff]  }
 0x210   :  { %6619 = vmatprep.subr.bf16.mxu0 %v9847_v42  ;;  %7275 = vmatprep.subr.bf16.mxu1 %v9850_v43  ;;  %v9942_v42 = vld [vmem:[%s13938_s1 + $0x126c] ss:$16 sps:$4 sm:$0xff]   ;;  %v9937_v43 = vld [vmem:[%s13938_s1 + $0x1260] ss:$16 sps:$4 sm:$0xff]  }
 0x213   :  { %6620 = vmatpush1.bf16.msra.mxu0 %v9845_v44  ;;  %7276 = vmatpush1.bf16.msra.mxu1 %v9848_v45  ;;  %v9940_v44 = vld [vmem:[%s13938_s1 + $0x1268] ss:$16 sps:$4 sm:$0xff]   ;;  %v9945_v45 = vld [vmem:[%s13938_s1 + $0x1284] ss:$16 sps:$4 sm:$0xff]  }
 0x214   :  { %6621 = vmatprep.subr.bf16.mxu0 %v9853_v46  ;;  %7277 = vmatprep.subr.bf16.mxu1 %v9856_v47  ;;  %v9948_v46 = vld [vmem:[%s13938_s1 + $0x128c] ss:$16 sps:$4 sm:$0xff]   ;;  %v9943_v47 = vld [vmem:[%s13938_s1 + $0x1280] ss:$16 sps:$4 sm:$0xff]  }
 0x217   :  { %6622 = vmatpush1.bf16.msra.mxu0 %v9851_v48  ;;  %7278 = vmatpush1.bf16.msra.mxu1 %v9854_v49  ;;  %v9946_v48 = vld [vmem:[%s13938_s1 + $0x1288] ss:$16 sps:$4 sm:$0xff]   ;;  %v9951_v49 = vld [vmem:[%s13938_s1 + $0x12a4] ss:$16 sps:$4 sm:$0xff]  }
 0x218   :  { %6623 = vmatprep.subr.bf16.mxu0 %v9859_v50  ;;  %7279 = vmatprep.subr.bf16.mxu1 %v9862_v51  ;;  %v9954_v50 = vld [vmem:[%s13938_s1 + $0x12ac] ss:$16 sps:$4 sm:$0xff]   ;;  %v9949_v51 = vld [vmem:[%s13938_s1 + $0x12a0] ss:$16 sps:$4 sm:$0xff]  }
 0x21b   :  { %6624 = vmatpush1.bf16.msra.mxu0 %v9857_v52  ;;  %7280 = vmatpush1.bf16.msra.mxu1 %v9860_v53  ;;  %v9952_v52 = vld [vmem:[%s13938_s1 + $0x12a8] ss:$16 sps:$4 sm:$0xff]   ;;  %v9957_v53 = vld [vmem:[%s13938_s1 + $0x12c4] ss:$16 sps:$4 sm:$0xff]  }
 0x21c   :  { %6625 = vmatprep.subr.bf16.mxu0 %v9865_v54  ;;  %7281 = vmatprep.subr.bf16.mxu1 %v9868_v55  ;;  %v9960_v54 = vld [vmem:[%s13938_s1 + $0x12cc] ss:$16 sps:$4 sm:$0xff]   ;;  %v9955_v55 = vld [vmem:[%s13938_s1 + $0x12c0] ss:$16 sps:$4 sm:$0xff]  }
 0x21f   :  { %6626 = vmatpush1.bf16.msra.mxu0 %v9863_v56  ;;  %7282 = vmatpush1.bf16.msra.mxu1 %v9866_v57  ;;  %v9958_v56 = vld [vmem:[%s13938_s1 + $0x12c8] ss:$16 sps:$4 sm:$0xff]   ;;  %v9963_v57 = vld [vmem:[%s13938_s1 + $0x12e4] ss:$16 sps:$4 sm:$0xff]  }
 0x220   :  { %6627 = vmatprep.subr.bf16.mxu0 %v9871_v58  ;;  %7283 = vmatprep.subr.bf16.mxu1 %v9874_v59  ;;  %v9966_v58 = vld [vmem:[%s13938_s1 + $0x12ec] ss:$16 sps:$4 sm:$0xff]   ;;  %v9961_v59 = vld [vmem:[%s13938_s1 + $0x12e0] ss:$16 sps:$4 sm:$0xff]  }
 0x223   :  { %6628 = vmatpush1.bf16.msra.mxu0 %v9869_v60  ;;  %7284 = vmatpush1.bf16.msra.mxu1 %v9872_v61  ;;  %v9964_v60 = vld [vmem:[%s13938_s1 + $0x12e8] ss:$16 sps:$4 sm:$0xff]   ;;  %v9969_v61 = vld [vmem:[%s13938_s1 + $0x1304] ss:$16 sps:$4 sm:$0xff]  }
 0x224   :  { %6629 = vmatprep.subr.bf16.mxu0 %v9877_v62  ;;  %7285 = vmatprep.subr.bf16.mxu1 %v9880_v63  ;;  %v9972_v62 = vld [vmem:[%s13938_s1 + $0x130c] ss:$16 sps:$4 sm:$0xff]   ;;  %v9967_v63 = vld [vmem:[%s13938_s1 + $0x1300] ss:$16 sps:$4 sm:$0xff]  }
 0x227   :  { %6630 = vmatpush1.bf16.msra.mxu0 %v9875_v0  ;;  %7286 = vmatpush1.bf16.msra.mxu1 %v9878_v1  ;;  %v9970_v0 = vld [vmem:[%s13938_s1 + $0x1308] ss:$16 sps:$4 sm:$0xff]   ;;  %v9975_v1 = vld [vmem:[%s13938_s1 + $0x1324] ss:$16 sps:$4 sm:$0xff]  }
 0x228   :  { %6631 = vmatprep.subr.bf16.mxu0 %v9883_v2  ;;  %7287 = vmatprep.subr.bf16.mxu1 %v9886_v3  ;;  %v9978_v2 = vld [vmem:[%s13938_s1 + $0x132c] ss:$16 sps:$4 sm:$0xff]   ;;  %v9973_v3 = vld [vmem:[%s13938_s1 + $0x1320] ss:$16 sps:$4 sm:$0xff]  }
 0x22b   :  { %6632 = vmatpush1.bf16.msra.mxu0 %v9881_v4  ;;  %7288 = vmatpush1.bf16.msra.mxu1 %v9884_v5  ;;  %v9976_v4 = vld [vmem:[%s13938_s1 + $0x1328] ss:$16 sps:$4 sm:$0xff]   ;;  %v9981_v5 = vld [vmem:[%s13938_s1 + $0x1344] ss:$16 sps:$4 sm:$0xff]  }
 0x22c   :  { %6633 = vmatprep.subr.bf16.mxu0 %v9889_v6  ;;  %7289 = vmatprep.subr.bf16.mxu1 %v9892_v7  ;;  %v9984_v6 = vld [vmem:[%s13938_s1 + $0x134c] ss:$16 sps:$4 sm:$0xff]   ;;  %v9979_v7 = vld [vmem:[%s13938_s1 + $0x1340] ss:$16 sps:$4 sm:$0xff]  }
 0x22f   :  { %6634 = vmatpush1.bf16.msra.mxu0 %v9887_v8  ;;  %7290 = vmatpush1.bf16.msra.mxu1 %v9890_v9  ;;  %v9982_v8 = vld [vmem:[%s13938_s1 + $0x1348] ss:$16 sps:$4 sm:$0xff]   ;;  %v9987_v9 = vld [vmem:[%s13938_s1 + $0x1364] ss:$16 sps:$4 sm:$0xff]  }
 0x230   :  { %6635 = vmatprep.subr.bf16.mxu0 %v9895_v10  ;;  %7291 = vmatprep.subr.bf16.mxu1 %v9898_v12  ;;  %v9990_v10 = vld [vmem:[%s13938_s1 + $0x136c] ss:$16 sps:$4 sm:$0xff]   ;;  %v9985_v12 = vld [vmem:[%s13938_s1 + $0x1360] ss:$16 sps:$4 sm:$0xff]  }
 0x233   :  { %6636 = vmatpush1.bf16.msra.mxu0 %v9893_v13  ;;  %7292 = vmatpush1.bf16.msra.mxu1 %v9896_v15  ;;  %v9988_v13 = vld [vmem:[%s13938_s1 + $0x1368] ss:$16 sps:$4 sm:$0xff]   ;;  %v9993_v15 = vld [vmem:[%s13938_s1 + $0x1384] ss:$16 sps:$4 sm:$0xff]  }
 0x234   :  { %6637 = vmatprep.subr.bf16.mxu0 %v9901_v11  ;;  %7293 = vmatprep.subr.bf16.mxu1 %v9904_v17  ;;  %v9996_v11 = vld [vmem:[%s13938_s1 + $0x138c] ss:$16 sps:$4 sm:$0xff]   ;;  %v9991_v17 = vld [vmem:[%s13938_s1 + $0x1380] ss:$16 sps:$4 sm:$0xff]  }
 0x237   :  { %6638 = vmatpush1.bf16.msra.mxu0 %v9899_v14  ;;  %7294 = vmatpush1.bf16.msra.mxu1 %v9902_v19  ;;  %v9994_v14 = vld [vmem:[%s13938_s1 + $0x1388] ss:$16 sps:$4 sm:$0xff]   ;;  %v9999_v19 = vld [vmem:[%s13938_s1 + $0x13a4] ss:$16 sps:$4 sm:$0xff]  }
 0x238   :  { %6639 = vmatprep.subr.bf16.mxu0 %v9907_v20  ;;  %7295 = vmatprep.subr.bf16.mxu1 %v9910_v16  ;;  %v10002_v20 = vld [vmem:[%s13938_s1 + $0x13ac] ss:$16 sps:$4 sm:$0xff]   ;;  %v9997_v16 = vld [vmem:[%s13938_s1 + $0x13a0] ss:$16 sps:$4 sm:$0xff]  }
 0x23b   :  { %6640 = vmatpush1.bf16.msra.mxu0 %v9905_v22  ;;  %7296 = vmatpush1.bf16.msra.mxu1 %v9908_v23  ;;  %v10000_v22 = vld [vmem:[%s13938_s1 + $0x13a8] ss:$16 sps:$4 sm:$0xff]   ;;  %v10005_v23 = vld [vmem:[%s13938_s1 + $0x13c4] ss:$16 sps:$4 sm:$0xff]  }
 0x23c   :  { %6641 = vmatprep.subr.bf16.mxu0 %v9913_v18  ;;  %7297 = vmatprep.subr.bf16.mxu1 %v9916_v25  ;;  %v10008_v18 = vld [vmem:[%s13938_s1 + $0x13cc] ss:$16 sps:$4 sm:$0xff]   ;;  %v10003_v25 = vld [vmem:[%s13938_s1 + $0x13c0] ss:$16 sps:$4 sm:$0xff]  }
 0x23f   :  { %6642 = vmatpush1.bf16.msra.mxu0 %v9911_v26  ;;  %7298 = vmatpush1.bf16.msra.mxu1 %v9914_v21  ;;  %v10006_v26 = vld [vmem:[%s13938_s1 + $0x13c8] ss:$16 sps:$4 sm:$0xff]   ;;  %v10011_v21 = vld [vmem:[%s13938_s1 + $0x13e4] ss:$16 sps:$4 sm:$0xff]  }
 0x240   :  { %6652 = vmatprep.subr.bf16.mxu0 %v9921_v28  ;;  %7308 = vmatprep.subr.bf16.mxu1 %v9924_v29  ;;  %v10014_v28 = vld [vmem:[%s13938_s1 + $0x13ec] ss:$16 sps:$4 sm:$0xff]   ;;  %v10009_v29 = vld [vmem:[%s13938_s1 + $0x13e0] ss:$16 sps:$4 sm:$0xff]  }
 0x242   :  { %6644 = vmatmul.mubr.bf16.vlgmr.msra.gmra.mrb[0].mxu0 %v7869_v24  ;;  %7300 = vmatmul.mubr.bf16.vlgmr.msra.gmra.mrb[0].mxu1 %v7869_v24  ;;  %v10012_v24 = vld [vmem:[%s13938_s1 + $0x13e8] ss:$16 sps:$4 sm:$0xff]  }
 0x243   :  { %6653 = vmatpush1.bf16.msra.mxu0 %v9919_v31  ;;  %7309 = vmatpush1.bf16.msra.mxu1 %v9922_v32  ;;  %v10019_v31 = vld [vmem:[%s13938_s1 + $0x1404] ss:$16 sps:$4 sm:$0xff]   ;;  %v10022_v32 = vld [vmem:[%s13938_s1 + $0x140c] ss:$16 sps:$4 sm:$0xff]  }
 0x244   :  { %6654 = vmatprep.subr.bf16.mxu0 %v9927_v33  ;;  %7310 = vmatprep.subr.bf16.mxu1 %v9930_v27  ;;  %v7871_v33 = vcombine.low %v12446_v30, %v12446_v30  ;;  %v12649_v27 = vld [vmem:[%s13939_s0 + $0x50] sm:$0xff] }
 0x245   :  { %6684 = vmatprep.mubr.bf16.mxu0 %v7872_v34  ;;  %7340 = vmatprep.mubr.bf16.mxu1 %v7872_v34  ;;  %v10017_v34 = vld [vmem:[%s13938_s1 + $0x1400] ss:$16 sps:$4 sm:$0xff]   ;;  %v10025_v30 = vld [vmem:[%s13938_s1 + $0x1424] ss:$16 sps:$4 sm:$0xff]  }
 0x247   :  { %6655 = vmatpush1.bf16.msra.mxu0 %v9925_v35  ;;  %7311 = vmatpush1.bf16.msra.mxu1 %v9928_v36  ;;  %v10020_v35 = vld [vmem:[%s13938_s1 + $0x1408] ss:$16 sps:$4 sm:$0xff]   ;;  %v10028_v36 = vld [vmem:[%s13938_s1 + $0x142c] ss:$16 sps:$4 sm:$0xff]  }
 0x248   :  { %6656 = vmatprep.subr.bf16.mxu0 %v9933_v37  ;;  %7312 = vmatprep.subr.bf16.mxu1 %v9936_v38  ;;  %v7874_v37 = vcombine.high %v12649_v27, %v12649_v27  ;;  %v10023_v38 = vld [vmem:[%s13938_s1 + $0x1420] ss:$16 sps:$4 sm:$0xff]  }
 0x24b   :  { %6657 = vmatpush1.bf16.msra.mxu0 %v9931_v39  ;;  %7313 = vmatpush1.bf16.msra.mxu1 %v9934_v40  ;;  %v10026_v39 = vld [vmem:[%s13938_s1 + $0x1428] ss:$16 sps:$4 sm:$0xff]   ;;  %v10031_v40 = vld [vmem:[%s13938_s1 + $0x1444] ss:$16 sps:$4 sm:$0xff]  }
 0x24c   :  { %6658 = vmatprep.subr.bf16.mxu0 %v9939_v41  ;;  %7314 = vmatprep.subr.bf16.mxu1 %v9942_v42  ;;  %v10034_v41 = vld [vmem:[%s13938_s1 + $0x144c] ss:$16 sps:$4 sm:$0xff]   ;;  %v10029_v42 = vld [vmem:[%s13938_s1 + $0x1440] ss:$16 sps:$4 sm:$0xff]  }
 0x24f   :  { %6659 = vmatpush1.bf16.msra.mxu0 %v9937_v43  ;;  %7315 = vmatpush1.bf16.msra.mxu1 %v9940_v44  ;;  %v10032_v43 = vld [vmem:[%s13938_s1 + $0x1448] ss:$16 sps:$4 sm:$0xff]   ;;  %v10037_v44 = vld [vmem:[%s13938_s1 + $0x1464] ss:$16 sps:$4 sm:$0xff]  }
 0x250   :  { %6660 = vmatprep.subr.bf16.mxu0 %v9945_v45  ;;  %7316 = vmatprep.subr.bf16.mxu1 %v9948_v46  ;;  %v10040_v45 = vld [vmem:[%s13938_s1 + $0x146c] ss:$16 sps:$4 sm:$0xff]   ;;  %v10035_v46 = vld [vmem:[%s13938_s1 + $0x1460] ss:$16 sps:$4 sm:$0xff]  }
 0x253   :  { %6661 = vmatpush1.bf16.msra.mxu0 %v9943_v47  ;;  %7317 = vmatpush1.bf16.msra.mxu1 %v9946_v48  ;;  %v10038_v47 = vld [vmem:[%s13938_s1 + $0x1468] ss:$16 sps:$4 sm:$0xff]   ;;  %v10043_v48 = vld [vmem:[%s13938_s1 + $0x1484] ss:$16 sps:$4 sm:$0xff]  }
 0x254   :  { %6662 = vmatprep.subr.bf16.mxu0 %v9951_v49  ;;  %7318 = vmatprep.subr.bf16.mxu1 %v9954_v50  ;;  %v10046_v49 = vld [vmem:[%s13938_s1 + $0x148c] ss:$16 sps:$4 sm:$0xff]   ;;  %v10041_v50 = vld [vmem:[%s13938_s1 + $0x1480] ss:$16 sps:$4 sm:$0xff]  }
 0x257   :  { %6663 = vmatpush1.bf16.msra.mxu0 %v9949_v51  ;;  %7319 = vmatpush1.bf16.msra.mxu1 %v9952_v52  ;;  %v10044_v51 = vld [vmem:[%s13938_s1 + $0x1488] ss:$16 sps:$4 sm:$0xff]   ;;  %v10049_v52 = vld [vmem:[%s13938_s1 + $0x14a4] ss:$16 sps:$4 sm:$0xff]  }
 0x258   :  { %6664 = vmatprep.subr.bf16.mxu0 %v9957_v53  ;;  %7320 = vmatprep.subr.bf16.mxu1 %v9960_v54  ;;  %v10052_v53 = vld [vmem:[%s13938_s1 + $0x14ac] ss:$16 sps:$4 sm:$0xff]   ;;  %v10047_v54 = vld [vmem:[%s13938_s1 + $0x14a0] ss:$16 sps:$4 sm:$0xff]  }
 0x25b   :  { %6665 = vmatpush1.bf16.msra.mxu0 %v9955_v55  ;;  %7321 = vmatpush1.bf16.msra.mxu1 %v9958_v56  ;;  %v10050_v55 = vld [vmem:[%s13938_s1 + $0x14a8] ss:$16 sps:$4 sm:$0xff]   ;;  %v10055_v56 = vld [vmem:[%s13938_s1 + $0x14c4] ss:$16 sps:$4 sm:$0xff]  }
 0x25c   :  { %6666 = vmatprep.subr.bf16.mxu0 %v9963_v57  ;;  %7322 = vmatprep.subr.bf16.mxu1 %v9966_v58  ;;  %v10058_v57 = vld [vmem:[%s13938_s1 + $0x14cc] ss:$16 sps:$4 sm:$0xff]   ;;  %v10053_v58 = vld [vmem:[%s13938_s1 + $0x14c0] ss:$16 sps:$4 sm:$0xff]  }
 0x25f   :  { %6667 = vmatpush1.bf16.msra.mxu0 %v9961_v59  ;;  %7323 = vmatpush1.bf16.msra.mxu1 %v9964_v60  ;;  %v10056_v59 = vld [vmem:[%s13938_s1 + $0x14c8] ss:$16 sps:$4 sm:$0xff]   ;;  %v10061_v60 = vld [vmem:[%s13938_s1 + $0x14e4] ss:$16 sps:$4 sm:$0xff]  }
 0x260   :  { %6668 = vmatprep.subr.bf16.mxu0 %v9969_v61  ;;  %7324 = vmatprep.subr.bf16.mxu1 %v9972_v62  ;;  %v10064_v61 = vld [vmem:[%s13938_s1 + $0x14ec] ss:$16 sps:$4 sm:$0xff]   ;;  %v10059_v62 = vld [vmem:[%s13938_s1 + $0x14e0] ss:$16 sps:$4 sm:$0xff]  }
 0x263   :  { %6669 = vmatpush1.bf16.msra.mxu0 %v9967_v63  ;;  %7325 = vmatpush1.bf16.msra.mxu1 %v9970_v0  ;;  %v10062_v63 = vld [vmem:[%s13938_s1 + $0x14e8] ss:$16 sps:$4 sm:$0xff]   ;;  %v10067_v0 = vld [vmem:[%s13938_s1 + $0x1504] ss:$16 sps:$4 sm:$0xff]  }
 0x264   :  { %6670 = vmatprep.subr.bf16.mxu0 %v9975_v1  ;;  %7326 = vmatprep.subr.bf16.mxu1 %v9978_v2  ;;  %v10070_v1 = vld [vmem:[%s13938_s1 + $0x150c] ss:$16 sps:$4 sm:$0xff]   ;;  %v10065_v2 = vld [vmem:[%s13938_s1 + $0x1500] ss:$16 sps:$4 sm:$0xff]  }
 0x267   :  { %6671 = vmatpush1.bf16.msra.mxu0 %v9973_v3  ;;  %7327 = vmatpush1.bf16.msra.mxu1 %v9976_v4  ;;  %v10068_v3 = vld [vmem:[%s13938_s1 + $0x1508] ss:$16 sps:$4 sm:$0xff]   ;;  %v10073_v4 = vld [vmem:[%s13938_s1 + $0x1524] ss:$16 sps:$4 sm:$0xff]  }
 0x268   :  { %6672 = vmatprep.subr.bf16.mxu0 %v9981_v5  ;;  %7328 = vmatprep.subr.bf16.mxu1 %v9984_v6  ;;  %v10076_v5 = vld [vmem:[%s13938_s1 + $0x152c] ss:$16 sps:$4 sm:$0xff]   ;;  %v10071_v6 = vld [vmem:[%s13938_s1 + $0x1520] ss:$16 sps:$4 sm:$0xff]  }
 0x26b   :  { %6673 = vmatpush1.bf16.msra.mxu0 %v9979_v7  ;;  %7329 = vmatpush1.bf16.msra.mxu1 %v9982_v8  ;;  %v10074_v7 = vld [vmem:[%s13938_s1 + $0x1528] ss:$16 sps:$4 sm:$0xff]   ;;  %v10079_v8 = vld [vmem:[%s13938_s1 + $0x1544] ss:$16 sps:$4 sm:$0xff]  }
 0x26c   :  { %6674 = vmatprep.subr.bf16.mxu0 %v9987_v9  ;;  %7330 = vmatprep.subr.bf16.mxu1 %v9990_v10  ;;  %v10082_v9 = vld [vmem:[%s13938_s1 + $0x154c] ss:$16 sps:$4 sm:$0xff]   ;;  %v10077_v10 = vld [vmem:[%s13938_s1 + $0x1540] ss:$16 sps:$4 sm:$0xff]  }
 0x26f   :  { %6675 = vmatpush1.bf16.msra.mxu0 %v9985_v12  ;;  %7331 = vmatpush1.bf16.msra.mxu1 %v9988_v13  ;;  %v10080_v12 = vld [vmem:[%s13938_s1 + $0x1548] ss:$16 sps:$4 sm:$0xff]   ;;  %v10085_v13 = vld [vmem:[%s13938_s1 + $0x1564] ss:$16 sps:$4 sm:$0xff]  }
 0x270   :  { %6676 = vmatprep.subr.bf16.mxu0 %v9993_v15  ;;  %7332 = vmatprep.subr.bf16.mxu1 %v9996_v11  ;;  %v10088_v15 = vld [vmem:[%s13938_s1 + $0x156c] ss:$16 sps:$4 sm:$0xff]   ;;  %v10083_v11 = vld [vmem:[%s13938_s1 + $0x1560] ss:$16 sps:$4 sm:$0xff]  }
 0x273   :  { %6677 = vmatpush1.bf16.msra.mxu0 %v9991_v17  ;;  %7333 = vmatpush1.bf16.msra.mxu1 %v9994_v14  ;;  %v10086_v17 = vld [vmem:[%s13938_s1 + $0x1568] ss:$16 sps:$4 sm:$0xff]   ;;  %v10091_v14 = vld [vmem:[%s13938_s1 + $0x1584] ss:$16 sps:$4 sm:$0xff]  }
 0x274   :  { %6678 = vmatprep.subr.bf16.mxu0 %v9999_v19  ;;  %7334 = vmatprep.subr.bf16.mxu1 %v10002_v20  ;;  %v10094_v19 = vld [vmem:[%s13938_s1 + $0x158c] ss:$16 sps:$4 sm:$0xff]   ;;  %v10089_v20 = vld [vmem:[%s13938_s1 + $0x1580] ss:$16 sps:$4 sm:$0xff]  }
 0x277   :  { %6679 = vmatpush1.bf16.msra.mxu0 %v9997_v16  ;;  %7335 = vmatpush1.bf16.msra.mxu1 %v10000_v22  ;;  %v10092_v16 = vld [vmem:[%s13938_s1 + $0x1588] ss:$16 sps:$4 sm:$0xff]   ;;  %v10097_v22 = vld [vmem:[%s13938_s1 + $0x15a4] ss:$16 sps:$4 sm:$0xff]  }
 0x278   :  { %6680 = vmatprep.subr.bf16.mxu0 %v10005_v23  ;;  %7336 = vmatprep.subr.bf16.mxu1 %v10008_v18  ;;  %v10100_v23 = vld [vmem:[%s13938_s1 + $0x15ac] ss:$16 sps:$4 sm:$0xff]   ;;  %v10095_v18 = vld [vmem:[%s13938_s1 + $0x15a0] ss:$16 sps:$4 sm:$0xff]  }
 0x27b   :  { %6681 = vmatpush1.bf16.msra.mxu0 %v10003_v25  ;;  %7337 = vmatpush1.bf16.msra.mxu1 %v10006_v26  ;;  %v10098_v25 = vld [vmem:[%s13938_s1 + $0x15a8] ss:$16 sps:$4 sm:$0xff]   ;;  %v10103_v26 = vld [vmem:[%s13938_s1 + $0x15c4] ss:$16 sps:$4 sm:$0xff]  }
 0x27c   :  { %6682 = vmatprep.subr.bf16.mxu0 %v10011_v21  ;;  %7338 = vmatprep.subr.bf16.mxu1 %v10014_v28  ;;  %v10106_v21 = vld [vmem:[%s13938_s1 + $0x15cc] ss:$16 sps:$4 sm:$0xff]   ;;  %v10101_v28 = vld [vmem:[%s13938_s1 + $0x15c0] ss:$16 sps:$4 sm:$0xff]  }
 0x27f   :  { %6683 = vmatpush1.bf16.msra.mxu0 %v10009_v29  ;;  %7339 = vmatpush1.bf16.msra.mxu1 %v10012_v24  ;;  %v10104_v29 = vld [vmem:[%s13938_s1 + $0x15c8] ss:$16 sps:$4 sm:$0xff]   ;;  %v10109_v24 = vld [vmem:[%s13938_s1 + $0x15e4] ss:$16 sps:$4 sm:$0xff]  }
 0x280   :  { %6693 = vmatprep.subr.bf16.mxu0 %v10019_v31  ;;  %7349 = vmatprep.subr.bf16.mxu1 %v10022_v32  ;;  %v10112_v31 = vld [vmem:[%s13938_s1 + $0x15ec] ss:$16 sps:$4 sm:$0xff]   ;;  %v10107_v32 = vld [vmem:[%s13938_s1 + $0x15e0] ss:$16 sps:$4 sm:$0xff]  }
 0x282   :  { %6685 = vmatmul.mubr.bf16.vlgmr.msra.gmra.mrb[0].mxu0 %v7871_v33  ;;  %7341 = vmatmul.mubr.bf16.vlgmr.msra.gmra.mrb[0].mxu1 %v7871_v33  ;;  %v10110_v33 = vld [vmem:[%s13938_s1 + $0x15e8] ss:$16 sps:$4 sm:$0xff]  }
 0x283   :  { %6694 = vmatpush1.bf16.msra.mxu0 %v10017_v34  ;;  %7350 = vmatpush1.bf16.msra.mxu1 %v10020_v35  ;;  %v10117_v34 = vld [vmem:[%s13938_s1 + $0x1604] ss:$16 sps:$4 sm:$0xff]   ;;  %v10120_v35 = vld [vmem:[%s13938_s1 + $0x160c] ss:$16 sps:$4 sm:$0xff]  }
 0x284   :  { %6695 = vmatprep.subr.bf16.mxu0 %v10025_v30  ;;  %7351 = vmatprep.subr.bf16.mxu1 %v10028_v36  ;;  %v7873_v30 = vcombine.low %v12649_v27, %v12649_v27  ;;  %v12850_v36 = vld [vmem:[%s13939_s0 + $0x58] sm:$0xff]  ;;  %v10123_v27 = vld [vmem:[%s13938_s1 + $0x1624] ss:$16 sps:$4 sm:$0xff]  }
 0x285   :  { %6725 = vmatprep.mubr.bf16.mxu0 %v7874_v37  ;;  %7381 = vmatprep.mubr.bf16.mxu1 %v7874_v37  ;;  %v10115_v37 = vld [vmem:[%s13938_s1 + $0x1600] ss:$16 sps:$4 sm:$0xff]  }
 0x287   :  { %6696 = vmatpush1.bf16.msra.mxu0 %v10023_v38  ;;  %7352 = vmatpush1.bf16.msra.mxu1 %v10026_v39  ;;  %v10118_v38 = vld [vmem:[%s13938_s1 + $0x1608] ss:$16 sps:$4 sm:$0xff]   ;;  %v10126_v39 = vld [vmem:[%s13938_s1 + $0x162c] ss:$16 sps:$4 sm:$0xff]  }
 0x288   :  { %6697 = vmatprep.subr.bf16.mxu0 %v10031_v40  ;;  %7353 = vmatprep.subr.bf16.mxu1 %v10034_v41  ;;  %v7876_v40 = vcombine.high %v12850_v36, %v12850_v36  ;;  %v10121_v41 = vld [vmem:[%s13938_s1 + $0x1620] ss:$16 sps:$4 sm:$0xff]  }
 0x28b   :  { %6698 = vmatpush1.bf16.msra.mxu0 %v10029_v42  ;;  %7354 = vmatpush1.bf16.msra.mxu1 %v10032_v43  ;;  %v10124_v42 = vld [vmem:[%s13938_s1 + $0x1628] ss:$16 sps:$4 sm:$0xff]   ;;  %v10129_v43 = vld [vmem:[%s13938_s1 + $0x1644] ss:$16 sps:$4 sm:$0xff]  }
 0x28c   :  { %6699 = vmatprep.subr.bf16.mxu0 %v10037_v44  ;;  %7355 = vmatprep.subr.bf16.mxu1 %v10040_v45  ;;  %v10132_v44 = vld [vmem:[%s13938_s1 + $0x164c] ss:$16 sps:$4 sm:$0xff]   ;;  %v10127_v45 = vld [vmem:[%s13938_s1 + $0x1640] ss:$16 sps:$4 sm:$0xff]  }
 0x28f   :  { %6700 = vmatpush1.bf16.msra.mxu0 %v10035_v46  ;;  %7356 = vmatpush1.bf16.msra.mxu1 %v10038_v47  ;;  %v10130_v46 = vld [vmem:[%s13938_s1 + $0x1648] ss:$16 sps:$4 sm:$0xff]   ;;  %v10135_v47 = vld [vmem:[%s13938_s1 + $0x1664] ss:$16 sps:$4 sm:$0xff]  }
 0x290   :  { %6701 = vmatprep.subr.bf16.mxu0 %v10043_v48  ;;  %7357 = vmatprep.subr.bf16.mxu1 %v10046_v49  ;;  %v10138_v48 = vld [vmem:[%s13938_s1 + $0x166c] ss:$16 sps:$4 sm:$0xff]   ;;  %v10133_v49 = vld [vmem:[%s13938_s1 + $0x1660] ss:$16 sps:$4 sm:$0xff]  }
 0x293   :  { %6702 = vmatpush1.bf16.msra.mxu0 %v10041_v50  ;;  %7358 = vmatpush1.bf16.msra.mxu1 %v10044_v51  ;;  %v10136_v50 = vld [vmem:[%s13938_s1 + $0x1668] ss:$16 sps:$4 sm:$0xff]   ;;  %v10141_v51 = vld [vmem:[%s13938_s1 + $0x1684] ss:$16 sps:$4 sm:$0xff]  }
 0x294   :  { %6703 = vmatprep.subr.bf16.mxu0 %v10049_v52  ;;  %7359 = vmatprep.subr.bf16.mxu1 %v10052_v53  ;;  %v10144_v52 = vld [vmem:[%s13938_s1 + $0x168c] ss:$16 sps:$4 sm:$0xff]   ;;  %v10139_v53 = vld [vmem:[%s13938_s1 + $0x1680] ss:$16 sps:$4 sm:$0xff]  }
 0x297   :  { %6704 = vmatpush1.bf16.msra.mxu0 %v10047_v54  ;;  %7360 = vmatpush1.bf16.msra.mxu1 %v10050_v55  ;;  %v10142_v54 = vld [vmem:[%s13938_s1 + $0x1688] ss:$16 sps:$4 sm:$0xff]   ;;  %v10147_v55 = vld [vmem:[%s13938_s1 + $0x16a4] ss:$16 sps:$4 sm:$0xff]  }
 0x298   :  { %6705 = vmatprep.subr.bf16.mxu0 %v10055_v56  ;;  %7361 = vmatprep.subr.bf16.mxu1 %v10058_v57  ;;  %v10150_v56 = vld [vmem:[%s13938_s1 + $0x16ac] ss:$16 sps:$4 sm:$0xff]   ;;  %v10145_v57 = vld [vmem:[%s13938_s1 + $0x16a0] ss:$16 sps:$4 sm:$0xff]  }
 0x29b   :  { %6706 = vmatpush1.bf16.msra.mxu0 %v10053_v58  ;;  %7362 = vmatpush1.bf16.msra.mxu1 %v10056_v59  ;;  %v10148_v58 = vld [vmem:[%s13938_s1 + $0x16a8] ss:$16 sps:$4 sm:$0xff]   ;;  %v10153_v59 = vld [vmem:[%s13938_s1 + $0x16c4] ss:$16 sps:$4 sm:$0xff]  }
 0x29c   :  { %6707 = vmatprep.subr.bf16.mxu0 %v10061_v60  ;;  %7363 = vmatprep.subr.bf16.mxu1 %v10064_v61  ;;  %v10156_v60 = vld [vmem:[%s13938_s1 + $0x16cc] ss:$16 sps:$4 sm:$0xff]   ;;  %v10151_v61 = vld [vmem:[%s13938_s1 + $0x16c0] ss:$16 sps:$4 sm:$0xff]  }
 0x29f   :  { %6708 = vmatpush1.bf16.msra.mxu0 %v10059_v62  ;;  %7364 = vmatpush1.bf16.msra.mxu1 %v10062_v63  ;;  %v10154_v62 = vld [vmem:[%s13938_s1 + $0x16c8] ss:$16 sps:$4 sm:$0xff]   ;;  %v10159_v63 = vld [vmem:[%s13938_s1 + $0x16e4] ss:$16 sps:$4 sm:$0xff]  }
 0x2a0   :  { %6709 = vmatprep.subr.bf16.mxu0 %v10067_v0  ;;  %7365 = vmatprep.subr.bf16.mxu1 %v10070_v1  ;;  %v10162_v0 = vld [vmem:[%s13938_s1 + $0x16ec] ss:$16 sps:$4 sm:$0xff]   ;;  %v10157_v1 = vld [vmem:[%s13938_s1 + $0x16e0] ss:$16 sps:$4 sm:$0xff]  }
 0x2a3   :  { %6710 = vmatpush1.bf16.msra.mxu0 %v10065_v2  ;;  %7366 = vmatpush1.bf16.msra.mxu1 %v10068_v3  ;;  %v10160_v2 = vld [vmem:[%s13938_s1 + $0x16e8] ss:$16 sps:$4 sm:$0xff]   ;;  %v10165_v3 = vld [vmem:[%s13938_s1 + $0x1704] ss:$16 sps:$4 sm:$0xff]  }
 0x2a4   :  { %6711 = vmatprep.subr.bf16.mxu0 %v10073_v4  ;;  %7367 = vmatprep.subr.bf16.mxu1 %v10076_v5  ;;  %v10168_v4 = vld [vmem:[%s13938_s1 + $0x170c] ss:$16 sps:$4 sm:$0xff]   ;;  %v10163_v5 = vld [vmem:[%s13938_s1 + $0x1700] ss:$16 sps:$4 sm:$0xff]  }
 0x2a7   :  { %6712 = vmatpush1.bf16.msra.mxu0 %v10071_v6  ;;  %7368 = vmatpush1.bf16.msra.mxu1 %v10074_v7  ;;  %v10166_v6 = vld [vmem:[%s13938_s1 + $0x1708] ss:$16 sps:$4 sm:$0xff]   ;;  %v10171_v7 = vld [vmem:[%s13938_s1 + $0x1724] ss:$16 sps:$4 sm:$0xff]  }
 0x2a8   :  { %6713 = vmatprep.subr.bf16.mxu0 %v10079_v8  ;;  %7369 = vmatprep.subr.bf16.mxu1 %v10082_v9  ;;  %v10174_v8 = vld [vmem:[%s13938_s1 + $0x172c] ss:$16 sps:$4 sm:$0xff]   ;;  %v10169_v9 = vld [vmem:[%s13938_s1 + $0x1720] ss:$16 sps:$4 sm:$0xff]  }
 0x2ab   :  { %6714 = vmatpush1.bf16.msra.mxu0 %v10077_v10  ;;  %7370 = vmatpush1.bf16.msra.mxu1 %v10080_v12  ;;  %v10172_v10 = vld [vmem:[%s13938_s1 + $0x1728] ss:$16 sps:$4 sm:$0xff]   ;;  %v10177_v12 = vld [vmem:[%s13938_s1 + $0x1744] ss:$16 sps:$4 sm:$0xff]  }
 0x2ac   :  { %6715 = vmatprep.subr.bf16.mxu0 %v10085_v13  ;;  %7371 = vmatprep.subr.bf16.mxu1 %v10088_v15  ;;  %v10180_v13 = vld [vmem:[%s13938_s1 + $0x174c] ss:$16 sps:$4 sm:$0xff]   ;;  %v10175_v15 = vld [vmem:[%s13938_s1 + $0x1740] ss:$16 sps:$4 sm:$0xff]  }
 0x2af   :  { %6716 = vmatpush1.bf16.msra.mxu0 %v10083_v11  ;;  %7372 = vmatpush1.bf16.msra.mxu1 %v10086_v17  ;;  %v10178_v11 = vld [vmem:[%s13938_s1 + $0x1748] ss:$16 sps:$4 sm:$0xff]   ;;  %v10183_v17 = vld [vmem:[%s13938_s1 + $0x1764] ss:$16 sps:$4 sm:$0xff]  }
 0x2b0   :  { %6717 = vmatprep.subr.bf16.mxu0 %v10091_v14  ;;  %7373 = vmatprep.subr.bf16.mxu1 %v10094_v19  ;;  %v10186_v14 = vld [vmem:[%s13938_s1 + $0x176c] ss:$16 sps:$4 sm:$0xff]   ;;  %v10181_v19 = vld [vmem:[%s13938_s1 + $0x1760] ss:$16 sps:$4 sm:$0xff]  }
 0x2b3   :  { %6718 = vmatpush1.bf16.msra.mxu0 %v10089_v20  ;;  %7374 = vmatpush1.bf16.msra.mxu1 %v10092_v16  ;;  %v10184_v20 = vld [vmem:[%s13938_s1 + $0x1768] ss:$16 sps:$4 sm:$0xff]   ;;  %v10189_v16 = vld [vmem:[%s13938_s1 + $0x1784] ss:$16 sps:$4 sm:$0xff]  }
 0x2b4   :  { %6719 = vmatprep.subr.bf16.mxu0 %v10097_v22  ;;  %7375 = vmatprep.subr.bf16.mxu1 %v10100_v23  ;;  %v10192_v22 = vld [vmem:[%s13938_s1 + $0x178c] ss:$16 sps:$4 sm:$0xff]   ;;  %v10187_v23 = vld [vmem:[%s13938_s1 + $0x1780] ss:$16 sps:$4 sm:$0xff]  }
 0x2b7   :  { %6720 = vmatpush1.bf16.msra.mxu0 %v10095_v18  ;;  %7376 = vmatpush1.bf16.msra.mxu1 %v10098_v25  ;;  %v10190_v18 = vld [vmem:[%s13938_s1 + $0x1788] ss:$16 sps:$4 sm:$0xff]   ;;  %v10195_v25 = vld [vmem:[%s13938_s1 + $0x17a4] ss:$16 sps:$4 sm:$0xff]  }
 0x2b8   :  { %6721 = vmatprep.subr.bf16.mxu0 %v10103_v26  ;;  %7377 = vmatprep.subr.bf16.mxu1 %v10106_v21  ;;  %v10198_v26 = vld [vmem:[%s13938_s1 + $0x17ac] ss:$16 sps:$4 sm:$0xff]   ;;  %v10193_v21 = vld [vmem:[%s13938_s1 + $0x17a0] ss:$16 sps:$4 sm:$0xff]  }
 0x2bb   :  { %6722 = vmatpush1.bf16.msra.mxu0 %v10101_v28  ;;  %7378 = vmatpush1.bf16.msra.mxu1 %v10104_v29  ;;  %v10196_v28 = vld [vmem:[%s13938_s1 + $0x17a8] ss:$16 sps:$4 sm:$0xff]   ;;  %v10201_v29 = vld [vmem:[%s13938_s1 + $0x17c4] ss:$16 sps:$4 sm:$0xff]  }
 0x2bc   :  { %6723 = vmatprep.subr.bf16.mxu0 %v10109_v24  ;;  %7379 = vmatprep.subr.bf16.mxu1 %v10112_v31  ;;  %v10204_v24 = vld [vmem:[%s13938_s1 + $0x17cc] ss:$16 sps:$4 sm:$0xff]   ;;  %v10199_v31 = vld [vmem:[%s13938_s1 + $0x17c0] ss:$16 sps:$4 sm:$0xff]  }
 0x2bf   :  { %6724 = vmatpush1.bf16.msra.mxu0 %v10107_v32  ;;  %7380 = vmatpush1.bf16.msra.mxu1 %v10110_v33  ;;  %v10202_v32 = vld [vmem:[%s13938_s1 + $0x17c8] ss:$16 sps:$4 sm:$0xff]   ;;  %v10207_v33 = vld [vmem:[%s13938_s1 + $0x17e4] ss:$16 sps:$4 sm:$0xff]  }
 0x2c0   :  { %6734 = vmatprep.subr.bf16.mxu0 %v10117_v34  ;;  %7390 = vmatprep.subr.bf16.mxu1 %v10120_v35  ;;  %v10210_v34 = vld [vmem:[%s13938_s1 + $0x17ec] ss:$16 sps:$4 sm:$0xff]   ;;  %v10205_v35 = vld [vmem:[%s13938_s1 + $0x17e0] ss:$16 sps:$4 sm:$0xff]  }
 0x2c2   :  { %6726 = vmatmul.mubr.bf16.vlgmr.msra.gmra.mrb[0].mxu0 %v7873_v30  ;;  %7382 = vmatmul.mubr.bf16.vlgmr.msra.gmra.mrb[0].mxu1 %v7873_v30  ;;  %v10208_v30 = vld [vmem:[%s13938_s1 + $0x17e8] ss:$16 sps:$4 sm:$0xff]  }
 0x2c3   :  { %6735 = vmatpush1.bf16.msra.mxu0 %v10115_v37  ;;  %7391 = vmatpush1.bf16.msra.mxu1 %v10118_v38  ;;  %v10215_v37 = vld [vmem:[%s13938_s1 + $0x1804] ss:$16 sps:$4 sm:$0xff]   ;;  %v10218_v38 = vld [vmem:[%s13938_s1 + $0x180c] ss:$16 sps:$4 sm:$0xff]  }
 0x2c4   :  { %6736 = vmatprep.subr.bf16.mxu0 %v10123_v27  ;;  %7392 = vmatprep.subr.bf16.mxu1 %v10126_v39  ;;  %v7875_v27 = vcombine.low %v12850_v36, %v12850_v36  ;;  %v13051_v39 = vld [vmem:[%s13939_s0 + $0x60] sm:$0xff] }
 0x2c5   :  { %6766 = vmatprep.mubr.bf16.mxu0 %v7876_v40  ;;  %7422 = vmatprep.mubr.bf16.mxu1 %v7876_v40  ;;  %v10213_v40 = vld [vmem:[%s13938_s1 + $0x1800] ss:$16 sps:$4 sm:$0xff]   ;;  %v10221_v36 = vld [vmem:[%s13938_s1 + $0x1824] ss:$16 sps:$4 sm:$0xff]  }
 0x2c7   :  { %6737 = vmatpush1.bf16.msra.mxu0 %v10121_v41  ;;  %7393 = vmatpush1.bf16.msra.mxu1 %v10124_v42  ;;  %v10216_v41 = vld [vmem:[%s13938_s1 + $0x1808] ss:$16 sps:$4 sm:$0xff]   ;;  %v10224_v42 = vld [vmem:[%s13938_s1 + $0x182c] ss:$16 sps:$4 sm:$0xff]  }
 0x2c8   :  { %6738 = vmatprep.subr.bf16.mxu0 %v10129_v43  ;;  %7394 = vmatprep.subr.bf16.mxu1 %v10132_v44  ;;  %v7878_v43 = vcombine.high %v13051_v39, %v13051_v39  ;;  %v10219_v44 = vld [vmem:[%s13938_s1 + $0x1820] ss:$16 sps:$4 sm:$0xff]  }
 0x2cb   :  { %6739 = vmatpush1.bf16.msra.mxu0 %v10127_v45  ;;  %7395 = vmatpush1.bf16.msra.mxu1 %v10130_v46  ;;  %v10222_v45 = vld [vmem:[%s13938_s1 + $0x1828] ss:$16 sps:$4 sm:$0xff]   ;;  %v10227_v46 = vld [vmem:[%s13938_s1 + $0x1844] ss:$16 sps:$4 sm:$0xff]  }
 0x2cc   :  { %6740 = vmatprep.subr.bf16.mxu0 %v10135_v47  ;;  %7396 = vmatprep.subr.bf16.mxu1 %v10138_v48  ;;  %v10230_v47 = vld [vmem:[%s13938_s1 + $0x184c] ss:$16 sps:$4 sm:$0xff]   ;;  %v10225_v48 = vld [vmem:[%s13938_s1 + $0x1840] ss:$16 sps:$4 sm:$0xff]  }
 0x2cf   :  { %6741 = vmatpush1.bf16.msra.mxu0 %v10133_v49  ;;  %7397 = vmatpush1.bf16.msra.mxu1 %v10136_v50  ;;  %v10228_v49 = vld [vmem:[%s13938_s1 + $0x1848] ss:$16 sps:$4 sm:$0xff]   ;;  %v10233_v50 = vld [vmem:[%s13938_s1 + $0x1864] ss:$16 sps:$4 sm:$0xff]  }
 0x2d0   :  { %6742 = vmatprep.subr.bf16.mxu0 %v10141_v51  ;;  %7398 = vmatprep.subr.bf16.mxu1 %v10144_v52  ;;  %v10236_v51 = vld [vmem:[%s13938_s1 + $0x186c] ss:$16 sps:$4 sm:$0xff]   ;;  %v10231_v52 = vld [vmem:[%s13938_s1 + $0x1860] ss:$16 sps:$4 sm:$0xff]  }
 0x2d3   :  { %6743 = vmatpush1.bf16.msra.mxu0 %v10139_v53  ;;  %7399 = vmatpush1.bf16.msra.mxu1 %v10142_v54  ;;  %v10234_v53 = vld [vmem:[%s13938_s1 + $0x1868] ss:$16 sps:$4 sm:$0xff]   ;;  %v10239_v54 = vld [vmem:[%s13938_s1 + $0x1884] ss:$16 sps:$4 sm:$0xff]  }
 0x2d4   :  { %6744 = vmatprep.subr.bf16.mxu0 %v10147_v55  ;;  %7400 = vmatprep.subr.bf16.mxu1 %v10150_v56  ;;  %v10242_v55 = vld [vmem:[%s13938_s1 + $0x188c] ss:$16 sps:$4 sm:$0xff]   ;;  %v10237_v56 = vld [vmem:[%s13938_s1 + $0x1880] ss:$16 sps:$4 sm:$0xff]  }
 0x2d7   :  { %6745 = vmatpush1.bf16.msra.mxu0 %v10145_v57  ;;  %7401 = vmatpush1.bf16.msra.mxu1 %v10148_v58  ;;  %v10240_v57 = vld [vmem:[%s13938_s1 + $0x1888] ss:$16 sps:$4 sm:$0xff]   ;;  %v10245_v58 = vld [vmem:[%s13938_s1 + $0x18a4] ss:$16 sps:$4 sm:$0xff]  }
 0x2d8   :  { %6746 = vmatprep.subr.bf16.mxu0 %v10153_v59  ;;  %7402 = vmatprep.subr.bf16.mxu1 %v10156_v60  ;;  %v10248_v59 = vld [vmem:[%s13938_s1 + $0x18ac] ss:$16 sps:$4 sm:$0xff]   ;;  %v10243_v60 = vld [vmem:[%s13938_s1 + $0x18a0] ss:$16 sps:$4 sm:$0xff]  }
 0x2db   :  { %6747 = vmatpush1.bf16.msra.mxu0 %v10151_v61  ;;  %7403 = vmatpush1.bf16.msra.mxu1 %v10154_v62  ;;  %v10246_v61 = vld [vmem:[%s13938_s1 + $0x18a8] ss:$16 sps:$4 sm:$0xff]   ;;  %v10251_v62 = vld [vmem:[%s13938_s1 + $0x18c4] ss:$16 sps:$4 sm:$0xff]  }
 0x2dc   :  { %6748 = vmatprep.subr.bf16.mxu0 %v10159_v63  ;;  %7404 = vmatprep.subr.bf16.mxu1 %v10162_v0  ;;  %v10254_v63 = vld [vmem:[%s13938_s1 + $0x18cc] ss:$16 sps:$4 sm:$0xff]   ;;  %v10249_v0 = vld [vmem:[%s13938_s1 + $0x18c0] ss:$16 sps:$4 sm:$0xff]  }
 0x2df   :  { %6749 = vmatpush1.bf16.msra.mxu0 %v10157_v1  ;;  %7405 = vmatpush1.bf16.msra.mxu1 %v10160_v2  ;;  %v10252_v1 = vld [vmem:[%s13938_s1 + $0x18c8] ss:$16 sps:$4 sm:$0xff]   ;;  %v10257_v2 = vld [vmem:[%s13938_s1 + $0x18e4] ss:$16 sps:$4 sm:$0xff]  }
 0x2e0   :  { %6750 = vmatprep.subr.bf16.mxu0 %v10165_v3  ;;  %7406 = vmatprep.subr.bf16.mxu1 %v10168_v4  ;;  %v10260_v3 = vld [vmem:[%s13938_s1 + $0x18ec] ss:$16 sps:$4 sm:$0xff]   ;;  %v10255_v4 = vld [vmem:[%s13938_s1 + $0x18e0] ss:$16 sps:$4 sm:$0xff]  }
 0x2e3   :  { %6751 = vmatpush1.bf16.msra.mxu0 %v10163_v5  ;;  %7407 = vmatpush1.bf16.msra.mxu1 %v10166_v6  ;;  %v10258_v5 = vld [vmem:[%s13938_s1 + $0x18e8] ss:$16 sps:$4 sm:$0xff]   ;;  %v10263_v6 = vld [vmem:[%s13938_s1 + $0x1904] ss:$16 sps:$4 sm:$0xff]  }
 0x2e4   :  { %6752 = vmatprep.subr.bf16.mxu0 %v10171_v7  ;;  %7408 = vmatprep.subr.bf16.mxu1 %v10174_v8  ;;  %v10266_v7 = vld [vmem:[%s13938_s1 + $0x190c] ss:$16 sps:$4 sm:$0xff]   ;;  %v10261_v8 = vld [vmem:[%s13938_s1 + $0x1900] ss:$16 sps:$4 sm:$0xff]  }
 0x2e7   :  { %6753 = vmatpush1.bf16.msra.mxu0 %v10169_v9  ;;  %7409 = vmatpush1.bf16.msra.mxu1 %v10172_v10  ;;  %v10264_v9 = vld [vmem:[%s13938_s1 + $0x1908] ss:$16 sps:$4 sm:$0xff]   ;;  %v10269_v10 = vld [vmem:[%s13938_s1 + $0x1924] ss:$16 sps:$4 sm:$0xff]  }
 0x2e8   :  { %6754 = vmatprep.subr.bf16.mxu0 %v10177_v12  ;;  %7410 = vmatprep.subr.bf16.mxu1 %v10180_v13  ;;  %v10272_v12 = vld [vmem:[%s13938_s1 + $0x192c] ss:$16 sps:$4 sm:$0xff]   ;;  %v10267_v13 = vld [vmem:[%s13938_s1 + $0x1920] ss:$16 sps:$4 sm:$0xff]  }
 0x2eb   :  { %6755 = vmatpush1.bf16.msra.mxu0 %v10175_v15  ;;  %7411 = vmatpush1.bf16.msra.mxu1 %v10178_v11  ;;  %v10270_v15 = vld [vmem:[%s13938_s1 + $0x1928] ss:$16 sps:$4 sm:$0xff]   ;;  %v10275_v11 = vld [vmem:[%s13938_s1 + $0x1944] ss:$16 sps:$4 sm:$0xff]  }
 0x2ec   :  { %6756 = vmatprep.subr.bf16.mxu0 %v10183_v17  ;;  %7412 = vmatprep.subr.bf16.mxu1 %v10186_v14  ;;  %v10278_v17 = vld [vmem:[%s13938_s1 + $0x194c] ss:$16 sps:$4 sm:$0xff]   ;;  %v10273_v14 = vld [vmem:[%s13938_s1 + $0x1940] ss:$16 sps:$4 sm:$0xff]  }
 0x2ef   :  { %6757 = vmatpush1.bf16.msra.mxu0 %v10181_v19  ;;  %7413 = vmatpush1.bf16.msra.mxu1 %v10184_v20  ;;  %v10276_v19 = vld [vmem:[%s13938_s1 + $0x1948] ss:$16 sps:$4 sm:$0xff]   ;;  %v10281_v20 = vld [vmem:[%s13938_s1 + $0x1964] ss:$16 sps:$4 sm:$0xff]  }
 0x2f0   :  { %6758 = vmatprep.subr.bf16.mxu0 %v10189_v16  ;;  %7414 = vmatprep.subr.bf16.mxu1 %v10192_v22  ;;  %v10284_v16 = vld [vmem:[%s13938_s1 + $0x196c] ss:$16 sps:$4 sm:$0xff]   ;;  %v10279_v22 = vld [vmem:[%s13938_s1 + $0x1960] ss:$16 sps:$4 sm:$0xff]  }
 0x2f3   :  { %6759 = vmatpush1.bf16.msra.mxu0 %v10187_v23  ;;  %7415 = vmatpush1.bf16.msra.mxu1 %v10190_v18  ;;  %v10282_v23 = vld [vmem:[%s13938_s1 + $0x1968] ss:$16 sps:$4 sm:$0xff]   ;;  %v10287_v18 = vld [vmem:[%s13938_s1 + $0x1984] ss:$16 sps:$4 sm:$0xff]  }
 0x2f4   :  { %6760 = vmatprep.subr.bf16.mxu0 %v10195_v25  ;;  %7416 = vmatprep.subr.bf16.mxu1 %v10198_v26  ;;  %v10290_v25 = vld [vmem:[%s13938_s1 + $0x198c] ss:$16 sps:$4 sm:$0xff]   ;;  %v10285_v26 = vld [vmem:[%s13938_s1 + $0x1980] ss:$16 sps:$4 sm:$0xff]  }
 0x2f7   :  { %6761 = vmatpush1.bf16.msra.mxu0 %v10193_v21  ;;  %7417 = vmatpush1.bf16.msra.mxu1 %v10196_v28  ;;  %v10288_v21 = vld [vmem:[%s13938_s1 + $0x1988] ss:$16 sps:$4 sm:$0xff]   ;;  %v10293_v28 = vld [vmem:[%s13938_s1 + $0x19a4] ss:$16 sps:$4 sm:$0xff]  }
 0x2f8   :  { %6762 = vmatprep.subr.bf16.mxu0 %v10201_v29  ;;  %7418 = vmatprep.subr.bf16.mxu1 %v10204_v24  ;;  %v10296_v29 = vld [vmem:[%s13938_s1 + $0x19ac] ss:$16 sps:$4 sm:$0xff]   ;;  %v10291_v24 = vld [vmem:[%s13938_s1 + $0x19a0] ss:$16 sps:$4 sm:$0xff]  }
 0x2fb   :  { %6763 = vmatpush1.bf16.msra.mxu0 %v10199_v31  ;;  %7419 = vmatpush1.bf16.msra.mxu1 %v10202_v32  ;;  %v10294_v31 = vld [vmem:[%s13938_s1 + $0x19a8] ss:$16 sps:$4 sm:$0xff]   ;;  %v10299_v32 = vld [vmem:[%s13938_s1 + $0x19c4] ss:$16 sps:$4 sm:$0xff]  }
 0x2fc   :  { %6764 = vmatprep.subr.bf16.mxu0 %v10207_v33  ;;  %7420 = vmatprep.subr.bf16.mxu1 %v10210_v34  ;;  %v10302_v33 = vld [vmem:[%s13938_s1 + $0x19cc] ss:$16 sps:$4 sm:$0xff]   ;;  %v10297_v34 = vld [vmem:[%s13938_s1 + $0x19c0] ss:$16 sps:$4 sm:$0xff]  }
 0x2ff   :  { %6765 = vmatpush1.bf16.msra.mxu0 %v10205_v35  ;;  %7421 = vmatpush1.bf16.msra.mxu1 %v10208_v30  ;;  %v10300_v35 = vld [vmem:[%s13938_s1 + $0x19c8] ss:$16 sps:$4 sm:$0xff]   ;;  %v10305_v30 = vld [vmem:[%s13938_s1 + $0x19e4] ss:$16 sps:$4 sm:$0xff]  }
 0x300   :  { %6775 = vmatprep.subr.bf16.mxu0 %v10215_v37  ;;  %7431 = vmatprep.subr.bf16.mxu1 %v10218_v38  ;;  %v10308_v37 = vld [vmem:[%s13938_s1 + $0x19ec] ss:$16 sps:$4 sm:$0xff]   ;;  %v10303_v38 = vld [vmem:[%s13938_s1 + $0x19e0] ss:$16 sps:$4 sm:$0xff]  }
 0x302   :  { %6767 = vmatmul.mubr.bf16.vlgmr.msra.gmra.mrb[0].mxu0 %v7875_v27  ;;  %7423 = vmatmul.mubr.bf16.vlgmr.msra.gmra.mrb[0].mxu1 %v7875_v27  ;;  %v10306_v27 = vld [vmem:[%s13938_s1 + $0x19e8] ss:$16 sps:$4 sm:$0xff]  }
 0x303   :  { %6776 = vmatpush1.bf16.msra.mxu0 %v10213_v40  ;;  %7432 = vmatpush1.bf16.msra.mxu1 %v10216_v41  ;;  %v10313_v40 = vld [vmem:[%s13938_s1 + $0x1a04] ss:$16 sps:$4 sm:$0xff]   ;;  %v10316_v41 = vld [vmem:[%s13938_s1 + $0x1a0c] ss:$16 sps:$4 sm:$0xff]  }
 0x304   :  { %6777 = vmatprep.subr.bf16.mxu0 %v10221_v36  ;;  %7433 = vmatprep.subr.bf16.mxu1 %v10224_v42  ;;  %v7877_v36 = vcombine.low %v13051_v39, %v13051_v39  ;;  %v13252_v42 = vld [vmem:[%s13939_s0 + $0x68] sm:$0xff]  ;;  %v10319_v39 = vld [vmem:[%s13938_s1 + $0x1a24] ss:$16 sps:$4 sm:$0xff]  }
 0x305   :  { %6807 = vmatprep.mubr.bf16.mxu0 %v7878_v43  ;;  %7463 = vmatprep.mubr.bf16.mxu1 %v7878_v43  ;;  %v10311_v43 = vld [vmem:[%s13938_s1 + $0x1a00] ss:$16 sps:$4 sm:$0xff]  }
 0x307   :  { %6778 = vmatpush1.bf16.msra.mxu0 %v10219_v44  ;;  %7434 = vmatpush1.bf16.msra.mxu1 %v10222_v45  ;;  %v10314_v44 = vld [vmem:[%s13938_s1 + $0x1a08] ss:$16 sps:$4 sm:$0xff]   ;;  %v10322_v45 = vld [vmem:[%s13938_s1 + $0x1a2c] ss:$16 sps:$4 sm:$0xff]  }
 0x308   :  { %6779 = vmatprep.subr.bf16.mxu0 %v10227_v46  ;;  %7435 = vmatprep.subr.bf16.mxu1 %v10230_v47  ;;  %v7880_v46 = vcombine.high %v13252_v42, %v13252_v42  ;;  %v10317_v47 = vld [vmem:[%s13938_s1 + $0x1a20] ss:$16 sps:$4 sm:$0xff]  }
 0x30b   :  { %6780 = vmatpush1.bf16.msra.mxu0 %v10225_v48  ;;  %7436 = vmatpush1.bf16.msra.mxu1 %v10228_v49  ;;  %v10320_v48 = vld [vmem:[%s13938_s1 + $0x1a28] ss:$16 sps:$4 sm:$0xff]   ;;  %v10325_v49 = vld [vmem:[%s13938_s1 + $0x1a44] ss:$16 sps:$4 sm:$0xff]  }
 0x30c   :  { %6781 = vmatprep.subr.bf16.mxu0 %v10233_v50  ;;  %7437 = vmatprep.subr.bf16.mxu1 %v10236_v51  ;;  %v10328_v50 = vld [vmem:[%s13938_s1 + $0x1a4c] ss:$16 sps:$4 sm:$0xff]   ;;  %v10323_v51 = vld [vmem:[%s13938_s1 + $0x1a40] ss:$16 sps:$4 sm:$0xff]  }
 0x30f   :  { %6782 = vmatpush1.bf16.msra.mxu0 %v10231_v52  ;;  %7438 = vmatpush1.bf16.msra.mxu1 %v10234_v53  ;;  %v10326_v52 = vld [vmem:[%s13938_s1 + $0x1a48] ss:$16 sps:$4 sm:$0xff]   ;;  %v10331_v53 = vld [vmem:[%s13938_s1 + $0x1a64] ss:$16 sps:$4 sm:$0xff]  }
 0x310   :  { %6783 = vmatprep.subr.bf16.mxu0 %v10239_v54  ;;  %7439 = vmatprep.subr.bf16.mxu1 %v10242_v55  ;;  %v10334_v54 = vld [vmem:[%s13938_s1 + $0x1a6c] ss:$16 sps:$4 sm:$0xff]   ;;  %v10329_v55 = vld [vmem:[%s13938_s1 + $0x1a60] ss:$16 sps:$4 sm:$0xff]  }
 0x313   :  { %6784 = vmatpush1.bf16.msra.mxu0 %v10237_v56  ;;  %7440 = vmatpush1.bf16.msra.mxu1 %v10240_v57  ;;  %v10332_v56 = vld [vmem:[%s13938_s1 + $0x1a68] ss:$16 sps:$4 sm:$0xff]   ;;  %v10337_v57 = vld [vmem:[%s13938_s1 + $0x1a84] ss:$16 sps:$4 sm:$0xff]  }
 0x314   :  { %6785 = vmatprep.subr.bf16.mxu0 %v10245_v58  ;;  %7441 = vmatprep.subr.bf16.mxu1 %v10248_v59  ;;  %v10340_v58 = vld [vmem:[%s13938_s1 + $0x1a8c] ss:$16 sps:$4 sm:$0xff]   ;;  %v10335_v59 = vld [vmem:[%s13938_s1 + $0x1a80] ss:$16 sps:$4 sm:$0xff]  }
 0x317   :  { %6786 = vmatpush1.bf16.msra.mxu0 %v10243_v60  ;;  %7442 = vmatpush1.bf16.msra.mxu1 %v10246_v61  ;;  %v10338_v60 = vld [vmem:[%s13938_s1 + $0x1a88] ss:$16 sps:$4 sm:$0xff]   ;;  %v10343_v61 = vld [vmem:[%s13938_s1 + $0x1aa4] ss:$16 sps:$4 sm:$0xff]  }
 0x318   :  { %6787 = vmatprep.subr.bf16.mxu0 %v10251_v62  ;;  %7443 = vmatprep.subr.bf16.mxu1 %v10254_v63  ;;  %v10346_v62 = vld [vmem:[%s13938_s1 + $0x1aac] ss:$16 sps:$4 sm:$0xff]   ;;  %v10341_v63 = vld [vmem:[%s13938_s1 + $0x1aa0] ss:$16 sps:$4 sm:$0xff]  }
 0x31b   :  { %6788 = vmatpush1.bf16.msra.mxu0 %v10249_v0  ;;  %7444 = vmatpush1.bf16.msra.mxu1 %v10252_v1  ;;  %v10344_v0 = vld [vmem:[%s13938_s1 + $0x1aa8] ss:$16 sps:$4 sm:$0xff]   ;;  %v10349_v1 = vld [vmem:[%s13938_s1 + $0x1ac4] ss:$16 sps:$4 sm:$0xff]  }
 0x31c   :  { %6789 = vmatprep.subr.bf16.mxu0 %v10257_v2  ;;  %7445 = vmatprep.subr.bf16.mxu1 %v10260_v3  ;;  %v10352_v2 = vld [vmem:[%s13938_s1 + $0x1acc] ss:$16 sps:$4 sm:$0xff]   ;;  %v10347_v3 = vld [vmem:[%s13938_s1 + $0x1ac0] ss:$16 sps:$4 sm:$0xff]  }
 0x31f   :  { %6790 = vmatpush1.bf16.msra.mxu0 %v10255_v4  ;;  %7446 = vmatpush1.bf16.msra.mxu1 %v10258_v5  ;;  %v10350_v4 = vld [vmem:[%s13938_s1 + $0x1ac8] ss:$16 sps:$4 sm:$0xff]   ;;  %v10355_v5 = vld [vmem:[%s13938_s1 + $0x1ae4] ss:$16 sps:$4 sm:$0xff]  }
 0x320   :  { %6791 = vmatprep.subr.bf16.mxu0 %v10263_v6  ;;  %7447 = vmatprep.subr.bf16.mxu1 %v10266_v7  ;;  %v10358_v6 = vld [vmem:[%s13938_s1 + $0x1aec] ss:$16 sps:$4 sm:$0xff]   ;;  %v10353_v7 = vld [vmem:[%s13938_s1 + $0x1ae0] ss:$16 sps:$4 sm:$0xff]  }
 0x323   :  { %6792 = vmatpush1.bf16.msra.mxu0 %v10261_v8  ;;  %7448 = vmatpush1.bf16.msra.mxu1 %v10264_v9  ;;  %v10356_v8 = vld [vmem:[%s13938_s1 + $0x1ae8] ss:$16 sps:$4 sm:$0xff]   ;;  %v10361_v9 = vld [vmem:[%s13938_s1 + $0x1b04] ss:$16 sps:$4 sm:$0xff]  }
 0x324   :  { %6793 = vmatprep.subr.bf16.mxu0 %v10269_v10  ;;  %7449 = vmatprep.subr.bf16.mxu1 %v10272_v12  ;;  %v10364_v10 = vld [vmem:[%s13938_s1 + $0x1b0c] ss:$16 sps:$4 sm:$0xff]   ;;  %v10359_v12 = vld [vmem:[%s13938_s1 + $0x1b00] ss:$16 sps:$4 sm:$0xff]  }
 0x327   :  { %6794 = vmatpush1.bf16.msra.mxu0 %v10267_v13  ;;  %7450 = vmatpush1.bf16.msra.mxu1 %v10270_v15  ;;  %v10362_v13 = vld [vmem:[%s13938_s1 + $0x1b08] ss:$16 sps:$4 sm:$0xff]   ;;  %v10367_v15 = vld [vmem:[%s13938_s1 + $0x1b24] ss:$16 sps:$4 sm:$0xff]  }
 0x328   :  { %6795 = vmatprep.subr.bf16.mxu0 %v10275_v11  ;;  %7451 = vmatprep.subr.bf16.mxu1 %v10278_v17  ;;  %v10370_v11 = vld [vmem:[%s13938_s1 + $0x1b2c] ss:$16 sps:$4 sm:$0xff]   ;;  %v10365_v17 = vld [vmem:[%s13938_s1 + $0x1b20] ss:$16 sps:$4 sm:$0xff]  }
 0x32b   :  { %6796 = vmatpush1.bf16.msra.mxu0 %v10273_v14  ;;  %7452 = vmatpush1.bf16.msra.mxu1 %v10276_v19  ;;  %v10368_v14 = vld [vmem:[%s13938_s1 + $0x1b28] ss:$16 sps:$4 sm:$0xff]   ;;  %v10373_v19 = vld [vmem:[%s13938_s1 + $0x1b44] ss:$16 sps:$4 sm:$0xff]  }
 0x32c   :  { %6797 = vmatprep.subr.bf16.mxu0 %v10281_v20  ;;  %7453 = vmatprep.subr.bf16.mxu1 %v10284_v16  ;;  %v10376_v20 = vld [vmem:[%s13938_s1 + $0x1b4c] ss:$16 sps:$4 sm:$0xff]   ;;  %v10371_v16 = vld [vmem:[%s13938_s1 + $0x1b40] ss:$16 sps:$4 sm:$0xff]  }
 0x32f   :  { %6798 = vmatpush1.bf16.msra.mxu0 %v10279_v22  ;;  %7454 = vmatpush1.bf16.msra.mxu1 %v10282_v23  ;;  %v10374_v22 = vld [vmem:[%s13938_s1 + $0x1b48] ss:$16 sps:$4 sm:$0xff]   ;;  %v10379_v23 = vld [vmem:[%s13938_s1 + $0x1b64] ss:$16 sps:$4 sm:$0xff]  }
 0x330   :  { %6799 = vmatprep.subr.bf16.mxu0 %v10287_v18  ;;  %7455 = vmatprep.subr.bf16.mxu1 %v10290_v25  ;;  %v10382_v18 = vld [vmem:[%s13938_s1 + $0x1b6c] ss:$16 sps:$4 sm:$0xff]   ;;  %v10377_v25 = vld [vmem:[%s13938_s1 + $0x1b60] ss:$16 sps:$4 sm:$0xff]  }
 0x333   :  { %6800 = vmatpush1.bf16.msra.mxu0 %v10285_v26  ;;  %7456 = vmatpush1.bf16.msra.mxu1 %v10288_v21  ;;  %v10380_v26 = vld [vmem:[%s13938_s1 + $0x1b68] ss:$16 sps:$4 sm:$0xff]   ;;  %v10385_v21 = vld [vmem:[%s13938_s1 + $0x1b84] ss:$16 sps:$4 sm:$0xff]  }
 0x334   :  { %6801 = vmatprep.subr.bf16.mxu0 %v10293_v28  ;;  %7457 = vmatprep.subr.bf16.mxu1 %v10296_v29  ;;  %v10388_v28 = vld [vmem:[%s13938_s1 + $0x1b8c] ss:$16 sps:$4 sm:$0xff]   ;;  %v10383_v29 = vld [vmem:[%s13938_s1 + $0x1b80] ss:$16 sps:$4 sm:$0xff]  }
 0x337   :  { %6802 = vmatpush1.bf16.msra.mxu0 %v10291_v24  ;;  %7458 = vmatpush1.bf16.msra.mxu1 %v10294_v31  ;;  %v10386_v24 = vld [vmem:[%s13938_s1 + $0x1b88] ss:$16 sps:$4 sm:$0xff]   ;;  %v10391_v31 = vld [vmem:[%s13938_s1 + $0x1ba4] ss:$16 sps:$4 sm:$0xff]  }
 0x338   :  { %6803 = vmatprep.subr.bf16.mxu0 %v10299_v32  ;;  %7459 = vmatprep.subr.bf16.mxu1 %v10302_v33  ;;  %v10394_v32 = vld [vmem:[%s13938_s1 + $0x1bac] ss:$16 sps:$4 sm:$0xff]   ;;  %v10389_v33 = vld [vmem:[%s13938_s1 + $0x1ba0] ss:$16 sps:$4 sm:$0xff]  }
 0x33b   :  { %6804 = vmatpush1.bf16.msra.mxu0 %v10297_v34  ;;  %7460 = vmatpush1.bf16.msra.mxu1 %v10300_v35  ;;  %v10392_v34 = vld [vmem:[%s13938_s1 + $0x1ba8] ss:$16 sps:$4 sm:$0xff]   ;;  %v10397_v35 = vld [vmem:[%s13938_s1 + $0x1bc4] ss:$16 sps:$4 sm:$0xff]  }
 0x33c   :  { %6805 = vmatprep.subr.bf16.mxu0 %v10305_v30  ;;  %7461 = vmatprep.subr.bf16.mxu1 %v10308_v37  ;;  %v10400_v30 = vld [vmem:[%s13938_s1 + $0x1bcc] ss:$16 sps:$4 sm:$0xff]   ;;  %v10395_v37 = vld [vmem:[%s13938_s1 + $0x1bc0] ss:$16 sps:$4 sm:$0xff]  }
 0x33f   :  { %6806 = vmatpush1.bf16.msra.mxu0 %v10303_v38  ;;  %7462 = vmatpush1.bf16.msra.mxu1 %v10306_v27  ;;  %v10398_v38 = vld [vmem:[%s13938_s1 + $0x1bc8] ss:$16 sps:$4 sm:$0xff]   ;;  %v10403_v27 = vld [vmem:[%s13938_s1 + $0x1be4] ss:$16 sps:$4 sm:$0xff]  }
 0x340   :  { %6816 = vmatprep.subr.bf16.mxu0 %v10313_v40  ;;  %7472 = vmatprep.subr.bf16.mxu1 %v10316_v41  ;;  %v10406_v40 = vld [vmem:[%s13938_s1 + $0x1bec] ss:$16 sps:$4 sm:$0xff]   ;;  %v10401_v41 = vld [vmem:[%s13938_s1 + $0x1be0] ss:$16 sps:$4 sm:$0xff]  }
 0x342   :  { %6808 = vmatmul.mubr.bf16.vlgmr.msra.gmra.mrb[0].mxu0 %v7877_v36  ;;  %7464 = vmatmul.mubr.bf16.vlgmr.msra.gmra.mrb[0].mxu1 %v7877_v36  ;;  %v10404_v36 = vld [vmem:[%s13938_s1 + $0x1be8] ss:$16 sps:$4 sm:$0xff]  }
 0x343   :  { %6817 = vmatpush1.bf16.msra.mxu0 %v10311_v43  ;;  %7473 = vmatpush1.bf16.msra.mxu1 %v10314_v44  ;;  %v10411_v43 = vld [vmem:[%s13938_s1 + $0x1c04] ss:$16 sps:$4 sm:$0xff]   ;;  %v10414_v44 = vld [vmem:[%s13938_s1 + $0x1c0c] ss:$16 sps:$4 sm:$0xff]  }
 0x344   :  { %6818 = vmatprep.subr.bf16.mxu0 %v10319_v39  ;;  %7474 = vmatprep.subr.bf16.mxu1 %v10322_v45  ;;  %v7879_v39 = vcombine.low %v13252_v42, %v13252_v42  ;;  %v13453_v45 = vld [vmem:[%s13939_s0 + $0x70] sm:$0xff] }
 0x345   :  { %6848 = vmatprep.mubr.bf16.mxu0 %v7880_v46  ;;  %7504 = vmatprep.mubr.bf16.mxu1 %v7880_v46  ;;  %v10409_v46 = vld [vmem:[%s13938_s1 + $0x1c00] ss:$16 sps:$4 sm:$0xff]   ;;  %v10417_v42 = vld [vmem:[%s13938_s1 + $0x1c24] ss:$16 sps:$4 sm:$0xff]  }
 0x347   :  { %6819 = vmatpush1.bf16.msra.mxu0 %v10317_v47  ;;  %7475 = vmatpush1.bf16.msra.mxu1 %v10320_v48  ;;  %v10412_v47 = vld [vmem:[%s13938_s1 + $0x1c08] ss:$16 sps:$4 sm:$0xff]   ;;  %v10420_v48 = vld [vmem:[%s13938_s1 + $0x1c2c] ss:$16 sps:$4 sm:$0xff]  }
 0x348   :  { %6820 = vmatprep.subr.bf16.mxu0 %v10325_v49  ;;  %7476 = vmatprep.subr.bf16.mxu1 %v10328_v50  ;;  %v7882_v49 = vcombine.high %v13453_v45, %v13453_v45  ;;  %v10415_v50 = vld [vmem:[%s13938_s1 + $0x1c20] ss:$16 sps:$4 sm:$0xff]  }
 0x34b   :  { %6821 = vmatpush1.bf16.msra.mxu0 %v10323_v51  ;;  %7477 = vmatpush1.bf16.msra.mxu1 %v10326_v52  ;;  %v10418_v51 = vld [vmem:[%s13938_s1 + $0x1c28] ss:$16 sps:$4 sm:$0xff]   ;;  %v10423_v52 = vld [vmem:[%s13938_s1 + $0x1c44] ss:$16 sps:$4 sm:$0xff]  }
 0x34c   :  { %6822 = vmatprep.subr.bf16.mxu0 %v10331_v53  ;;  %7478 = vmatprep.subr.bf16.mxu1 %v10334_v54  ;;  %v10426_v53 = vld [vmem:[%s13938_s1 + $0x1c4c] ss:$16 sps:$4 sm:$0xff]   ;;  %v10421_v54 = vld [vmem:[%s13938_s1 + $0x1c40] ss:$16 sps:$4 sm:$0xff]  }
 0x34f   :  { %6823 = vmatpush1.bf16.msra.mxu0 %v10329_v55  ;;  %7479 = vmatpush1.bf16.msra.mxu1 %v10332_v56  ;;  %v10424_v55 = vld [vmem:[%s13938_s1 + $0x1c48] ss:$16 sps:$4 sm:$0xff]   ;;  %v10429_v56 = vld [vmem:[%s13938_s1 + $0x1c64] ss:$16 sps:$4 sm:$0xff]  }
 0x350   :  { %6824 = vmatprep.subr.bf16.mxu0 %v10337_v57  ;;  %7480 = vmatprep.subr.bf16.mxu1 %v10340_v58  ;;  %v10432_v57 = vld [vmem:[%s13938_s1 + $0x1c6c] ss:$16 sps:$4 sm:$0xff]   ;;  %v10427_v58 = vld [vmem:[%s13938_s1 + $0x1c60] ss:$16 sps:$4 sm:$0xff]  }
 0x353   :  { %6825 = vmatpush1.bf16.msra.mxu0 %v10335_v59  ;;  %7481 = vmatpush1.bf16.msra.mxu1 %v10338_v60  ;;  %v10430_v59 = vld [vmem:[%s13938_s1 + $0x1c68] ss:$16 sps:$4 sm:$0xff]   ;;  %v10435_v60 = vld [vmem:[%s13938_s1 + $0x1c84] ss:$16 sps:$4 sm:$0xff]  }
 0x354   :  { %6826 = vmatprep.subr.bf16.mxu0 %v10343_v61  ;;  %7482 = vmatprep.subr.bf16.mxu1 %v10346_v62  ;;  %v10438_v61 = vld [vmem:[%s13938_s1 + $0x1c8c] ss:$16 sps:$4 sm:$0xff]   ;;  %v10433_v62 = vld [vmem:[%s13938_s1 + $0x1c80] ss:$16 sps:$4 sm:$0xff]  }
 0x357   :  { %6827 = vmatpush1.bf16.msra.mxu0 %v10341_v63  ;;  %7483 = vmatpush1.bf16.msra.mxu1 %v10344_v0  ;;  %v10436_v63 = vld [vmem:[%s13938_s1 + $0x1c88] ss:$16 sps:$4 sm:$0xff]   ;;  %v10441_v0 = vld [vmem:[%s13938_s1 + $0x1ca4] ss:$16 sps:$4 sm:$0xff]  }
 0x358   :  { %6828 = vmatprep.subr.bf16.mxu0 %v10349_v1  ;;  %7484 = vmatprep.subr.bf16.mxu1 %v10352_v2  ;;  %v10444_v1 = vld [vmem:[%s13938_s1 + $0x1cac] ss:$16 sps:$4 sm:$0xff]   ;;  %v10439_v2 = vld [vmem:[%s13938_s1 + $0x1ca0] ss:$16 sps:$4 sm:$0xff]  }
 0x35b   :  { %6829 = vmatpush1.bf16.msra.mxu0 %v10347_v3  ;;  %7485 = vmatpush1.bf16.msra.mxu1 %v10350_v4  ;;  %v10442_v3 = vld [vmem:[%s13938_s1 + $0x1ca8] ss:$16 sps:$4 sm:$0xff]   ;;  %v10447_v4 = vld [vmem:[%s13938_s1 + $0x1cc4] ss:$16 sps:$4 sm:$0xff]  }
 0x35c   :  { %6830 = vmatprep.subr.bf16.mxu0 %v10355_v5  ;;  %7486 = vmatprep.subr.bf16.mxu1 %v10358_v6  ;;  %v10450_v5 = vld [vmem:[%s13938_s1 + $0x1ccc] ss:$16 sps:$4 sm:$0xff]   ;;  %v10445_v6 = vld [vmem:[%s13938_s1 + $0x1cc0] ss:$16 sps:$4 sm:$0xff]  }
 0x35f   :  { %6831 = vmatpush1.bf16.msra.mxu0 %v10353_v7  ;;  %7487 = vmatpush1.bf16.msra.mxu1 %v10356_v8  ;;  %v10448_v7 = vld [vmem:[%s13938_s1 + $0x1cc8] ss:$16 sps:$4 sm:$0xff]   ;;  %v10453_v8 = vld [vmem:[%s13938_s1 + $0x1ce4] ss:$16 sps:$4 sm:$0xff]  }
 0x360   :  { %6832 = vmatprep.subr.bf16.mxu0 %v10361_v9  ;;  %7488 = vmatprep.subr.bf16.mxu1 %v10364_v10  ;;  %v10456_v9 = vld [vmem:[%s13938_s1 + $0x1cec] ss:$16 sps:$4 sm:$0xff]   ;;  %v10451_v10 = vld [vmem:[%s13938_s1 + $0x1ce0] ss:$16 sps:$4 sm:$0xff]  }
 0x363   :  { %6833 = vmatpush1.bf16.msra.mxu0 %v10359_v12  ;;  %7489 = vmatpush1.bf16.msra.mxu1 %v10362_v13  ;;  %v10454_v12 = vld [vmem:[%s13938_s1 + $0x1ce8] ss:$16 sps:$4 sm:$0xff]   ;;  %v10459_v13 = vld [vmem:[%s13938_s1 + $0x1d04] ss:$16 sps:$4 sm:$0xff]  }
 0x364   :  { %6834 = vmatprep.subr.bf16.mxu0 %v10367_v15  ;;  %7490 = vmatprep.subr.bf16.mxu1 %v10370_v11  ;;  %v10462_v15 = vld [vmem:[%s13938_s1 + $0x1d0c] ss:$16 sps:$4 sm:$0xff]   ;;  %v10457_v11 = vld [vmem:[%s13938_s1 + $0x1d00] ss:$16 sps:$4 sm:$0xff]  }
 0x367   :  { %6835 = vmatpush1.bf16.msra.mxu0 %v10365_v17  ;;  %7491 = vmatpush1.bf16.msra.mxu1 %v10368_v14  ;;  %v10460_v17 = vld [vmem:[%s13938_s1 + $0x1d08] ss:$16 sps:$4 sm:$0xff]   ;;  %v10465_v14 = vld [vmem:[%s13938_s1 + $0x1d24] ss:$16 sps:$4 sm:$0xff]  }
 0x368   :  { %6836 = vmatprep.subr.bf16.mxu0 %v10373_v19  ;;  %7492 = vmatprep.subr.bf16.mxu1 %v10376_v20  ;;  %v10468_v19 = vld [vmem:[%s13938_s1 + $0x1d2c] ss:$16 sps:$4 sm:$0xff]   ;;  %v10463_v20 = vld [vmem:[%s13938_s1 + $0x1d20] ss:$16 sps:$4 sm:$0xff]  }
 0x36b   :  { %6837 = vmatpush1.bf16.msra.mxu0 %v10371_v16  ;;  %7493 = vmatpush1.bf16.msra.mxu1 %v10374_v22  ;;  %v10466_v16 = vld [vmem:[%s13938_s1 + $0x1d28] ss:$16 sps:$4 sm:$0xff]   ;;  %v10471_v22 = vld [vmem:[%s13938_s1 + $0x1d44] ss:$16 sps:$4 sm:$0xff]  }
 0x36c   :  { %6838 = vmatprep.subr.bf16.mxu0 %v10379_v23  ;;  %7494 = vmatprep.subr.bf16.mxu1 %v10382_v18  ;;  %v10474_v23 = vld [vmem:[%s13938_s1 + $0x1d4c] ss:$16 sps:$4 sm:$0xff]   ;;  %v10469_v18 = vld [vmem:[%s13938_s1 + $0x1d40] ss:$16 sps:$4 sm:$0xff]  }
 0x36f   :  { %6839 = vmatpush1.bf16.msra.mxu0 %v10377_v25  ;;  %7495 = vmatpush1.bf16.msra.mxu1 %v10380_v26  ;;  %v10472_v25 = vld [vmem:[%s13938_s1 + $0x1d48] ss:$16 sps:$4 sm:$0xff]   ;;  %v10477_v26 = vld [vmem:[%s13938_s1 + $0x1d64] ss:$16 sps:$4 sm:$0xff]  }
 0x370   :  { %6840 = vmatprep.subr.bf16.mxu0 %v10385_v21  ;;  %7496 = vmatprep.subr.bf16.mxu1 %v10388_v28  ;;  %v10480_v21 = vld [vmem:[%s13938_s1 + $0x1d6c] ss:$16 sps:$4 sm:$0xff]   ;;  %v10475_v28 = vld [vmem:[%s13938_s1 + $0x1d60] ss:$16 sps:$4 sm:$0xff]  }
 0x373   :  { %6841 = vmatpush1.bf16.msra.mxu0 %v10383_v29  ;;  %7497 = vmatpush1.bf16.msra.mxu1 %v10386_v24  ;;  %v10478_v29 = vld [vmem:[%s13938_s1 + $0x1d68] ss:$16 sps:$4 sm:$0xff]   ;;  %v10483_v24 = vld [vmem:[%s13938_s1 + $0x1d84] ss:$16 sps:$4 sm:$0xff]  }
 0x374   :  { %6842 = vmatprep.subr.bf16.mxu0 %v10391_v31  ;;  %7498 = vmatprep.subr.bf16.mxu1 %v10394_v32  ;;  %v10486_v31 = vld [vmem:[%s13938_s1 + $0x1d8c] ss:$16 sps:$4 sm:$0xff]   ;;  %v10481_v32 = vld [vmem:[%s13938_s1 + $0x1d80] ss:$16 sps:$4 sm:$0xff]  }
 0x377   :  { %6843 = vmatpush1.bf16.msra.mxu0 %v10389_v33  ;;  %7499 = vmatpush1.bf16.msra.mxu1 %v10392_v34  ;;  %v10484_v33 = vld [vmem:[%s13938_s1 + $0x1d88] ss:$16 sps:$4 sm:$0xff]   ;;  %v10489_v34 = vld [vmem:[%s13938_s1 + $0x1da4] ss:$16 sps:$4 sm:$0xff]  }
 0x378   :  { %6844 = vmatprep.subr.bf16.mxu0 %v10397_v35  ;;  %7500 = vmatprep.subr.bf16.mxu1 %v10400_v30  ;;  %v10492_v35 = vld [vmem:[%s13938_s1 + $0x1dac] ss:$16 sps:$4 sm:$0xff]   ;;  %v10487_v30 = vld [vmem:[%s13938_s1 + $0x1da0] ss:$16 sps:$4 sm:$0xff]  }
 0x37b   :  { %6845 = vmatpush1.bf16.msra.mxu0 %v10395_v37  ;;  %7501 = vmatpush1.bf16.msra.mxu1 %v10398_v38  ;;  %v10490_v37 = vld [vmem:[%s13938_s1 + $0x1da8] ss:$16 sps:$4 sm:$0xff]   ;;  %v10495_v38 = vld [vmem:[%s13938_s1 + $0x1dc4] ss:$16 sps:$4 sm:$0xff]  }
 0x37c   :  { %6846 = vmatprep.subr.bf16.mxu0 %v10403_v27  ;;  %7502 = vmatprep.subr.bf16.mxu1 %v10406_v40  ;;  %v10498_v27 = vld [vmem:[%s13938_s1 + $0x1dcc] ss:$16 sps:$4 sm:$0xff]   ;;  %v10493_v40 = vld [vmem:[%s13938_s1 + $0x1dc0] ss:$16 sps:$4 sm:$0xff]  }
 0x37f   :  { %6847 = vmatpush1.bf16.msra.mxu0 %v10401_v41  ;;  %7503 = vmatpush1.bf16.msra.mxu1 %v10404_v36  ;;  %v10496_v41 = vld [vmem:[%s13938_s1 + $0x1dc8] ss:$16 sps:$4 sm:$0xff]   ;;  %v10501_v36 = vld [vmem:[%s13938_s1 + $0x1de4] ss:$16 sps:$4 sm:$0xff]  }
 0x380   :  { %6857 = vmatprep.subr.bf16.mxu0 %v10411_v43  ;;  %7513 = vmatprep.subr.bf16.mxu1 %v10414_v44  ;;  %v10504_v43 = vld [vmem:[%s13938_s1 + $0x1dec] ss:$16 sps:$4 sm:$0xff]   ;;  %v10499_v44 = vld [vmem:[%s13938_s1 + $0x1de0] ss:$16 sps:$4 sm:$0xff]  }
 0x382   :  { %6849 = vmatmul.mubr.bf16.vlgmr.msra.gmra.mrb[0].mxu0 %v7879_v39  ;;  %7505 = vmatmul.mubr.bf16.vlgmr.msra.gmra.mrb[0].mxu1 %v7879_v39  ;;  %v10502_v39 = vld [vmem:[%s13938_s1 + $0x1de8] ss:$16 sps:$4 sm:$0xff]  }
 0x383   :  { %6858 = vmatpush1.bf16.msra.mxu0 %v10409_v46  ;;  %7514 = vmatpush1.bf16.msra.mxu1 %v10412_v47  ;;  %v10509_v46 = vld [vmem:[%s13938_s1 + $0x1e04] ss:$16 sps:$4 sm:$0xff]   ;;  %v10512_v47 = vld [vmem:[%s13938_s1 + $0x1e0c] ss:$16 sps:$4 sm:$0xff]  }
 0x384   :  { %6859 = vmatprep.subr.bf16.mxu0 %v10417_v42  ;;  %7515 = vmatprep.subr.bf16.mxu1 %v10420_v48  ;;  %v7881_v42 = vcombine.low %v13453_v45, %v13453_v45  ;;  %v13654_v48 = vld [vmem:[%s13939_s0 + $0x78] sm:$0xff]  ;;  %v10515_v45 = vld [vmem:[%s13938_s1 + $0x1e24] ss:$16 sps:$4 sm:$0xff]  }
 0x385   :  { %6889 = vmatprep.mubr.bf16.mxu0 %v7882_v49  ;;  %7545 = vmatprep.mubr.bf16.mxu1 %v7882_v49  ;;  %v10507_v49 = vld [vmem:[%s13938_s1 + $0x1e00] ss:$16 sps:$4 sm:$0xff]  }
 0x387   :  { %6860 = vmatpush1.bf16.msra.mxu0 %v10415_v50  ;;  %7516 = vmatpush1.bf16.msra.mxu1 %v10418_v51  ;;  %v10510_v50 = vld [vmem:[%s13938_s1 + $0x1e08] ss:$16 sps:$4 sm:$0xff]   ;;  %v10518_v51 = vld [vmem:[%s13938_s1 + $0x1e2c] ss:$16 sps:$4 sm:$0xff]  }
 0x388   :  { %6861 = vmatprep.subr.bf16.mxu0 %v10423_v52  ;;  %7517 = vmatprep.subr.bf16.mxu1 %v10426_v53  ;;  %v7884_v52 = vcombine.high %v13654_v48, %v13654_v48  ;;  %v10513_v53 = vld [vmem:[%s13938_s1 + $0x1e20] ss:$16 sps:$4 sm:$0xff]  }
 0x38b   :  { %6862 = vmatpush1.bf16.msra.mxu0 %v10421_v54  ;;  %7518 = vmatpush1.bf16.msra.mxu1 %v10424_v55  ;;  %v10516_v54 = vld [vmem:[%s13938_s1 + $0x1e28] ss:$16 sps:$4 sm:$0xff]   ;;  %v10521_v55 = vld [vmem:[%s13938_s1 + $0x1e44] ss:$16 sps:$4 sm:$0xff]  }
 0x38c   :  { %6863 = vmatprep.subr.bf16.mxu0 %v10429_v56  ;;  %7519 = vmatprep.subr.bf16.mxu1 %v10432_v57  ;;  %v10524_v56 = vld [vmem:[%s13938_s1 + $0x1e4c] ss:$16 sps:$4 sm:$0xff]   ;;  %v10519_v57 = vld [vmem:[%s13938_s1 + $0x1e40] ss:$16 sps:$4 sm:$0xff]  }
 0x38f   :  { %6864 = vmatpush1.bf16.msra.mxu0 %v10427_v58  ;;  %7520 = vmatpush1.bf16.msra.mxu1 %v10430_v59  ;;  %v10522_v58 = vld [vmem:[%s13938_s1 + $0x1e48] ss:$16 sps:$4 sm:$0xff]   ;;  %v10527_v59 = vld [vmem:[%s13938_s1 + $0x1e64] ss:$16 sps:$4 sm:$0xff]  }
 0x390   :  { %6865 = vmatprep.subr.bf16.mxu0 %v10435_v60  ;;  %7521 = vmatprep.subr.bf16.mxu1 %v10438_v61  ;;  %v10530_v60 = vld [vmem:[%s13938_s1 + $0x1e6c] ss:$16 sps:$4 sm:$0xff]   ;;  %v10525_v61 = vld [vmem:[%s13938_s1 + $0x1e60] ss:$16 sps:$4 sm:$0xff]  }
 0x393   :  { %6866 = vmatpush1.bf16.msra.mxu0 %v10433_v62  ;;  %7522 = vmatpush1.bf16.msra.mxu1 %v10436_v63  ;;  %v10528_v62 = vld [vmem:[%s13938_s1 + $0x1e68] ss:$16 sps:$4 sm:$0xff]   ;;  %v10533_v63 = vld [vmem:[%s13938_s1 + $0x1e84] ss:$16 sps:$4 sm:$0xff]  }
 0x394   :  { %6867 = vmatprep.subr.bf16.mxu0 %v10441_v0  ;;  %7523 = vmatprep.subr.bf16.mxu1 %v10444_v1  ;;  %v10536_v0 = vld [vmem:[%s13938_s1 + $0x1e8c] ss:$16 sps:$4 sm:$0xff]   ;;  %v10531_v1 = vld [vmem:[%s13938_s1 + $0x1e80] ss:$16 sps:$4 sm:$0xff]  }
 0x397   :  { %6868 = vmatpush1.bf16.msra.mxu0 %v10439_v2  ;;  %7524 = vmatpush1.bf16.msra.mxu1 %v10442_v3  ;;  %v10534_v2 = vld [vmem:[%s13938_s1 + $0x1e88] ss:$16 sps:$4 sm:$0xff]   ;;  %v10539_v3 = vld [vmem:[%s13938_s1 + $0x1ea4] ss:$16 sps:$4 sm:$0xff]  }
 0x398   :  { %6869 = vmatprep.subr.bf16.mxu0 %v10447_v4  ;;  %7525 = vmatprep.subr.bf16.mxu1 %v10450_v5  ;;  %v10542_v4 = vld [vmem:[%s13938_s1 + $0x1eac] ss:$16 sps:$4 sm:$0xff]   ;;  %v10537_v5 = vld [vmem:[%s13938_s1 + $0x1ea0] ss:$16 sps:$4 sm:$0xff]  }
 0x39b   :  { %6870 = vmatpush1.bf16.msra.mxu0 %v10445_v6  ;;  %7526 = vmatpush1.bf16.msra.mxu1 %v10448_v7  ;;  %v10540_v6 = vld [vmem:[%s13938_s1 + $0x1ea8] ss:$16 sps:$4 sm:$0xff]   ;;  %v10545_v7 = vld [vmem:[%s13938_s1 + $0x1ec4] ss:$16 sps:$4 sm:$0xff]  }
 0x39c   :  { %6871 = vmatprep.subr.bf16.mxu0 %v10453_v8  ;;  %7527 = vmatprep.subr.bf16.mxu1 %v10456_v9  ;;  %v10548_v8 = vld [vmem:[%s13938_s1 + $0x1ecc] ss:$16 sps:$4 sm:$0xff]   ;;  %v10543_v9 = vld [vmem:[%s13938_s1 + $0x1ec0] ss:$16 sps:$4 sm:$0xff]  }
 0x39f   :  { %6872 = vmatpush1.bf16.msra.mxu0 %v10451_v10  ;;  %7528 = vmatpush1.bf16.msra.mxu1 %v10454_v12  ;;  %v10546_v10 = vld [vmem:[%s13938_s1 + $0x1ec8] ss:$16 sps:$4 sm:$0xff]   ;;  %v10551_v12 = vld [vmem:[%s13938_s1 + $0x1ee4] ss:$16 sps:$4 sm:$0xff]  }
 0x3a0   :  { %6873 = vmatprep.subr.bf16.mxu0 %v10459_v13  ;;  %7529 = vmatprep.subr.bf16.mxu1 %v10462_v15  ;;  %v10554_v13 = vld [vmem:[%s13938_s1 + $0x1eec] ss:$16 sps:$4 sm:$0xff]   ;;  %v10549_v15 = vld [vmem:[%s13938_s1 + $0x1ee0] ss:$16 sps:$4 sm:$0xff]  }
 0x3a3   :  { %6874 = vmatpush1.bf16.msra.mxu0 %v10457_v11  ;;  %7530 = vmatpush1.bf16.msra.mxu1 %v10460_v17  ;;  %v10552_v11 = vld [vmem:[%s13938_s1 + $0x1ee8] ss:$16 sps:$4 sm:$0xff]   ;;  %v10557_v17 = vld [vmem:[%s13938_s1 + $0x1f04] ss:$16 sps:$4 sm:$0xff]  }
 0x3a4   :  { %6875 = vmatprep.subr.bf16.mxu0 %v10465_v14  ;;  %7531 = vmatprep.subr.bf16.mxu1 %v10468_v19  ;;  %v10560_v14 = vld [vmem:[%s13938_s1 + $0x1f0c] ss:$16 sps:$4 sm:$0xff]   ;;  %v10555_v19 = vld [vmem:[%s13938_s1 + $0x1f00] ss:$16 sps:$4 sm:$0xff]  }
 0x3a7   :  { %6876 = vmatpush1.bf16.msra.mxu0 %v10463_v20  ;;  %7532 = vmatpush1.bf16.msra.mxu1 %v10466_v16  ;;  %v10558_v20 = vld [vmem:[%s13938_s1 + $0x1f08] ss:$16 sps:$4 sm:$0xff]   ;;  %v10563_v16 = vld [vmem:[%s13938_s1 + $0x1f24] ss:$16 sps:$4 sm:$0xff]  }
 0x3a8   :  { %6877 = vmatprep.subr.bf16.mxu0 %v10471_v22  ;;  %7533 = vmatprep.subr.bf16.mxu1 %v10474_v23  ;;  %v10566_v22 = vld [vmem:[%s13938_s1 + $0x1f2c] ss:$16 sps:$4 sm:$0xff]   ;;  %v10561_v23 = vld [vmem:[%s13938_s1 + $0x1f20] ss:$16 sps:$4 sm:$0xff]  }
 0x3ab   :  { %6878 = vmatpush1.bf16.msra.mxu0 %v10469_v18  ;;  %7534 = vmatpush1.bf16.msra.mxu1 %v10472_v25  ;;  %v10564_v18 = vld [vmem:[%s13938_s1 + $0x1f28] ss:$16 sps:$4 sm:$0xff]   ;;  %v10569_v25 = vld [vmem:[%s13938_s1 + $0x1f44] ss:$16 sps:$4 sm:$0xff]  }
 0x3ac   :  { %6879 = vmatprep.subr.bf16.mxu0 %v10477_v26  ;;  %7535 = vmatprep.subr.bf16.mxu1 %v10480_v21  ;;  %v10572_v26 = vld [vmem:[%s13938_s1 + $0x1f4c] ss:$16 sps:$4 sm:$0xff]   ;;  %v10567_v21 = vld [vmem:[%s13938_s1 + $0x1f40] ss:$16 sps:$4 sm:$0xff]  }
 0x3af   :  { %6880 = vmatpush1.bf16.msra.mxu0 %v10475_v28  ;;  %7536 = vmatpush1.bf16.msra.mxu1 %v10478_v29  ;;  %v10570_v28 = vld [vmem:[%s13938_s1 + $0x1f48] ss:$16 sps:$4 sm:$0xff]   ;;  %v10575_v29 = vld [vmem:[%s13938_s1 + $0x1f64] ss:$16 sps:$4 sm:$0xff]  }
 0x3b0   :  { %6881 = vmatprep.subr.bf16.mxu0 %v10483_v24  ;;  %7537 = vmatprep.subr.bf16.mxu1 %v10486_v31  ;;  %v10578_v24 = vld [vmem:[%s13938_s1 + $0x1f6c] ss:$16 sps:$4 sm:$0xff]   ;;  %v10573_v31 = vld [vmem:[%s13938_s1 + $0x1f60] ss:$16 sps:$4 sm:$0xff]  }
 0x3b3   :  { %6882 = vmatpush1.bf16.msra.mxu0 %v10481_v32  ;;  %7538 = vmatpush1.bf16.msra.mxu1 %v10484_v33  ;;  %v10576_v32 = vld [vmem:[%s13938_s1 + $0x1f68] ss:$16 sps:$4 sm:$0xff]   ;;  %v10581_v33 = vld [vmem:[%s13938_s1 + $0x1f84] ss:$16 sps:$4 sm:$0xff]  }
 0x3b4   :  { %6883 = vmatprep.subr.bf16.mxu0 %v10489_v34  ;;  %7539 = vmatprep.subr.bf16.mxu1 %v10492_v35  ;;  %v10584_v34 = vld [vmem:[%s13938_s1 + $0x1f8c] ss:$16 sps:$4 sm:$0xff]   ;;  %v10579_v35 = vld [vmem:[%s13938_s1 + $0x1f80] ss:$16 sps:$4 sm:$0xff]  }
 0x3b7   :  { %6884 = vmatpush1.bf16.msra.mxu0 %v10487_v30  ;;  %7540 = vmatpush1.bf16.msra.mxu1 %v10490_v37  ;;  %v10582_v30 = vld [vmem:[%s13938_s1 + $0x1f88] ss:$16 sps:$4 sm:$0xff]   ;;  %v10587_v37 = vld [vmem:[%s13938_s1 + $0x1fa4] ss:$16 sps:$4 sm:$0xff]  }
 0x3b8   :  { %6885 = vmatprep.subr.bf16.mxu0 %v10495_v38  ;;  %7541 = vmatprep.subr.bf16.mxu1 %v10498_v27  ;;  %v10590_v38 = vld [vmem:[%s13938_s1 + $0x1fac] ss:$16 sps:$4 sm:$0xff]   ;;  %v10585_v27 = vld [vmem:[%s13938_s1 + $0x1fa0] ss:$16 sps:$4 sm:$0xff]  }
 0x3bb   :  { %6886 = vmatpush1.bf16.msra.mxu0 %v10493_v40  ;;  %7542 = vmatpush1.bf16.msra.mxu1 %v10496_v41  ;;  %v10588_v40 = vld [vmem:[%s13938_s1 + $0x1fa8] ss:$16 sps:$4 sm:$0xff]   ;;  %v10593_v41 = vld [vmem:[%s13938_s1 + $0x1fc4] ss:$16 sps:$4 sm:$0xff]  }
 0x3bc   :  { %6887 = vmatprep.subr.bf16.mxu0 %v10501_v36  ;;  %7543 = vmatprep.subr.bf16.mxu1 %v10504_v43  ;;  %v10596_v36 = vld [vmem:[%s13938_s1 + $0x1fcc] ss:$16 sps:$4 sm:$0xff]   ;;  %v10591_v43 = vld [vmem:[%s13938_s1 + $0x1fc0] ss:$16 sps:$4 sm:$0xff]  }
 0x3bf   :  { %6888 = vmatpush1.bf16.msra.mxu0 %v10499_v44  ;;  %7544 = vmatpush1.bf16.msra.mxu1 %v10502_v39  ;;  %v10594_v44 = vld [vmem:[%s13938_s1 + $0x1fc8] ss:$16 sps:$4 sm:$0xff]   ;;  %v10599_v39 = vld [vmem:[%s13938_s1 + $0x1fe4] ss:$16 sps:$4 sm:$0xff]  }
 0x3c0   :  { %6898 = vmatprep.subr.bf16.mxu0 %v10509_v46  ;;  %7554 = vmatprep.subr.bf16.mxu1 %v10512_v47  ;;  %v10602_v46 = vld [vmem:[%s13938_s1 + $0x1fec] ss:$16 sps:$4 sm:$0xff]   ;;  %v10597_v47 = vld [vmem:[%s13938_s1 + $0x1fe0] ss:$16 sps:$4 sm:$0xff]  }
 0x3c2   :  { %6890 = vmatmul.mubr.bf16.vlgmr.msra.gmra.mrb[0].mxu0 %v7881_v42  ;;  %7546 = vmatmul.mubr.bf16.vlgmr.msra.gmra.mrb[0].mxu1 %v7881_v42  ;;  %v10600_v42 = vld [vmem:[%s13938_s1 + $0x1fe8] ss:$16 sps:$4 sm:$0xff]  }
 0x3c3   :  { %6899 = vmatpush1.bf16.msra.mxu0 %v10507_v49  ;;  %7555 = vmatpush1.bf16.msra.mxu1 %v10510_v50  ;;  %v7883_v49 = vcombine.low %v13654_v48, %v13654_v48 }
 0x3c4   :  { %6900 = vmatprep.subr.bf16.mxu0 %v10515_v45  ;;  %7556 = vmatprep.subr.bf16.mxu1 %v10518_v51 }
 0x3c5   :  { %6930 = vmatprep.mubr.bf16.mxu0 %v7884_v52  ;;  %7586 = vmatprep.mubr.bf16.mxu1 %v7884_v52 }
 0x3c7   :  { %6901 = vmatpush1.bf16.msra.mxu0 %v10513_v53  ;;  %7557 = vmatpush1.bf16.msra.mxu1 %v10516_v54 }
 0x3c8   :  { %6902 = vmatprep.subr.bf16.mxu0 %v10521_v55  ;;  %7558 = vmatprep.subr.bf16.mxu1 %v10524_v56 }
 0x3cb   :  { %6903 = vmatpush1.bf16.msra.mxu0 %v10519_v57  ;;  %7559 = vmatpush1.bf16.msra.mxu1 %v10522_v58 }
 0x3cc   :  { %6904 = vmatprep.subr.bf16.mxu0 %v10527_v59  ;;  %7560 = vmatprep.subr.bf16.mxu1 %v10530_v60 }
 0x3cf   :  { %6905 = vmatpush1.bf16.msra.mxu0 %v10525_v61  ;;  %7561 = vmatpush1.bf16.msra.mxu1 %v10528_v62 }
 0x3d0   :  { %6906 = vmatprep.subr.bf16.mxu0 %v10533_v63  ;;  %7562 = vmatprep.subr.bf16.mxu1 %v10536_v0 }
 0x3d3   :  { %6907 = vmatpush1.bf16.msra.mxu0 %v10531_v1  ;;  %7563 = vmatpush1.bf16.msra.mxu1 %v10534_v2 }
 0x3d4   :  { %6908 = vmatprep.subr.bf16.mxu0 %v10539_v3  ;;  %7564 = vmatprep.subr.bf16.mxu1 %v10542_v4 }
 0x3d7   :  { %6909 = vmatpush1.bf16.msra.mxu0 %v10537_v5  ;;  %7565 = vmatpush1.bf16.msra.mxu1 %v10540_v6 }
 0x3d8   :  { %6910 = vmatprep.subr.bf16.mxu0 %v10545_v7  ;;  %7566 = vmatprep.subr.bf16.mxu1 %v10548_v8 }
 0x3db   :  { %6911 = vmatpush1.bf16.msra.mxu0 %v10543_v9  ;;  %7567 = vmatpush1.bf16.msra.mxu1 %v10546_v10 }
 0x3dc   :  { %6912 = vmatprep.subr.bf16.mxu0 %v10551_v12  ;;  %7568 = vmatprep.subr.bf16.mxu1 %v10554_v13 }
 0x3df   :  { %6913 = vmatpush1.bf16.msra.mxu0 %v10549_v15  ;;  %7569 = vmatpush1.bf16.msra.mxu1 %v10552_v11 }
 0x3e0   :  { %6914 = vmatprep.subr.bf16.mxu0 %v10557_v17  ;;  %7570 = vmatprep.subr.bf16.mxu1 %v10560_v14 }
 0x3e3   :  { %6915 = vmatpush1.bf16.msra.mxu0 %v10555_v19  ;;  %7571 = vmatpush1.bf16.msra.mxu1 %v10558_v20 }
 0x3e4   :  { %6916 = vmatprep.subr.bf16.mxu0 %v10563_v16  ;;  %7572 = vmatprep.subr.bf16.mxu1 %v10566_v22 }
 0x3e7   :  { %6917 = vmatpush1.bf16.msra.mxu0 %v10561_v23  ;;  %7573 = vmatpush1.bf16.msra.mxu1 %v10564_v18 }
 0x3e8   :  { %6918 = vmatprep.subr.bf16.mxu0 %v10569_v25  ;;  %7574 = vmatprep.subr.bf16.mxu1 %v10572_v26 }
 0x3eb   :  { %6919 = vmatpush1.bf16.msra.mxu0 %v10567_v21  ;;  %7575 = vmatpush1.bf16.msra.mxu1 %v10570_v28 }
 0x3ec   :  { %6920 = vmatprep.subr.bf16.mxu0 %v10575_v29  ;;  %7576 = vmatprep.subr.bf16.mxu1 %v10578_v24 }
 0x3ef   :  { %6921 = vmatpush1.bf16.msra.mxu0 %v10573_v31  ;;  %7577 = vmatpush1.bf16.msra.mxu1 %v10576_v32 }
 0x3f0   :  { %6922 = vmatprep.subr.bf16.mxu0 %v10581_v33  ;;  %7578 = vmatprep.subr.bf16.mxu1 %v10584_v34 }
 0x3f3   :  { %6923 = vmatpush1.bf16.msra.mxu0 %v10579_v35  ;;  %7579 = vmatpush1.bf16.msra.mxu1 %v10582_v30 }
 0x3f4   :  { %6924 = vmatprep.subr.bf16.mxu0 %v10587_v37  ;;  %7580 = vmatprep.subr.bf16.mxu1 %v10590_v38 }
 0x3f7   :  { %6925 = vmatpush1.bf16.msra.mxu0 %v10585_v27  ;;  %7581 = vmatpush1.bf16.msra.mxu1 %v10588_v40 }
 0x3f8   :  { %6926 = vmatprep.subr.bf16.mxu0 %v10593_v41  ;;  %7582 = vmatprep.subr.bf16.mxu1 %v10596_v36 }
 0x3fb   :  { %6927 = vmatpush1.bf16.msra.mxu0 %v10591_v43  ;;  %7583 = vmatpush1.bf16.msra.mxu1 %v10594_v44 }
 0x3fc   :  { %6928 = vmatprep.subr.bf16.mxu0 %v10599_v39  ;;  %7584 = vmatprep.subr.bf16.mxu1 %v10602_v46 }
 0x3ff   :  { %6929 = vmatpush1.bf16.msra.mxu0 %v10597_v47  ;;  %7585 = vmatpush1.bf16.msra.mxu1 %v10600_v42 }
 0x402   :  { %6931 = vmatmul.mubr.bf16.vlgmr.msra.gmra.mrb[0].mxu0 %v7883_v49  ;;  %7587 = vmatmul.mubr.bf16.vlgmr.msra.gmra.mrb[0].mxu1 %v7883_v49 }
 0x4d5   :  { %v13846_v50 = vpop.f32.mrb[0].mxu0  ;;  %v13848_v45 = vpop.f32.mrb[0].mxu1 }
 0x4d6   :  { %v7596_v51 = vsel %vm7595_vm0, %v13846_v50, 0.0  ;;  %v7715_v52 = vrot.slane %v13846_v50, 4  ;;  %v7610_v53 = vsel %vm7595_vm0, %v13848_v45, 0.0  ;;  %v7717_v54 = vrot.slane %v13848_v45, 4  ;;  %v13856_v48 = vpop.f32.mrb[1].mxu0  ;;  %v13858_v55 = vpop.f32.mrb[1].mxu1 }
 0x4d7   :  { %v7597_v56 = vrot.slane %v7596_v51, 4  ;;  %v7611_v57 = vrot.slane %v7610_v53, 4  ;;  %v7603_v58 = vsel %vm7595_vm0, %v13856_v48, 0.0  ;;  %v7716_v59 = vrot.slane %v13856_v48, 4  ;;  %v6936_v60 = vpop.f32.mrb[2].mxu0  ;;  %v7592_v61 = vpop.f32.mrb[2].mxu1 }
 0x4d8   :  { %v7723_v62 = vsel %vm7595_vm0, %v7715_v52, 0.0  ;;  %v7737_v63 = vsel %vm7595_vm0, %v7717_v54, 0.0  ;;  %v7604_v0 = vrot.slane %v7603_v58, 4  ;;  %v7617_v1 = vsel %vm7595_vm0, %v13858_v55, 0.0  ;;  %v6937_v2 = vpop.f32.mrb[3].mxu0  ;;  %v7593_v3 = vpop.f32.mrb[3].mxu1 }
 0x4d9   :  { %v7598_v4 = vadd.f32 %v7597_v56, %v7596_v51  ;;  %v7724_v5 = vrot.slane %v7723_v62, 4  ;;  %v7612_v6 = vadd.f32 %v7611_v57, %v7610_v53  ;;  %v7738_v7 = vrot.slane %v7737_v63, 4 }
 0x4da   :  { %v7605_v8 = vadd.f32 %v7604_v0, %v7603_v58  ;;  %v7730_v9 = vsel %vm7595_vm0, %v7716_v59, 0.0  ;;  %v7618_v10 = vrot.slane %v7617_v1, 4  ;;  %v7718_v12 = vrot.slane %v13858_v55, 4 }
 0x4db   :  { %v7599_v13 = vrot.slane %v7598_v4, 2  ;;  %v7725_v15 = vadd.f32 %v7724_v5, %v7723_v62  ;;  %v7613_v11 = vrot.slane %v7612_v6, 2  ;;  %v7739_v17 = vadd.f32 %v7738_v7, %v7737_v63 }
 0x4dc   :  { %v7606_v14 = vrot.slane %v7605_v8, 2  ;;  %v7731_v19 = vrot.slane %v7730_v9, 4  ;;  %v7619_v20 = vadd.f32 %v7618_v10, %v7617_v1  ;;  %v7744_v16 = vsel %vm7595_vm0, %v7718_v12, 0.0 }
 0x4dd   :  { %v7600_v22 = vadd.f32 %v7599_v13, %v7598_v4  ;;  %v7726_v23 = vrot.slane %v7725_v15, 2  ;;  %v7614_v18 = vadd.f32 %v7613_v11, %v7612_v6  ;;  %v7740_v25 = vrot.slane %v7739_v17, 2 }
 0x4de   :  { %v7607_v26 = vadd.f32 %v7606_v14, %v7605_v8  ;;  %v7732_v21 = vadd.f32 %v7731_v19, %v7730_v9  ;;  %v7620_v28 = vrot.slane %v7619_v20, 2  ;;  %v7745_v29 = vrot.slane %v7744_v16, 4 }
 0x4df   :  { %v7601_v24 = vrot.slane %v7600_v22, 1  ;;  %v7727_v31 = vadd.f32 %v7726_v23, %v7725_v15  ;;  %v7615_v32 = vrot.slane %v7614_v18, 1  ;;  %v7741_v33 = vadd.f32 %v7740_v25, %v7739_v17 }
 0x4e0   :  { %v7608_v34 = vrot.slane %v7607_v26, 1  ;;  %v7733_v35 = vrot.slane %v7732_v21, 2  ;;  %v7621_v30 = vadd.f32 %v7620_v28, %v7619_v20  ;;  %v7746_v37 = vadd.f32 %v7745_v29, %v7744_v16 }
 0x4e1   :  { %v7602_v38 = vadd.f32 %v7601_v24, %v7600_v22  ;;  %v7728_v27 = vrot.slane %v7727_v31, 1  ;;  %v7616_v40 = vadd.f32 %v7615_v32, %v7614_v18  ;;  %v7742_v41 = vrot.slane %v7741_v33, 1 }
 0x4e2   :  { %v7609_v36 = vadd.f32 %v7608_v34, %v7607_v26  ;;  %v7734_v43 = vadd.f32 %v7733_v35, %v7732_v21  ;;  %v7622_v44 = vrot.slane %v7621_v30, 1  ;;  %v7747_v39 = vrot.slane %v7746_v37, 2 }
 0x4e3   :  { %v7625_v46 = vmul.f32 0.25, %v7602_v38  ;;  %v7729_v47 = vadd.f32 %v7728_v27, %v7727_v31  ;;  %v7627_v42 = vmul.f32 0.25, %v7616_v40  ;;  %v7743_v49 = vadd.f32 %v7742_v41, %v7741_v33 }
 0x4e4   :  { %v7626_v51 = vmul.f32 0.25, %v7609_v36  ;;  %v7735_v52 = vrot.slane %v7734_v43, 1  ;;  %v7623_v53 = vadd.f32 %v7622_v44, %v7621_v30  ;;  %v7748_v54 = vadd.f32 %v7747_v39, %v7746_v37 }
 0x4e5   :  { %v13871_v56 = vsub.f32 %v13846_v50, %v7625_v46  ;;  %v7751_v57 = vmul.f32 0.25, %v7729_v47  ;;  %v13874_v58 = vsub.f32 %v13848_v45, %v7627_v42  ;;  %v7753_v59 = vmul.f32 0.25, %v7743_v49 }
 0x4e6   :  { %v13877_v60 = vsub.f32 %v13856_v48, %v7626_v51  ;;  %v7736_v61 = vadd.f32 %v7735_v52, %v7734_v43  ;;  %v7628_v62 = vmul.f32 0.25, %v7623_v53  ;;  %v7749_v63 = vrot.slane %v7748_v54, 1 }
 0x4e7   :  { %v7633_v0 = vmul.f32 %v13871_v56, %v13871_v56  ;;  %v13882_v1 = vsub.f32 %v13846_v50, %v7751_v57  ;;  %v7635_v2 = vmul.f32 %v13874_v58, %v13874_v58  ;;  %v13887_v3 = vsub.f32 %v13848_v45, %v7753_v59 }
 0x4e8   :  { %v7634_v4 = vmul.f32 %v13877_v60, %v13877_v60  ;;  %v7752_v5 = vmul.f32 0.25, %v7736_v61  ;;  %v13892_v6 = vsub.f32 %v13858_v55, %v7628_v62  ;;  %v7750_v7 = vadd.f32 %v7749_v63, %v7748_v54 }
 0x4e9   :  { %v7637_v8 = vsel %vm7595_vm0, %v7633_v0, 0.0  ;;  %v7759_v50 = vmul.f32 %v13882_v1, %v13882_v1  ;;  %v7651_v9 = vsel %vm7595_vm0, %v7635_v2, 0.0  ;;  %v7761_v10 = vmul.f32 %v13887_v3, %v13887_v3 }
 0x4ea   :  { %v7638_v45 = vrot.slane %v7637_v8, 4  ;;  %v7652_v12 = vrot.slane %v7651_v9, 4  ;;  %v7644_v13 = vsel %vm7595_vm0, %v7634_v4, 0.0  ;;  %v13902_v15 = vsub.f32 %v13856_v48, %v7752_v5 }
 0x4eb   :  { %v7767_v11 = vrot.slane %v7759_v50, 4  ;;  %v7769_v17 = vrot.slane %v7761_v10, 4  ;;  %v7645_v14 = vrot.slane %v7644_v13, 4  ;;  %v7636_v19 = vmul.f32 %v13892_v6, %v13892_v6 }
 0x4ec   :  { %v7639_v20 = vadd.f32 %v7638_v45, %v7637_v8  ;;  %v7653_v16 = vadd.f32 %v7652_v12, %v7651_v9  ;;  %v7760_v22 = vmul.f32 %v13902_v15, %v13902_v15  ;;  %v7754_v23 = vmul.f32 0.25, %v7750_v7 }
 0x4ed   :  { %v7775_v18 = vsel %vm7595_vm0, %v7767_v11, 0.0  ;;  %v7789_v25 = vsel %vm7595_vm0, %v7769_v17, 0.0  ;;  %v7646_v26 = vadd.f32 %v7645_v14, %v7644_v13  ;;  %v7658_v48 = vsel %vm7595_vm0, %v7636_v19, 0.0 }
 0x4ee   :  { %v7640_v21 = vrot.slane %v7639_v20, 2  ;;  %v7776_v28 = vrot.slane %v7775_v18, 4  ;;  %v7654_v29 = vrot.slane %v7653_v16, 2  ;;  %v7790_v24 = vrot.slane %v7789_v25, 4 }
 0x4ef   :  { %v7647_v31 = vrot.slane %v7646_v26, 2  ;;  %v7768_v32 = vrot.slane %v7760_v22, 4  ;;  %v7659_v33 = vrot.slane %v7658_v48, 4  ;;  %v13912_v34 = vsub.f32 %v13858_v55, %v7754_v23 }
 0x4f0   :  { %v7641_v35 = vadd.f32 %v7640_v21, %v7639_v20  ;;  %v7777_v30 = vadd.f32 %v7776_v28, %v7775_v18  ;;  %v7655_v37 = vadd.f32 %v7654_v29, %v7653_v16  ;;  %v7791_v38 = vadd.f32 %v7790_v24, %v7789_v25 }
 0x4f1   :  { %v7648_v27 = vadd.f32 %v7647_v31, %v7646_v26  ;;  %v7782_v40 = vsel %vm7595_vm0, %v7768_v32, 0.0  ;;  %v7660_v41 = vadd.f32 %v7659_v33, %v7658_v48  ;;  %v7762_v36 = vmul.f32 %v13912_v34, %v13912_v34 }
 0x4f2   :  { %v7642_v43 = vrot.slane %v7641_v35, 1  ;;  %v7778_v44 = vrot.slane %v7777_v30, 2  ;;  %v7656_v39 = vrot.slane %v7655_v37, 1  ;;  %v7792_v46 = vrot.slane %v7791_v38, 2 }
 0x4f3   :  { %v7649_v47 = vrot.slane %v7648_v27, 1  ;;  %v7783_v42 = vrot.slane %v7782_v40, 4  ;;  %v7661_v49 = vrot.slane %v7660_v41, 2  ;;  %v7770_v55 = vrot.slane %v7762_v36, 4 }
 0x4f4   :  { %v7643_v51 = vadd.f32 %v7642_v43, %v7641_v35  ;;  %v7779_v52 = vadd.f32 %v7778_v44, %v7777_v30  ;;  %v7657_v53 = vadd.f32 %v7656_v39, %v7655_v37  ;;  %v7793_v54 = vadd.f32 %v7792_v46, %v7791_v38 }
 0x4f5   :  { %v7650_v57 = vadd.f32 %v7649_v47, %v7648_v27  ;;  %v7784_v59 = vadd.f32 %v7783_v42, %v7782_v40  ;;  %v7662_v61 = vadd.f32 %v7661_v49, %v7660_v41  ;;  %v7796_v62 = vsel %vm7595_vm0, %v7770_v55, 0.0 }
 0x4f6   :  { %v7665_v63 = vmul.f32 0.25, %v7643_v51  ;;  %v7780_v0 = vrot.slane %v7779_v52, 1  ;;  %v7667_v2 = vmul.f32 0.25, %v7657_v53  ;;  %v7794_v4 = vrot.slane %v7793_v54, 1 }
 0x4f7   :  { %v7666_v5 = vmul.f32 0.25, %v7650_v57  ;;  %v7785_v7 = vrot.slane %v7784_v59, 2  ;;  %v7663_v8 = vrot.slane %v7662_v61, 1  ;;  %v7797_v50 = vrot.slane %v7796_v62, 4 }
 0x4f8   :  { %v7669_v9 = vadd.f32 1e-05, %v7665_v63  ;;  %v7781_v10 = vadd.f32 %v7780_v0, %v7779_v52  ;;  %v7671_v45 = vadd.f32 1e-05, %v7667_v2  ;;  %v7795_v12 = vadd.f32 %v7794_v4, %v7793_v54 }
 0x4f9   :  { %v7670_v13 = vadd.f32 1e-05, %v7666_v5  ;;  %v7786_v11 = vadd.f32 %v7785_v7, %v7784_v59  ;;  %v7664_v17 = vadd.f32 %v7663_v8, %v7662_v61  ;;  %v7798_v14 = vadd.f32 %v7797_v50, %v7796_v62 }
 0x4fa   :  { %10605 = vrsqrt.f32 %v7669_v9  ;;  %v7803_v19 = vmul.f32 0.25, %v7781_v10  ;;  %v7805_v20 = vmul.f32 0.25, %v7795_v12 }
 0x4fb   :  { %10607 = vrsqrt.f32 %v7671_v45  ;;  %v7787_v16 = vrot.slane %v7786_v11, 1  ;;  %v7668_v22 = vmul.f32 0.25, %v7664_v17  ;;  %v7799_v23 = vrot.slane %v7798_v14, 2 }
 0x4fc   :  { %v7807_v18 = vadd.f32 1e-05, %v7803_v19  ;;  %v7809_v25 = vadd.f32 1e-05, %v7805_v20  ;;  %10609 = vrsqrt.f32 %v7670_v13 }
 0x4fd   :  { %v7788_v26 = vadd.f32 %v7787_v16, %v7786_v11  ;;  %v7672_v48 = vadd.f32 1e-05, %v7668_v22  ;;  %v7800_v21 = vadd.f32 %v7799_v23, %v7798_v14 }
 0x4fe   :  { %10611 = vrsqrt.f32 %v7807_v18 }
 0x4ff   :  { %10613 = vrsqrt.f32 %v7809_v25  ;;  %v7804_v28 = vmul.f32 0.25, %v7788_v26  ;;  %v7801_v29 = vrot.slane %v7800_v21, 1 }
 0x500   :  { %10615 = vrsqrt.f32 %v7672_v48 }
 0x501   :  { %v7808_v24 = vadd.f32 1e-05, %v7804_v28  ;;  %v7802_v31 = vadd.f32 %v7801_v29, %v7800_v21 }
 0x503   :  { %10617 = vrsqrt.f32 %v7808_v24  ;;  %v7806_v32 = vmul.f32 0.25, %v7802_v31 }
 0x504   :  { %v10606_v33 = vpop.eup %10605 }
 0x505   :  { %v10608_v35 = vpop.eup %10607  ;;  %v7677_v30 = vmul.f32 %v10606_v33, %v13871_v56  ;;  %v7810_v37 = vadd.f32 1e-05, %v7806_v32 }
 0x506   :  { %v10610_v38 = vpop.eup %10609  ;;  %v7679_v27 = vmul.f32 %v10608_v35, %v13874_v58 }
 0x507   :  { %vm7681_vm1 = vcmp.ge.f32.partialorder %v7677_v30, 0.0  ;;  %v7685_v40 = vmul.f32 0.2, %v7677_v30  ;;  %v7678_v41 = vmul.f32 %v10610_v38, %v13877_v60  ;;  %10619 = vrsqrt.f32 %v7810_v37 }
 0x508   :  { %v10612_v36 = vpop.eup %10611  ;;  %v7687_v43 = vmul.f32 0.2, %v7679_v27  ;;  %vm7683_vm3 = vcmp.ge.f32.partialorder %v7679_v27, 0.0 }
 0x509   :  { %v10614_v44 = vpop.eup %10613  ;;  %v7689_v39 = vsel %vm7681_vm1, %v7677_v30, %v7685_v40  ;;  %v7815_v46 = vmul.f32 %v10612_v36, %v13882_v1  ;;  %vm7682_vm2 = vcmp.ge.f32.partialorder %v7678_v41, 0.0  ;;  %v7686_v47 = vmul.f32 0.2, %v7678_v41 }
 0x50a   :  { %v10616_v42 = vpop.eup %10615  ;;  %v7817_v56 = vmul.f32 %v10614_v44, %v13887_v3  ;;  %v7691_v60 = vsel %vm7683_vm3, %v7679_v27, %v7687_v43 }
 0x50b   :  { %v7690_v49 = vsel %vm7682_vm2, %v7678_v41, %v7686_v47  ;;  %v7680_v58 = vmul.f32 %v10616_v42, %v13892_v6  ;;  %v7823_v55 = vmul.f32 0.2, %v7815_v46  ;;  %vm7819_vm4 = vcmp.ge.f32.partialorder %v7815_v46, 0.0 }
 0x50c   :  { %v8913_v51 = vpack.c.bf16 %v7690_v49, %v7689_v39  ;;  %v7825_v54 = vmul.f32 0.2, %v7817_v56  ;;  %vm7821_vm7 = vcmp.ge.f32.partialorder %v7817_v56, 0.0 }
 0x50d   :  { %v10618_v52 = vpop.eup %10617  ;;  %vm7684_vm5 = vcmp.ge.f32.partialorder %v7680_v58, 0.0  ;;  %v7688_v53 = vmul.f32 0.2, %v7680_v58  ;;  %v7827_v59 = vsel %vm7819_vm4, %v7815_v46, %v7823_v55 }
 0x50e   :  { %7709 = vst [vmem:[%s13940_s2] sm:$0x33] %v8913_v51  ;;  %v7816_v1 = vmul.f32 %v10618_v52, %v13902_v15  ;;  %v7829_v2 = vsel %vm7821_vm7, %v7817_v56, %v7825_v54 }
 0x50f   :  { %v7692_v57 = vsel %vm7684_vm5, %v7680_v58, %v7688_v53 }
 0x510   :  { %vm7820_vm6 = vcmp.ge.f32.partialorder %v7816_v1, 0.0  ;;  %v7824_v3 = vmul.f32 0.2, %v7816_v1  ;;  %v8914_v61 = vpack.c.bf16 %v7692_v57, %v7691_v60 }
 0x511   :  { %v10620_v6 = vpop.eup %10619 }
 0x512   :  { %v7828_v62 = vsel %vm7820_vm6, %v7816_v1, %v7824_v3  ;;  %7710 = vst [vmem:[%s13940_s2 + $0x8] sm:$0x33] %v8914_v61  ;;  %v7818_v63 = vmul.f32 %v10620_v6, %v13912_v34 }
 0x513   :  { %v8915_v0 = vpack.c.bf16 %v7828_v62, %v7827_v59 }
 0x514   :  { %vm7822_vm8 = vcmp.ge.f32.partialorder %v7818_v63, 0.0  ;;  %v7826_v4 = vmul.f32 0.2, %v7818_v63 }
 0x515   :  { %7847 = vst [vmem:[%s13940_s2] sm:$0xcc] %v8915_v0 }
 0x516   :  { %v7830_v15 = vsel %vm7822_vm8, %v7818_v63, %v7826_v4 }
 0x517   :  { %v8916_v5 = vpack.c.bf16 %v7830_v15, %v7829_v2 }
 0x519   :  { %7848 = vst [vmem:[%s13940_s2 + $0x8] sm:$0xcc] %v8916_v5 }

// kernel: discriminator_forward.9
= control target key start
LH: loop header
LB: loop body
LE: loop exit
PB: predicated region body
PF: predicated region fallthrough
CT: control target
= control target key end

     0   :  { %s9179_s1 = inlined_call_operand.vmem [shape: bf16[8192,128], index: 1, kind: input, shape index: {}]   ;;  %s9180_s0 = inlined_call_operand.vmem [shape: bf16[8,8192], index: 0, kind: input, shape index: {}]   ;;  %s9181_s2 = inlined_call_operand.vmem [shape: f32[8,128], index: 2, kind: output, shape index: {}]  }
   0x1   :  { %v6929_v0 = vld [vmem:[%s9179_s1 + $0x40] sm:$0xff]   ;;  %v6933_v4 = vld [vmem:[%s9179_s1 + $0x48] sm:$0xff]   ;;  %v6937_v8 = vld [vmem:[%s9179_s1 + $0x50] sm:$0xff]  }
   0x2   :  { %v6930_v1 = vld [vmem:[%s9179_s1 + $0xc0] sm:$0xff]   ;;  %6225 = vmatprep.subr.bf16.mxu0 %v6929_v0  ;;  %v6934_v5 = vld [vmem:[%s9179_s1 + $0xc8] sm:$0xff]   ;;  %v6938_v9 = vld [vmem:[%s9179_s1 + $0xd0] sm:$0xff]  }
   0x3   :  { %v6931_v2 = vld [vmem:[%s9179_s1] sm:$0xff]   ;;  %6247 = vmatprep.subr.bf16.mxu1 %v6930_v1  ;;  %v6935_v6 = vld [vmem:[%s9179_s1 + $0x8] sm:$0xff]   ;;  %v6939_v10 = vld [vmem:[%s9179_s1 + $0x10] sm:$0xff]  }
   0x4   :  { %v6932_v3 = vld [vmem:[%s9179_s1 + $0x80] sm:$0xff]   ;;  %6226 = vmatpush3.bf16.msra.mxu0 %v6931_v2  ;;  %v6936_v7 = vld [vmem:[%s9179_s1 + $0x88] sm:$0xff]   ;;  %v6940_v11 = vld [vmem:[%s9179_s1 + $0x90] sm:$0xff]  }
   0x5   :  { %6248 = vmatpush3.bf16.msra.mxu1 %v6932_v3  ;;  %6227 = vmatprep.subr.bf16.mxu0 %v6933_v4  ;;  %v6941_v12 = vld [vmem:[%s9179_s1 + $0x58] sm:$0xff]   ;;  %v6945_v16 = vld [vmem:[%s9179_s1 + $0x60] sm:$0xff]   ;;  %v6949_v20 = vld [vmem:[%s9179_s1 + $0x68] sm:$0xff]  }
   0x6   :  { %6249 = vmatprep.subr.bf16.mxu1 %v6934_v5  ;;  %v6942_v13 = vld [vmem:[%s9179_s1 + $0xd8] sm:$0xff]   ;;  %v6946_v17 = vld [vmem:[%s9179_s1 + $0xe0] sm:$0xff]   ;;  %v6950_v21 = vld [vmem:[%s9179_s1 + $0xe8] sm:$0xff]  }
   0x7   :  { %v6943_v14 = vld [vmem:[%s9179_s1 + $0x18] sm:$0xff]   ;;  %v6947_v18 = vld [vmem:[%s9179_s1 + $0x20] sm:$0xff]   ;;  %v6951_v22 = vld [vmem:[%s9179_s1 + $0x28] sm:$0xff]  }
   0x8   :  { %6228 = vmatpush3.bf16.msra.mxu0 %v6935_v6  ;;  %v6944_v15 = vld [vmem:[%s9179_s1 + $0x98] sm:$0xff]   ;;  %v6948_v19 = vld [vmem:[%s9179_s1 + $0xa0] sm:$0xff]   ;;  %v6952_v23 = vld [vmem:[%s9179_s1 + $0xa8] sm:$0xff]  }
   0x9   :  { %6250 = vmatpush3.bf16.msra.mxu1 %v6936_v7  ;;  %6229 = vmatprep.subr.bf16.mxu0 %v6937_v8  ;;  %v6953_v24 = vld [vmem:[%s9179_s1 + $0x70] sm:$0xff]   ;;  %v6957_v28 = vld [vmem:[%s9179_s1 + $0x78] sm:$0xff]   ;;  %v12_v32 = vld [vmem:[%s9180_s0] sm:$0xff] }
   0xa   :  { %6251 = vmatprep.subr.bf16.mxu1 %v6938_v9  ;;  %v6954_v25 = vld [vmem:[%s9179_s1 + $0xf0] sm:$0xff]   ;;  %v6958_v29 = vld [vmem:[%s9179_s1 + $0xf8] sm:$0xff]   ;;  %v13_v33 = vld [vmem:[%s9180_s0 + $0x8] sm:$0xff]  ;;  %v5649_v34 = vcombine.low %v12_v32, %v12_v32  ;;  %v5650_v35 = vcombine.high %v12_v32, %v12_v32 }
   0xb   :  { %v6955_v26 = vld [vmem:[%s9179_s1 + $0x30] sm:$0xff]   ;;  %v6959_v30 = vld [vmem:[%s9179_s1 + $0x38] sm:$0xff]   ;;  %v5651_v36 = vcombine.low %v13_v33, %v13_v33  ;;  %v5652_v37 = vcombine.high %v13_v33, %v13_v33  ;;  %v6965_v38 = vld [vmem:[%s9179_s1 + $0x140] sm:$0xff]  }
   0xc   :  { %6230 = vmatpush3.bf16.msra.mxu0 %v6939_v10  ;;  %v6956_v27 = vld [vmem:[%s9179_s1 + $0xb0] sm:$0xff]   ;;  %v6960_v31 = vld [vmem:[%s9179_s1 + $0xb8] sm:$0xff]   ;;  %v6966_v39 = vld [vmem:[%s9179_s1 + $0x1c0] sm:$0xff]   ;;  %4396 = vmatprep.mubr.bf16.mxu0 %v5650_v35 }
   0xd   :  { %6252 = vmatpush3.bf16.msra.mxu1 %v6940_v11  ;;  %6231 = vmatprep.subr.bf16.mxu0 %v6941_v12  ;;  %v6967_v40 = vld [vmem:[%s9179_s1 + $0x100] sm:$0xff]   ;;  %v6969_v42 = vld [vmem:[%s9179_s1 + $0x148] sm:$0xff]   ;;  %v6973_v46 = vld [vmem:[%s9179_s1 + $0x150] sm:$0xff]  }
   0xe   :  { %6253 = vmatprep.subr.bf16.mxu1 %v6942_v13  ;;  %4436 = vmatprep.mubr.bf16.mxu1 %v5652_v37  ;;  %v6968_v41 = vld [vmem:[%s9179_s1 + $0x180] sm:$0xff]   ;;  %v6970_v43 = vld [vmem:[%s9179_s1 + $0x1c8] sm:$0xff]   ;;  %v6974_v47 = vld [vmem:[%s9179_s1 + $0x1d0] sm:$0xff]  }
   0xf   :  { %v6971_v44 = vld [vmem:[%s9179_s1 + $0x108] sm:$0xff]   ;;  %v6975_v48 = vld [vmem:[%s9179_s1 + $0x110] sm:$0xff]   ;;  %v6977_v50 = vld [vmem:[%s9179_s1 + $0x158] sm:$0xff]  }
  0x10   :  { %6232 = vmatpush3.bf16.msra.mxu0 %v6943_v14  ;;  %v6972_v45 = vld [vmem:[%s9179_s1 + $0x188] sm:$0xff]   ;;  %v6976_v49 = vld [vmem:[%s9179_s1 + $0x190] sm:$0xff]   ;;  %v6978_v51 = vld [vmem:[%s9179_s1 + $0x1d8] sm:$0xff]  }
  0x11   :  { %6254 = vmatpush3.bf16.msra.mxu1 %v6944_v15  ;;  %6233 = vmatprep.subr.bf16.mxu0 %v6945_v16  ;;  %v6979_v52 = vld [vmem:[%s9179_s1 + $0x118] sm:$0xff]   ;;  %v6981_v54 = vld [vmem:[%s9179_s1 + $0x160] sm:$0xff]   ;;  %v6985_v58 = vld [vmem:[%s9179_s1 + $0x168] sm:$0xff]  }
  0x12   :  { %6255 = vmatprep.subr.bf16.mxu1 %v6946_v17  ;;  %v6980_v53 = vld [vmem:[%s9179_s1 + $0x198] sm:$0xff]   ;;  %v6982_v55 = vld [vmem:[%s9179_s1 + $0x1e0] sm:$0xff]   ;;  %v6986_v59 = vld [vmem:[%s9179_s1 + $0x1e8] sm:$0xff]  }
  0x13   :  { %v6983_v56 = vld [vmem:[%s9179_s1 + $0x120] sm:$0xff]   ;;  %v6987_v60 = vld [vmem:[%s9179_s1 + $0x128] sm:$0xff]   ;;  %v6989_v62 = vld [vmem:[%s9179_s1 + $0x170] sm:$0xff]  }
  0x14   :  { %6234 = vmatpush3.bf16.msra.mxu0 %v6947_v18  ;;  %v6984_v57 = vld [vmem:[%s9179_s1 + $0x1a0] sm:$0xff]   ;;  %v6988_v61 = vld [vmem:[%s9179_s1 + $0x1a8] sm:$0xff]   ;;  %v6990_v63 = vld [vmem:[%s9179_s1 + $0x1f0] sm:$0xff]  }
  0x15   :  { %6256 = vmatpush3.bf16.msra.mxu1 %v6948_v19  ;;  %6235 = vmatprep.subr.bf16.mxu0 %v6949_v20  ;;  %v6991_v0 = vld [vmem:[%s9179_s1 + $0x130] sm:$0xff]   ;;  %v6993_v2 = vld [vmem:[%s9179_s1 + $0x178] sm:$0xff]   ;;  %v7001_v12 = vld [vmem:[%s9179_s1 + $0x240] sm:$0xff]  }
  0x16   :  { %6257 = vmatprep.subr.bf16.mxu1 %v6950_v21  ;;  %v6992_v1 = vld [vmem:[%s9179_s1 + $0x1b0] sm:$0xff]   ;;  %v6994_v3 = vld [vmem:[%s9179_s1 + $0x1f8] sm:$0xff]   ;;  %v7002_v13 = vld [vmem:[%s9179_s1 + $0x2c0] sm:$0xff]  }
  0x17   :  { %v6995_v4 = vld [vmem:[%s9179_s1 + $0x138] sm:$0xff]   ;;  %v14_v6 = vld [vmem:[%s9180_s0 + $0x10] sm:$0xff]  ;;  %v7003_v14 = vld [vmem:[%s9179_s1 + $0x200] sm:$0xff]  }
  0x18   :  { %6236 = vmatpush3.bf16.msra.mxu0 %v6951_v22  ;;  %v6996_v5 = vld [vmem:[%s9179_s1 + $0x1b8] sm:$0xff]   ;;  %v5653_v7 = vcombine.low %v14_v6, %v14_v6  ;;  %v5654_v8 = vcombine.high %v14_v6, %v14_v6  ;;  %v7004_v15 = vld [vmem:[%s9179_s1 + $0x280] sm:$0xff]   ;;  %v7005_v16 = vld [vmem:[%s9179_s1 + $0x248] sm:$0xff]  }
  0x19   :  { %6258 = vmatpush3.bf16.msra.mxu1 %v6952_v23  ;;  %6237 = vmatprep.subr.bf16.mxu0 %v6953_v24  ;;  %v15_v9 = vld [vmem:[%s9180_s0 + $0x18] sm:$0xff]  ;;  %v7006_v17 = vld [vmem:[%s9179_s1 + $0x2c8] sm:$0xff]   ;;  %v7009_v20 = vld [vmem:[%s9179_s1 + $0x250] sm:$0xff]  }
  0x1a   :  { %6259 = vmatprep.subr.bf16.mxu1 %v6954_v25  ;;  %v5655_v10 = vcombine.low %v15_v9, %v15_v9  ;;  %v5656_v11 = vcombine.high %v15_v9, %v15_v9  ;;  %v7007_v18 = vld [vmem:[%s9179_s1 + $0x208] sm:$0xff]   ;;  %v7010_v21 = vld [vmem:[%s9179_s1 + $0x2d0] sm:$0xff]   ;;  %v7013_v24 = vld [vmem:[%s9179_s1 + $0x258] sm:$0xff]  }
  0x1b   :  { %v7008_v19 = vld [vmem:[%s9179_s1 + $0x288] sm:$0xff]   ;;  %v7011_v22 = vld [vmem:[%s9179_s1 + $0x210] sm:$0xff]   ;;  %v7014_v25 = vld [vmem:[%s9179_s1 + $0x2d8] sm:$0xff]  }
  0x1c   :  { %6238 = vmatpush3.bf16.msra.mxu0 %v6955_v26  ;;  %v7012_v23 = vld [vmem:[%s9179_s1 + $0x290] sm:$0xff]   ;;  %v7015_v26 = vld [vmem:[%s9179_s1 + $0x218] sm:$0xff]   ;;  %v7021_v32 = vld [vmem:[%s9179_s1 + $0x268] sm:$0xff]  }
  0x1d   :  { %6260 = vmatpush3.bf16.msra.mxu1 %v6956_v27  ;;  %6239 = vmatprep.subr.bf16.mxu0 %v6957_v28  ;;  %v7016_v27 = vld [vmem:[%s9179_s1 + $0x298] sm:$0xff]   ;;  %v7017_v28 = vld [vmem:[%s9179_s1 + $0x260] sm:$0xff]   ;;  %v7022_v33 = vld [vmem:[%s9179_s1 + $0x2e8] sm:$0xff]  }
  0x1e   :  { %6261 = vmatprep.subr.bf16.mxu1 %v6958_v29  ;;  %v7018_v29 = vld [vmem:[%s9179_s1 + $0x2e0] sm:$0xff]   ;;  %v7024_v35 = vld [vmem:[%s9179_s1 + $0x2a8] sm:$0xff]   ;;  %v7026_v37 = vld [vmem:[%s9179_s1 + $0x2f0] sm:$0xff]  }
  0x1f   :  { %v7057_v6 = vld [vmem:[%s9179_s1 + $0x368] sm:$0xff]  }
  0x20   :  { %6240 = vmatpush3.bf16.msra.mxu0 %v6959_v30  ;;  %v7019_v30 = vld [vmem:[%s9179_s1 + $0x220] sm:$0xff]   ;;  %v7060_v9 = vld [vmem:[%s9179_s1 + $0x3a8] sm:$0xff]  }
  0x21   :  { %6262 = vmatpush3.bf16.msra.mxu1 %v6960_v31  ;;  %6269 = vmatprep.subr.bf16.mxu0 %v6965_v38  ;;  %v7020_v31 = vld [vmem:[%s9179_s1 + $0x2a0] sm:$0xff]   ;;  %v7027_v38 = vld [vmem:[%s9179_s1 + $0x230] sm:$0xff]  }
  0x22   :  { %6291 = vmatprep.subr.bf16.mxu1 %v6966_v39  ;;  %v7028_v39 = vld [vmem:[%s9179_s1 + $0x2b0] sm:$0xff]  }
  0x23   :  { %4397 = vmatmul.mubr.bf16.vlgmr.msra.gmra.mrb[0].mxu0 %v5649_v34  ;;  %v7023_v34 = vld [vmem:[%s9179_s1 + $0x228] sm:$0xff]  }
  0x24   :  { %4437 = vmatmul.mubr.bf16.vlgmr.msra.gmra.mrb[0].mxu1 %v5651_v36  ;;  %6270 = vmatpush3.bf16.msra.mxu0 %v6967_v40  ;;  %v7025_v36 = vld [vmem:[%s9179_s1 + $0x270] sm:$0xff]   ;;  %v7029_v40 = vld [vmem:[%s9179_s1 + $0x278] sm:$0xff]  }
  0x25   :  { %6292 = vmatpush3.bf16.msra.mxu1 %v6968_v41  ;;  %6271 = vmatprep.subr.bf16.mxu0 %v6969_v42  ;;  %v7030_v41 = vld [vmem:[%s9179_s1 + $0x2f8] sm:$0xff]  }
  0x26   :  { %6293 = vmatprep.subr.bf16.mxu1 %v6970_v43  ;;  %4476 = vmatprep.mubr.bf16.mxu0 %v5654_v8  ;;  %v7031_v42 = vld [vmem:[%s9179_s1 + $0x238] sm:$0xff]   ;;  %v7059_v8 = vld [vmem:[%s9179_s1 + $0x328] sm:$0xff]  }
  0x27   :  { %4516 = vmatprep.mubr.bf16.mxu1 %v5656_v11  ;;  %v7032_v43 = vld [vmem:[%s9179_s1 + $0x2b8] sm:$0xff]   ;;  %v7062_v11 = vld [vmem:[%s9179_s1 + $0x3f0] sm:$0xff]  }
  0x28   :  { %6272 = vmatpush3.bf16.msra.mxu0 %v6971_v44  ;;  %v16_v44 = vld [vmem:[%s9180_s0 + $0x20] sm:$0xff] }
  0x29   :  { %6294 = vmatpush3.bf16.msra.mxu1 %v6972_v45  ;;  %6273 = vmatprep.subr.bf16.mxu0 %v6973_v46  ;;  %v17_v45 = vld [vmem:[%s9180_s0 + $0x28] sm:$0xff]  ;;  %v5657_v46 = vcombine.low %v16_v44, %v16_v44 }
  0x2a   :  { %6295 = vmatprep.subr.bf16.mxu1 %v6974_v47  ;;  %v5658_v47 = vcombine.high %v16_v44, %v16_v44  ;;  %v7093_v44 = vld [vmem:[%s9179_s1 + $0x468] sm:$0xff]  }
  0x2c   :  { %6274 = vmatpush3.bf16.msra.mxu0 %v6975_v48  ;;  %v5659_v48 = vcombine.low %v17_v45, %v17_v45 }
  0x2d   :  { %6296 = vmatpush3.bf16.msra.mxu1 %v6976_v49  ;;  %6275 = vmatprep.subr.bf16.mxu0 %v6977_v50  ;;  %v5660_v49 = vcombine.high %v17_v45, %v17_v45  ;;  %v7037_v50 = vld [vmem:[%s9179_s1 + $0x340] sm:$0xff]   ;;  %v7094_v45 = vld [vmem:[%s9179_s1 + $0x4e8] sm:$0xff]  }
  0x2e   :  { %6297 = vmatprep.subr.bf16.mxu1 %v6978_v51  ;;  %v7038_v51 = vld [vmem:[%s9179_s1 + $0x3c0] sm:$0xff]  }
  0x30   :  { %6276 = vmatpush3.bf16.msra.mxu0 %v6979_v52  ;;  %v7039_v52 = vld [vmem:[%s9179_s1 + $0x300] sm:$0xff]  }
  0x31   :  { %6298 = vmatpush3.bf16.msra.mxu1 %v6980_v53  ;;  %6277 = vmatprep.subr.bf16.mxu0 %v6981_v54  ;;  %v7040_v53 = vld [vmem:[%s9179_s1 + $0x380] sm:$0xff]   ;;  %v7041_v54 = vld [vmem:[%s9179_s1 + $0x348] sm:$0xff]  }
  0x32   :  { %6299 = vmatprep.subr.bf16.mxu1 %v6982_v55  ;;  %v7042_v55 = vld [vmem:[%s9179_s1 + $0x3c8] sm:$0xff]  }
  0x34   :  { %6278 = vmatpush3.bf16.msra.mxu0 %v6983_v56  ;;  %v7043_v56 = vld [vmem:[%s9179_s1 + $0x308] sm:$0xff]  }
  0x35   :  { %6300 = vmatpush3.bf16.msra.mxu1 %v6984_v57  ;;  %6279 = vmatprep.subr.bf16.mxu0 %v6985_v58  ;;  %v7044_v57 = vld [vmem:[%s9179_s1 + $0x388] sm:$0xff]   ;;  %v7045_v58 = vld [vmem:[%s9179_s1 + $0x350] sm:$0xff]  }
  0x36   :  { %6301 = vmatprep.subr.bf16.mxu1 %v6986_v59  ;;  %v7046_v59 = vld [vmem:[%s9179_s1 + $0x3d0] sm:$0xff]  }
  0x38   :  { %6280 = vmatpush3.bf16.msra.mxu0 %v6987_v60  ;;  %v7047_v60 = vld [vmem:[%s9179_s1 + $0x310] sm:$0xff]  }
  0x39   :  { %6302 = vmatpush3.bf16.msra.mxu1 %v6988_v61  ;;  %6281 = vmatprep.subr.bf16.mxu0 %v6989_v62  ;;  %v7048_v61 = vld [vmem:[%s9179_s1 + $0x390] sm:$0xff]   ;;  %v7049_v62 = vld [vmem:[%s9179_s1 + $0x358] sm:$0xff]  }
  0x3a   :  { %6303 = vmatprep.subr.bf16.mxu1 %v6990_v63  ;;  %v7050_v63 = vld [vmem:[%s9179_s1 + $0x3d8] sm:$0xff]  }
  0x3c   :  { %6282 = vmatpush3.bf16.msra.mxu0 %v6991_v0  ;;  %v7051_v0 = vld [vmem:[%s9179_s1 + $0x318] sm:$0xff]  }
  0x3d   :  { %6304 = vmatpush3.bf16.msra.mxu1 %v6992_v1  ;;  %6283 = vmatprep.subr.bf16.mxu0 %v6993_v2  ;;  %v7052_v1 = vld [vmem:[%s9179_s1 + $0x398] sm:$0xff]   ;;  %v7053_v2 = vld [vmem:[%s9179_s1 + $0x360] sm:$0xff]  }
  0x3e   :  { %6305 = vmatprep.subr.bf16.mxu1 %v6994_v3  ;;  %v7054_v3 = vld [vmem:[%s9179_s1 + $0x3e0] sm:$0xff]  }
  0x40   :  { %6284 = vmatpush3.bf16.msra.mxu0 %v6995_v4  ;;  %v7055_v4 = vld [vmem:[%s9179_s1 + $0x320] sm:$0xff]  }
  0x41   :  { %6306 = vmatpush3.bf16.msra.mxu1 %v6996_v5  ;;  %6313 = vmatprep.subr.bf16.mxu0 %v7001_v12  ;;  %v7056_v5 = vld [vmem:[%s9179_s1 + $0x3a0] sm:$0xff]   ;;  %v7063_v12 = vld [vmem:[%s9179_s1 + $0x330] sm:$0xff]  }
  0x42   :  { %6335 = vmatprep.subr.bf16.mxu1 %v7002_v13  ;;  %v7064_v13 = vld [vmem:[%s9179_s1 + $0x3b0] sm:$0xff]  }
  0x43   :  { %4477 = vmatmul.mubr.bf16.vlgmr.msra.gmra.mrb[4].mxu0 %v5653_v7  ;;  %v7058_v7 = vld [vmem:[%s9179_s1 + $0x3e8] sm:$0xff]  }
  0x44   :  { %4517 = vmatmul.mubr.bf16.vlgmr.msra.gmra.mrb[4].mxu1 %v5655_v10  ;;  %6314 = vmatpush3.bf16.msra.mxu0 %v7003_v14  ;;  %v7061_v10 = vld [vmem:[%s9179_s1 + $0x370] sm:$0xff]   ;;  %v7065_v14 = vld [vmem:[%s9179_s1 + $0x378] sm:$0xff]  }
  0x45   :  { %6336 = vmatpush3.bf16.msra.mxu1 %v7004_v15  ;;  %6315 = vmatprep.subr.bf16.mxu0 %v7005_v16  ;;  %v7066_v15 = vld [vmem:[%s9179_s1 + $0x3f8] sm:$0xff]  }
  0x46   :  { %6337 = vmatprep.subr.bf16.mxu1 %v7006_v17  ;;  %4556 = vmatprep.mubr.bf16.mxu0 %v5658_v47  ;;  %v7067_v16 = vld [vmem:[%s9179_s1 + $0x338] sm:$0xff]   ;;  %v7096_v47 = vld [vmem:[%s9179_s1 + $0x4a8] sm:$0xff]  }
  0x47   :  { %4596 = vmatprep.mubr.bf16.mxu1 %v5660_v49  ;;  %v7068_v17 = vld [vmem:[%s9179_s1 + $0x3b8] sm:$0xff]   ;;  %v7098_v49 = vld [vmem:[%s9179_s1 + $0x4f0] sm:$0xff]  }
  0x48   :  { %6316 = vmatpush3.bf16.msra.mxu0 %v7007_v18  ;;  %v18_v18 = vld [vmem:[%s9180_s0 + $0x30] sm:$0xff] }
  0x49   :  { %6338 = vmatpush3.bf16.msra.mxu1 %v7008_v19  ;;  %6317 = vmatprep.subr.bf16.mxu0 %v7009_v20  ;;  %v19_v19 = vld [vmem:[%s9180_s0 + $0x38] sm:$0xff]  ;;  %v5661_v20 = vcombine.low %v18_v18, %v18_v18 }
  0x4a   :  { %6339 = vmatprep.subr.bf16.mxu1 %v7010_v21  ;;  %v5662_v21 = vcombine.high %v18_v18, %v18_v18  ;;  %v7129_v18 = vld [vmem:[%s9179_s1 + $0x568] sm:$0xff]  }
  0x4c   :  { %6318 = vmatpush3.bf16.msra.mxu0 %v7011_v22  ;;  %v5663_v22 = vcombine.low %v19_v19, %v19_v19 }
  0x4d   :  { %6340 = vmatpush3.bf16.msra.mxu1 %v7012_v23  ;;  %6319 = vmatprep.subr.bf16.mxu0 %v7013_v24  ;;  %v7073_v23 = vld [vmem:[%s9179_s1 + $0x440] sm:$0xff]   ;;  %v5664_v24 = vcombine.high %v19_v19, %v19_v19  ;;  %v7130_v19 = vld [vmem:[%s9179_s1 + $0x5e8] sm:$0xff]  }
  0x4e   :  { %6341 = vmatprep.subr.bf16.mxu1 %v7014_v25  ;;  %v7074_v25 = vld [vmem:[%s9179_s1 + $0x4c0] sm:$0xff]  }
  0x50   :  { %6320 = vmatpush3.bf16.msra.mxu0 %v7015_v26  ;;  %v7075_v26 = vld [vmem:[%s9179_s1 + $0x400] sm:$0xff]  }
  0x51   :  { %6342 = vmatpush3.bf16.msra.mxu1 %v7016_v27  ;;  %6321 = vmatprep.subr.bf16.mxu0 %v7017_v28  ;;  %v7076_v27 = vld [vmem:[%s9179_s1 + $0x480] sm:$0xff]   ;;  %v7077_v28 = vld [vmem:[%s9179_s1 + $0x448] sm:$0xff]  }
  0x52   :  { %6343 = vmatprep.subr.bf16.mxu1 %v7018_v29  ;;  %v7078_v29 = vld [vmem:[%s9179_s1 + $0x4c8] sm:$0xff]  }
  0x54   :  { %6322 = vmatpush3.bf16.msra.mxu0 %v7019_v30  ;;  %v7079_v30 = vld [vmem:[%s9179_s1 + $0x408] sm:$0xff]  }
  0x55   :  { %6344 = vmatpush3.bf16.msra.mxu1 %v7020_v31  ;;  %6323 = vmatprep.subr.bf16.mxu0 %v7021_v32  ;;  %v7080_v31 = vld [vmem:[%s9179_s1 + $0x488] sm:$0xff]   ;;  %v7081_v32 = vld [vmem:[%s9179_s1 + $0x450] sm:$0xff]  }
  0x56   :  { %6345 = vmatprep.subr.bf16.mxu1 %v7022_v33  ;;  %v7082_v33 = vld [vmem:[%s9179_s1 + $0x4d0] sm:$0xff]  }
  0x58   :  { %6324 = vmatpush3.bf16.msra.mxu0 %v7023_v34  ;;  %v7083_v34 = vld [vmem:[%s9179_s1 + $0x410] sm:$0xff]  }
  0x59   :  { %6346 = vmatpush3.bf16.msra.mxu1 %v7024_v35  ;;  %6325 = vmatprep.subr.bf16.mxu0 %v7025_v36  ;;  %v7084_v35 = vld [vmem:[%s9179_s1 + $0x490] sm:$0xff]   ;;  %v7085_v36 = vld [vmem:[%s9179_s1 + $0x458] sm:$0xff]  }
  0x5a   :  { %6347 = vmatprep.subr.bf16.mxu1 %v7026_v37  ;;  %v7086_v37 = vld [vmem:[%s9179_s1 + $0x4d8] sm:$0xff]  }
  0x5c   :  { %6326 = vmatpush3.bf16.msra.mxu0 %v7027_v38  ;;  %v7087_v38 = vld [vmem:[%s9179_s1 + $0x418] sm:$0xff]  }
  0x5d   :  { %6348 = vmatpush3.bf16.msra.mxu1 %v7028_v39  ;;  %6327 = vmatprep.subr.bf16.mxu0 %v7029_v40  ;;  %v7088_v39 = vld [vmem:[%s9179_s1 + $0x498] sm:$0xff]   ;;  %v7089_v40 = vld [vmem:[%s9179_s1 + $0x460] sm:$0xff]  }
  0x5e   :  { %6349 = vmatprep.subr.bf16.mxu1 %v7030_v41  ;;  %v7090_v41 = vld [vmem:[%s9179_s1 + $0x4e0] sm:$0xff]  }
  0x60   :  { %6328 = vmatpush3.bf16.msra.mxu0 %v7031_v42  ;;  %v7091_v42 = vld [vmem:[%s9179_s1 + $0x420] sm:$0xff]  }
  0x61   :  { %6350 = vmatpush3.bf16.msra.mxu1 %v7032_v43  ;;  %6357 = vmatprep.subr.bf16.mxu0 %v7037_v50  ;;  %v7092_v43 = vld [vmem:[%s9179_s1 + $0x4a0] sm:$0xff]   ;;  %v7099_v50 = vld [vmem:[%s9179_s1 + $0x430] sm:$0xff]  }
  0x62   :  { %6379 = vmatprep.subr.bf16.mxu1 %v7038_v51  ;;  %v7100_v51 = vld [vmem:[%s9179_s1 + $0x4b0] sm:$0xff]  }
  0x63   :  { %4557 = vmatmul.mubr.bf16.vlgmr.msra.gmra.mrb[8].mxu0 %v5657_v46  ;;  %v7095_v46 = vld [vmem:[%s9179_s1 + $0x428] sm:$0xff]  }
  0x64   :  { %4597 = vmatmul.mubr.bf16.vlgmr.msra.gmra.mrb[8].mxu1 %v5659_v48  ;;  %6358 = vmatpush3.bf16.msra.mxu0 %v7039_v52  ;;  %v7097_v48 = vld [vmem:[%s9179_s1 + $0x470] sm:$0xff]   ;;  %v7101_v52 = vld [vmem:[%s9179_s1 + $0x478] sm:$0xff]  }
  0x65   :  { %6380 = vmatpush3.bf16.msra.mxu1 %v7040_v53  ;;  %6359 = vmatprep.subr.bf16.mxu0 %v7041_v54  ;;  %v7102_v53 = vld [vmem:[%s9179_s1 + $0x4f8] sm:$0xff]  }
  0x66   :  { %6381 = vmatprep.subr.bf16.mxu1 %v7042_v55  ;;  %4636 = vmatprep.mubr.bf16.mxu0 %v5662_v21  ;;  %v7103_v54 = vld [vmem:[%s9179_s1 + $0x438] sm:$0xff]   ;;  %v7132_v21 = vld [vmem:[%s9179_s1 + $0x5a8] sm:$0xff]  }
  0x67   :  { %4676 = vmatprep.mubr.bf16.mxu1 %v5664_v24  ;;  %v7104_v55 = vld [vmem:[%s9179_s1 + $0x4b8] sm:$0xff]   ;;  %v7135_v24 = vld [vmem:[%s9179_s1 + $0x530] sm:$0xff]  }
  0x68   :  { %6360 = vmatpush3.bf16.msra.mxu0 %v7043_v56  ;;  %v20_v56 = vld [vmem:[%s9180_s0 + $0x40] sm:$0xff] }
  0x69   :  { %6382 = vmatpush3.bf16.msra.mxu1 %v7044_v57  ;;  %6361 = vmatprep.subr.bf16.mxu0 %v7045_v58  ;;  %v5665_v57 = vcombine.low %v20_v56, %v20_v56  ;;  %v5666_v58 = vcombine.high %v20_v56, %v20_v56  ;;  %v7165_v56 = vld [vmem:[%s9179_s1 + $0x668] sm:$0xff]  }
  0x6a   :  { %6383 = vmatprep.subr.bf16.mxu1 %v7046_v59  ;;  %v21_v59 = vld [vmem:[%s9180_s0 + $0x48] sm:$0xff] }
  0x6c   :  { %6362 = vmatpush3.bf16.msra.mxu0 %v7047_v60  ;;  %v5667_v60 = vcombine.low %v21_v59, %v21_v59 }
  0x6d   :  { %6384 = vmatpush3.bf16.msra.mxu1 %v7048_v61  ;;  %6363 = vmatprep.subr.bf16.mxu0 %v7049_v62  ;;  %v5668_v61 = vcombine.high %v21_v59, %v21_v59  ;;  %v7109_v62 = vld [vmem:[%s9179_s1 + $0x540] sm:$0xff]   ;;  %v7168_v59 = vld [vmem:[%s9179_s1 + $0x6a8] sm:$0xff]  }
  0x6e   :  { %6385 = vmatprep.subr.bf16.mxu1 %v7050_v63  ;;  %v7110_v63 = vld [vmem:[%s9179_s1 + $0x5c0] sm:$0xff]  }
  0x70   :  { %6364 = vmatpush3.bf16.msra.mxu0 %v7051_v0  ;;  %v7111_v0 = vld [vmem:[%s9179_s1 + $0x500] sm:$0xff]  }
  0x71   :  { %6386 = vmatpush3.bf16.msra.mxu1 %v7052_v1  ;;  %6365 = vmatprep.subr.bf16.mxu0 %v7053_v2  ;;  %v7112_v1 = vld [vmem:[%s9179_s1 + $0x580] sm:$0xff]   ;;  %v7113_v2 = vld [vmem:[%s9179_s1 + $0x548] sm:$0xff]  }
  0x72   :  { %6387 = vmatprep.subr.bf16.mxu1 %v7054_v3  ;;  %v7114_v3 = vld [vmem:[%s9179_s1 + $0x5c8] sm:$0xff]  }
  0x74   :  { %6366 = vmatpush3.bf16.msra.mxu0 %v7055_v4  ;;  %v7115_v4 = vld [vmem:[%s9179_s1 + $0x508] sm:$0xff]  }
  0x75   :  { %6388 = vmatpush3.bf16.msra.mxu1 %v7056_v5  ;;  %6367 = vmatprep.subr.bf16.mxu0 %v7057_v6  ;;  %v7116_v5 = vld [vmem:[%s9179_s1 + $0x588] sm:$0xff]   ;;  %v7117_v6 = vld [vmem:[%s9179_s1 + $0x550] sm:$0xff]  }
  0x76   :  { %6389 = vmatprep.subr.bf16.mxu1 %v7058_v7  ;;  %v7118_v7 = vld [vmem:[%s9179_s1 + $0x5d0] sm:$0xff]  }
  0x78   :  { %6368 = vmatpush3.bf16.msra.mxu0 %v7059_v8  ;;  %v7119_v8 = vld [vmem:[%s9179_s1 + $0x510] sm:$0xff]  }
  0x79   :  { %6390 = vmatpush3.bf16.msra.mxu1 %v7060_v9  ;;  %6369 = vmatprep.subr.bf16.mxu0 %v7061_v10  ;;  %v7120_v9 = vld [vmem:[%s9179_s1 + $0x590] sm:$0xff]   ;;  %v7121_v10 = vld [vmem:[%s9179_s1 + $0x558] sm:$0xff]  }
  0x7a   :  { %6391 = vmatprep.subr.bf16.mxu1 %v7062_v11  ;;  %v7122_v11 = vld [vmem:[%s9179_s1 + $0x5d8] sm:$0xff]  }
  0x7c   :  { %6370 = vmatpush3.bf16.msra.mxu0 %v7063_v12  ;;  %v7123_v12 = vld [vmem:[%s9179_s1 + $0x518] sm:$0xff]  }
  0x7d   :  { %6392 = vmatpush3.bf16.msra.mxu1 %v7064_v13  ;;  %6371 = vmatprep.subr.bf16.mxu0 %v7065_v14  ;;  %v7124_v13 = vld [vmem:[%s9179_s1 + $0x598] sm:$0xff]   ;;  %v7125_v14 = vld [vmem:[%s9179_s1 + $0x560] sm:$0xff]  }
  0x7e   :  { %6393 = vmatprep.subr.bf16.mxu1 %v7066_v15  ;;  %v7126_v15 = vld [vmem:[%s9179_s1 + $0x5e0] sm:$0xff]  }
  0x80   :  { %6372 = vmatpush3.bf16.msra.mxu0 %v7067_v16  ;;  %v7127_v16 = vld [vmem:[%s9179_s1 + $0x520] sm:$0xff]  }
  0x81   :  { %6394 = vmatpush3.bf16.msra.mxu1 %v7068_v17  ;;  %6401 = vmatprep.subr.bf16.mxu0 %v7073_v23  ;;  %v7128_v17 = vld [vmem:[%s9179_s1 + $0x5a0] sm:$0xff]   ;;  %v7134_v23 = vld [vmem:[%s9179_s1 + $0x5f0] sm:$0xff]  }
  0x82   :  { %6423 = vmatprep.subr.bf16.mxu1 %v7074_v25  ;;  %v7136_v25 = vld [vmem:[%s9179_s1 + $0x5b0] sm:$0xff]  }
  0x83   :  { %4637 = vmatmul.mubr.bf16.vlgmr.msra.gmra.mrb[12].mxu0 %v5661_v20  ;;  %v7131_v20 = vld [vmem:[%s9179_s1 + $0x528] sm:$0xff]  }
  0x84   :  { %4677 = vmatmul.mubr.bf16.vlgmr.msra.gmra.mrb[12].mxu1 %v5663_v22  ;;  %6402 = vmatpush3.bf16.msra.mxu0 %v7075_v26  ;;  %v7133_v22 = vld [vmem:[%s9179_s1 + $0x570] sm:$0xff]   ;;  %v7137_v26 = vld [vmem:[%s9179_s1 + $0x578] sm:$0xff]  }
  0x85   :  { %6424 = vmatpush3.bf16.msra.mxu1 %v7076_v27  ;;  %6403 = vmatprep.subr.bf16.mxu0 %v7077_v28  ;;  %v7138_v27 = vld [vmem:[%s9179_s1 + $0x5f8] sm:$0xff]  }
  0x86   :  { %6425 = vmatprep.subr.bf16.mxu1 %v7078_v29  ;;  %4716 = vmatprep.mubr.bf16.mxu0 %v5666_v58  ;;  %v7139_v28 = vld [vmem:[%s9179_s1 + $0x538] sm:$0xff]   ;;  %v7167_v58 = vld [vmem:[%s9179_s1 + $0x628] sm:$0xff]  }
  0x87   :  { %4756 = vmatprep.mubr.bf16.mxu1 %v5668_v61  ;;  %v7140_v29 = vld [vmem:[%s9179_s1 + $0x5b8] sm:$0xff]   ;;  %v7170_v61 = vld [vmem:[%s9179_s1 + $0x6f0] sm:$0xff]  }
  0x88   :  { %6404 = vmatpush3.bf16.msra.mxu0 %v7079_v30  ;;  %v22_v30 = vld [vmem:[%s9180_s0 + $0x50] sm:$0xff] }
  0x89   :  { %6426 = vmatpush3.bf16.msra.mxu1 %v7080_v31  ;;  %6405 = vmatprep.subr.bf16.mxu0 %v7081_v32  ;;  %v23_v31 = vld [vmem:[%s9180_s0 + $0x58] sm:$0xff]  ;;  %v5669_v32 = vcombine.low %v22_v30, %v22_v30 }
  0x8a   :  { %6427 = vmatprep.subr.bf16.mxu1 %v7082_v33  ;;  %v5670_v33 = vcombine.high %v22_v30, %v22_v30  ;;  %v7200_v30 = vld [vmem:[%s9179_s1 + $0x7a0] sm:$0xff]  }
  0x8c   :  { %6406 = vmatpush3.bf16.msra.mxu0 %v7083_v34  ;;  %v5671_v34 = vcombine.low %v23_v31, %v23_v31 }
  0x8d   :  { %6428 = vmatpush3.bf16.msra.mxu1 %v7084_v35  ;;  %6407 = vmatprep.subr.bf16.mxu0 %v7085_v36  ;;  %v5672_v35 = vcombine.high %v23_v31, %v23_v31  ;;  %v7145_v36 = vld [vmem:[%s9179_s1 + $0x640] sm:$0xff]  }
  0x8e   :  { %6429 = vmatprep.subr.bf16.mxu1 %v7086_v37  ;;  %v7146_v37 = vld [vmem:[%s9179_s1 + $0x6c0] sm:$0xff]  }
  0x90   :  { %6408 = vmatpush3.bf16.msra.mxu0 %v7087_v38  ;;  %v7147_v38 = vld [vmem:[%s9179_s1 + $0x600] sm:$0xff]  }
  0x91   :  { %6430 = vmatpush3.bf16.msra.mxu1 %v7088_v39  ;;  %6409 = vmatprep.subr.bf16.mxu0 %v7089_v40  ;;  %v7148_v39 = vld [vmem:[%s9179_s1 + $0x680] sm:$0xff]   ;;  %v7149_v40 = vld [vmem:[%s9179_s1 + $0x648] sm:$0xff]  }
  0x92   :  { %6431 = vmatprep.subr.bf16.mxu1 %v7090_v41  ;;  %v7150_v41 = vld [vmem:[%s9179_s1 + $0x6c8] sm:$0xff]  }
  0x94   :  { %6410 = vmatpush3.bf16.msra.mxu0 %v7091_v42  ;;  %v7151_v42 = vld [vmem:[%s9179_s1 + $0x608] sm:$0xff]  }
  0x95   :  { %6432 = vmatpush3.bf16.msra.mxu1 %v7092_v43  ;;  %6411 = vmatprep.subr.bf16.mxu0 %v7093_v44  ;;  %v7152_v43 = vld [vmem:[%s9179_s1 + $0x688] sm:$0xff]   ;;  %v7153_v44 = vld [vmem:[%s9179_s1 + $0x650] sm:$0xff]  }
  0x96   :  { %6433 = vmatprep.subr.bf16.mxu1 %v7094_v45  ;;  %v7154_v45 = vld [vmem:[%s9179_s1 + $0x6d0] sm:$0xff]  }
  0x98   :  { %6412 = vmatpush3.bf16.msra.mxu0 %v7095_v46  ;;  %v7155_v46 = vld [vmem:[%s9179_s1 + $0x610] sm:$0xff]  }
  0x99   :  { %6434 = vmatpush3.bf16.msra.mxu1 %v7096_v47  ;;  %6413 = vmatprep.subr.bf16.mxu0 %v7097_v48  ;;  %v7156_v47 = vld [vmem:[%s9179_s1 + $0x690] sm:$0xff]   ;;  %v7157_v48 = vld [vmem:[%s9179_s1 + $0x658] sm:$0xff]  }
  0x9a   :  { %6435 = vmatprep.subr.bf16.mxu1 %v7098_v49  ;;  %v7158_v49 = vld [vmem:[%s9179_s1 + $0x6d8] sm:$0xff]  }
  0x9c   :  { %6414 = vmatpush3.bf16.msra.mxu0 %v7099_v50  ;;  %v7159_v50 = vld [vmem:[%s9179_s1 + $0x618] sm:$0xff]  }
  0x9d   :  { %6436 = vmatpush3.bf16.msra.mxu1 %v7100_v51  ;;  %6415 = vmatprep.subr.bf16.mxu0 %v7101_v52  ;;  %v7160_v51 = vld [vmem:[%s9179_s1 + $0x698] sm:$0xff]   ;;  %v7161_v52 = vld [vmem:[%s9179_s1 + $0x660] sm:$0xff]  }
  0x9e   :  { %6437 = vmatprep.subr.bf16.mxu1 %v7102_v53  ;;  %v7162_v53 = vld [vmem:[%s9179_s1 + $0x6e0] sm:$0xff]  }
  0xa0   :  { %6416 = vmatpush3.bf16.msra.mxu0 %v7103_v54  ;;  %v7163_v54 = vld [vmem:[%s9179_s1 + $0x620] sm:$0xff]  }
  0xa1   :  { %6438 = vmatpush3.bf16.msra.mxu1 %v7104_v55  ;;  %6445 = vmatprep.subr.bf16.mxu0 %v7109_v62  ;;  %v7164_v55 = vld [vmem:[%s9179_s1 + $0x6a0] sm:$0xff]   ;;  %v7171_v62 = vld [vmem:[%s9179_s1 + $0x630] sm:$0xff]  }
  0xa2   :  { %6467 = vmatprep.subr.bf16.mxu1 %v7110_v63  ;;  %v7172_v63 = vld [vmem:[%s9179_s1 + $0x6b0] sm:$0xff]  }
  0xa3   :  { %4717 = vmatmul.mubr.bf16.vlgmr.msra.gmra.mrb[16].mxu0 %v5665_v57  ;;  %v7166_v57 = vld [vmem:[%s9179_s1 + $0x6e8] sm:$0xff]  }
  0xa4   :  { %4757 = vmatmul.mubr.bf16.vlgmr.msra.gmra.mrb[16].mxu1 %v5667_v60  ;;  %6446 = vmatpush3.bf16.msra.mxu0 %v7111_v0  ;;  %v7169_v60 = vld [vmem:[%s9179_s1 + $0x670] sm:$0xff]   ;;  %v7173_v0 = vld [vmem:[%s9179_s1 + $0x678] sm:$0xff]  }
  0xa5   :  { %6468 = vmatpush3.bf16.msra.mxu1 %v7112_v1  ;;  %6447 = vmatprep.subr.bf16.mxu0 %v7113_v2  ;;  %v7174_v1 = vld [vmem:[%s9179_s1 + $0x6f8] sm:$0xff]  }
  0xa6   :  { %6469 = vmatprep.subr.bf16.mxu1 %v7114_v3  ;;  %4796 = vmatprep.mubr.bf16.mxu0 %v5670_v33  ;;  %v7175_v2 = vld [vmem:[%s9179_s1 + $0x638] sm:$0xff]   ;;  %v7201_v33 = vld [vmem:[%s9179_s1 + $0x768] sm:$0xff]  }
  0xa7   :  { %4836 = vmatprep.mubr.bf16.mxu1 %v5672_v35  ;;  %v7176_v3 = vld [vmem:[%s9179_s1 + $0x6b8] sm:$0xff]  }
  0xa8   :  { %6448 = vmatpush3.bf16.msra.mxu0 %v7115_v4  ;;  %v24_v4 = vld [vmem:[%s9180_s0 + $0x60] sm:$0xff] }
  0xa9   :  { %6470 = vmatpush3.bf16.msra.mxu1 %v7116_v5  ;;  %6449 = vmatprep.subr.bf16.mxu0 %v7117_v6  ;;  %v25_v5 = vld [vmem:[%s9180_s0 + $0x68] sm:$0xff]  ;;  %v5673_v6 = vcombine.low %v24_v4, %v24_v4 }
  0xaa   :  { %6471 = vmatprep.subr.bf16.mxu1 %v7118_v7  ;;  %v5674_v7 = vcombine.high %v24_v4, %v24_v4  ;;  %v7226_v4 = vld [vmem:[%s9179_s1 + $0x8d0] sm:$0xff]  }
  0xac   :  { %6450 = vmatpush3.bf16.msra.mxu0 %v7119_v8  ;;  %v5675_v8 = vcombine.low %v25_v5, %v25_v5 }
  0xad   :  { %6472 = vmatpush3.bf16.msra.mxu1 %v7120_v9  ;;  %6451 = vmatprep.subr.bf16.mxu0 %v7121_v10  ;;  %v7181_v9 = vld [vmem:[%s9179_s1 + $0x740] sm:$0xff]   ;;  %v5676_v10 = vcombine.high %v25_v5, %v25_v5  ;;  %v7227_v5 = vld [vmem:[%s9179_s1 + $0x810] sm:$0xff]  }
  0xae   :  { %6473 = vmatprep.subr.bf16.mxu1 %v7122_v11  ;;  %v7182_v11 = vld [vmem:[%s9179_s1 + $0x7c0] sm:$0xff]  }
  0xb0   :  { %6452 = vmatpush3.bf16.msra.mxu0 %v7123_v12  ;;  %v7183_v12 = vld [vmem:[%s9179_s1 + $0x700] sm:$0xff]  }
  0xb1   :  { %6474 = vmatpush3.bf16.msra.mxu1 %v7124_v13  ;;  %6453 = vmatprep.subr.bf16.mxu0 %v7125_v14  ;;  %v7184_v13 = vld [vmem:[%s9179_s1 + $0x780] sm:$0xff]   ;;  %v7185_v14 = vld [vmem:[%s9179_s1 + $0x748] sm:$0xff]  }
  0xb2   :  { %6475 = vmatprep.subr.bf16.mxu1 %v7126_v15  ;;  %v7186_v15 = vld [vmem:[%s9179_s1 + $0x7c8] sm:$0xff]  }
  0xb4   :  { %6454 = vmatpush3.bf16.msra.mxu0 %v7127_v16  ;;  %v7187_v16 = vld [vmem:[%s9179_s1 + $0x708] sm:$0xff]  }
  0xb5   :  { %6476 = vmatpush3.bf16.msra.mxu1 %v7128_v17  ;;  %6455 = vmatprep.subr.bf16.mxu0 %v7129_v18  ;;  %v7188_v17 = vld [vmem:[%s9179_s1 + $0x788] sm:$0xff]   ;;  %v7189_v18 = vld [vmem:[%s9179_s1 + $0x750] sm:$0xff]  }
  0xb6   :  { %6477 = vmatprep.subr.bf16.mxu1 %v7130_v19  ;;  %v7190_v19 = vld [vmem:[%s9179_s1 + $0x7d0] sm:$0xff]  }
  0xb8   :  { %6456 = vmatpush3.bf16.msra.mxu0 %v7131_v20  ;;  %v7191_v20 = vld [vmem:[%s9179_s1 + $0x710] sm:$0xff]  }
  0xb9   :  { %6478 = vmatpush3.bf16.msra.mxu1 %v7132_v21  ;;  %6457 = vmatprep.subr.bf16.mxu0 %v7133_v22  ;;  %v7192_v21 = vld [vmem:[%s9179_s1 + $0x790] sm:$0xff]   ;;  %v7193_v22 = vld [vmem:[%s9179_s1 + $0x758] sm:$0xff]  }
  0xba   :  { %6479 = vmatprep.subr.bf16.mxu1 %v7134_v23  ;;  %v7194_v23 = vld [vmem:[%s9179_s1 + $0x7d8] sm:$0xff]  }
  0xbc   :  { %6458 = vmatpush3.bf16.msra.mxu0 %v7135_v24  ;;  %v7195_v24 = vld [vmem:[%s9179_s1 + $0x718] sm:$0xff]  }
  0xbd   :  { %6480 = vmatpush3.bf16.msra.mxu1 %v7136_v25  ;;  %6459 = vmatprep.subr.bf16.mxu0 %v7137_v26  ;;  %v7196_v25 = vld [vmem:[%s9179_s1 + $0x798] sm:$0xff]   ;;  %v7197_v26 = vld [vmem:[%s9179_s1 + $0x760] sm:$0xff]  }
  0xbe   :  { %6481 = vmatprep.subr.bf16.mxu1 %v7138_v27  ;;  %v7198_v27 = vld [vmem:[%s9179_s1 + $0x7e0] sm:$0xff]  }
  0xc0   :  { %6460 = vmatpush3.bf16.msra.mxu0 %v7139_v28  ;;  %v7199_v28 = vld [vmem:[%s9179_s1 + $0x720] sm:$0xff]  }
  0xc1   :  { %6482 = vmatpush3.bf16.msra.mxu1 %v7140_v29  ;;  %6489 = vmatprep.subr.bf16.mxu0 %v7145_v36  ;;  %v7202_v36 = vld [vmem:[%s9179_s1 + $0x7e8] sm:$0xff]  }
  0xc2   :  { %6511 = vmatprep.subr.bf16.mxu1 %v7146_v37 }
  0xc3   :  { %4797 = vmatmul.mubr.bf16.vlgmr.msra.gmra.mrb[20].mxu0 %v5669_v32 }
  0xc4   :  { %4837 = vmatmul.mubr.bf16.vlgmr.msra.gmra.mrb[20].mxu1 %v5671_v34  ;;  %6490 = vmatpush3.bf16.msra.mxu0 %v7147_v38 }
  0xc5   :  { %6512 = vmatpush3.bf16.msra.mxu1 %v7148_v39  ;;  %6491 = vmatprep.subr.bf16.mxu0 %v7149_v40  ;;  %v7203_v40 = vld [vmem:[%s9179_s1 + $0x728] sm:$0xff]  }
  0xc6   :  { %6513 = vmatprep.subr.bf16.mxu1 %v7150_v41  ;;  %4876 = vmatprep.mubr.bf16.mxu0 %v5674_v7  ;;  %v7229_v7 = vld [vmem:[%s9179_s1 + $0x858] sm:$0xff]  }
  0xc7   :  { %4916 = vmatprep.mubr.bf16.mxu1 %v5676_v10  ;;  %v7232_v10 = vld [vmem:[%s9179_s1 + $0x898] sm:$0xff]  }
  0xc8   :  { %6492 = vmatpush3.bf16.msra.mxu0 %v7151_v42 }
  0xc9   :  { %6514 = vmatpush3.bf16.msra.mxu1 %v7152_v43  ;;  %6493 = vmatprep.subr.bf16.mxu0 %v7153_v44  ;;  %v7204_v43 = vld [vmem:[%s9179_s1 + $0x7a8] sm:$0xff]  }
  0xca   :  { %6515 = vmatprep.subr.bf16.mxu1 %v7154_v45  ;;  %v7205_v45 = vld [vmem:[%s9179_s1 + $0x770] sm:$0xff]  }
  0xcc   :  { %6494 = vmatpush3.bf16.msra.mxu0 %v7155_v46  ;;  %v7206_v46 = vld [vmem:[%s9179_s1 + $0x7f0] sm:$0xff]  }
  0xcd   :  { %6516 = vmatpush3.bf16.msra.mxu1 %v7156_v47  ;;  %6495 = vmatprep.subr.bf16.mxu0 %v7157_v48  ;;  %v7207_v47 = vld [vmem:[%s9179_s1 + $0x730] sm:$0xff]  }
  0xce   :  { %6517 = vmatprep.subr.bf16.mxu1 %v7158_v49  ;;  %v7208_v48 = vld [vmem:[%s9179_s1 + $0x7b0] sm:$0xff]   ;;  %v7209_v49 = vld [vmem:[%s9179_s1 + $0x778] sm:$0xff]  }
  0xd0   :  { %6496 = vmatpush3.bf16.msra.mxu0 %v7159_v50  ;;  %v7210_v50 = vld [vmem:[%s9179_s1 + $0x7f8] sm:$0xff]  }
  0xd1   :  { %6518 = vmatpush3.bf16.msra.mxu1 %v7160_v51  ;;  %6497 = vmatprep.subr.bf16.mxu0 %v7161_v52  ;;  %v7211_v51 = vld [vmem:[%s9179_s1 + $0x738] sm:$0xff]  }
  0xd2   :  { %6519 = vmatprep.subr.bf16.mxu1 %v7162_v53  ;;  %v7212_v52 = vld [vmem:[%s9179_s1 + $0x7b8] sm:$0xff]   ;;  %v26_v53 = vld [vmem:[%s9180_s0 + $0x70] sm:$0xff] }
  0xd4   :  { %6498 = vmatpush3.bf16.msra.mxu0 %v7163_v54  ;;  %v27_v54 = vld [vmem:[%s9180_s0 + $0x78] sm:$0xff] }
  0xd5   :  { %6520 = vmatpush3.bf16.msra.mxu1 %v7164_v55  ;;  %6499 = vmatprep.subr.bf16.mxu0 %v7165_v56  ;;  %v5677_v55 = vcombine.low %v26_v53, %v26_v53  ;;  %v5678_v56 = vcombine.high %v26_v53, %v26_v53  ;;  %v7261_v53 = vld [vmem:[%s9179_s1 + $0x950] sm:$0xff]  }
  0xd6   :  { %6521 = vmatprep.subr.bf16.mxu1 %v7166_v57  ;;  %v5679_v57 = vcombine.low %v27_v54, %v27_v54 }
  0xd8   :  { %6500 = vmatpush3.bf16.msra.mxu0 %v7167_v58  ;;  %v7217_v58 = vld [vmem:[%s9179_s1 + $0x840] sm:$0xff]  }
  0xd9   :  { %6522 = vmatpush3.bf16.msra.mxu1 %v7168_v59  ;;  %6501 = vmatprep.subr.bf16.mxu0 %v7169_v60  ;;  %v5680_v59 = vcombine.high %v27_v54, %v27_v54  ;;  %v7218_v60 = vld [vmem:[%s9179_s1 + $0x8c0] sm:$0xff]   ;;  %v7262_v54 = vld [vmem:[%s9179_s1 + $0x9d0] sm:$0xff]  }
  0xda   :  { %6523 = vmatprep.subr.bf16.mxu1 %v7170_v61  ;;  %v7219_v61 = vld [vmem:[%s9179_s1 + $0x800] sm:$0xff]  }
  0xdc   :  { %6502 = vmatpush3.bf16.msra.mxu0 %v7171_v62  ;;  %v7220_v62 = vld [vmem:[%s9179_s1 + $0x880] sm:$0xff]  }
  0xdd   :  { %6524 = vmatpush3.bf16.msra.mxu1 %v7172_v63  ;;  %6503 = vmatprep.subr.bf16.mxu0 %v7173_v0  ;;  %v7221_v63 = vld [vmem:[%s9179_s1 + $0x848] sm:$0xff]  }
  0xde   :  { %6525 = vmatprep.subr.bf16.mxu1 %v7174_v1  ;;  %v7222_v0 = vld [vmem:[%s9179_s1 + $0x8c8] sm:$0xff]  }
  0xdf   :  { %v7223_v1 = vld [vmem:[%s9179_s1 + $0x808] sm:$0xff]  }
  0xe0   :  { %6504 = vmatpush3.bf16.msra.mxu0 %v7175_v2  ;;  %v7224_v2 = vld [vmem:[%s9179_s1 + $0x888] sm:$0xff]  }
  0xe1   :  { %6526 = vmatpush3.bf16.msra.mxu1 %v7176_v3  ;;  %6533 = vmatprep.subr.bf16.mxu0 %v7181_v9  ;;  %v7225_v3 = vld [vmem:[%s9179_s1 + $0x850] sm:$0xff]   ;;  %v7231_v9 = vld [vmem:[%s9179_s1 + $0x818] sm:$0xff]  }
  0xe2   :  { %6555 = vmatprep.subr.bf16.mxu1 %v7182_v11  ;;  %v7233_v11 = vld [vmem:[%s9179_s1 + $0x860] sm:$0xff]  }
  0xe3   :  { %4877 = vmatmul.mubr.bf16.vlgmr.msra.gmra.mrb[24].mxu0 %v5673_v6  ;;  %v7228_v6 = vld [vmem:[%s9179_s1 + $0x890] sm:$0xff]  }
  0xe4   :  { %4917 = vmatmul.mubr.bf16.vlgmr.msra.gmra.mrb[24].mxu1 %v5675_v8  ;;  %6534 = vmatpush3.bf16.msra.mxu0 %v7183_v12  ;;  %v7230_v8 = vld [vmem:[%s9179_s1 + $0x8d8] sm:$0xff]   ;;  %v7234_v12 = vld [vmem:[%s9179_s1 + $0x8e0] sm:$0xff]  }
  0xe5   :  { %6556 = vmatpush3.bf16.msra.mxu1 %v7184_v13  ;;  %6535 = vmatprep.subr.bf16.mxu0 %v7185_v14  ;;  %v7235_v13 = vld [vmem:[%s9179_s1 + $0x820] sm:$0xff]  }
  0xe6   :  { %6557 = vmatprep.subr.bf16.mxu1 %v7186_v15  ;;  %4956 = vmatprep.mubr.bf16.mxu0 %v5678_v56  ;;  %v7236_v15 = vld [vmem:[%s9179_s1 + $0x8a0] sm:$0xff]   ;;  %v7264_v56 = vld [vmem:[%s9179_s1 + $0x990] sm:$0xff]  }
  0xe7   :  { %4996 = vmatprep.mubr.bf16.mxu1 %v5680_v59  ;;  %v7267_v59 = vld [vmem:[%s9179_s1 + $0x918] sm:$0xff]  }
  0xe8   :  { %6536 = vmatpush3.bf16.msra.mxu0 %v7187_v16 }
  0xe9   :  { %6558 = vmatpush3.bf16.msra.mxu1 %v7188_v17  ;;  %6537 = vmatprep.subr.bf16.mxu0 %v7189_v18  ;;  %v7237_v18 = vld [vmem:[%s9179_s1 + $0x868] sm:$0xff]  }
  0xea   :  { %6559 = vmatprep.subr.bf16.mxu1 %v7190_v19 }
  0xec   :  { %6538 = vmatpush3.bf16.msra.mxu0 %v7191_v20 }
  0xed   :  { %6560 = vmatpush3.bf16.msra.mxu1 %v7192_v21  ;;  %6539 = vmatprep.subr.bf16.mxu0 %v7193_v22  ;;  %v7238_v21 = vld [vmem:[%s9179_s1 + $0x8e8] sm:$0xff]  }
  0xee   :  { %6561 = vmatprep.subr.bf16.mxu1 %v7194_v23 }
  0xf0   :  { %6540 = vmatpush3.bf16.msra.mxu0 %v7195_v24 }
  0xf1   :  { %6562 = vmatpush3.bf16.msra.mxu1 %v7196_v25  ;;  %6541 = vmatprep.subr.bf16.mxu0 %v7197_v26  ;;  %v7239_v26 = vld [vmem:[%s9179_s1 + $0x828] sm:$0xff]  }
  0xf2   :  { %6563 = vmatprep.subr.bf16.mxu1 %v7198_v27 }
  0xf4   :  { %6542 = vmatpush3.bf16.msra.mxu0 %v7199_v28  ;;  %v7240_v28 = vld [vmem:[%s9179_s1 + $0x8a8] sm:$0xff]  }
  0xf5   :  { %6564 = vmatpush3.bf16.msra.mxu1 %v7200_v30  ;;  %6543 = vmatprep.subr.bf16.mxu0 %v7201_v33  ;;  %v7243_v33 = vld [vmem:[%s9179_s1 + $0x830] sm:$0xff]  }
  0xf6   :  { %v6241_v29 = vpop.f32.mrb[0].mxu0  ;;  %6565 = vmatprep.subr.bf16.mxu1 %v7202_v36  ;;  %v7246_v36 = vld [vmem:[%s9179_s1 + $0x8f8] sm:$0xff]  }
  0xf7   :  { %v6263_v31 = vpop.f32.mrb[0].mxu1  ;;  %v6242_v32 = vpop.f32.mrb[1].mxu0 }
  0xf8   :  { %v6243_v34 = vadd.f32 %v6242_v32, %v6241_v29  ;;  %v6264_v35 = vpop.f32.mrb[1].mxu1  ;;  %v6244_v38 = vpop.f32.mrb[2].mxu0  ;;  %6544 = vmatpush3.bf16.msra.mxu0 %v7203_v40  ;;  %v7242_v32 = vld [vmem:[%s9179_s1 + $0x8f0] sm:$0xff]   ;;  %v29_v40 = vld [vmem:[%s9180_s0 + $0x88] sm:$0xff] }
  0xf9   :  { %v6265_v37 = vadd.f32 %v6264_v35, %v6263_v31  ;;  %v6266_v39 = vpop.f32.mrb[2].mxu1  ;;  %v6245_v41 = vpop.f32.mrb[3].mxu0  ;;  %6566 = vmatpush3.bf16.msra.mxu1 %v7204_v43  ;;  %6545 = vmatprep.subr.bf16.mxu0 %v7205_v45  ;;  %v7241_v31 = vld [vmem:[%s9179_s1 + $0x870] sm:$0xff]   ;;  %v7245_v35 = vld [vmem:[%s9179_s1 + $0x878] sm:$0xff]   ;;  %v5683_v43 = vcombine.low %v29_v40, %v29_v40  ;;  %v5684_v45 = vcombine.high %v29_v40, %v29_v40 }
  0xfa   :  { %v6267_v44 = vpop.f32.mrb[3].mxu1  ;;  %6567 = vmatprep.subr.bf16.mxu1 %v7206_v46  ;;  %v7248_v38 = vld [vmem:[%s9179_s1 + $0x8b8] sm:$0xff]   ;;  %v28_v39 = vld [vmem:[%s9180_s0 + $0x80] sm:$0xff]  ;;  %v7298_v40 = vld [vmem:[%s9179_s1 + $0xad0] sm:$0xff]  }
  0xfb   :  { %v8303_v42 = vadd.f32 %v6265_v37, %v6243_v34  ;;  %v7244_v34 = vld [vmem:[%s9179_s1 + $0x8b0] sm:$0xff]   ;;  %v7247_v37 = vld [vmem:[%s9179_s1 + $0x838] sm:$0xff]   ;;  %v5681_v41 = vcombine.low %v28_v39, %v28_v39  ;;  %v7253_v44 = vld [vmem:[%s9179_s1 + $0x940] sm:$0xff]  }
  0xfc   :  { %6546 = vmatpush3.bf16.msra.mxu0 %v7207_v47  ;;  %v7254_v46 = vld [vmem:[%s9179_s1 + $0x9c0] sm:$0xff]  }
  0xfd   :  { %6568 = vmatpush3.bf16.msra.mxu1 %v7208_v48  ;;  %6547 = vmatprep.subr.bf16.mxu0 %v7209_v49  ;;  %v7255_v47 = vld [vmem:[%s9179_s1 + $0x900] sm:$0xff]   ;;  %v7257_v49 = vld [vmem:[%s9179_s1 + $0x948] sm:$0xff]  }
  0xfe   :  { %6569 = vmatprep.subr.bf16.mxu1 %v7210_v50  ;;  %v7256_v48 = vld [vmem:[%s9179_s1 + $0x980] sm:$0xff]   ;;  %v7258_v50 = vld [vmem:[%s9179_s1 + $0x9c8] sm:$0xff]  }
 0x100   :  { %6548 = vmatpush3.bf16.msra.mxu0 %v7211_v51  ;;  %v7259_v51 = vld [vmem:[%s9179_s1 + $0x908] sm:$0xff]  }
 0x101   :  { %6570 = vmatpush3.bf16.msra.mxu1 %v7212_v52  ;;  %6577 = vmatprep.subr.bf16.mxu0 %v7217_v58  ;;  %v7260_v52 = vld [vmem:[%s9179_s1 + $0x988] sm:$0xff]   ;;  %v7266_v58 = vld [vmem:[%s9179_s1 + $0x9d8] sm:$0xff]  }
 0x102   :  { %6599 = vmatprep.subr.bf16.mxu1 %v7218_v60  ;;  %v7268_v60 = vld [vmem:[%s9179_s1 + $0x998] sm:$0xff]  }
 0x103   :  { %4957 = vmatmul.mubr.bf16.vlgmr.msra.gmra.mrb[28].mxu0 %v5677_v55  ;;  %v7263_v55 = vld [vmem:[%s9179_s1 + $0x910] sm:$0xff]  }
 0x104   :  { %4997 = vmatmul.mubr.bf16.vlgmr.msra.gmra.mrb[28].mxu1 %v5679_v57  ;;  %6578 = vmatpush3.bf16.msra.mxu0 %v7219_v61  ;;  %v7265_v57 = vld [vmem:[%s9179_s1 + $0x958] sm:$0xff]   ;;  %v7269_v61 = vld [vmem:[%s9179_s1 + $0x960] sm:$0xff]  }
 0x105   :  { %6600 = vmatpush3.bf16.msra.mxu1 %v7220_v62  ;;  %6579 = vmatprep.subr.bf16.mxu0 %v7221_v63  ;;  %v7270_v62 = vld [vmem:[%s9179_s1 + $0x9e0] sm:$0xff]  }
 0x106   :  { %6601 = vmatprep.subr.bf16.mxu1 %v7222_v0  ;;  %5076 = vmatprep.mubr.bf16.mxu1 %v5684_v45  ;;  %v7271_v0 = vld [vmem:[%s9179_s1 + $0x920] sm:$0xff]   ;;  %v7303_v45 = vld [vmem:[%s9179_s1 + $0xa18] sm:$0xff]  }
 0x108   :  { %6580 = vmatpush3.bf16.msra.mxu0 %v7223_v1 }
 0x109   :  { %6602 = vmatpush3.bf16.msra.mxu1 %v7224_v2  ;;  %6581 = vmatprep.subr.bf16.mxu0 %v7225_v3  ;;  %v7272_v2 = vld [vmem:[%s9179_s1 + $0x9a0] sm:$0xff]  }
 0x10a   :  { %6603 = vmatprep.subr.bf16.mxu1 %v7226_v4 }
 0x10c   :  { %6582 = vmatpush3.bf16.msra.mxu0 %v7227_v5  ;;  %v7273_v5 = vld [vmem:[%s9179_s1 + $0x968] sm:$0xff]  }
 0x10d   :  { %6604 = vmatpush3.bf16.msra.mxu1 %v7228_v6  ;;  %6583 = vmatprep.subr.bf16.mxu0 %v7229_v7 }
 0x10e   :  { %6605 = vmatprep.subr.bf16.mxu1 %v7230_v8  ;;  %v7274_v8 = vld [vmem:[%s9179_s1 + $0x9e8] sm:$0xff]  }
 0x110   :  { %6584 = vmatpush3.bf16.msra.mxu0 %v7231_v9 }
 0x111   :  { %6606 = vmatpush3.bf16.msra.mxu1 %v7232_v10  ;;  %6585 = vmatprep.subr.bf16.mxu0 %v7233_v11  ;;  %v7275_v11 = vld [vmem:[%s9179_s1 + $0x928] sm:$0xff]  }
 0x112   :  { %6607 = vmatprep.subr.bf16.mxu1 %v7234_v12 }
 0x114   :  { %6586 = vmatpush3.bf16.msra.mxu0 %v7235_v13  ;;  %v7276_v13 = vld [vmem:[%s9179_s1 + $0x9a8] sm:$0xff]  }
 0x115   :  { %6608 = vmatpush3.bf16.msra.mxu1 %v7236_v15  ;;  %6587 = vmatprep.subr.bf16.mxu0 %v7237_v18  ;;  %v7278_v18 = vld [vmem:[%s9179_s1 + $0x9f0] sm:$0xff]  }
 0x116   :  { %v6285_v14 = vpop.f32.mrb[4].mxu0  ;;  %6609 = vmatprep.subr.bf16.mxu1 %v7238_v21  ;;  %v7281_v21 = vld [vmem:[%s9179_s1 + $0x978] sm:$0xff]  }
 0x117   :  { %v6307_v16 = vpop.f32.mrb[4].mxu1  ;;  %v6286_v17 = vpop.f32.mrb[5].mxu0 }
 0x118   :  { %v6287_v19 = vadd.f32 %v6286_v17, %v6285_v14  ;;  %v6308_v20 = vpop.f32.mrb[5].mxu1  ;;  %v6288_v23 = vpop.f32.mrb[6].mxu0  ;;  %6588 = vmatpush3.bf16.msra.mxu0 %v7239_v26 }
 0x119   :  { %v6309_v22 = vadd.f32 %v6308_v20, %v6307_v16  ;;  %v6310_v24 = vpop.f32.mrb[6].mxu1  ;;  %v6289_v27 = vpop.f32.mrb[7].mxu0  ;;  %6610 = vmatpush3.bf16.msra.mxu1 %v7240_v28  ;;  %6589 = vmatprep.subr.bf16.mxu0 %v7241_v31  ;;  %v7277_v16 = vld [vmem:[%s9179_s1 + $0x970] sm:$0xff]   ;;  %v7283_v23 = vld [vmem:[%s9179_s1 + $0x938] sm:$0xff]   ;;  %v7289_v31 = vld [vmem:[%s9179_s1 + $0xa40] sm:$0xff]  }
 0x11a   :  { %v4479_v25 = vadd.f32 %v6287_v19, %v8303_v42  ;;  %v6311_v29 = vpop.f32.mrb[7].mxu1  ;;  %6611 = vmatprep.subr.bf16.mxu1 %v7242_v32  ;;  %v5682_v42 = vcombine.high %v28_v39, %v28_v39  ;;  %v7279_v19 = vld [vmem:[%s9179_s1 + $0x930] sm:$0xff]   ;;  %v7284_v24 = vld [vmem:[%s9179_s1 + $0x9b8] sm:$0xff]   ;;  %v7290_v32 = vld [vmem:[%s9179_s1 + $0xac0] sm:$0xff]  }
 0x11b   :  { %v7280_v20 = vld [vmem:[%s9179_s1 + $0x9b0] sm:$0xff]   ;;  %v31_v28 = vld [vmem:[%s9180_s0 + $0x98] sm:$0xff] }
 0x11c   :  { %v8411_v30 = vadd.f32 %v6309_v22, %v4479_v25  ;;  %6590 = vmatpush3.bf16.msra.mxu0 %v7243_v33  ;;  %5036 = vmatprep.mubr.bf16.mxu0 %v5682_v42  ;;  %v7282_v22 = vld [vmem:[%s9179_s1 + $0x9f8] sm:$0xff]   ;;  %v30_v25 = vld [vmem:[%s9180_s0 + $0x90] sm:$0xff]  ;;  %v5687_v29 = vcombine.low %v31_v28, %v31_v28  ;;  %v7291_v33 = vld [vmem:[%s9179_s1 + $0xa00] sm:$0xff]  }
 0x11d   :  { %6612 = vmatpush3.bf16.msra.mxu1 %v7244_v34  ;;  %6591 = vmatprep.subr.bf16.mxu0 %v7245_v35  ;;  %v5685_v26 = vcombine.low %v30_v25, %v30_v25  ;;  %v5686_v27 = vcombine.high %v30_v25, %v30_v25  ;;  %v7292_v34 = vld [vmem:[%s9179_s1 + $0xa80] sm:$0xff]   ;;  %v7293_v35 = vld [vmem:[%s9179_s1 + $0xa48] sm:$0xff]   ;;  %v7297_v39 = vld [vmem:[%s9179_s1 + $0xa50] sm:$0xff]  }
 0x11e   :  { %6613 = vmatprep.subr.bf16.mxu1 %v7246_v36  ;;  %v7294_v36 = vld [vmem:[%s9179_s1 + $0xac8] sm:$0xff]   ;;  %v7300_v42 = vld [vmem:[%s9179_s1 + $0xa90] sm:$0xff]  }
 0x11f   :  { %v7333_v25 = vld [vmem:[%s9179_s1 + $0xb50] sm:$0xff]  }
 0x120   :  { %6592 = vmatpush3.bf16.msra.mxu0 %v7247_v37  ;;  %v7295_v37 = vld [vmem:[%s9179_s1 + $0xa08] sm:$0xff]  }
 0x121   :  { %6614 = vmatpush3.bf16.msra.mxu1 %v7248_v38  ;;  %6621 = vmatprep.subr.bf16.mxu0 %v7253_v44  ;;  %v7296_v38 = vld [vmem:[%s9179_s1 + $0xa88] sm:$0xff]   ;;  %v7302_v44 = vld [vmem:[%s9179_s1 + $0xad8] sm:$0xff]  }
 0x122   :  { %6643 = vmatprep.subr.bf16.mxu1 %v7254_v46  ;;  %v7304_v46 = vld [vmem:[%s9179_s1 + $0xa98] sm:$0xff]  }
 0x123   :  { %5037 = vmatmul.mubr.bf16.vlgmr.msra.gmra.mrb[32].mxu0 %v5681_v41  ;;  %v7299_v41 = vld [vmem:[%s9179_s1 + $0xa10] sm:$0xff]  }
 0x124   :  { %5077 = vmatmul.mubr.bf16.vlgmr.msra.gmra.mrb[32].mxu1 %v5683_v43  ;;  %6622 = vmatpush3.bf16.msra.mxu0 %v7255_v47  ;;  %v7301_v43 = vld [vmem:[%s9179_s1 + $0xa58] sm:$0xff]   ;;  %v7305_v47 = vld [vmem:[%s9179_s1 + $0xa60] sm:$0xff]  }
 0x125   :  { %6644 = vmatpush3.bf16.msra.mxu1 %v7256_v48  ;;  %6623 = vmatprep.subr.bf16.mxu0 %v7257_v49  ;;  %v7306_v48 = vld [vmem:[%s9179_s1 + $0xae0] sm:$0xff]  }
 0x126   :  { %6645 = vmatprep.subr.bf16.mxu1 %v7258_v50  ;;  %5116 = vmatprep.mubr.bf16.mxu0 %v5686_v27  ;;  %v7307_v50 = vld [vmem:[%s9179_s1 + $0xa20] sm:$0xff]   ;;  %v7335_v27 = vld [vmem:[%s9179_s1 + $0xb10] sm:$0xff]  }
 0x128   :  { %6624 = vmatpush3.bf16.msra.mxu0 %v7259_v51 }
 0x129   :  { %6646 = vmatpush3.bf16.msra.mxu1 %v7260_v52  ;;  %6625 = vmatprep.subr.bf16.mxu0 %v7261_v53  ;;  %v7308_v52 = vld [vmem:[%s9179_s1 + $0xaa0] sm:$0xff]  }
 0x12a   :  { %6647 = vmatprep.subr.bf16.mxu1 %v7262_v54 }
 0x12c   :  { %6626 = vmatpush3.bf16.msra.mxu0 %v7263_v55  ;;  %v7309_v55 = vld [vmem:[%s9179_s1 + $0xa68] sm:$0xff]  }
 0x12d   :  { %6648 = vmatpush3.bf16.msra.mxu1 %v7264_v56  ;;  %6627 = vmatprep.subr.bf16.mxu0 %v7265_v57 }
 0x12e   :  { %6649 = vmatprep.subr.bf16.mxu1 %v7266_v58  ;;  %v7310_v58 = vld [vmem:[%s9179_s1 + $0xae8] sm:$0xff]  }
 0x130   :  { %6628 = vmatpush3.bf16.msra.mxu0 %v7267_v59 }
 0x131   :  { %6650 = vmatpush3.bf16.msra.mxu1 %v7268_v60  ;;  %6629 = vmatprep.subr.bf16.mxu0 %v7269_v61  ;;  %v7311_v61 = vld [vmem:[%s9179_s1 + $0xa28] sm:$0xff]  }
 0x132   :  { %6651 = vmatprep.subr.bf16.mxu1 %v7270_v62 }
 0x134   :  { %6630 = vmatpush3.bf16.msra.mxu0 %v7271_v0 }
 0x135   :  { %6652 = vmatpush3.bf16.msra.mxu1 %v7272_v2  ;;  %6631 = vmatprep.subr.bf16.mxu0 %v7273_v5  ;;  %v7313_v2 = vld [vmem:[%s9179_s1 + $0xa70] sm:$0xff]  }
 0x136   :  { %v6329_v63 = vpop.f32.mrb[8].mxu0  ;;  %6653 = vmatprep.subr.bf16.mxu1 %v7274_v8  ;;  %v7315_v5 = vld [vmem:[%s9179_s1 + $0xa30] sm:$0xff]   ;;  %v7318_v8 = vld [vmem:[%s9179_s1 + $0xaf8] sm:$0xff]  }
 0x137   :  { %v6351_v1 = vpop.f32.mrb[8].mxu1  ;;  %v6330_v3 = vpop.f32.mrb[9].mxu0 }
 0x138   :  { %v6352_v4 = vpop.f32.mrb[9].mxu1  ;;  %v6331_v6 = vadd.f32 %v6330_v3, %v6329_v63  ;;  %v6332_v9 = vpop.f32.mrb[10].mxu0  ;;  %6632 = vmatpush3.bf16.msra.mxu0 %v7275_v11  ;;  %v7312_v63 = vld [vmem:[%s9179_s1 + $0xaa8] sm:$0xff]   ;;  %v32_v11 = vld [vmem:[%s9180_s0 + $0xa0] sm:$0xff] }
 0x139   :  { %v6353_v7 = vadd.f32 %v6352_v4, %v6351_v1  ;;  %v6354_v10 = vpop.f32.mrb[10].mxu1  ;;  %v6333_v14 = vpop.f32.mrb[11].mxu0  ;;  %6654 = vmatpush3.bf16.msra.mxu1 %v7276_v13  ;;  %6633 = vmatprep.subr.bf16.mxu0 %v7277_v16  ;;  %v7314_v4 = vld [vmem:[%s9179_s1 + $0xaf0] sm:$0xff]   ;;  %v7319_v9 = vld [vmem:[%s9179_s1 + $0xa38] sm:$0xff]   ;;  %v5689_v13 = vcombine.low %v32_v11, %v32_v11 }
 0x13a   :  { %v4559_v12 = vadd.f32 %v6331_v6, %v8411_v30  ;;  %v6355_v15 = vpop.f32.mrb[11].mxu1  ;;  %6655 = vmatprep.subr.bf16.mxu1 %v7278_v18  ;;  %v5688_v30 = vcombine.high %v31_v28, %v31_v28  ;;  %v7316_v6 = vld [vmem:[%s9179_s1 + $0xab0] sm:$0xff]   ;;  %v7320_v10 = vld [vmem:[%s9179_s1 + $0xab8] sm:$0xff]   ;;  %v5690_v14 = vcombine.high %v32_v11, %v32_v11  ;;  %v7326_v18 = vld [vmem:[%s9179_s1 + $0xbc0] sm:$0xff]  }
 0x13b   :  { %v7336_v28 = vld [vmem:[%s9179_s1 + $0xb90] sm:$0xff]  }
 0x13c   :  { %v8519_v17 = vadd.f32 %v6353_v7, %v4559_v12  ;;  %6634 = vmatpush3.bf16.msra.mxu0 %v7279_v19  ;;  %5156 = vmatprep.mubr.bf16.mxu1 %v5688_v30  ;;  %v7317_v7 = vld [vmem:[%s9179_s1 + $0xa78] sm:$0xff]   ;;  %v33_v12 = vld [vmem:[%s9180_s0 + $0xa8] sm:$0xff]  ;;  %v7327_v19 = vld [vmem:[%s9179_s1 + $0xb00] sm:$0xff]  }
 0x13d   :  { %6656 = vmatpush3.bf16.msra.mxu1 %v7280_v20  ;;  %6635 = vmatprep.subr.bf16.mxu0 %v7281_v21  ;;  %v5691_v15 = vcombine.low %v33_v12, %v33_v12  ;;  %v5692_v16 = vcombine.high %v33_v12, %v33_v12  ;;  %v7328_v20 = vld [vmem:[%s9179_s1 + $0xb80] sm:$0xff]   ;;  %v7329_v21 = vld [vmem:[%s9179_s1 + $0xb48] sm:$0xff]   ;;  %v7338_v30 = vld [vmem:[%s9179_s1 + $0xbd8] sm:$0xff]  }
 0x13e   :  { %6657 = vmatprep.subr.bf16.mxu1 %v7282_v22  ;;  %v7330_v22 = vld [vmem:[%s9179_s1 + $0xbc8] sm:$0xff]   ;;  %v7369_v11 = vld [vmem:[%s9179_s1 + $0xc50] sm:$0xff]  }
 0x13f   :  { %v7370_v12 = vld [vmem:[%s9179_s1 + $0xcd0] sm:$0xff]  }
 0x140   :  { %6636 = vmatpush3.bf16.msra.mxu0 %v7283_v23  ;;  %v7331_v23 = vld [vmem:[%s9179_s1 + $0xb08] sm:$0xff]  }
 0x141   :  { %6658 = vmatpush3.bf16.msra.mxu1 %v7284_v24  ;;  %6665 = vmatprep.subr.bf16.mxu0 %v7289_v31  ;;  %v7332_v24 = vld [vmem:[%s9179_s1 + $0xb88] sm:$0xff]   ;;  %v7339_v31 = vld [vmem:[%s9179_s1 + $0xb18] sm:$0xff]  }
 0x142   :  { %6687 = vmatprep.subr.bf16.mxu1 %v7290_v32  ;;  %v7340_v32 = vld [vmem:[%s9179_s1 + $0xb98] sm:$0xff]  }
 0x143   :  { %5117 = vmatmul.mubr.bf16.vlgmr.msra.gmra.mrb[36].mxu0 %v5685_v26  ;;  %v7334_v26 = vld [vmem:[%s9179_s1 + $0xbd0] sm:$0xff]  }
 0x144   :  { %5157 = vmatmul.mubr.bf16.vlgmr.msra.gmra.mrb[36].mxu1 %v5687_v29  ;;  %6666 = vmatpush3.bf16.msra.mxu0 %v7291_v33  ;;  %v7337_v29 = vld [vmem:[%s9179_s1 + $0xb58] sm:$0xff]   ;;  %v7341_v33 = vld [vmem:[%s9179_s1 + $0xb60] sm:$0xff]  }
 0x145   :  { %6688 = vmatpush3.bf16.msra.mxu1 %v7292_v34  ;;  %6667 = vmatprep.subr.bf16.mxu0 %v7293_v35  ;;  %v7342_v34 = vld [vmem:[%s9179_s1 + $0xbe0] sm:$0xff]  }
 0x146   :  { %6689 = vmatprep.subr.bf16.mxu1 %v7294_v36  ;;  %5196 = vmatprep.mubr.bf16.mxu0 %v5690_v14  ;;  %v7343_v35 = vld [vmem:[%s9179_s1 + $0xb20] sm:$0xff]   ;;  %v7372_v14 = vld [vmem:[%s9179_s1 + $0xc90] sm:$0xff]  }
 0x147   :  { %5236 = vmatprep.mubr.bf16.mxu1 %v5692_v16  ;;  %v7374_v16 = vld [vmem:[%s9179_s1 + $0xcd8] sm:$0xff]  }
 0x148   :  { %6668 = vmatpush3.bf16.msra.mxu0 %v7295_v37  ;;  %v7344_v37 = vld [vmem:[%s9179_s1 + $0xba0] sm:$0xff]  }
 0x149   :  { %6690 = vmatpush3.bf16.msra.mxu1 %v7296_v38  ;;  %6669 = vmatprep.subr.bf16.mxu0 %v7297_v39 }
 0x14a   :  { %6691 = vmatprep.subr.bf16.mxu1 %v7298_v40 }
 0x14c   :  { %6670 = vmatpush3.bf16.msra.mxu0 %v7299_v41 }
 0x14d   :  { %6692 = vmatpush3.bf16.msra.mxu1 %v7300_v42  ;;  %6671 = vmatprep.subr.bf16.mxu0 %v7301_v43  ;;  %v7345_v43 = vld [vmem:[%s9179_s1 + $0xb68] sm:$0xff]  }
 0x14e   :  { %6693 = vmatprep.subr.bf16.mxu1 %v7302_v44 }
 0x150   :  { %6672 = vmatpush3.bf16.msra.mxu0 %v7303_v45  ;;  %v7346_v45 = vld [vmem:[%s9179_s1 + $0xbe8] sm:$0xff]  }
 0x151   :  { %6694 = vmatpush3.bf16.msra.mxu1 %v7304_v46  ;;  %6673 = vmatprep.subr.bf16.mxu0 %v7305_v47 }
 0x152   :  { %6695 = vmatprep.subr.bf16.mxu1 %v7306_v48  ;;  %v7347_v48 = vld [vmem:[%s9179_s1 + $0xb28] sm:$0xff]  }
 0x154   :  { %6674 = vmatpush3.bf16.msra.mxu0 %v7307_v50  ;;  %v7348_v50 = vld [vmem:[%s9179_s1 + $0xba8] sm:$0xff]  }
 0x155   :  { %6696 = vmatpush3.bf16.msra.mxu1 %v7308_v52  ;;  %6675 = vmatprep.subr.bf16.mxu0 %v7309_v55  ;;  %v7351_v55 = vld [vmem:[%s9179_s1 + $0xb30] sm:$0xff]  }
 0x156   :  { %v6373_v49 = vpop.f32.mrb[12].mxu0  ;;  %6697 = vmatprep.subr.bf16.mxu1 %v7310_v58  ;;  %v7354_v58 = vld [vmem:[%s9179_s1 + $0xbf8] sm:$0xff]  }
 0x157   :  { %v6395_v51 = vpop.f32.mrb[12].mxu1  ;;  %v6374_v53 = vpop.f32.mrb[13].mxu0 }
 0x158   :  { %v6396_v54 = vpop.f32.mrb[13].mxu1  ;;  %v6375_v56 = vadd.f32 %v6374_v53, %v6373_v49  ;;  %v6376_v59 = vpop.f32.mrb[14].mxu0  ;;  %6676 = vmatpush3.bf16.msra.mxu0 %v7311_v61  ;;  %v7349_v53 = vld [vmem:[%s9179_s1 + $0xb70] sm:$0xff]  }
 0x159   :  { %v6397_v57 = vadd.f32 %v6396_v54, %v6395_v51  ;;  %v6398_v60 = vpop.f32.mrb[14].mxu1  ;;  %v6377_v0 = vpop.f32.mrb[15].mxu0  ;;  %6698 = vmatpush3.bf16.msra.mxu1 %v7312_v63  ;;  %6677 = vmatprep.subr.bf16.mxu0 %v7313_v2  ;;  %v7350_v54 = vld [vmem:[%s9179_s1 + $0xbf0] sm:$0xff]   ;;  %v7355_v59 = vld [vmem:[%s9179_s1 + $0xb38] sm:$0xff]  }
 0x15a   :  { %v4639_v62 = vadd.f32 %v6375_v56, %v8519_v17  ;;  %v6399_v1 = vpop.f32.mrb[15].mxu1  ;;  %6699 = vmatprep.subr.bf16.mxu1 %v7314_v4  ;;  %v7325_v17 = vld [vmem:[%s9179_s1 + $0xb40] sm:$0xff]   ;;  %v7352_v56 = vld [vmem:[%s9179_s1 + $0xbb0] sm:$0xff]   ;;  %v7356_v60 = vld [vmem:[%s9179_s1 + $0xbb8] sm:$0xff]  }
 0x15b   :  { %v34_v61 = vld [vmem:[%s9180_s0 + $0xb0] sm:$0xff]  ;;  %v7362_v4 = vld [vmem:[%s9179_s1 + $0xcc0] sm:$0xff]  }
 0x15c   :  { %v8624_v3 = vadd.f32 %v6397_v57, %v4639_v62  ;;  %6678 = vmatpush3.bf16.msra.mxu0 %v7315_v5  ;;  %v7353_v57 = vld [vmem:[%s9179_s1 + $0xb78] sm:$0xff]   ;;  %v5693_v63 = vcombine.low %v34_v61, %v34_v61  ;;  %v5694_v0 = vcombine.high %v34_v61, %v34_v61  ;;  %v7363_v5 = vld [vmem:[%s9179_s1 + $0xc00] sm:$0xff]   ;;  %v7405_v61 = vld [vmem:[%s9179_s1 + $0xd50] sm:$0xff]  }
 0x15d   :  { %6700 = vmatpush3.bf16.msra.mxu1 %v7316_v6  ;;  %6679 = vmatprep.subr.bf16.mxu0 %v7317_v7  ;;  %v35_v62 = vld [vmem:[%s9180_s0 + $0xb8] sm:$0xff]  ;;  %v7364_v6 = vld [vmem:[%s9179_s1 + $0xc80] sm:$0xff]   ;;  %v7365_v7 = vld [vmem:[%s9179_s1 + $0xc48] sm:$0xff]  }
 0x15e   :  { %6701 = vmatprep.subr.bf16.mxu1 %v7318_v8  ;;  %v5695_v1 = vcombine.low %v35_v62, %v35_v62  ;;  %v5696_v2 = vcombine.high %v35_v62, %v35_v62  ;;  %v7366_v8 = vld [vmem:[%s9179_s1 + $0xcc8] sm:$0xff]   ;;  %v7406_v62 = vld [vmem:[%s9179_s1 + $0xdd0] sm:$0xff]  }
 0x160   :  { %6680 = vmatpush3.bf16.msra.mxu0 %v7319_v9  ;;  %v7367_v9 = vld [vmem:[%s9179_s1 + $0xc08] sm:$0xff]  }
 0x161   :  { %6702 = vmatpush3.bf16.msra.mxu1 %v7320_v10  ;;  %6709 = vmatprep.subr.bf16.mxu0 %v7325_v17  ;;  %v7368_v10 = vld [vmem:[%s9179_s1 + $0xc88] sm:$0xff]   ;;  %v7375_v17 = vld [vmem:[%s9179_s1 + $0xc18] sm:$0xff]  }
 0x162   :  { %6731 = vmatprep.subr.bf16.mxu1 %v7326_v18  ;;  %v7376_v18 = vld [vmem:[%s9179_s1 + $0xc98] sm:$0xff]  }
 0x163   :  { %5197 = vmatmul.mubr.bf16.vlgmr.msra.gmra.mrb[40].mxu0 %v5689_v13  ;;  %v7371_v13 = vld [vmem:[%s9179_s1 + $0xc10] sm:$0xff]  }
 0x164   :  { %5237 = vmatmul.mubr.bf16.vlgmr.msra.gmra.mrb[40].mxu1 %v5691_v15  ;;  %6710 = vmatpush3.bf16.msra.mxu0 %v7327_v19  ;;  %v7373_v15 = vld [vmem:[%s9179_s1 + $0xc58] sm:$0xff]   ;;  %v7377_v19 = vld [vmem:[%s9179_s1 + $0xc60] sm:$0xff]  }
 0x165   :  { %6732 = vmatpush3.bf16.msra.mxu1 %v7328_v20  ;;  %6711 = vmatprep.subr.bf16.mxu0 %v7329_v21  ;;  %v7378_v20 = vld [vmem:[%s9179_s1 + $0xce0] sm:$0xff]  }
 0x166   :  { %6733 = vmatprep.subr.bf16.mxu1 %v7330_v22  ;;  %5276 = vmatprep.mubr.bf16.mxu0 %v5694_v0  ;;  %v7379_v22 = vld [vmem:[%s9179_s1 + $0xc20] sm:$0xff]   ;;  %v7408_v0 = vld [vmem:[%s9179_s1 + $0xd90] sm:$0xff]  }
 0x167   :  { %5316 = vmatprep.mubr.bf16.mxu1 %v5696_v2  ;;  %v7410_v2 = vld [vmem:[%s9179_s1 + $0xdd8] sm:$0xff]  }
 0x168   :  { %6712 = vmatpush3.bf16.msra.mxu0 %v7331_v23 }
 0x169   :  { %6734 = vmatpush3.bf16.msra.mxu1 %v7332_v24  ;;  %6713 = vmatprep.subr.bf16.mxu0 %v7333_v25  ;;  %v7380_v24 = vld [vmem:[%s9179_s1 + $0xca0] sm:$0xff]  }
 0x16a   :  { %6735 = vmatprep.subr.bf16.mxu1 %v7334_v26 }
 0x16c   :  { %6714 = vmatpush3.bf16.msra.mxu0 %v7335_v27 }
 0x16d   :  { %6736 = vmatpush3.bf16.msra.mxu1 %v7336_v28  ;;  %6715 = vmatprep.subr.bf16.mxu0 %v7337_v29  ;;  %v7381_v28 = vld [vmem:[%s9179_s1 + $0xc68] sm:$0xff]  }
 0x16e   :  { %6737 = vmatprep.subr.bf16.mxu1 %v7338_v30  ;;  %v7382_v30 = vld [vmem:[%s9179_s1 + $0xce8] sm:$0xff]  }
 0x170   :  { %6716 = vmatpush3.bf16.msra.mxu0 %v7339_v31 }
 0x171   :  { %6738 = vmatpush3.bf16.msra.mxu1 %v7340_v32  ;;  %6717 = vmatprep.subr.bf16.mxu0 %v7341_v33 }
 0x172   :  { %6739 = vmatprep.subr.bf16.mxu1 %v7342_v34  ;;  %v7383_v34 = vld [vmem:[%s9179_s1 + $0xc28] sm:$0xff]  }
 0x174   :  { %6718 = vmatpush3.bf16.msra.mxu0 %v7343_v35  ;;  %v7384_v35 = vld [vmem:[%s9179_s1 + $0xca8] sm:$0xff]  }
 0x175   :  { %6740 = vmatpush3.bf16.msra.mxu1 %v7344_v37  ;;  %6719 = vmatprep.subr.bf16.mxu0 %v7345_v43  ;;  %v7389_v43 = vld [vmem:[%s9179_s1 + $0xc78] sm:$0xff]  }
 0x176   :  { %v6417_v36 = vpop.f32.mrb[16].mxu0  ;;  %6741 = vmatprep.subr.bf16.mxu1 %v7346_v45  ;;  %v7391_v45 = vld [vmem:[%s9179_s1 + $0xc38] sm:$0xff]  }
 0x177   :  { %v6439_v38 = vpop.f32.mrb[16].mxu1  ;;  %v6418_v39 = vpop.f32.mrb[17].mxu0 }
 0x178   :  { %v6440_v40 = vpop.f32.mrb[17].mxu1  ;;  %v6419_v41 = vadd.f32 %v6418_v39, %v6417_v36  ;;  %v6420_v44 = vpop.f32.mrb[18].mxu0  ;;  %6720 = vmatpush3.bf16.msra.mxu0 %v7347_v48  ;;  %v7385_v39 = vld [vmem:[%s9179_s1 + $0xc70] sm:$0xff]   ;;  %v37_v48 = vld [vmem:[%s9180_s0 + $0xc8] sm:$0xff] }
 0x179   :  { %v6441_v42 = vadd.f32 %v6440_v40, %v6439_v38  ;;  %v6442_v46 = vpop.f32.mrb[18].mxu1  ;;  %v6421_v49 = vpop.f32.mrb[19].mxu0  ;;  %6742 = vmatpush3.bf16.msra.mxu1 %v7348_v50  ;;  %6721 = vmatprep.subr.bf16.mxu0 %v7349_v53  ;;  %v7386_v40 = vld [vmem:[%s9179_s1 + $0xcf0] sm:$0xff]   ;;  %v7390_v44 = vld [vmem:[%s9179_s1 + $0xcf8] sm:$0xff]   ;;  %v5700_v53 = vcombine.high %v37_v48, %v37_v48 }
 0x17a   :  { %v4719_v47 = vadd.f32 %v6419_v41, %v8624_v3  ;;  %v6443_v51 = vpop.f32.mrb[19].mxu1  ;;  %6743 = vmatprep.subr.bf16.mxu1 %v7350_v54  ;;  %v7361_v3 = vld [vmem:[%s9179_s1 + $0xc40] sm:$0xff]   ;;  %v7387_v41 = vld [vmem:[%s9179_s1 + $0xc30] sm:$0xff]   ;;  %v7392_v46 = vld [vmem:[%s9179_s1 + $0xcb8] sm:$0xff]  }
 0x17b   :  { %v5699_v51 = vcombine.low %v37_v48, %v37_v48  ;;  %v7398_v54 = vld [vmem:[%s9179_s1 + $0xdc0] sm:$0xff]   ;;  %v7442_v48 = vld [vmem:[%s9179_s1 + $0xed0] sm:$0xff]  }
 0x17c   :  { %v8726_v52 = vadd.f32 %v6441_v42, %v4719_v47  ;;  %6722 = vmatpush3.bf16.msra.mxu0 %v7351_v55  ;;  %v7388_v42 = vld [vmem:[%s9179_s1 + $0xcb0] sm:$0xff]   ;;  %v36_v47 = vld [vmem:[%s9180_s0 + $0xc0] sm:$0xff] }
 0x17d   :  { %6744 = vmatpush3.bf16.msra.mxu1 %v7352_v56  ;;  %6723 = vmatprep.subr.bf16.mxu0 %v7353_v57  ;;  %v5697_v49 = vcombine.low %v36_v47, %v36_v47  ;;  %v5698_v50 = vcombine.high %v36_v47, %v36_v47  ;;  %v7399_v55 = vld [vmem:[%s9179_s1 + $0xd00] sm:$0xff]   ;;  %v7401_v57 = vld [vmem:[%s9179_s1 + $0xd48] sm:$0xff]   ;;  %v7441_v47 = vld [vmem:[%s9179_s1 + $0xe50] sm:$0xff]  }
 0x17e   :  { %6745 = vmatprep.subr.bf16.mxu1 %v7354_v58  ;;  %v7400_v56 = vld [vmem:[%s9179_s1 + $0xd80] sm:$0xff]   ;;  %v7402_v58 = vld [vmem:[%s9179_s1 + $0xdc8] sm:$0xff]  }
 0x180   :  { %6724 = vmatpush3.bf16.msra.mxu0 %v7355_v59  ;;  %v7403_v59 = vld [vmem:[%s9179_s1 + $0xd08] sm:$0xff]  }
 0x181   :  { %6746 = vmatpush3.bf16.msra.mxu1 %v7356_v60  ;;  %6753 = vmatprep.subr.bf16.mxu0 %v7361_v3  ;;  %v7404_v60 = vld [vmem:[%s9179_s1 + $0xd88] sm:$0xff]   ;;  %v7411_v3 = vld [vmem:[%s9179_s1 + $0xd18] sm:$0xff]  }
 0x182   :  { %6775 = vmatprep.subr.bf16.mxu1 %v7362_v4  ;;  %v7412_v4 = vld [vmem:[%s9179_s1 + $0xd98] sm:$0xff]  }
 0x183   :  { %5277 = vmatmul.mubr.bf16.vlgmr.msra.gmra.mrb[44].mxu0 %v5693_v63  ;;  %v7407_v63 = vld [vmem:[%s9179_s1 + $0xd10] sm:$0xff]  }
 0x184   :  { %5317 = vmatmul.mubr.bf16.vlgmr.msra.gmra.mrb[44].mxu1 %v5695_v1  ;;  %6754 = vmatpush3.bf16.msra.mxu0 %v7363_v5  ;;  %v7409_v1 = vld [vmem:[%s9179_s1 + $0xd58] sm:$0xff]   ;;  %v7413_v5 = vld [vmem:[%s9179_s1 + $0xd60] sm:$0xff]  }
 0x185   :  { %6776 = vmatpush3.bf16.msra.mxu1 %v7364_v6  ;;  %6755 = vmatprep.subr.bf16.mxu0 %v7365_v7  ;;  %v7414_v6 = vld [vmem:[%s9179_s1 + $0xde0] sm:$0xff]  }
 0x186   :  { %6777 = vmatprep.subr.bf16.mxu1 %v7366_v8  ;;  %5356 = vmatprep.mubr.bf16.mxu0 %v5698_v50  ;;  %v7415_v8 = vld [vmem:[%s9179_s1 + $0xd20] sm:$0xff]   ;;  %v7444_v50 = vld [vmem:[%s9179_s1 + $0xe90] sm:$0xff]  }
 0x187   :  { %5396 = vmatprep.mubr.bf16.mxu1 %v5700_v53  ;;  %v7447_v53 = vld [vmem:[%s9179_s1 + $0xe18] sm:$0xff]  }
 0x188   :  { %6756 = vmatpush3.bf16.msra.mxu0 %v7367_v9 }
 0x189   :  { %6778 = vmatpush3.bf16.msra.mxu1 %v7368_v10  ;;  %6757 = vmatprep.subr.bf16.mxu0 %v7369_v11  ;;  %v7416_v10 = vld [vmem:[%s9179_s1 + $0xda0] sm:$0xff]  }
 0x18a   :  { %6779 = vmatprep.subr.bf16.mxu1 %v7370_v12 }
 0x18c   :  { %6758 = vmatpush3.bf16.msra.mxu0 %v7371_v13  ;;  %v7417_v13 = vld [vmem:[%s9179_s1 + $0xd68] sm:$0xff]  }
 0x18d   :  { %6780 = vmatpush3.bf16.msra.mxu1 %v7372_v14  ;;  %6759 = vmatprep.subr.bf16.mxu0 %v7373_v15 }
 0x18e   :  { %6781 = vmatprep.subr.bf16.mxu1 %v7374_v16  ;;  %v7418_v16 = vld [vmem:[%s9179_s1 + $0xde8] sm:$0xff]  }
 0x190   :  { %6760 = vmatpush3.bf16.msra.mxu0 %v7375_v17 }
 0x191   :  { %6782 = vmatpush3.bf16.msra.mxu1 %v7376_v18  ;;  %6761 = vmatprep.subr.bf16.mxu0 %v7377_v19  ;;  %v7419_v19 = vld [vmem:[%s9179_s1 + $0xd28] sm:$0xff]  }
 0x192   :  { %6783 = vmatprep.subr.bf16.mxu1 %v7378_v20 }
 0x194   :  { %6762 = vmatpush3.bf16.msra.mxu0 %v7379_v22 }
 0x195   :  { %6784 = vmatpush3.bf16.msra.mxu1 %v7380_v24  ;;  %6763 = vmatprep.subr.bf16.mxu0 %v7381_v28  ;;  %v7421_v24 = vld [vmem:[%s9179_s1 + $0xd70] sm:$0xff]  }
 0x196   :  { %v6461_v21 = vpop.f32.mrb[20].mxu0  ;;  %6785 = vmatprep.subr.bf16.mxu1 %v7382_v30  ;;  %v7424_v28 = vld [vmem:[%s9179_s1 + $0xdb0] sm:$0xff]   ;;  %v7426_v30 = vld [vmem:[%s9179_s1 + $0xdf8] sm:$0xff]  }
 0x197   :  { %v6483_v23 = vpop.f32.mrb[20].mxu1  ;;  %v6462_v25 = vpop.f32.mrb[21].mxu0 }
 0x198   :  { %v6463_v26 = vadd.f32 %v6462_v25, %v6461_v21  ;;  %v6484_v27 = vpop.f32.mrb[21].mxu1  ;;  %v6464_v31 = vpop.f32.mrb[22].mxu0  ;;  %6764 = vmatpush3.bf16.msra.mxu0 %v7383_v34  ;;  %v7420_v21 = vld [vmem:[%s9179_s1 + $0xda8] sm:$0xff]  }
 0x199   :  { %v6485_v29 = vadd.f32 %v6484_v27, %v6483_v23  ;;  %v6486_v33 = vpop.f32.mrb[22].mxu1  ;;  %v6465_v36 = vpop.f32.mrb[23].mxu0  ;;  %6786 = vmatpush3.bf16.msra.mxu1 %v7384_v35  ;;  %6765 = vmatprep.subr.bf16.mxu0 %v7385_v39  ;;  %v7423_v27 = vld [vmem:[%s9179_s1 + $0xd30] sm:$0xff]   ;;  %v7427_v31 = vld [vmem:[%s9179_s1 + $0xd38] sm:$0xff]   ;;  %v7433_v39 = vld [vmem:[%s9179_s1 + $0xe40] sm:$0xff]  }
 0x19a   :  { %v4799_v32 = vadd.f32 %v6463_v26, %v8726_v52  ;;  %v6487_v38 = vpop.f32.mrb[23].mxu1  ;;  %6787 = vmatprep.subr.bf16.mxu1 %v7386_v40  ;;  %v7397_v52 = vld [vmem:[%s9179_s1 + $0xd40] sm:$0xff]   ;;  %v7422_v26 = vld [vmem:[%s9179_s1 + $0xdf0] sm:$0xff]   ;;  %v39_v36 = vld [vmem:[%s9180_s0 + $0xd8] sm:$0xff] }
 0x19b   :  { %v38_v33 = vld [vmem:[%s9180_s0 + $0xd0] sm:$0xff]  ;;  %v5704_v38 = vcombine.high %v39_v36, %v39_v36  ;;  %v7434_v40 = vld [vmem:[%s9179_s1 + $0xec0] sm:$0xff]  }
 0x19c   :  { %v8831_v37 = vadd.f32 %v6485_v29, %v4799_v32  ;;  %6766 = vmatpush3.bf16.msra.mxu0 %v7387_v41  ;;  %v7425_v29 = vld [vmem:[%s9179_s1 + $0xd78] sm:$0xff]   ;;  %v5701_v34 = vcombine.low %v38_v33, %v38_v33  ;;  %v5702_v35 = vcombine.high %v38_v33, %v38_v33  ;;  %v7435_v41 = vld [vmem:[%s9179_s1 + $0xe00] sm:$0xff]   ;;  %v7477_v33 = vld [vmem:[%s9179_s1 + $0xf50] sm:$0xff]  }
 0x19d   :  { %6788 = vmatpush3.bf16.msra.mxu1 %v7388_v42  ;;  %6767 = vmatprep.subr.bf16.mxu0 %v7389_v43  ;;  %v7428_v32 = vld [vmem:[%s9179_s1 + $0xdb8] sm:$0xff]   ;;  %v7436_v42 = vld [vmem:[%s9179_s1 + $0xe80] sm:$0xff]   ;;  %v7437_v43 = vld [vmem:[%s9179_s1 + $0xe48] sm:$0xff]  }
 0x19e   :  { %6789 = vmatprep.subr.bf16.mxu1 %v7390_v44  ;;  %v7438_v44 = vld [vmem:[%s9179_s1 + $0xec8] sm:$0xff]  }
 0x1a0   :  { %6768 = vmatpush3.bf16.msra.mxu0 %v7391_v45  ;;  %v7439_v45 = vld [vmem:[%s9179_s1 + $0xe08] sm:$0xff]  }
 0x1a1   :  { %6790 = vmatpush3.bf16.msra.mxu1 %v7392_v46  ;;  %6797 = vmatprep.subr.bf16.mxu0 %v7397_v52  ;;  %v7440_v46 = vld [vmem:[%s9179_s1 + $0xe88] sm:$0xff]   ;;  %v7446_v52 = vld [vmem:[%s9179_s1 + $0xed8] sm:$0xff]  }
 0x1a2   :  { %6819 = vmatprep.subr.bf16.mxu1 %v7398_v54  ;;  %v7448_v54 = vld [vmem:[%s9179_s1 + $0xe98] sm:$0xff]  }
 0x1a3   :  { %5357 = vmatmul.mubr.bf16.vlgmr.msra.gmra.mrb[48].mxu0 %v5697_v49  ;;  %v7443_v49 = vld [vmem:[%s9179_s1 + $0xe10] sm:$0xff]  }
 0x1a4   :  { %5397 = vmatmul.mubr.bf16.vlgmr.msra.gmra.mrb[48].mxu1 %v5699_v51  ;;  %6798 = vmatpush3.bf16.msra.mxu0 %v7399_v55  ;;  %v7445_v51 = vld [vmem:[%s9179_s1 + $0xe58] sm:$0xff]   ;;  %v7449_v55 = vld [vmem:[%s9179_s1 + $0xe60] sm:$0xff]  }
 0x1a5   :  { %6820 = vmatpush3.bf16.msra.mxu1 %v7400_v56  ;;  %6799 = vmatprep.subr.bf16.mxu0 %v7401_v57  ;;  %v7450_v56 = vld [vmem:[%s9179_s1 + $0xee0] sm:$0xff]  }
 0x1a6   :  { %6821 = vmatprep.subr.bf16.mxu1 %v7402_v58  ;;  %5436 = vmatprep.mubr.bf16.mxu0 %v5702_v35  ;;  %v7451_v58 = vld [vmem:[%s9179_s1 + $0xe20] sm:$0xff]   ;;  %v7479_v35 = vld [vmem:[%s9179_s1 + $0xf10] sm:$0xff]  }
 0x1a7   :  { %5476 = vmatprep.mubr.bf16.mxu1 %v5704_v38  ;;  %v7482_v38 = vld [vmem:[%s9179_s1 + $0xfd8] sm:$0xff]  }
 0x1a8   :  { %6800 = vmatpush3.bf16.msra.mxu0 %v7403_v59 }
 0x1a9   :  { %6822 = vmatpush3.bf16.msra.mxu1 %v7404_v60  ;;  %6801 = vmatprep.subr.bf16.mxu0 %v7405_v61  ;;  %v7452_v60 = vld [vmem:[%s9179_s1 + $0xea0] sm:$0xff]  }
 0x1aa   :  { %6823 = vmatprep.subr.bf16.mxu1 %v7406_v62 }
 0x1ac   :  { %6802 = vmatpush3.bf16.msra.mxu0 %v7407_v63  ;;  %v7453_v63 = vld [vmem:[%s9179_s1 + $0xe68] sm:$0xff]  }
 0x1ad   :  { %6824 = vmatpush3.bf16.msra.mxu1 %v7408_v0  ;;  %6803 = vmatprep.subr.bf16.mxu0 %v7409_v1 }
 0x1ae   :  { %6825 = vmatprep.subr.bf16.mxu1 %v7410_v2  ;;  %v7454_v2 = vld [vmem:[%s9179_s1 + $0xee8] sm:$0xff]  }
 0x1b0   :  { %6804 = vmatpush3.bf16.msra.mxu0 %v7411_v3 }
 0x1b1   :  { %6826 = vmatpush3.bf16.msra.mxu1 %v7412_v4  ;;  %6805 = vmatprep.subr.bf16.mxu0 %v7413_v5  ;;  %v7455_v5 = vld [vmem:[%s9179_s1 + $0xe28] sm:$0xff]  }
 0x1b2   :  { %6827 = vmatprep.subr.bf16.mxu1 %v7414_v6 }
 0x1b4   :  { %6806 = vmatpush3.bf16.msra.mxu0 %v7415_v8 }
 0x1b5   :  { %6828 = vmatpush3.bf16.msra.mxu1 %v7416_v10  ;;  %6807 = vmatprep.subr.bf16.mxu0 %v7417_v13  ;;  %v7457_v10 = vld [vmem:[%s9179_s1 + $0xe70] sm:$0xff]  }
 0x1b6   :  { %v6505_v7 = vpop.f32.mrb[24].mxu0  ;;  %6829 = vmatprep.subr.bf16.mxu1 %v7418_v16  ;;  %v7459_v13 = vld [vmem:[%s9179_s1 + $0xe30] sm:$0xff]   ;;  %v7462_v16 = vld [vmem:[%s9179_s1 + $0xef8] sm:$0xff]  }
 0x1b7   :  { %v6527_v9 = vpop.f32.mrb[24].mxu1  ;;  %v6506_v11 = vpop.f32.mrb[25].mxu0 }
 0x1b8   :  { %v6528_v12 = vpop.f32.mrb[25].mxu1  ;;  %v6507_v14 = vadd.f32 %v6506_v11, %v6505_v7  ;;  %v6508_v17 = vpop.f32.mrb[26].mxu0  ;;  %6808 = vmatpush3.bf16.msra.mxu0 %v7419_v19  ;;  %v7456_v7 = vld [vmem:[%s9179_s1 + $0xea8] sm:$0xff]   ;;  %v40_v19 = vld [vmem:[%s9180_s0 + $0xe0] sm:$0xff] }
 0x1b9   :  { %v6529_v15 = vadd.f32 %v6528_v12, %v6527_v9  ;;  %v6530_v18 = vpop.f32.mrb[26].mxu1  ;;  %v6509_v22 = vpop.f32.mrb[27].mxu0  ;;  %6830 = vmatpush3.bf16.msra.mxu1 %v7420_v21  ;;  %6809 = vmatprep.subr.bf16.mxu0 %v7421_v24  ;;  %v7458_v12 = vld [vmem:[%s9179_s1 + $0xef0] sm:$0xff]   ;;  %v7463_v17 = vld [vmem:[%s9179_s1 + $0xe38] sm:$0xff]   ;;  %v5705_v21 = vcombine.low %v40_v19, %v40_v19 }
 0x1ba   :  { %v4879_v20 = vadd.f32 %v6507_v14, %v8831_v37  ;;  %v6531_v23 = vpop.f32.mrb[27].mxu1  ;;  %6831 = vmatprep.subr.bf16.mxu1 %v7422_v26  ;;  %v5703_v37 = vcombine.low %v39_v36, %v39_v36  ;;  %v7460_v14 = vld [vmem:[%s9179_s1 + $0xeb0] sm:$0xff]   ;;  %v7464_v18 = vld [vmem:[%s9179_s1 + $0xeb8] sm:$0xff]   ;;  %v5706_v22 = vcombine.high %v40_v19, %v40_v19  ;;  %v7470_v26 = vld [vmem:[%s9179_s1 + $0xfc0] sm:$0xff]  }
 0x1bb   :  { %v7480_v36 = vld [vmem:[%s9179_s1 + $0xf90] sm:$0xff]  }
 0x1bc   :  { %v8939_v25 = vadd.f32 %v6529_v15, %v4879_v20  ;;  %6810 = vmatpush3.bf16.msra.mxu0 %v7423_v27  ;;  %v7461_v15 = vld [vmem:[%s9179_s1 + $0xe78] sm:$0xff]   ;;  %v41_v20 = vld [vmem:[%s9180_s0 + $0xe8] sm:$0xff]  ;;  %v7471_v27 = vld [vmem:[%s9179_s1 + $0xf00] sm:$0xff]  }
 0x1bd   :  { %6832 = vmatpush3.bf16.msra.mxu1 %v7424_v28  ;;  %6811 = vmatprep.subr.bf16.mxu0 %v7425_v29  ;;  %v5707_v23 = vcombine.low %v41_v20, %v41_v20  ;;  %v5708_v24 = vcombine.high %v41_v20, %v41_v20  ;;  %v7472_v28 = vld [vmem:[%s9179_s1 + $0xf80] sm:$0xff]   ;;  %v7473_v29 = vld [vmem:[%s9179_s1 + $0xf48] sm:$0xff]  }
 0x1be   :  { %6833 = vmatprep.subr.bf16.mxu1 %v7426_v30  ;;  %v7474_v30 = vld [vmem:[%s9179_s1 + $0xfc8] sm:$0xff]  }
 0x1c0   :  { %6812 = vmatpush3.bf16.msra.mxu0 %v7427_v31  ;;  %v7475_v31 = vld [vmem:[%s9179_s1 + $0xf08] sm:$0xff]  }
 0x1c1   :  { %6834 = vmatpush3.bf16.msra.mxu1 %v7428_v32  ;;  %6841 = vmatprep.subr.bf16.mxu0 %v7433_v39  ;;  %v7476_v32 = vld [vmem:[%s9179_s1 + $0xf88] sm:$0xff]   ;;  %v7483_v39 = vld [vmem:[%s9179_s1 + $0xf18] sm:$0xff]  }
 0x1c2   :  { %6863 = vmatprep.subr.bf16.mxu1 %v7434_v40  ;;  %v7484_v40 = vld [vmem:[%s9179_s1 + $0xf98] sm:$0xff]  }
 0x1c3   :  { %5437 = vmatmul.mubr.bf16.vlgmr.msra.gmra.mrb[52].mxu0 %v5701_v34  ;;  %v7478_v34 = vld [vmem:[%s9179_s1 + $0xfd0] sm:$0xff]  }
 0x1c4   :  { %5477 = vmatmul.mubr.bf16.vlgmr.msra.gmra.mrb[52].mxu1 %v5703_v37  ;;  %6842 = vmatpush3.bf16.msra.mxu0 %v7435_v41  ;;  %v7481_v37 = vld [vmem:[%s9179_s1 + $0xf58] sm:$0xff]   ;;  %v7485_v41 = vld [vmem:[%s9179_s1 + $0xf60] sm:$0xff]  }
 0x1c5   :  { %6864 = vmatpush3.bf16.msra.mxu1 %v7436_v42  ;;  %6843 = vmatprep.subr.bf16.mxu0 %v7437_v43  ;;  %v7486_v42 = vld [vmem:[%s9179_s1 + $0xfe0] sm:$0xff]  }
 0x1c6   :  { %6865 = vmatprep.subr.bf16.mxu1 %v7438_v44  ;;  %5516 = vmatprep.mubr.bf16.mxu0 %v5706_v22  ;;  %v7487_v43 = vld [vmem:[%s9179_s1 + $0xf20] sm:$0xff]  }
 0x1c7   :  { %5556 = vmatprep.mubr.bf16.mxu1 %v5708_v24 }
 0x1c8   :  { %6844 = vmatpush3.bf16.msra.mxu0 %v7439_v45  ;;  %v7488_v45 = vld [vmem:[%s9179_s1 + $0xfa0] sm:$0xff]  }
 0x1c9   :  { %6866 = vmatpush3.bf16.msra.mxu1 %v7440_v46  ;;  %6845 = vmatprep.subr.bf16.mxu0 %v7441_v47 }
 0x1ca   :  { %6867 = vmatprep.subr.bf16.mxu1 %v7442_v48 }
 0x1cc   :  { %6846 = vmatpush3.bf16.msra.mxu0 %v7443_v49 }
 0x1cd   :  { %6868 = vmatpush3.bf16.msra.mxu1 %v7444_v50  ;;  %6847 = vmatprep.subr.bf16.mxu0 %v7445_v51  ;;  %v7489_v51 = vld [vmem:[%s9179_s1 + $0xf68] sm:$0xff]  }
 0x1ce   :  { %6869 = vmatprep.subr.bf16.mxu1 %v7446_v52 }
 0x1d0   :  { %6848 = vmatpush3.bf16.msra.mxu0 %v7447_v53  ;;  %v7490_v53 = vld [vmem:[%s9179_s1 + $0xfe8] sm:$0xff]  }
 0x1d1   :  { %6870 = vmatpush3.bf16.msra.mxu1 %v7448_v54  ;;  %6849 = vmatprep.subr.bf16.mxu0 %v7449_v55 }
 0x1d2   :  { %6871 = vmatprep.subr.bf16.mxu1 %v7450_v56  ;;  %v7491_v56 = vld [vmem:[%s9179_s1 + $0xf28] sm:$0xff]  }
 0x1d4   :  { %6850 = vmatpush3.bf16.msra.mxu0 %v7451_v58  ;;  %v7492_v58 = vld [vmem:[%s9179_s1 + $0xfa8] sm:$0xff]  }
 0x1d5   :  { %6872 = vmatpush3.bf16.msra.mxu1 %v7452_v60  ;;  %6851 = vmatprep.subr.bf16.mxu0 %v7453_v63  ;;  %v7495_v63 = vld [vmem:[%s9179_s1 + $0xf30] sm:$0xff]  }
 0x1d6   :  { %v6549_v57 = vpop.f32.mrb[28].mxu0  ;;  %6873 = vmatprep.subr.bf16.mxu1 %v7454_v2  ;;  %v7498_v2 = vld [vmem:[%s9179_s1 + $0xff8] sm:$0xff]  }
 0x1d7   :  { %v6571_v59 = vpop.f32.mrb[28].mxu1  ;;  %v6550_v61 = vpop.f32.mrb[29].mxu0 }
 0x1d8   :  { %v6572_v62 = vpop.f32.mrb[29].mxu1  ;;  %v6551_v0 = vadd.f32 %v6550_v61, %v6549_v57  ;;  %v6552_v3 = vpop.f32.mrb[30].mxu0  ;;  %6852 = vmatpush3.bf16.msra.mxu0 %v7455_v5  ;;  %v7493_v61 = vld [vmem:[%s9179_s1 + $0xf70] sm:$0xff]  }
 0x1d9   :  { %v6573_v1 = vadd.f32 %v6572_v62, %v6571_v59  ;;  %v6574_v4 = vpop.f32.mrb[30].mxu1  ;;  %v6553_v8 = vpop.f32.mrb[31].mxu0  ;;  %6874 = vmatpush3.bf16.msra.mxu1 %v7456_v7  ;;  %6853 = vmatprep.subr.bf16.mxu0 %v7457_v10  ;;  %v7494_v62 = vld [vmem:[%s9179_s1 + $0xff0] sm:$0xff]   ;;  %v7499_v3 = vld [vmem:[%s9179_s1 + $0xf38] sm:$0xff]  }
 0x1da   :  { %v4959_v6 = vadd.f32 %v6551_v0, %v8939_v25  ;;  %v6575_v9 = vpop.f32.mrb[31].mxu1  ;;  %6875 = vmatprep.subr.bf16.mxu1 %v7458_v12  ;;  %v7469_v25 = vld [vmem:[%s9179_s1 + $0xf40] sm:$0xff]   ;;  %v7496_v0 = vld [vmem:[%s9179_s1 + $0xfb0] sm:$0xff]   ;;  %v7500_v4 = vld [vmem:[%s9179_s1 + $0xfb8] sm:$0xff]  }
 0x1db   :  { %v42_v5 = vld [vmem:[%s9180_s0 + $0xf0] sm:$0xff] }
 0x1dc   :  { %v9044_v11 = vadd.f32 %v6573_v1, %v4959_v6  ;;  %6854 = vmatpush3.bf16.msra.mxu0 %v7459_v13  ;;  %v7497_v1 = vld [vmem:[%s9179_s1 + $0xf78] sm:$0xff]   ;;  %v5709_v7 = vcombine.low %v42_v5, %v42_v5  ;;  %v5710_v8 = vcombine.high %v42_v5, %v42_v5 }
 0x1dd   :  { %6876 = vmatpush3.bf16.msra.mxu1 %v7460_v14  ;;  %6855 = vmatprep.subr.bf16.mxu0 %v7461_v15  ;;  %v43_v6 = vld [vmem:[%s9180_s0 + $0xf8] sm:$0xff] }
 0x1de   :  { %6877 = vmatprep.subr.bf16.mxu1 %v7462_v16  ;;  %v5711_v9 = vcombine.low %v43_v6, %v43_v6  ;;  %v5712_v10 = vcombine.high %v43_v6, %v43_v6 }
 0x1e0   :  { %6856 = vmatpush3.bf16.msra.mxu0 %v7463_v17 }
 0x1e1   :  { %6878 = vmatpush3.bf16.msra.mxu1 %v7464_v18  ;;  %6885 = vmatprep.subr.bf16.mxu0 %v7469_v25 }
 0x1e2   :  { %6907 = vmatprep.subr.bf16.mxu1 %v7470_v26 }
 0x1e3   :  { %5517 = vmatmul.mubr.bf16.vlgmr.msra.gmra.mrb[56].mxu0 %v5705_v21 }
 0x1e4   :  { %5557 = vmatmul.mubr.bf16.vlgmr.msra.gmra.mrb[56].mxu1 %v5707_v23  ;;  %6886 = vmatpush3.bf16.msra.mxu0 %v7471_v27 }
 0x1e5   :  { %6908 = vmatpush3.bf16.msra.mxu1 %v7472_v28  ;;  %6887 = vmatprep.subr.bf16.mxu0 %v7473_v29 }
 0x1e6   :  { %6909 = vmatprep.subr.bf16.mxu1 %v7474_v30  ;;  %5596 = vmatprep.mubr.bf16.mxu0 %v5710_v8 }
 0x1e7   :  { %5636 = vmatprep.mubr.bf16.mxu1 %v5712_v10 }
 0x1e8   :  { %6888 = vmatpush3.bf16.msra.mxu0 %v7475_v31 }
 0x1e9   :  { %6910 = vmatpush3.bf16.msra.mxu1 %v7476_v32  ;;  %6889 = vmatprep.subr.bf16.mxu0 %v7477_v33 }
 0x1ea   :  { %6911 = vmatprep.subr.bf16.mxu1 %v7478_v34 }
 0x1ec   :  { %6890 = vmatpush3.bf16.msra.mxu0 %v7479_v35 }
 0x1ed   :  { %6912 = vmatpush3.bf16.msra.mxu1 %v7480_v36  ;;  %6891 = vmatprep.subr.bf16.mxu0 %v7481_v37 }
 0x1ee   :  { %6913 = vmatprep.subr.bf16.mxu1 %v7482_v38 }
 0x1f0   :  { %6892 = vmatpush3.bf16.msra.mxu0 %v7483_v39 }
 0x1f1   :  { %6914 = vmatpush3.bf16.msra.mxu1 %v7484_v40  ;;  %6893 = vmatprep.subr.bf16.mxu0 %v7485_v41 }
 0x1f2   :  { %6915 = vmatprep.subr.bf16.mxu1 %v7486_v42 }
 0x1f4   :  { %6894 = vmatpush3.bf16.msra.mxu0 %v7487_v43 }
 0x1f5   :  { %6916 = vmatpush3.bf16.msra.mxu1 %v7488_v45  ;;  %6895 = vmatprep.subr.bf16.mxu0 %v7489_v51 }
 0x1f6   :  { %v6593_v44 = vpop.f32.mrb[32].mxu0  ;;  %6917 = vmatprep.subr.bf16.mxu1 %v7490_v53 }
 0x1f7   :  { %v6615_v46 = vpop.f32.mrb[32].mxu1  ;;  %v6594_v47 = vpop.f32.mrb[33].mxu0 }
 0x1f8   :  { %v6616_v48 = vpop.f32.mrb[33].mxu1  ;;  %v6595_v49 = vadd.f32 %v6594_v47, %v6593_v44  ;;  %v6596_v52 = vpop.f32.mrb[34].mxu0  ;;  %6896 = vmatpush3.bf16.msra.mxu0 %v7491_v56 }
 0x1f9   :  { %v6617_v50 = vadd.f32 %v6616_v48, %v6615_v46  ;;  %v6618_v54 = vpop.f32.mrb[34].mxu1  ;;  %v6597_v57 = vpop.f32.mrb[35].mxu0  ;;  %6918 = vmatpush3.bf16.msra.mxu1 %v7492_v58  ;;  %6897 = vmatprep.subr.bf16.mxu0 %v7493_v61 }
 0x1fa   :  { %v5039_v55 = vadd.f32 %v6595_v49, %v9044_v11  ;;  %v6619_v59 = vpop.f32.mrb[35].mxu1  ;;  %6919 = vmatprep.subr.bf16.mxu1 %v7494_v62 }
 0x1fc   :  { %v5079_v60 = vadd.f32 %v6617_v50, %v5039_v55  ;;  %6898 = vmatpush3.bf16.msra.mxu0 %v7495_v63 }
 0x1fd   :  { %6920 = vmatpush3.bf16.msra.mxu1 %v7496_v0  ;;  %6899 = vmatprep.subr.bf16.mxu0 %v7497_v1 }
 0x1fe   :  { %6921 = vmatprep.subr.bf16.mxu1 %v7498_v2 }
 0x200   :  { %6900 = vmatpush3.bf16.msra.mxu0 %v7499_v3 }
 0x201   :  { %6922 = vmatpush3.bf16.msra.mxu1 %v7500_v4 }
 0x203   :  { %5597 = vmatmul.mubr.bf16.vlgmr.msra.gmra.mrb[60].mxu0 %v5709_v7 }
 0x204   :  { %5637 = vmatmul.mubr.bf16.vlgmr.msra.gmra.mrb[60].mxu1 %v5711_v9 }
 0x216   :  { %v6637_v11 = vpop.f32.mrb[36].mxu0 }
 0x217   :  { %v6659_v12 = vpop.f32.mrb[36].mxu1  ;;  %v6638_v13 = vpop.f32.mrb[37].mxu0 }
 0x218   :  { %v6660_v14 = vpop.f32.mrb[37].mxu1  ;;  %v6639_v15 = vadd.f32 %v6638_v13, %v6637_v11  ;;  %v6640_v17 = vpop.f32.mrb[38].mxu0 }
 0x219   :  { %v6661_v16 = vadd.f32 %v6660_v14, %v6659_v12  ;;  %v6662_v18 = vpop.f32.mrb[38].mxu1  ;;  %v6641_v19 = vpop.f32.mrb[39].mxu0 }
 0x21a   :  { %v6663_v20 = vpop.f32.mrb[39].mxu1  ;;  %v5119_v21 = vadd.f32 %v6639_v15, %v5079_v60 }
 0x21c   :  { %v5159_v22 = vadd.f32 %v6661_v16, %v5119_v21 }
 0x236   :  { %v6681_v23 = vpop.f32.mrb[40].mxu0 }
 0x237   :  { %v6703_v24 = vpop.f32.mrb[40].mxu1  ;;  %v6682_v25 = vpop.f32.mrb[41].mxu0 }
 0x238   :  { %v6683_v26 = vadd.f32 %v6682_v25, %v6681_v23  ;;  %v6704_v27 = vpop.f32.mrb[41].mxu1  ;;  %v6684_v28 = vpop.f32.mrb[42].mxu0 }
 0x239   :  { %v6705_v29 = vadd.f32 %v6704_v27, %v6703_v24  ;;  %v6706_v30 = vpop.f32.mrb[42].mxu1  ;;  %v6685_v31 = vpop.f32.mrb[43].mxu0 }
 0x23a   :  { %v5199_v32 = vadd.f32 %v6683_v26, %v5159_v22  ;;  %v6707_v33 = vpop.f32.mrb[43].mxu1 }
 0x23c   :  { %v5239_v34 = vadd.f32 %v6705_v29, %v5199_v32 }
 0x256   :  { %v6725_v35 = vpop.f32.mrb[44].mxu0 }
 0x257   :  { %v6747_v36 = vpop.f32.mrb[44].mxu1  ;;  %v6726_v37 = vpop.f32.mrb[45].mxu0 }
 0x258   :  { %v6727_v38 = vadd.f32 %v6726_v37, %v6725_v35  ;;  %v6748_v39 = vpop.f32.mrb[45].mxu1  ;;  %v6728_v40 = vpop.f32.mrb[46].mxu0 }
 0x259   :  { %v6749_v41 = vadd.f32 %v6748_v39, %v6747_v36  ;;  %v6750_v42 = vpop.f32.mrb[46].mxu1  ;;  %v6729_v43 = vpop.f32.mrb[47].mxu0 }
 0x25a   :  { %v5279_v44 = vadd.f32 %v6727_v38, %v5239_v34  ;;  %v6751_v45 = vpop.f32.mrb[47].mxu1 }
 0x25c   :  { %v5319_v46 = vadd.f32 %v6749_v41, %v5279_v44 }
 0x276   :  { %v6769_v47 = vpop.f32.mrb[48].mxu0 }
 0x277   :  { %v6791_v48 = vpop.f32.mrb[48].mxu1  ;;  %v6770_v49 = vpop.f32.mrb[49].mxu0 }
 0x278   :  { %v6771_v50 = vadd.f32 %v6770_v49, %v6769_v47  ;;  %v6792_v51 = vpop.f32.mrb[49].mxu1  ;;  %v6772_v52 = vpop.f32.mrb[50].mxu0 }
 0x279   :  { %v6793_v53 = vadd.f32 %v6792_v51, %v6791_v48  ;;  %v6794_v54 = vpop.f32.mrb[50].mxu1  ;;  %v6773_v55 = vpop.f32.mrb[51].mxu0 }
 0x27a   :  { %v5359_v56 = vadd.f32 %v6771_v50, %v5319_v46  ;;  %v6795_v57 = vpop.f32.mrb[51].mxu1 }
 0x27c   :  { %v5399_v58 = vadd.f32 %v6793_v53, %v5359_v56 }
 0x296   :  { %v6813_v59 = vpop.f32.mrb[52].mxu0 }
 0x297   :  { %v6835_v60 = vpop.f32.mrb[52].mxu1  ;;  %v6814_v61 = vpop.f32.mrb[53].mxu0 }
 0x298   :  { %v6836_v62 = vpop.f32.mrb[53].mxu1  ;;  %v6815_v63 = vadd.f32 %v6814_v61, %v6813_v59  ;;  %v6816_v1 = vpop.f32.mrb[54].mxu0 }
 0x299   :  { %v6837_v0 = vadd.f32 %v6836_v62, %v6835_v60  ;;  %v6838_v2 = vpop.f32.mrb[54].mxu1  ;;  %v6817_v3 = vpop.f32.mrb[55].mxu0 }
 0x29a   :  { %v6839_v4 = vpop.f32.mrb[55].mxu1  ;;  %v5439_v5 = vadd.f32 %v6815_v63, %v5399_v58 }
 0x29c   :  { %v5479_v6 = vadd.f32 %v6837_v0, %v5439_v5 }
 0x2b6   :  { %v6857_v7 = vpop.f32.mrb[56].mxu0 }
 0x2b7   :  { %v6879_v8 = vpop.f32.mrb[56].mxu1  ;;  %v6858_v9 = vpop.f32.mrb[57].mxu0 }
 0x2b8   :  { %v6859_v10 = vadd.f32 %v6858_v9, %v6857_v7  ;;  %v6880_v11 = vpop.f32.mrb[57].mxu1  ;;  %v6860_v12 = vpop.f32.mrb[58].mxu0 }
 0x2b9   :  { %v6881_v13 = vadd.f32 %v6880_v11, %v6879_v8  ;;  %v6882_v14 = vpop.f32.mrb[58].mxu1  ;;  %v6861_v15 = vpop.f32.mrb[59].mxu0 }
 0x2ba   :  { %v5519_v16 = vadd.f32 %v6859_v10, %v5479_v6  ;;  %v6883_v17 = vpop.f32.mrb[59].mxu1 }
 0x2bc   :  { %v5559_v18 = vadd.f32 %v6881_v13, %v5519_v16 }
 0x2d6   :  { %v6901_v19 = vpop.f32.mrb[60].mxu0 }
 0x2d7   :  { %v6923_v20 = vpop.f32.mrb[60].mxu1  ;;  %v6902_v21 = vpop.f32.mrb[61].mxu0 }
 0x2d8   :  { %v6903_v22 = vadd.f32 %v6902_v21, %v6901_v19  ;;  %v6924_v23 = vpop.f32.mrb[61].mxu1  ;;  %v6904_v24 = vpop.f32.mrb[62].mxu0 }
 0x2d9   :  { %v6925_v25 = vadd.f32 %v6924_v23, %v6923_v20  ;;  %v6926_v26 = vpop.f32.mrb[62].mxu1  ;;  %v6905_v27 = vpop.f32.mrb[63].mxu0 }
 0x2da   :  { %v5599_v28 = vadd.f32 %v6903_v22, %v5559_v18  ;;  %v6927_v29 = vpop.f32.mrb[63].mxu1 }
 0x2dc   :  { %v5639_v30 = vadd.f32 %v6925_v25, %v5599_v28 }
 0x2de   :  { %5644 = vst [vmem:[%s9181_s2] sm:$0xff] %v5639_v30 }

</bundles_post_ra>
